<compile_context>
chip_gen: v7x
topology: tpu7x:2x2x1
jax: 0.10.0
libtpu: 0.0.40
codegen_flags: <defaults>
</compile_context>

<pallas_src>
import jax
import jax.numpy as jnp
from jax.experimental import pallas as pl
from jax.experimental.pallas import tpu as pltpu

EPS = 1e-5
LANE = 128


def _round_up(x, m):
    return (x + m - 1) // m * m


# --------------------------------------------------------------------------
# In-kernel helpers
# --------------------------------------------------------------------------
def _conv3x3_taps(xp_ref, w_ref, H, W, Cp):
    """3x3 conv on an already zero-padded (H+2, W+2, Cp) bf16 ref.

    Nine accumulated per-tap MXU matmuls into a single f32 accumulator
    (no im2col patch buffer / jnp.concatenate relayout).
    """
    acc = None
    for k in range(9):
        ky, kx = divmod(k, 3)
        tap = xp_ref[ky:ky + H, kx:kx + W, :].reshape(H * W, Cp)        # bf16
        part = jnp.dot(tap, w_ref[k], preferred_element_type=jnp.float32)
        acc = part if acc is None else acc + part
    return acc                                                          # (H*W, Cp) f32


def _store_stats(stats_ref, y, count):
    # Per-image partials for two-phase training-mode BN: sum and CENTERED
    # sum-of-squares (combined Chan-style in the glue -> no E[x^2]-E[x]^2
    # cancellation for large N*H*W).
    s = jnp.sum(y, axis=0, keepdims=True)
    m = s * (1.0 / count)
    d = y - m
    stats_ref[0:1, :] = s
    stats_ref[1:2, :] = jnp.sum(d * d, axis=0, keepdims=True)


# --------------------------------------------------------------------------
# Pass 1: conv1 (bf16 MXU, f32 accum) + per-image BN1 partial stats.
# Output is UNPADDED bf16 (no halo bytes, half the f32 bytes).
# --------------------------------------------------------------------------
def _conv1_kernel(xp_ref, w_ref, y1_ref, stats_ref):
    Hp, Wp, Cp = xp_ref.shape
    H, W = Hp - 2, Wp - 2
    acc = _conv3x3_taps(xp_ref, w_ref, H, W, Cp)
    _store_stats(stats_ref, acc, H * W)
    y1_ref[...] = acc.reshape(H, W, Cp).astype(y1_ref.dtype)


# --------------------------------------------------------------------------
# Pass 2: bn1 affine + relu, assemble zero-padded tile in VMEM scratch,
# conv2, per-image BN2 partial stats.
# --------------------------------------------------------------------------
def _conv2_kernel(y1_ref, scale_ref, shift_ref, w_ref, y2_ref, stats_ref,
                  zpad_ref):
    H, W, Cp = y1_ref.shape
    Hp, Wp = H + 2, W + 2
    bf16 = jnp.bfloat16
    # bn1 affine + relu in f32 (VPU), single cast for the MXU.
    z = jnp.maximum(y1_ref[...].astype(jnp.float32) * scale_ref[...]
                    + shift_ref[...], 0.0).astype(bf16)
    # Zero only the 1-px ring of the persistent padded scratch (4 strip
    # stores, redone every step so each megacore core's scratch is valid),
    # then store the interior once.  No iota mask, no full-block zero fill.
    zpad_ref[0:1, :, :] = jnp.zeros((1, Wp, Cp), bf16)
    zpad_ref[Hp - 1:Hp, :, :] = jnp.zeros((1, Wp, Cp), bf16)
    zpad_ref[:, 0:1, :] = jnp.zeros((Hp, 1, Cp), bf16)
    zpad_ref[:, Wp - 1:Wp, :] = jnp.zeros((Hp, 1, Cp), bf16)
    zpad_ref[1:1 + H, 1:1 + W, :] = z
    acc = _conv3x3_taps(zpad_ref, w_ref, H, W, Cp)
    _store_stats(stats_ref, acc, H * W)
    y2_ref[...] = acc.reshape(H, W, Cp)


# --------------------------------------------------------------------------
# Pass 3: bn2 affine + residual add + relu.
# --------------------------------------------------------------------------
def _finalize_kernel(y2_ref, xp_ref, scale_ref, shift_ref, o_ref):
    H, W, Cp = o_ref.shape
    # TODO(synk): feed an unpadded lane-dense residual block / fuse the final
    # layout here to drop the remaining ~7% padded-residual bytes.
    xres = xp_ref[1:1 + H, 1:1 + W, :].astype(jnp.float32)
    o_ref[...] = jnp.maximum(
        y2_ref[...] * scale_ref[...] + shift_ref[...] + xres, 0.0)


# --------------------------------------------------------------------------
# Wrapper
# --------------------------------------------------------------------------
def basic_block_forward(x_nchw, w1_oihw, g1, b1, w2_oihw, g2, b2):
    """BasicBlock forward.  x_nchw: (N, C, H, W) f32 -> (N, C, H, W) f32."""
    N, C, H, W = x_nchw.shape
    planes = w1_oihw.shape[0]
    assert planes == C, "stride=1 / downsample=None requires inplanes == planes"
    # TODO(synk): for C < 128 (v5e-sensitive) lane padding inflates MXU FLOPs;
    # acceptable while HBM-bound, revisit with W-folding if compute-bound.
    Cp = _round_up(C, LANE)
    f32, bf16 = jnp.float32, jnp.bfloat16

    # NCHW -> NHWC, pad channels to Cp and spatial by 1; store bf16 (halves
    # pass-1 input DMA; the MXU consumes bf16 anyway).
    x_nhwc = jnp.transpose(x_nchw, (0, 2, 3, 1)).astype(f32)
    x_pad = jnp.pad(x_nhwc, ((0, 0), (1, 1), (1, 1), (0, Cp - C))).astype(bf16)

    def tap_weights(w_oihw):
        # OIHW -> (ky*3+kx, Cin_p, Cout_p) bf16: one (Cp, Cp) matrix per tap.
        w = jnp.transpose(w_oihw, (2, 3, 1, 0)).astype(f32)       # (3,3,Cin,Cout)
        w = jnp.pad(w, ((0, 0), (0, 0),
                        (0, Cp - w.shape[2]), (0, Cp - w.shape[3])))
        return w.reshape(9, Cp, Cp).astype(bf16)

    w1t, w2t = tap_weights(w1_oihw), tap_weights(w2_oihw)

    def pad_param(v):
        return jnp.pad(v.astype(f32), (0, Cp - C))

    g1p, b1p, g2p, b2p = pad_param(g1), pad_param(b1), pad_param(g2), pad_param(b2)

    # VMEM budget: <= 3/4 of physical, capped at 96 MiB
    # (-> ~48 MiB on v7x's 64 MiB, 96 MiB on v5e/v6e's 128 MiB).
    try:
        vmem_cap = int(pltpu.get_tpu_info().vmem_capacity_bytes)
    except Exception:
        vmem_cap = 64 * 1024 * 1024
    cparams = pltpu.CompilerParams(
        dimension_semantics=("parallel",),      # v7x megacore splits the batch
        vmem_limit_bytes=int(min(vmem_cap * 3 // 4, 96 * 1024 * 1024)),
    )

    xpad_spec = pl.BlockSpec((None, H + 2, W + 2, Cp), lambda n: (n, 0, 0, 0))
    img_spec = pl.BlockSpec((None, H, W, Cp), lambda n: (n, 0, 0, 0))
    stats_spec = pl.BlockSpec((None, 2, Cp), lambda n: (n, 0, 0))
    w_spec = pl.BlockSpec((9, Cp, Cp), lambda n: (0, 0, 0))        # VMEM resident
    vec_spec = pl.BlockSpec((1, Cp), lambda n: (0, 0))             # VMEM resident

    # ---- pass 1: conv1 + bn1 partial stats ---------------------------------
    y1, stats1 = pl.pallas_call(
        _conv1_kernel,
        grid=(N,),
        in_specs=[xpad_spec, w_spec],
        out_specs=[img_spec, stats_spec],
        out_shape=(
            jax.ShapeDtypeStruct((N, H, W, Cp), bf16),    # unpadded, bf16
            jax.ShapeDtypeStruct((N, 2, Cp), f32),
        ),
        compiler_params=cparams,
    )(x_pad, w1t)

    # ---- glue: finalize training-mode batch stats (Chan-style combine) -----
    cnt_img = float(H * W)
    cnt = float(N * H * W)

    def bn_scale_shift(stats, gamma, beta):
        s = stats[:, 0, :]                        # per-image sums        (N, Cp)
        q = stats[:, 1, :]                        # per-image centered sumsq
        mean_i = s / cnt_img
        mean = jnp.sum(s, axis=0) / cnt
        var = (jnp.sum(q, axis=0)
               + cnt_img * jnp.sum((mean_i - mean) ** 2, axis=0)) / cnt
        inv = jax.lax.rsqrt(jnp.maximum(var, 0.0) + EPS)
        scale = gamma * inv
        shift = beta - mean * scale
        return scale.reshape(1, Cp), shift.reshape(1, Cp)

    scale1, shift1 = bn_scale_shift(stats1, g1p, b1p)

    # ---- pass 2: bn1 apply + relu + conv2 + bn2 partial stats ---------------
    # TODO(synk): y2 could also be stored bf16 (another ~2x on pass-2/3 bytes)
    # if ~2^-8 extra output rounding is acceptable.
    y2, stats2 = pl.pallas_call(
        _conv2_kernel,
        grid=(N,),
        in_specs=[img_spec, vec_spec, vec_spec, w_spec],
        out_specs=[img_spec, stats_spec],
        out_shape=(
            jax.ShapeDtypeStruct((N, H, W, Cp), f32),
            jax.ShapeDtypeStruct((N, 2, Cp), f32),
        ),
        scratch_shapes=[pltpu.VMEM((H + 2, W + 2, Cp), bf16)],
        compiler_params=cparams,
    )(y1, scale1, shift1, w2t)

    scale2, shift2 = bn_scale_shift(stats2, g2p, b2p)

    # ---- pass 3: bn2 apply + residual add + relu ----------------------------
    out_pad = pl.pallas_call(
        _finalize_kernel,
        grid=(N,),
        in_specs=[img_spec, xpad_spec, vec_spec, vec_spec],
        out_specs=img_spec,
        out_shape=jax.ShapeDtypeStruct((N, H, W, Cp), f32),
        compiler_params=cparams,
    )(y2, x_pad, scale2, shift2)

    out = out_pad[..., :C]                   # no-op when C is 128-aligned
    return jnp.transpose(out, (0, 3, 1, 2))  # NHWC -> NCHW


# --------------------------------------------------------------------------
# Pure-JAX reference (f32 XLA conv) for the correctness check.
# --------------------------------------------------------------------------
def _reference_basic_block(x_nchw, w1_oihw, g1, b1, w2_oihw, g2, b2):
    x = jnp.transpose(x_nchw, (0, 2, 3, 1)).astype(jnp.float32)
    w1 = jnp.transpose(w1_oihw, (2, 3, 1, 0)).astype(jnp.float32)
    w2 = jnp.transpose(w2_oihw, (2, 3, 1, 0)).astype(jnp.float32)

    def conv(x, w):
        return jax.lax.conv_general_dilated(
            x, w, window_strides=(1, 1), padding=((1, 1), (1, 1)),
            dimension_numbers=("NHWC", "HWIO", "NHWC"))

    def bn(y, g, b):
        m = jnp.mean(y, axis=(0, 1, 2), keepdims=True)
        v = jnp.mean((y - m) ** 2, axis=(0, 1, 2), keepdims=True)
        return (y - m) * jax.lax.rsqrt(v + EPS) * g + b

    out = jax.nn.relu(bn(conv(x, w1), g1, b1))
    out = bn(conv(out, w2), g2, b2)
    out = jax.nn.relu(out + x)
    return jnp.transpose(out, (0, 3, 1, 2))


if __name__ == "__main__":
    # Small deterministic setup: inplanes = planes = 4, 16x16 maps, batch 2.
    N, C, H, W = 2, 4, 16, 16
    planes = C

    key = jax.random.PRNGKey(0)
    kx, kw1, kw2, kg1, kb1, kg2, kb2 = jax.random.split(key, 7)

    x = jax.random.normal(kx, (N, C, H, W), jnp.float32)
    w1 = jax.random.normal(kw1, (planes, C, 3, 3), jnp.float32) * 0.1
    w2 = jax.random.normal(kw2, (planes, planes, 3, 3), jnp.float32) * 0.1
    g1 = 1.0 + 0.1 * jax.random.normal(kg1, (planes,), jnp.float32)
    b1 = 0.1 * jax.random.normal(kb1, (planes,), jnp.float32)
    g2 = 1.0 + 0.1 * jax.random.normal(kg2, (planes,), jnp.float32)
    b2 = 0.1 * jax.random.normal(kb2, (planes,), jnp.float32)

    fwd = jax.jit(basic_block_forward)
    out = jax.block_until_ready(fwd(x, w1, g1, b1, w2, g2, b2))
    ref = jax.block_until_ready(_reference_basic_block(x, w1, g1, b1, w2, g2, b2))

    assert out.shape == (N, C, H, W)
    err = float(jnp.max(jnp.abs(out - ref)))
    # bf16 MXU operands + bf16 storage of x / y1 (per perf feedback) vs the
    # all-f32 reference -> loose tolerance; BN stats / affine / residual math
    # stay f32 in the kernel.
    assert jnp.allclose(out, ref, rtol=5e-2, atol=7.5e-2), f"max abs err {err}"

    print("KERNEL_OK")
</pallas_src>

<mosaic_0001>
module attributes {stable_mosaic.version = 11 : i64} {
  func.func @_conv1_kernel(%arg0: i32, %arg1: memref<1x18x18x128xbf16, #tpu.memory_space<vmem>>, %arg2: memref<9x128x128xbf16, #tpu.memory_space<vmem>>, %arg3: memref<1x16x16x128xbf16, #tpu.memory_space<vmem>>, %arg4: memref<1x2x128xf32, #tpu.memory_space<vmem>>) attributes {dimension_semantics = [#tpu.dimension_semantics<parallel>], iteration_bounds = array<i64: 2>, scalar_prefetch = 0 : i64, scratch_operands = 0 : i64, tpu.core_type = #tpu.core_type<tc>, window_params = [{transform_indices = @transform_0, window_bounds = array<i64: 1, 18, 18, 128>}, {pipeline_mode = #tpu.pipeline_mode<synchronous>, transform_indices = @transform_1, window_bounds = array<i64: 9, 128, 128>}, {transform_indices = @transform_2, window_bounds = array<i64: 1, 16, 16, 128>}, {transform_indices = @transform_3, window_bounds = array<i64: 1, 2, 128>}]} {
    %c0 = arith.constant 0 : index
    %c0_0 = arith.constant 0 : index
    %c0_1 = arith.constant 0 : index
    %c0_2 = arith.constant 0 : index
    %0 = vector.load %arg1[%c0, %c0_0, %c0_1, %c0_2] : memref<1x18x18x128xbf16, #tpu.memory_space<vmem>>, vector<1x16x16x128xbf16>
    %1 = vector.shape_cast %0 : vector<1x16x16x128xbf16> to vector<16x16x128xbf16>
    %2 = vector.shape_cast %1 : vector<16x16x128xbf16> to vector<256x128xbf16>
    %c0_3 = arith.constant 0 : index
    %c0_4 = arith.constant 0 : index
    %c0_5 = arith.constant 0 : index
    %3 = vector.load %arg2[%c0_3, %c0_4, %c0_5] : memref<9x128x128xbf16, #tpu.memory_space<vmem>>, vector<1x128x128xbf16>
    %4 = vector.shape_cast %3 : vector<1x128x128xbf16> to vector<128x128xbf16>
    %cst = arith.constant dense<0.000000e+00> : vector<256x128xf32>
    %5 = tpu.matmul %2, %4, %cst {dimension_numbers = #tpu.dot_dimension_numbers<[1], [0], [0], [1], [0, 0, 1, 1], [], []>} : vector<256x128xbf16>, vector<128x128xbf16>, vector<256x128xf32> -> vector<256x128xf32>
    %c0_6 = arith.constant 0 : index
    %c0_7 = arith.constant 0 : index
    %c1 = arith.constant 1 : index
    %c0_8 = arith.constant 0 : index
    %6 = vector.load %arg1[%c0_6, %c0_7, %c1, %c0_8] : memref<1x18x18x128xbf16, #tpu.memory_space<vmem>>, vector<1x16x16x128xbf16>
    %7 = vector.shape_cast %6 : vector<1x16x16x128xbf16> to vector<16x16x128xbf16>
    %8 = vector.shape_cast %7 : vector<16x16x128xbf16> to vector<256x128xbf16>
    %c1_9 = arith.constant 1 : index
    %c0_10 = arith.constant 0 : index
    %c0_11 = arith.constant 0 : index
    %9 = vector.load %arg2[%c1_9, %c0_10, %c0_11] : memref<9x128x128xbf16, #tpu.memory_space<vmem>>, vector<1x128x128xbf16>
    %10 = vector.shape_cast %9 : vector<1x128x128xbf16> to vector<128x128xbf16>
    %cst_12 = arith.constant dense<0.000000e+00> : vector<256x128xf32>
    %11 = tpu.matmul %8, %10, %cst_12 {dimension_numbers = #tpu.dot_dimension_numbers<[1], [0], [0], [1], [0, 0, 1, 1], [], []>} : vector<256x128xbf16>, vector<128x128xbf16>, vector<256x128xf32> -> vector<256x128xf32>
    %12 = arith.addf %5, %11 : vector<256x128xf32>
    %c0_13 = arith.constant 0 : index
    %c0_14 = arith.constant 0 : index
    %c2 = arith.constant 2 : index
    %c0_15 = arith.constant 0 : index
    %13 = vector.load %arg1[%c0_13, %c0_14, %c2, %c0_15] : memref<1x18x18x128xbf16, #tpu.memory_space<vmem>>, vector<1x16x16x128xbf16>
    %14 = vector.shape_cast %13 : vector<1x16x16x128xbf16> to vector<16x16x128xbf16>
    %15 = vector.shape_cast %14 : vector<16x16x128xbf16> to vector<256x128xbf16>
    %c2_16 = arith.constant 2 : index
    %c0_17 = arith.constant 0 : index
    %c0_18 = arith.constant 0 : index
    %16 = vector.load %arg2[%c2_16, %c0_17, %c0_18] : memref<9x128x128xbf16, #tpu.memory_space<vmem>>, vector<1x128x128xbf16>
    %17 = vector.shape_cast %16 : vector<1x128x128xbf16> to vector<128x128xbf16>
    %cst_19 = arith.constant dense<0.000000e+00> : vector<256x128xf32>
    %18 = tpu.matmul %15, %17, %cst_19 {dimension_numbers = #tpu.dot_dimension_numbers<[1], [0], [0], [1], [0, 0, 1, 1], [], []>} : vector<256x128xbf16>, vector<128x128xbf16>, vector<256x128xf32> -> vector<256x128xf32>
    %19 = arith.addf %12, %18 : vector<256x128xf32>
    %c0_20 = arith.constant 0 : index
    %c1_21 = arith.constant 1 : index
    %c0_22 = arith.constant 0 : index
    %c0_23 = arith.constant 0 : index
    %20 = vector.load %arg1[%c0_20, %c1_21, %c0_22, %c0_23] : memref<1x18x18x128xbf16, #tpu.memory_space<vmem>>, vector<1x16x16x128xbf16>
    %21 = vector.shape_cast %20 : vector<1x16x16x128xbf16> to vector<16x16x128xbf16>
    %22 = vector.shape_cast %21 : vector<16x16x128xbf16> to vector<256x128xbf16>
    %c3 = arith.constant 3 : index
    %c0_24 = arith.constant 0 : index
    %c0_25 = arith.constant 0 : index
    %23 = vector.load %arg2[%c3, %c0_24, %c0_25] : memref<9x128x128xbf16, #tpu.memory_space<vmem>>, vector<1x128x128xbf16>
    %24 = vector.shape_cast %23 : vector<1x128x128xbf16> to vector<128x128xbf16>
    %cst_26 = arith.constant dense<0.000000e+00> : vector<256x128xf32>
    %25 = tpu.matmul %22, %24, %cst_26 {dimension_numbers = #tpu.dot_dimension_numbers<[1], [0], [0], [1], [0, 0, 1, 1], [], []>} : vector<256x128xbf16>, vector<128x128xbf16>, vector<256x128xf32> -> vector<256x128xf32>
    %26 = arith.addf %19, %25 : vector<256x128xf32>
    %c0_27 = arith.constant 0 : index
    %c1_28 = arith.constant 1 : index
    %c1_29 = arith.constant 1 : index
    %c0_30 = arith.constant 0 : index
    %27 = vector.load %arg1[%c0_27, %c1_28, %c1_29, %c0_30] : memref<1x18x18x128xbf16, #tpu.memory_space<vmem>>, vector<1x16x16x128xbf16>
    %28 = vector.shape_cast %27 : vector<1x16x16x128xbf16> to vector<16x16x128xbf16>
    %29 = vector.shape_cast %28 : vector<16x16x128xbf16> to vector<256x128xbf16>
    %c4 = arith.constant 4 : index
    %c0_31 = arith.constant 0 : index
    %c0_32 = arith.constant 0 : index
    %30 = vector.load %arg2[%c4, %c0_31, %c0_32] : memref<9x128x128xbf16, #tpu.memory_space<vmem>>, vector<1x128x128xbf16>
    %31 = vector.shape_cast %30 : vector<1x128x128xbf16> to vector<128x128xbf16>
    %cst_33 = arith.constant dense<0.000000e+00> : vector<256x128xf32>
    %32 = tpu.matmul %29, %31, %cst_33 {dimension_numbers = #tpu.dot_dimension_numbers<[1], [0], [0], [1], [0, 0, 1, 1], [], []>} : vector<256x128xbf16>, vector<128x128xbf16>, vector<256x128xf32> -> vector<256x128xf32>
    %33 = arith.addf %26, %32 : vector<256x128xf32>
    %c0_34 = arith.constant 0 : index
    %c1_35 = arith.constant 1 : index
    %c2_36 = arith.constant 2 : index
    %c0_37 = arith.constant 0 : index
    %34 = vector.load %arg1[%c0_34, %c1_35, %c2_36, %c0_37] : memref<1x18x18x128xbf16, #tpu.memory_space<vmem>>, vector<1x16x16x128xbf16>
    %35 = vector.shape_cast %34 : vector<1x16x16x128xbf16> to vector<16x16x128xbf16>
    %36 = vector.shape_cast %35 : vector<16x16x128xbf16> to vector<256x128xbf16>
    %c5 = arith.constant 5 : index
    %c0_38 = arith.constant 0 : index
    %c0_39 = arith.constant 0 : index
    %37 = vector.load %arg2[%c5, %c0_38, %c0_39] : memref<9x128x128xbf16, #tpu.memory_space<vmem>>, vector<1x128x128xbf16>
    %38 = vector.shape_cast %37 : vector<1x128x128xbf16> to vector<128x128xbf16>
    %cst_40 = arith.constant dense<0.000000e+00> : vector<256x128xf32>
    %39 = tpu.matmul %36, %38, %cst_40 {dimension_numbers = #tpu.dot_dimension_numbers<[1], [0], [0], [1], [0, 0, 1, 1], [], []>} : vector<256x128xbf16>, vector<128x128xbf16>, vector<256x128xf32> -> vector<256x128xf32>
    %40 = arith.addf %33, %39 : vector<256x128xf32>
    %c0_41 = arith.constant 0 : index
    %c2_42 = arith.constant 2 : index
    %c0_43 = arith.constant 0 : index
    %c0_44 = arith.constant 0 : index
    %41 = vector.load %arg1[%c0_41, %c2_42, %c0_43, %c0_44] : memref<1x18x18x128xbf16, #tpu.memory_space<vmem>>, vector<1x16x16x128xbf16>
    %42 = vector.shape_cast %41 : vector<1x16x16x128xbf16> to vector<16x16x128xbf16>
    %43 = vector.shape_cast %42 : vector<16x16x128xbf16> to vector<256x128xbf16>
    %c6 = arith.constant 6 : index
    %c0_45 = arith.constant 0 : index
    %c0_46 = arith.constant 0 : index
    %44 = vector.load %arg2[%c6, %c0_45, %c0_46] : memref<9x128x128xbf16, #tpu.memory_space<vmem>>, vector<1x128x128xbf16>
    %45 = vector.shape_cast %44 : vector<1x128x128xbf16> to vector<128x128xbf16>
    %cst_47 = arith.constant dense<0.000000e+00> : vector<256x128xf32>
    %46 = tpu.matmul %43, %45, %cst_47 {dimension_numbers = #tpu.dot_dimension_numbers<[1], [0], [0], [1], [0, 0, 1, 1], [], []>} : vector<256x128xbf16>, vector<128x128xbf16>, vector<256x128xf32> -> vector<256x128xf32>
    %47 = arith.addf %40, %46 : vector<256x128xf32>
    %c0_48 = arith.constant 0 : index
    %c2_49 = arith.constant 2 : index
    %c1_50 = arith.constant 1 : index
    %c0_51 = arith.constant 0 : index
    %48 = vector.load %arg1[%c0_48, %c2_49, %c1_50, %c0_51] : memref<1x18x18x128xbf16, #tpu.memory_space<vmem>>, vector<1x16x16x128xbf16>
    %49 = vector.shape_cast %48 : vector<1x16x16x128xbf16> to vector<16x16x128xbf16>
    %50 = vector.shape_cast %49 : vector<16x16x128xbf16> to vector<256x128xbf16>
    %c7 = arith.constant 7 : index
    %c0_52 = arith.constant 0 : index
    %c0_53 = arith.constant 0 : index
    %51 = vector.load %arg2[%c7, %c0_52, %c0_53] : memref<9x128x128xbf16, #tpu.memory_space<vmem>>, vector<1x128x128xbf16>
    %52 = vector.shape_cast %51 : vector<1x128x128xbf16> to vector<128x128xbf16>
    %cst_54 = arith.constant dense<0.000000e+00> : vector<256x128xf32>
    %53 = tpu.matmul %50, %52, %cst_54 {dimension_numbers = #tpu.dot_dimension_numbers<[1], [0], [0], [1], [0, 0, 1, 1], [], []>} : vector<256x128xbf16>, vector<128x128xbf16>, vector<256x128xf32> -> vector<256x128xf32>
    %54 = arith.addf %47, %53 : vector<256x128xf32>
    %c0_55 = arith.constant 0 : index
    %c2_56 = arith.constant 2 : index
    %c2_57 = arith.constant 2 : index
    %c0_58 = arith.constant 0 : index
    %55 = vector.load %arg1[%c0_55, %c2_56, %c2_57, %c0_58] : memref<1x18x18x128xbf16, #tpu.memory_space<vmem>>, vector<1x16x16x128xbf16>
    %56 = vector.shape_cast %55 : vector<1x16x16x128xbf16> to vector<16x16x128xbf16>
    %57 = vector.shape_cast %56 : vector<16x16x128xbf16> to vector<256x128xbf16>
    %c8 = arith.constant 8 : index
    %c0_59 = arith.constant 0 : index
    %c0_60 = arith.constant 0 : index
    %58 = vector.load %arg2[%c8, %c0_59, %c0_60] : memref<9x128x128xbf16, #tpu.memory_space<vmem>>, vector<1x128x128xbf16>
    %59 = vector.shape_cast %58 : vector<1x128x128xbf16> to vector<128x128xbf16>
    %cst_61 = arith.constant dense<0.000000e+00> : vector<256x128xf32>
    %60 = tpu.matmul %57, %59, %cst_61 {dimension_numbers = #tpu.dot_dimension_numbers<[1], [0], [0], [1], [0, 0, 1, 1], [], []>} : vector<256x128xbf16>, vector<128x128xbf16>, vector<256x128xf32> -> vector<256x128xf32>
    %61 = arith.addf %54, %60 : vector<256x128xf32>
    %cst_62 = arith.constant dense<0.000000e+00> : vector<128xf32>
    %62 = vector.multi_reduction <add>, %61, %cst_62 [0] : vector<256x128xf32> to vector<128xf32>
    %63 = vector.shape_cast %62 : vector<128xf32> to vector<1x128xf32>
    %cst_63 = arith.constant 3.906250e-03 : f32
    %64 = vector.broadcast %cst_63 : f32 to vector<1x128xf32>
    %65 = arith.mulf %63, %64 : vector<1x128xf32>
    %66 = vector.broadcast %65 : vector<1x128xf32> to vector<256x128xf32>
    %67 = arith.subf %61, %66 : vector<256x128xf32>
    %c0_64 = arith.constant 0 : index
    %c0_65 = arith.constant 0 : index
    %c0_66 = arith.constant 0 : index
    %68 = vector.load %arg4[%c0_64, %c0_65, %c0_66] : memref<1x2x128xf32, #tpu.memory_space<vmem>>, vector<1x1x128xf32>
    %69 = vector.shape_cast %68 : vector<1x1x128xf32> to vector<1x128xf32>
    %70 = vector.shape_cast %63 : vector<1x128xf32> to vector<1x1x128xf32>
    tpu.vector_store %arg4[%c0_64, %c0_65, %c0_66], %70 {strides = array<i32>} : memref<1x2x128xf32, #tpu.memory_space<vmem>>, vector<1x1x128xf32>,
    %71 = arith.mulf %67, %67 : vector<256x128xf32>
    %cst_67 = arith.constant dense<0.000000e+00> : vector<128xf32>
    %72 = vector.multi_reduction <add>, %71, %cst_67 [0] : vector<256x128xf32> to vector<128xf32>
    %73 = vector.shape_cast %72 : vector<128xf32> to vector<1x128xf32>
    %c0_68 = arith.constant 0 : index
    %c1_69 = arith.constant 1 : index
    %c0_70 = arith.constant 0 : index
    %74 = vector.load %arg4[%c0_68, %c1_69, %c0_70] : memref<1x2x128xf32, #tpu.memory_space<vmem>>, vector<1x1x128xf32>
    %75 = vector.shape_cast %74 : vector<1x1x128xf32> to vector<1x128xf32>
    %76 = vector.shape_cast %73 : vector<1x128xf32> to vector<1x1x128xf32>
    tpu.vector_store %arg4[%c0_68, %c1_69, %c0_70], %76 {strides = array<i32>} : memref<1x2x128xf32, #tpu.memory_space<vmem>>, vector<1x1x128xf32>,
    %77 = vector.shape_cast %61 : vector<256x128xf32> to vector<16x16x128xf32>
    %78 = arith.truncf %77 : vector<16x16x128xf32> to vector<16x16x128xbf16>
    %c0_71 = arith.constant 0 : index
    %c0_72 = arith.constant 0 : index
    %c0_73 = arith.constant 0 : index
    %c0_74 = arith.constant 0 : index
    %79 = vector.load %arg3[%c0_71, %c0_72, %c0_73, %c0_74] : memref<1x16x16x128xbf16, #tpu.memory_space<vmem>>, vector<1x16x16x128xbf16>
    %80 = vector.shape_cast %79 : vector<1x16x16x128xbf16> to vector<16x16x128xbf16>
    %81 = vector.shape_cast %78 : vector<16x16x128xbf16> to vector<1x16x16x128xbf16>
    tpu.vector_store %arg3[%c0_71, %c0_72, %c0_73, %c0_74], %81 {strides = array<i32>} : memref<1x16x16x128xbf16, #tpu.memory_space<vmem>>, vector<1x16x16x128xbf16>,
    return
  }
  func.func @transform_0(%arg0: i32) -> (i32, i32, i32, i32) {
    %c0_i32 = arith.constant 0 : i32
    %c0_i32_0 = arith.constant 0 : i32
    %c0_i32_1 = arith.constant 0 : i32
    %c0_i32_2 = arith.constant 0 : i32
    return %arg0, %c0_i32, %c0_i32_0, %c0_i32_1 : i32, i32, i32, i32
  }
  func.func @transform_1(%arg0: i32) -> (i32, i32, i32) {
    %c0_i32 = arith.constant 0 : i32
    %c0_i32_0 = arith.constant 0 : i32
    %c0_i32_1 = arith.constant 0 : i32
    %c0_i32_2 = arith.constant 0 : i32
    return %c0_i32, %c0_i32_0, %c0_i32_1 : i32, i32, i32
  }
  func.func @transform_2(%arg0: i32) -> (i32, i32, i32, i32) {
    %c0_i32 = arith.constant 0 : i32
    %c0_i32_0 = arith.constant 0 : i32
    %c0_i32_1 = arith.constant 0 : i32
    %c0_i32_2 = arith.constant 0 : i32
    return %arg0, %c0_i32, %c0_i32_0, %c0_i32_1 : i32, i32, i32, i32
  }
  func.func @transform_3(%arg0: i32) -> (i32, i32, i32) {
    %c0_i32 = arith.constant 0 : i32
    %c0_i32_0 = arith.constant 0 : i32
    %c0_i32_1 = arith.constant 0 : i32
    return %arg0, %c0_i32, %c0_i32_0 : i32, i32, i32
  }
}

module attributes {stable_mosaic.version = 11 : i64} {
  func.func @_finalize_kernel(%arg0: i32, %arg1: memref<1x16x16x128xf32, #tpu.memory_space<vmem>>, %arg2: memref<1x18x18x128xbf16, #tpu.memory_space<vmem>>, %arg3: memref<1x128xf32, #tpu.memory_space<vmem>>, %arg4: memref<1x128xf32, #tpu.memory_space<vmem>>, %arg5: memref<1x16x16x128xf32, #tpu.memory_space<vmem>>) attributes {dimension_semantics = [#tpu.dimension_semantics<parallel>], iteration_bounds = array<i64: 2>, scalar_prefetch = 0 : i64, scratch_operands = 0 : i64, tpu.core_type = #tpu.core_type<tc>, window_params = [{transform_indices = @transform_0, window_bounds = array<i64: 1, 16, 16, 128>}, {transform_indices = @transform_1, window_bounds = array<i64: 1, 18, 18, 128>}, {pipeline_mode = #tpu.pipeline_mode<synchronous>, transform_indices = @transform_2, window_bounds = array<i64: 1, 128>}, {pipeline_mode = #tpu.pipeline_mode<synchronous>, transform_indices = @transform_3, window_bounds = array<i64: 1, 128>}, {transform_indices = @transform_4, window_bounds = array<i64: 1, 16, 16, 128>}]} {
    %c0 = arith.constant 0 : index
    %c1 = arith.constant 1 : index
    %c1_0 = arith.constant 1 : index
    %c0_1 = arith.constant 0 : index
    %0 = vector.load %arg2[%c0, %c1, %c1_0, %c0_1] : memref<1x18x18x128xbf16, #tpu.memory_space<vmem>>, vector<1x16x16x128xbf16>
    %1 = vector.shape_cast %0 : vector<1x16x16x128xbf16> to vector<16x16x128xbf16>
    %2 = arith.extf %1 : vector<16x16x128xbf16> to vector<16x16x128xf32>
    %c0_2 = arith.constant 0 : index
    %c0_3 = arith.constant 0 : index
    %c0_4 = arith.constant 0 : index
    %c0_5 = arith.constant 0 : index
    %3 = vector.load %arg1[%c0_2, %c0_3, %c0_4, %c0_5] : memref<1x16x16x128xf32, #tpu.memory_space<vmem>>, vector<1x16x16x128xf32>
    %4 = vector.shape_cast %3 : vector<1x16x16x128xf32> to vector<16x16x128xf32>
    %c0_6 = arith.constant 0 : index
    %c0_7 = arith.constant 0 : index
    %5 = vector.load %arg3[%c0_6, %c0_7] : memref<1x128xf32, #tpu.memory_space<vmem>>, vector<1x128xf32>
    %6 = vector.shape_cast %5 : vector<1x128xf32> to vector<1x1x128xf32>
    %7 = vector.broadcast %6 : vector<1x1x128xf32> to vector<16x16x128xf32>
    %8 = arith.mulf %4, %7 : vector<16x16x128xf32>
    %c0_8 = arith.constant 0 : index
    %c0_9 = arith.constant 0 : index
    %9 = vector.load %arg4[%c0_8, %c0_9] : memref<1x128xf32, #tpu.memory_space<vmem>>, vector<1x128xf32>
    %10 = vector.shape_cast %9 : vector<1x128xf32> to vector<1x1x128xf32>
    %11 = vector.broadcast %10 : vector<1x1x128xf32> to vector<16x16x128xf32>
    %12 = arith.addf %8, %11 : vector<16x16x128xf32>
    %13 = arith.addf %12, %2 : vector<16x16x128xf32>
    %cst = arith.constant 0.000000e+00 : f32
    %14 = vector.broadcast %cst : f32 to vector<16x16x128xf32>
    %15 = arith.maximumf %13, %14 : vector<16x16x128xf32>
    %c0_10 = arith.constant 0 : index
    %c0_11 = arith.constant 0 : index
    %c0_12 = arith.constant 0 : index
    %c0_13 = arith.constant 0 : index
    %16 = vector.load %arg5[%c0_10, %c0_11, %c0_12, %c0_13] : memref<1x16x16x128xf32, #tpu.memory_space<vmem>>, vector<1x16x16x128xf32>
    %17 = vector.shape_cast %16 : vector<1x16x16x128xf32> to vector<16x16x128xf32>
    %18 = vector.shape_cast %15 : vector<16x16x128xf32> to vector<1x16x16x128xf32>
    tpu.vector_store %arg5[%c0_10, %c0_11, %c0_12, %c0_13], %18 {strides = array<i32>} : memref<1x16x16x128xf32, #tpu.memory_space<vmem>>, vector<1x16x16x128xf32>,
    return
  }
  func.func @transform_0(%arg0: i32) -> (i32, i32, i32, i32) {
    %c0_i32 = arith.constant 0 : i32
    %c0_i32_0 = arith.constant 0 : i32
    %c0_i32_1 = arith.constant 0 : i32
    %c0_i32_2 = arith.constant 0 : i32
    return %arg0, %c0_i32, %c0_i32_0, %c0_i32_1 : i32, i32, i32, i32
  }
  func.func @transform_1(%arg0: i32) -> (i32, i32, i32, i32) {
    %c0_i32 = arith.constant 0 : i32
    %c0_i32_0 = arith.constant 0 : i32
    %c0_i32_1 = arith.constant 0 : i32
    %c0_i32_2 = arith.constant 0 : i32
    return %arg0, %c0_i32, %c0_i32_0, %c0_i32_1 : i32, i32, i32, i32
  }
  func.func @transform_2(%arg0: i32) -> (i32, i32) {
    %c0_i32 = arith.constant 0 : i32
    %c0_i32_0 = arith.constant 0 : i32
    %c0_i32_1 = arith.constant 0 : i32
    return %c0_i32, %c0_i32_0 : i32, i32
  }
  func.func @transform_3(%arg0: i32) -> (i32, i32) {
    %c0_i32 = arith.constant 0 : i32
    %c0_i32_0 = arith.constant 0 : i32
    %c0_i32_1 = arith.constant 0 : i32
    return %c0_i32, %c0_i32_0 : i32, i32
  }
  func.func @transform_4(%arg0: i32) -> (i32, i32, i32, i32) {
    %c0_i32 = arith.constant 0 : i32
    %c0_i32_0 = arith.constant 0 : i32
    %c0_i32_1 = arith.constant 0 : i32
    %c0_i32_2 = arith.constant 0 : i32
    return %arg0, %c0_i32, %c0_i32_0, %c0_i32_1 : i32, i32, i32, i32
  }
}

module attributes {stable_mosaic.version = 11 : i64} {
  func.func @_conv2_kernel(%arg0: i32, %arg1: memref<1x16x16x128xbf16, #tpu.memory_space<vmem>>, %arg2: memref<1x128xf32, #tpu.memory_space<vmem>>, %arg3: memref<1x128xf32, #tpu.memory_space<vmem>>, %arg4: memref<9x128x128xbf16, #tpu.memory_space<vmem>>, %arg5: memref<1x16x16x128xf32, #tpu.memory_space<vmem>>, %arg6: memref<1x2x128xf32, #tpu.memory_space<vmem>>, %arg7: memref<18x18x128xbf16, #tpu.memory_space<vmem>>) attributes {dimension_semantics = [#tpu.dimension_semantics<parallel>], iteration_bounds = array<i64: 2>, scalar_prefetch = 0 : i64, scratch_operands = 1 : i64, tpu.core_type = #tpu.core_type<tc>, window_params = [{transform_indices = @transform_0, window_bounds = array<i64: 1, 16, 16, 128>}, {pipeline_mode = #tpu.pipeline_mode<synchronous>, transform_indices = @transform_1, window_bounds = array<i64: 1, 128>}, {pipeline_mode = #tpu.pipeline_mode<synchronous>, transform_indices = @transform_2, window_bounds = array<i64: 1, 128>}, {pipeline_mode = #tpu.pipeline_mode<synchronous>, transform_indices = @transform_3, window_bounds = array<i64: 9, 128, 128>}, {transform_indices = @transform_4, window_bounds = array<i64: 1, 16, 16, 128>}, {transform_indices = @transform_5, window_bounds = array<i64: 1, 2, 128>}]} {
    %c0 = arith.constant 0 : index
    %c0_0 = arith.constant 0 : index
    %c0_1 = arith.constant 0 : index
    %c0_2 = arith.constant 0 : index
    %0 = vector.load %arg1[%c0, %c0_0, %c0_1, %c0_2] : memref<1x16x16x128xbf16, #tpu.memory_space<vmem>>, vector<1x16x16x128xbf16>
    %1 = vector.shape_cast %0 : vector<1x16x16x128xbf16> to vector<16x16x128xbf16>
    %2 = arith.extf %1 : vector<16x16x128xbf16> to vector<16x16x128xf32>
    %c0_3 = arith.constant 0 : index
    %c0_4 = arith.constant 0 : index
    %3 = vector.load %arg2[%c0_3, %c0_4] : memref<1x128xf32, #tpu.memory_space<vmem>>, vector<1x128xf32>
    %4 = vector.shape_cast %3 : vector<1x128xf32> to vector<1x1x128xf32>
    %5 = vector.broadcast %4 : vector<1x1x128xf32> to vector<16x16x128xf32>
    %6 = arith.mulf %2, %5 : vector<16x16x128xf32>
    %c0_5 = arith.constant 0 : index
    %c0_6 = arith.constant 0 : index
    %7 = vector.load %arg3[%c0_5, %c0_6] : memref<1x128xf32, #tpu.memory_space<vmem>>, vector<1x128xf32>
    %8 = vector.shape_cast %7 : vector<1x128xf32> to vector<1x1x128xf32>
    %9 = vector.broadcast %8 : vector<1x1x128xf32> to vector<16x16x128xf32>
    %10 = arith.addf %6, %9 : vector<16x16x128xf32>
    %cst = arith.constant 0.000000e+00 : f32
    %11 = vector.broadcast %cst : f32 to vector<16x16x128xf32>
    %12 = arith.maximumf %10, %11 : vector<16x16x128xf32>
    %13 = arith.truncf %12 : vector<16x16x128xf32> to vector<16x16x128xbf16>
    %cst_7 = arith.constant 0.000000e+00 : bf16
    %14 = vector.broadcast %cst_7 : bf16 to vector<1x18x128xbf16>
    %c0_8 = arith.constant 0 : index
    %c0_9 = arith.constant 0 : index
    %c0_10 = arith.constant 0 : index
    %15 = vector.load %arg7[%c0_8, %c0_9, %c0_10] : memref<18x18x128xbf16, #tpu.memory_space<vmem>>, vector<1x18x128xbf16>
    tpu.vector_store %arg7[%c0_8, %c0_9, %c0_10], %14 {strides = array<i32>} : memref<18x18x128xbf16, #tpu.memory_space<vmem>>, vector<1x18x128xbf16>,
    %cst_11 = arith.constant 0.000000e+00 : bf16
    %16 = vector.broadcast %cst_11 : bf16 to vector<1x18x128xbf16>
    %c17 = arith.constant 17 : index
    %c0_12 = arith.constant 0 : index
    %c0_13 = arith.constant 0 : index
    %17 = vector.load %arg7[%c17, %c0_12, %c0_13] : memref<18x18x128xbf16, #tpu.memory_space<vmem>>, vector<1x18x128xbf16>
    tpu.vector_store %arg7[%c17, %c0_12, %c0_13], %16 {strides = array<i32>} : memref<18x18x128xbf16, #tpu.memory_space<vmem>>, vector<1x18x128xbf16>,
    %cst_14 = arith.constant 0.000000e+00 : bf16
    %18 = vector.broadcast %cst_14 : bf16 to vector<18x1x128xbf16>
    %c0_15 = arith.constant 0 : index
    %c0_16 = arith.constant 0 : index
    %c0_17 = arith.constant 0 : index
    %19 = vector.load %arg7[%c0_15, %c0_16, %c0_17] : memref<18x18x128xbf16, #tpu.memory_space<vmem>>, vector<18x1x128xbf16>
    tpu.vector_store %arg7[%c0_15, %c0_16, %c0_17], %18 {strides = array<i32>} : memref<18x18x128xbf16, #tpu.memory_space<vmem>>, vector<18x1x128xbf16>,
    %cst_18 = arith.constant 0.000000e+00 : bf16
    %20 = vector.broadcast %cst_18 : bf16 to vector<18x1x128xbf16>
    %c0_19 = arith.constant 0 : index
    %c17_20 = arith.constant 17 : index
    %c0_21 = arith.constant 0 : index
    %21 = vector.load %arg7[%c0_19, %c17_20, %c0_21] : memref<18x18x128xbf16, #tpu.memory_space<vmem>>, vector<18x1x128xbf16>
    tpu.vector_store %arg7[%c0_19, %c17_20, %c0_21], %20 {strides = array<i32>} : memref<18x18x128xbf16, #tpu.memory_space<vmem>>, vector<18x1x128xbf16>,
    %c1 = arith.constant 1 : index
    %c1_22 = arith.constant 1 : index
    %c0_23 = arith.constant 0 : index
    %22 = vector.load %arg7[%c1, %c1_22, %c0_23] : memref<18x18x128xbf16, #tpu.memory_space<vmem>>, vector<16x16x128xbf16>
    tpu.vector_store %arg7[%c1, %c1_22, %c0_23], %13 {strides = array<i32>} : memref<18x18x128xbf16, #tpu.memory_space<vmem>>, vector<16x16x128xbf16>,
    %c0_24 = arith.constant 0 : index
    %c0_25 = arith.constant 0 : index
    %c0_26 = arith.constant 0 : index
    %23 = vector.load %arg7[%c0_24, %c0_25, %c0_26] : memref<18x18x128xbf16, #tpu.memory_space<vmem>>, vector<16x16x128xbf16>
    %24 = vector.shape_cast %23 : vector<16x16x128xbf16> to vector<256x128xbf16>
    %c0_27 = arith.constant 0 : index
    %c0_28 = arith.constant 0 : index
    %c0_29 = arith.constant 0 : index
    %25 = vector.load %arg4[%c0_27, %c0_28, %c0_29] : memref<9x128x128xbf16, #tpu.memory_space<vmem>>, vector<1x128x128xbf16>
    %26 = vector.shape_cast %25 : vector<1x128x128xbf16> to vector<128x128xbf16>
    %cst_30 = arith.constant dense<0.000000e+00> : vector<256x128xf32>
    %27 = tpu.matmul %24, %26, %cst_30 {dimension_numbers = #tpu.dot_dimension_numbers<[1], [0], [0], [1], [0, 0, 1, 1], [], []>} : vector<256x128xbf16>, vector<128x128xbf16>, vector<256x128xf32> -> vector<256x128xf32>
    %c0_31 = arith.constant 0 : index
    %c1_32 = arith.constant 1 : index
    %c0_33 = arith.constant 0 : index
    %28 = vector.load %arg7[%c0_31, %c1_32, %c0_33] : memref<18x18x128xbf16, #tpu.memory_space<vmem>>, vector<16x16x128xbf16>
    %29 = vector.shape_cast %28 : vector<16x16x128xbf16> to vector<256x128xbf16>
    %c1_34 = arith.constant 1 : index
    %c0_35 = arith.constant 0 : index
    %c0_36 = arith.constant 0 : index
    %30 = vector.load %arg4[%c1_34, %c0_35, %c0_36] : memref<9x128x128xbf16, #tpu.memory_space<vmem>>, vector<1x128x128xbf16>
    %31 = vector.shape_cast %30 : vector<1x128x128xbf16> to vector<128x128xbf16>
    %cst_37 = arith.constant dense<0.000000e+00> : vector<256x128xf32>
    %32 = tpu.matmul %29, %31, %cst_37 {dimension_numbers = #tpu.dot_dimension_numbers<[1], [0], [0], [1], [0, 0, 1, 1], [], []>} : vector<256x128xbf16>, vector<128x128xbf16>, vector<256x128xf32> -> vector<256x128xf32>
    %33 = arith.addf %27, %32 : vector<256x128xf32>
    %c0_38 = arith.constant 0 : index
    %c2 = arith.constant 2 : index
    %c0_39 = arith.constant 0 : index
    %34 = vector.load %arg7[%c0_38, %c2, %c0_39] : memref<18x18x128xbf16, #tpu.memory_space<vmem>>, vector<16x16x128xbf16>
    %35 = vector.shape_cast %34 : vector<16x16x128xbf16> to vector<256x128xbf16>
    %c2_40 = arith.constant 2 : index
    %c0_41 = arith.constant 0 : index
    %c0_42 = arith.constant 0 : index
    %36 = vector.load %arg4[%c2_40, %c0_41, %c0_42] : memref<9x128x128xbf16, #tpu.memory_space<vmem>>, vector<1x128x128xbf16>
    %37 = vector.shape_cast %36 : vector<1x128x128xbf16> to vector<128x128xbf16>
    %cst_43 = arith.constant dense<0.000000e+00> : vector<256x128xf32>
    %38 = tpu.matmul %35, %37, %cst_43 {dimension_numbers = #tpu.dot_dimension_numbers<[1], [0], [0], [1], [0, 0, 1, 1], [], []>} : vector<256x128xbf16>, vector<128x128xbf16>, vector<256x128xf32> -> vector<256x128xf32>
    %39 = arith.addf %33, %38 : vector<256x128xf32>
    %c1_44 = arith.constant 1 : index
    %c0_45 = arith.constant 0 : index
    %c0_46 = arith.constant 0 : index
    %40 = vector.load %arg7[%c1_44, %c0_45, %c0_46] : memref<18x18x128xbf16, #tpu.memory_space<vmem>>, vector<16x16x128xbf16>
    %41 = vector.shape_cast %40 : vector<16x16x128xbf16> to vector<256x128xbf16>
    %c3 = arith.constant 3 : index
    %c0_47 = arith.constant 0 : index
    %c0_48 = arith.constant 0 : index
    %42 = vector.load %arg4[%c3, %c0_47, %c0_48] : memref<9x128x128xbf16, #tpu.memory_space<vmem>>, vector<1x128x128xbf16>
    %43 = vector.shape_cast %42 : vector<1x128x128xbf16> to vector<128x128xbf16>
    %cst_49 = arith.constant dense<0.000000e+00> : vector<256x128xf32>
    %44 = tpu.matmul %41, %43, %cst_49 {dimension_numbers = #tpu.dot_dimension_numbers<[1], [0], [0], [1], [0, 0, 1, 1], [], []>} : vector<256x128xbf16>, vector<128x128xbf16>, vector<256x128xf32> -> vector<256x128xf32>
    %45 = arith.addf %39, %44 : vector<256x128xf32>
    %c1_50 = arith.constant 1 : index
    %c1_51 = arith.constant 1 : index
    %c0_52 = arith.constant 0 : index
    %46 = vector.load %arg7[%c1_50, %c1_51, %c0_52] : memref<18x18x128xbf16, #tpu.memory_space<vmem>>, vector<16x16x128xbf16>
    %47 = vector.shape_cast %46 : vector<16x16x128xbf16> to vector<256x128xbf16>
    %c4 = arith.constant 4 : index
    %c0_53 = arith.constant 0 : index
    %c0_54 = arith.constant 0 : index
    %48 = vector.load %arg4[%c4, %c0_53, %c0_54] : memref<9x128x128xbf16, #tpu.memory_space<vmem>>, vector<1x128x128xbf16>
    %49 = vector.shape_cast %48 : vector<1x128x128xbf16> to vector<128x128xbf16>
    %cst_55 = arith.constant dense<0.000000e+00> : vector<256x128xf32>
    %50 = tpu.matmul %47, %49, %cst_55 {dimension_numbers = #tpu.dot_dimension_numbers<[1], [0], [0], [1], [0, 0, 1, 1], [], []>} : vector<256x128xbf16>, vector<128x128xbf16>, vector<256x128xf32> -> vector<256x128xf32>
    %51 = arith.addf %45, %50 : vector<256x128xf32>
    %c1_56 = arith.constant 1 : index
    %c2_57 = arith.constant 2 : index
    %c0_58 = arith.constant 0 : index
    %52 = vector.load %arg7[%c1_56, %c2_57, %c0_58] : memref<18x18x128xbf16, #tpu.memory_space<vmem>>, vector<16x16x128xbf16>
    %53 = vector.shape_cast %52 : vector<16x16x128xbf16> to vector<256x128xbf16>
    %c5 = arith.constant 5 : index
    %c0_59 = arith.constant 0 : index
    %c0_60 = arith.constant 0 : index
    %54 = vector.load %arg4[%c5, %c0_59, %c0_60] : memref<9x128x128xbf16, #tpu.memory_space<vmem>>, vector<1x128x128xbf16>
    %55 = vector.shape_cast %54 : vector<1x128x128xbf16> to vector<128x128xbf16>
    %cst_61 = arith.constant dense<0.000000e+00> : vector<256x128xf32>
    %56 = tpu.matmul %53, %55, %cst_61 {dimension_numbers = #tpu.dot_dimension_numbers<[1], [0], [0], [1], [0, 0, 1, 1], [], []>} : vector<256x128xbf16>, vector<128x128xbf16>, vector<256x128xf32> -> vector<256x128xf32>
    %57 = arith.addf %51, %56 : vector<256x128xf32>
    %c2_62 = arith.constant 2 : index
    %c0_63 = arith.constant 0 : index
    %c0_64 = arith.constant 0 : index
    %58 = vector.load %arg7[%c2_62, %c0_63, %c0_64] : memref<18x18x128xbf16, #tpu.memory_space<vmem>>, vector<16x16x128xbf16>
    %59 = vector.shape_cast %58 : vector<16x16x128xbf16> to vector<256x128xbf16>
    %c6 = arith.constant 6 : index
    %c0_65 = arith.constant 0 : index
    %c0_66 = arith.constant 0 : index
    %60 = vector.load %arg4[%c6, %c0_65, %c0_66] : memref<9x128x128xbf16, #tpu.memory_space<vmem>>, vector<1x128x128xbf16>
    %61 = vector.shape_cast %60 : vector<1x128x128xbf16> to vector<128x128xbf16>
    %cst_67 = arith.constant dense<0.000000e+00> : vector<256x128xf32>
    %62 = tpu.matmul %59, %61, %cst_67 {dimension_numbers = #tpu.dot_dimension_numbers<[1], [0], [0], [1], [0, 0, 1, 1], [], []>} : vector<256x128xbf16>, vector<128x128xbf16>, vector<256x128xf32> -> vector<256x128xf32>
    %63 = arith.addf %57, %62 : vector<256x128xf32>
    %c2_68 = arith.constant 2 : index
    %c1_69 = arith.constant 1 : index
    %c0_70 = arith.constant 0 : index
    %64 = vector.load %arg7[%c2_68, %c1_69, %c0_70] : memref<18x18x128xbf16, #tpu.memory_space<vmem>>, vector<16x16x128xbf16>
    %65 = vector.shape_cast %64 : vector<16x16x128xbf16> to vector<256x128xbf16>
    %c7 = arith.constant 7 : index
    %c0_71 = arith.constant 0 : index
    %c0_72 = arith.constant 0 : index
    %66 = vector.load %arg4[%c7, %c0_71, %c0_72] : memref<9x128x128xbf16, #tpu.memory_space<vmem>>, vector<1x128x128xbf16>
    %67 = vector.shape_cast %66 : vector<1x128x128xbf16> to vector<128x128xbf16>
    %cst_73 = arith.constant dense<0.000000e+00> : vector<256x128xf32>
    %68 = tpu.matmul %65, %67, %cst_73 {dimension_numbers = #tpu.dot_dimension_numbers<[1], [0], [0], [1], [0, 0, 1, 1], [], []>} : vector<256x128xbf16>, vector<128x128xbf16>, vector<256x128xf32> -> vector<256x128xf32>
    %69 = arith.addf %63, %68 : vector<256x128xf32>
    %c2_74 = arith.constant 2 : index
    %c2_75 = arith.constant 2 : index
    %c0_76 = arith.constant 0 : index
    %70 = vector.load %arg7[%c2_74, %c2_75, %c0_76] : memref<18x18x128xbf16, #tpu.memory_space<vmem>>, vector<16x16x128xbf16>
    %71 = vector.shape_cast %70 : vector<16x16x128xbf16> to vector<256x128xbf16>
    %c8 = arith.constant 8 : index
    %c0_77 = arith.constant 0 : index
    %c0_78 = arith.constant 0 : index
    %72 = vector.load %arg4[%c8, %c0_77, %c0_78] : memref<9x128x128xbf16, #tpu.memory_space<vmem>>, vector<1x128x128xbf16>
    %73 = vector.shape_cast %72 : vector<1x128x128xbf16> to vector<128x128xbf16>
    %cst_79 = arith.constant dense<0.000000e+00> : vector<256x128xf32>
    %74 = tpu.matmul %71, %73, %cst_79 {dimension_numbers = #tpu.dot_dimension_numbers<[1], [0], [0], [1], [0, 0, 1, 1], [], []>} : vector<256x128xbf16>, vector<128x128xbf16>, vector<256x128xf32> -> vector<256x128xf32>
    %75 = arith.addf %69, %74 : vector<256x128xf32>
    %cst_80 = arith.constant dense<0.000000e+00> : vector<128xf32>
    %76 = vector.multi_reduction <add>, %75, %cst_80 [0] : vector<256x128xf32> to vector<128xf32>
    %77 = vector.shape_cast %76 : vector<128xf32> to vector<1x128xf32>
    %cst_81 = arith.constant 3.906250e-03 : f32
    %78 = vector.broadcast %cst_81 : f32 to vector<1x128xf32>
    %79 = arith.mulf %77, %78 : vector<1x128xf32>
    %80 = vector.broadcast %79 : vector<1x128xf32> to vector<256x128xf32>
    %81 = arith.subf %75, %80 : vector<256x128xf32>
    %c0_82 = arith.constant 0 : index
    %c0_83 = arith.constant 0 : index
    %c0_84 = arith.constant 0 : index
    %82 = vector.load %arg6[%c0_82, %c0_83, %c0_84] : memref<1x2x128xf32, #tpu.memory_space<vmem>>, vector<1x1x128xf32>
    %83 = vector.shape_cast %82 : vector<1x1x128xf32> to vector<1x128xf32>
    %84 = vector.shape_cast %77 : vector<1x128xf32> to vector<1x1x128xf32>
    tpu.vector_store %arg6[%c0_82, %c0_83, %c0_84], %84 {strides = array<i32>} : memref<1x2x128xf32, #tpu.memory_space<vmem>>, vector<1x1x128xf32>,
    %85 = arith.mulf %81, %81 : vector<256x128xf32>
    %cst_85 = arith.constant dense<0.000000e+00> : vector<128xf32>
    %86 = vector.multi_reduction <add>, %85, %cst_85 [0] : vector<256x128xf32> to vector<128xf32>
    %87 = vector.shape_cast %86 : vector<128xf32> to vector<1x128xf32>
    %c0_86 = arith.constant 0 : index
    %c1_87 = arith.constant 1 : index
    %c0_88 = arith.constant 0 : index
    %88 = vector.load %arg6[%c0_86, %c1_87, %c0_88] : memref<1x2x128xf32, #tpu.memory_space<vmem>>, vector<1x1x128xf32>
    %89 = vector.shape_cast %88 : vector<1x1x128xf32> to vector<1x128xf32>
    %90 = vector.shape_cast %87 : vector<1x128xf32> to vector<1x1x128xf32>
    tpu.vector_store %arg6[%c0_86, %c1_87, %c0_88], %90 {strides = array<i32>} : memref<1x2x128xf32, #tpu.memory_space<vmem>>, vector<1x1x128xf32>,
    %91 = vector.shape_cast %75 : vector<256x128xf32> to vector<16x16x128xf32>
    %c0_89 = arith.constant 0 : index
    %c0_90 = arith.constant 0 : index
    %c0_91 = arith.constant 0 : index
    %c0_92 = arith.constant 0 : index
    %92 = vector.load %arg5[%c0_89, %c0_90, %c0_91, %c0_92] : memref<1x16x16x128xf32, #tpu.memory_space<vmem>>, vector<1x16x16x128xf32>
    %93 = vector.shape_cast %92 : vector<1x16x16x128xf32> to vector<16x16x128xf32>
    %94 = vector.shape_cast %91 : vector<16x16x128xf32> to vector<1x16x16x128xf32>
    tpu.vector_store %arg5[%c0_89, %c0_90, %c0_91, %c0_92], %94 {strides = array<i32>} : memref<1x16x16x128xf32, #tpu.memory_space<vmem>>, vector<1x16x16x128xf32>,
    return
  }
  func.func @transform_0(%arg0: i32) -> (i32, i32, i32, i32) {
    %c0_i32 = arith.constant 0 : i32
    %c0_i32_0 = arith.constant 0 : i32
    %c0_i32_1 = arith.constant 0 : i32
    %c0_i32_2 = arith.constant 0 : i32
    return %arg0, %c0_i32, %c0_i32_0, %c0_i32_1 : i32, i32, i32, i32
  }
  func.func @transform_1(%arg0: i32) -> (i32, i32) {
    %c0_i32 = arith.constant 0 : i32
    %c0_i32_0 = arith.constant 0 : i32
    %c0_i32_1 = arith.constant 0 : i32
    return %c0_i32, %c0_i32_0 : i32, i32
  }
  func.func @transform_2(%arg0: i32) -> (i32, i32) {
    %c0_i32 = arith.constant 0 : i32
    %c0_i32_0 = arith.constant 0 : i32
    %c0_i32_1 = arith.constant 0 : i32
    return %c0_i32, %c0_i32_0 : i32, i32
  }
  func.func @transform_3(%arg0: i32) -> (i32, i32, i32) {
    %c0_i32 = arith.constant 0 : i32
    %c0_i32_0 = arith.constant 0 : i32
    %c0_i32_1 = arith.constant 0 : i32
    %c0_i32_2 = arith.constant 0 : i32
    return %c0_i32, %c0_i32_0, %c0_i32_1 : i32, i32, i32
  }
  func.func @transform_4(%arg0: i32) -> (i32, i32, i32, i32) {
    %c0_i32 = arith.constant 0 : i32
    %c0_i32_0 = arith.constant 0 : i32
    %c0_i32_1 = arith.constant 0 : i32
    %c0_i32_2 = arith.constant 0 : i32
    return %arg0, %c0_i32, %c0_i32_0, %c0_i32_1 : i32, i32, i32, i32
  }
  func.func @transform_5(%arg0: i32) -> (i32, i32, i32) {
    %c0_i32 = arith.constant 0 : i32
    %c0_i32_0 = arith.constant 0 : i32
    %c0_i32_1 = arith.constant 0 : i32
    return %arg0, %c0_i32, %c0_i32_0 : i32, i32, i32
  }
}

</mosaic_0001>

<bundles_post_ra>
// kernel: basic_block_forward.5
= control target key start
LH: loop header
LB: loop body
LE: loop exit
PB: predicated region body
PF: predicated region fallthrough
CT: control target
= control target key end

     0   :  { %s895_s15 = smov 0   ;;  %s1131_s0 = inlined_call_operand.vmem [shape: f32[2,16,16,128], index: 0, kind: input, shape index: {}]   ;;  %s1132_s1 = inlined_call_operand.vmem [shape: bf16[2,18,18,128], index: 1, kind: input, shape index: {}]   ;;  %s1133_s2 = inlined_call_operand.vmem [shape: f32[1,128], index: 2, kind: input, shape index: {}]   ;;  %s1134_s3 = inlined_call_operand.vmem [shape: f32[1,128], index: 3, kind: input, shape index: {}]   ;;  %s1135_s4 = inlined_call_operand.vmem [shape: f32[2,16,16,128], index: 4, kind: output, shape index: {}]  }
   0x1 LB: > { %s749_s16 = sadd.s32 4294967295, %s868_s15   ;;  %p753_p0 = scmp.ge.s32.totalorder %s868_s15, 1  ;;  %s868_s15 = sphi %s895_s15, %s14_s15  }
   0x2   : > { %p172_p1 = scmp.lt.s32.totalorder %s868_s15, 3 }
   0x4   : > { %p173_p2 = pnand %p753_p0, %p172_p1 }
   0x5   : > { %p203_p3 = scmp.lt.s32.totalorder (!%p173_p2), %s749_s16, 1  ;;  %v910_v0 = vld [vmem:[%s1133_s2] ss:$0 sm:$0xff] (!%p173_p2)  ;;  %vm473_vm0 = vcmask (!%p173_p2), 1046528  }
   0x6   : > { %176 = sbr.rel (%p173_p2) target bundleno = 87 (0x57), region = 36  ;;  %v922_v1 = vld [vmem:[%s1134_s3] ss:$0 sm:$0xff] (!%p173_p2) }
   0xd   : > { %s1137_s16 = smov (!%p203_p3, %s749_s16), 1 }
   0xe   : > { %s811_s17 = sshll.u32 %s1137_s16, 8  ;;  %s853_s18 = smul.u32 216, %s1137_s16 }
   0xf   : > { %s917_s23 = scalar_lea.vmem %s1131_s0, %s811_s17  ;;  %s959_s5 = scalar_lea.vmem %s1135_s4, %s811_s17 }
  0x10   : > { %s927_s28 = scalar_lea.vmem %s1132_s1, %s853_s18  ;;  %v315_v2 = vld [vmem:[%s917_s23] sm:$0xff]  ;;  %v316_v3 = vld [vmem:[%s917_s23 + $0x8] sm:$0xff]  ;;  %v317_v4 = vld [vmem:[%s917_s23 + $0x10] sm:$0xff] }
  0x11   : > { %v759_v5 = vld [vmem:[%s927_s28 + $0xc] sm:$0xff]   ;;  %v354_v6 = vmul.f32 %v910_v0, %v315_v2  ;;  %v761_v7 = vld [vmem:[%s927_s28 + $0x14] sm:$0x1]  ;;  %v355_v8 = vmul.f32 %v910_v0, %v316_v3  ;;  %v845_v9 = vld [vmem:[%s927_s28 + $0x18] sm:$0xff]   ;;  %v356_v10 = vmul.f32 %v910_v0, %v317_v4 }
  0x12   : > { %v267_v11 = vunpack.c.l.bf16 %v759_v5  ;;  %v268_v12 = vunpack.c.h.bf16 %v759_v5  ;;  %v269_v13 = vunpack.c.l.bf16 %v761_v7  ;;  %v815_v14 = vunpack.c.l.bf16 %v845_v9  ;;  %v764_v15 = vld [vmem:[%s927_s28 + $0x20] sm:$0x1]  ;;  %v318_v16 = vld [vmem:[%s917_s23 + $0x18] sm:$0xff]  ;;  %v765_v17 = vld [vmem:[%s927_s28 + $0x24] sm:$0xff]  }
  0x13   : > { %v393_v18 = vadd.f32 %v922_v1, %v354_v6  ;;  %v394_v19 = vadd.f32 %v922_v1, %v355_v8  ;;  %v816_v20 = vunpack.c.h.bf16 %v845_v9  ;;  %v395_v21 = vadd.f32 %v922_v1, %v356_v10  ;;  %v319_v22 = vld [vmem:[%s917_s23 + $0x20] sm:$0xff]  ;;  %v767_v35 = vld [vmem:[%s927_s28 + $0x2c] sm:$0x1]  ;;  %v846_v41 = vld [vmem:[%s927_s28 + $0x30] sm:$0xff]  }
  0x14   : > { %v474_v23 = vrot.slane %v267_v11, 1  ;;  %v475_v24 = vrot.slane %v268_v12, 1  ;;  %v477_v25 = vrot.slane %v269_v13, 1  ;;  %v479_v26 = vrot.slane %v815_v14, 1  ;;  %v320_v40 = vld [vmem:[%s917_s23 + $0x28] sm:$0xff]  ;;  %v321_v50 = vld [vmem:[%s917_s23 + $0x30] sm:$0xff] }
  0x15   : > { %v480_v27 = vrot.slane %v816_v20, 1  ;;  %v272_v28 = vunpack.c.l.bf16 %v764_v15  ;;  %v357_v29 = vmul.f32 %v910_v0, %v318_v16  ;;  %v273_v30 = vunpack.c.l.bf16 %v765_v17  ;;  %v770_v55 = vld [vmem:[%s927_s28 + $0x38] sm:$0x1]  ;;  %v771_v3 = vld [vmem:[%s927_s28 + $0x3c] sm:$0xff]   ;;  %v773_v13 = vld [vmem:[%s927_s28 + $0x44] sm:$0x1] }
  0x16   : > { %v476_v31 = vsel %vm473_vm0, %v474_v23, %v475_v24  ;;  %v478_v32 = vsel %vm473_vm0, %v475_v24, %v477_v25  ;;  %v274_v33 = vunpack.c.h.bf16 %v765_v17  ;;  %v358_v34 = vmul.f32 %v910_v0, %v319_v22  ;;  %v322_v60 = vld [vmem:[%s917_s23 + $0x38] sm:$0xff]  ;;  %v323_v8 = vld [vmem:[%s917_s23 + $0x40] sm:$0xff]  ;;  %v847_v23 = vld [vmem:[%s927_s28 + $0x48] sm:$0xff]  }
  0x17   : > { %v586_v36 = vadd.f32 %v476_v31, %v393_v18  ;;  %v587_v37 = vadd.f32 %v478_v32, %v394_v19  ;;  %v481_v38 = vsel %vm473_vm0, %v479_v26, %v480_v27  ;;  %v396_v39 = vadd.f32 %v922_v1, %v357_v29  ;;  %v324_v18 = vld [vmem:[%s917_s23 + $0x48] sm:$0xff] }
  0x18   : > { %v588_v42 = vadd.f32 %v481_v38, %v395_v21  ;;  %v482_v43 = vrot.slane %v272_v28, 1  ;;  %v397_v44 = vadd.f32 %v922_v1, %v358_v34  ;;  %v484_v45 = vrot.slane %v273_v30, 1  ;;  %v325_v28 = vld [vmem:[%s917_s23 + $0x50] sm:$0xff]  ;;  %v326_v38 = vld [vmem:[%s917_s23 + $0x58] sm:$0xff] }
  0x19   : > { %v618_v46 = vmax.f32 %v586_v36, 0.0  ;;  %v619_v47 = vmax.f32 %v587_v37, 0.0  ;;  %v485_v48 = vrot.slane %v274_v33, 1  ;;  %v275_v49 = vunpack.c.l.bf16 %v767_v35  ;;  %v776_v33 = vld [vmem:[%s927_s28 + $0x50] sm:$0x1] }
  0x1a   : > { %v620_v51 = vmax.f32 %v588_v42, 0.0  ;;  %v483_v52 = vsel %vm473_vm0, %v480_v27, %v482_v43  ;;  %v359_v53 = vmul.f32 %v910_v0, %v320_v40  ;;  %v819_v54 = vunpack.c.l.bf16 %v846_v41  ;;  %v777_v43 = vld [vmem:[%s927_s28 + $0x54] sm:$0xff]  }
  0x1b   : > { %650 = vst [vmem:[%s959_s5] sm:$0xff] %v618_v46  ;;  %651 = vst [vmem:[%s959_s5 + $0x8] sm:$0xff] %v619_v47  ;;  %v589_v56 = vadd.f32 %v483_v52, %v396_v39  ;;  %v486_v57 = vsel %vm473_vm0, %v484_v45, %v485_v48  ;;  %v487_v58 = vrot.slane %v275_v49, 1  ;;  %v820_v59 = vunpack.c.h.bf16 %v846_v41 }
  0x1c   : > { %652 = vst [vmem:[%s959_s5 + $0x10] sm:$0xff] %v620_v51  ;;  %v590_v61 = vadd.f32 %v486_v57, %v397_v44  ;;  %v398_v62 = vadd.f32 %v922_v1, %v359_v53  ;;  %v360_v63 = vmul.f32 %v910_v0, %v321_v50  ;;  %v489_v2 = vrot.slane %v819_v54, 1  ;;  %v779_v53 = vld [vmem:[%s927_s28 + $0x5c] sm:$0x1] }
  0x1d   : > { %v621_v4 = vmax.f32 %v589_v56, 0.0  ;;  %v488_v5 = vsel %vm473_vm0, %v485_v48, %v487_v58  ;;  %v490_v6 = vrot.slane %v820_v59, 1  ;;  %v278_v7 = vunpack.c.l.bf16 %v770_v55  ;;  %v327_v48 = vld [vmem:[%s917_s23 + $0x60] sm:$0xff]  ;;  %v328_v58 = vld [vmem:[%s917_s23 + $0x68] sm:$0xff] }
  0x1e   : > { %v622_v9 = vmax.f32 %v590_v61, 0.0  ;;  %v591_v10 = vadd.f32 %v488_v5, %v398_v62  ;;  %v399_v11 = vadd.f32 %v922_v1, %v360_v63  ;;  %v361_v12 = vmul.f32 %v910_v0, %v322_v60  ;;  %v848_v63 = vld [vmem:[%s927_s28 + $0x60] sm:$0xff]  }
  0x1f   : > { %653 = vst [vmem:[%s959_s5 + $0x18] sm:$0xff] %v621_v4  ;;  %v491_v14 = vsel %vm473_vm0, %v489_v2, %v490_v6  ;;  %v492_v15 = vrot.slane %v278_v7, 1  ;;  %v279_v16 = vunpack.c.l.bf16 %v771_v3  ;;  %v280_v17 = vunpack.c.h.bf16 %v771_v3 }
  0x20   : > { %654 = vst [vmem:[%s959_s5 + $0x20] sm:$0xff] %v622_v9  ;;  %v623_v19 = vmax.f32 %v591_v10, 0.0  ;;  %v592_v20 = vadd.f32 %v491_v14, %v399_v11  ;;  %v400_v21 = vadd.f32 %v922_v1, %v361_v12  ;;  %v362_v22 = vmul.f32 %v910_v0, %v323_v8  ;;  %v782_v11 = vld [vmem:[%s927_s28 + $0x68] sm:$0x1] }
  0x21   : > { %v493_v24 = vsel %vm473_vm0, %v490_v6, %v492_v15  ;;  %v494_v25 = vrot.slane %v279_v16, 1  ;;  %v495_v26 = vrot.slane %v280_v17, 1  ;;  %v281_v27 = vunpack.c.l.bf16 %v773_v13  ;;  %v329_v6 = vld [vmem:[%s917_s23 + $0x70] sm:$0xff]  ;;  %v330_v16 = vld [vmem:[%s917_s23 + $0x78] sm:$0xff] }
  0x22   : > { %655 = vst [vmem:[%s959_s5 + $0x28] sm:$0xff] %v623_v19  ;;  %v624_v29 = vmax.f32 %v592_v20, 0.0  ;;  %v593_v30 = vadd.f32 %v493_v24, %v400_v21  ;;  %v401_v31 = vadd.f32 %v922_v1, %v362_v22  ;;  %v363_v32 = vmul.f32 %v910_v0, %v324_v18  ;;  %v783_v21 = vld [vmem:[%s927_s28 + $0x6c] sm:$0xff]  }
  0x23   : > { %v496_v34 = vsel %vm473_vm0, %v494_v25, %v495_v26  ;;  %v497_v35 = vrot.slane %v281_v27, 1  ;;  %v823_v36 = vunpack.c.l.bf16 %v847_v23  ;;  %v824_v37 = vunpack.c.h.bf16 %v847_v23 }
  0x24   : > { %656 = vst [vmem:[%s959_s5 + $0x30] sm:$0xff] %v624_v29  ;;  %v625_v39 = vmax.f32 %v593_v30, 0.0  ;;  %v594_v40 = vadd.f32 %v496_v34, %v401_v31  ;;  %v402_v41 = vadd.f32 %v922_v1, %v363_v32  ;;  %v364_v42 = vmul.f32 %v910_v0, %v325_v28  ;;  %v785_v31 = vld [vmem:[%s927_s28 + $0x74] sm:$0x1] }
  0x25   : > { %v498_v44 = vsel %vm473_vm0, %v495_v26, %v497_v35  ;;  %v499_v45 = vrot.slane %v823_v36, 1  ;;  %v500_v46 = vrot.slane %v824_v37, 1  ;;  %v284_v47 = vunpack.c.l.bf16 %v776_v33  ;;  %v331_v26 = vld [vmem:[%s917_s23 + $0x80] sm:$0xff]  ;;  %v332_v36 = vld [vmem:[%s917_s23 + $0x88] sm:$0xff] }
  0x26   : > { %657 = vst [vmem:[%s959_s5 + $0x38] sm:$0xff] %v625_v39  ;;  %v626_v49 = vmax.f32 %v594_v40, 0.0  ;;  %v595_v50 = vadd.f32 %v498_v44, %v402_v41  ;;  %v403_v51 = vadd.f32 %v922_v1, %v364_v42  ;;  %v365_v52 = vmul.f32 %v910_v0, %v326_v38  ;;  %v849_v41 = vld [vmem:[%s927_s28 + $0x78] sm:$0xff]  }
  0x27   : > { %v501_v54 = vsel %vm473_vm0, %v499_v45, %v500_v46  ;;  %v502_v55 = vrot.slane %v284_v47, 1  ;;  %v285_v56 = vunpack.c.l.bf16 %v777_v43  ;;  %v286_v57 = vunpack.c.h.bf16 %v777_v43 }
  0x28   : > { %658 = vst [vmem:[%s959_s5 + $0x40] sm:$0xff] %v626_v49  ;;  %v627_v59 = vmax.f32 %v595_v50, 0.0  ;;  %v596_v60 = vadd.f32 %v501_v54, %v403_v51  ;;  %v404_v61 = vadd.f32 %v922_v1, %v365_v52  ;;  %v366_v62 = vmul.f32 %v910_v0, %v327_v48  ;;  %v788_v51 = vld [vmem:[%s927_s28 + $0x80] sm:$0x1] }
  0x29   : > { %v503_v2 = vsel %vm473_vm0, %v500_v46, %v502_v55  ;;  %v504_v3 = vrot.slane %v285_v56, 1  ;;  %v505_v4 = vrot.slane %v286_v57, 1  ;;  %v287_v5 = vunpack.c.l.bf16 %v779_v53  ;;  %v333_v46 = vld [vmem:[%s917_s23 + $0x90] sm:$0xff]  ;;  %v334_v56 = vld [vmem:[%s917_s23 + $0x98] sm:$0xff] }
  0x2a   : > { %659 = vst [vmem:[%s959_s5 + $0x48] sm:$0xff] %v627_v59  ;;  %v628_v7 = vmax.f32 %v596_v60, 0.0  ;;  %v597_v8 = vadd.f32 %v503_v2, %v404_v61  ;;  %v405_v9 = vadd.f32 %v922_v1, %v366_v62  ;;  %v367_v10 = vmul.f32 %v910_v0, %v328_v58  ;;  %v789_v61 = vld [vmem:[%s927_s28 + $0x84] sm:$0xff]  }
  0x2b   : > { %v506_v12 = vsel %vm473_vm0, %v504_v3, %v505_v4  ;;  %v507_v13 = vrot.slane %v287_v5, 1  ;;  %v827_v14 = vunpack.c.l.bf16 %v848_v63  ;;  %v828_v15 = vunpack.c.h.bf16 %v848_v63 }
  0x2c   : > { %660 = vst [vmem:[%s959_s5 + $0x50] sm:$0xff] %v628_v7  ;;  %v629_v17 = vmax.f32 %v597_v8, 0.0  ;;  %v598_v18 = vadd.f32 %v506_v12, %v405_v9  ;;  %v406_v19 = vadd.f32 %v922_v1, %v367_v10  ;;  %v368_v20 = vmul.f32 %v910_v0, %v329_v6  ;;  %v791_v9 = vld [vmem:[%s927_s28 + $0x8c] sm:$0x1] }
  0x2d   : > { %v508_v22 = vsel %vm473_vm0, %v505_v4, %v507_v13  ;;  %v509_v23 = vrot.slane %v827_v14, 1  ;;  %v510_v24 = vrot.slane %v828_v15, 1  ;;  %v290_v25 = vunpack.c.l.bf16 %v782_v11  ;;  %v335_v4 = vld [vmem:[%s917_s23 + $0xa0] sm:$0xff]  ;;  %v336_v14 = vld [vmem:[%s917_s23 + $0xa8] sm:$0xff] }
  0x2e   : > { %661 = vst [vmem:[%s959_s5 + $0x58] sm:$0xff] %v629_v17  ;;  %v630_v27 = vmax.f32 %v598_v18, 0.0  ;;  %v599_v28 = vadd.f32 %v508_v22, %v406_v19  ;;  %v407_v29 = vadd.f32 %v922_v1, %v368_v20  ;;  %v369_v30 = vmul.f32 %v910_v0, %v330_v16  ;;  %v850_v19 = vld [vmem:[%s927_s28 + $0x90] sm:$0xff]  }
  0x2f   : > { %v511_v32 = vsel %vm473_vm0, %v509_v23, %v510_v24  ;;  %v512_v33 = vrot.slane %v290_v25, 1  ;;  %v291_v34 = vunpack.c.l.bf16 %v783_v21  ;;  %v292_v35 = vunpack.c.h.bf16 %v783_v21 }
  0x30   : > { %662 = vst [vmem:[%s959_s5 + $0x60] sm:$0xff] %v630_v27  ;;  %v631_v37 = vmax.f32 %v599_v28, 0.0  ;;  %v600_v38 = vadd.f32 %v511_v32, %v407_v29  ;;  %v408_v39 = vadd.f32 %v922_v1, %v369_v30  ;;  %v370_v40 = vmul.f32 %v910_v0, %v331_v26  ;;  %v794_v29 = vld [vmem:[%s927_s28 + $0x98] sm:$0x1] }
  0x31   : > { %v513_v42 = vsel %vm473_vm0, %v510_v24, %v512_v33  ;;  %v514_v43 = vrot.slane %v291_v34, 1  ;;  %v515_v44 = vrot.slane %v292_v35, 1  ;;  %v293_v45 = vunpack.c.l.bf16 %v785_v31  ;;  %v337_v24 = vld [vmem:[%s917_s23 + $0xb0] sm:$0xff]  ;;  %v338_v34 = vld [vmem:[%s917_s23 + $0xb8] sm:$0xff] }
  0x32   : > { %663 = vst [vmem:[%s959_s5 + $0x68] sm:$0xff] %v631_v37  ;;  %v632_v47 = vmax.f32 %v600_v38, 0.0  ;;  %v601_v48 = vadd.f32 %v513_v42, %v408_v39  ;;  %v409_v49 = vadd.f32 %v922_v1, %v370_v40  ;;  %v371_v50 = vmul.f32 %v910_v0, %v332_v36  ;;  %v795_v39 = vld [vmem:[%s927_s28 + $0x9c] sm:$0xff]  }
  0x33   : > { %v516_v52 = vsel %vm473_vm0, %v514_v43, %v515_v44  ;;  %v517_v53 = vrot.slane %v293_v45, 1  ;;  %v831_v54 = vunpack.c.l.bf16 %v849_v41  ;;  %v832_v55 = vunpack.c.h.bf16 %v849_v41 }
  0x34   : > { %664 = vst [vmem:[%s959_s5 + $0x70] sm:$0xff] %v632_v47  ;;  %v633_v57 = vmax.f32 %v601_v48, 0.0  ;;  %v602_v58 = vadd.f32 %v516_v52, %v409_v49  ;;  %v410_v59 = vadd.f32 %v922_v1, %v371_v50  ;;  %v372_v60 = vmul.f32 %v910_v0, %v333_v46  ;;  %v797_v49 = vld [vmem:[%s927_s28 + $0xa4] sm:$0x1] }
  0x35   : > { %v518_v62 = vsel %vm473_vm0, %v515_v44, %v517_v53  ;;  %v519_v63 = vrot.slane %v831_v54, 1  ;;  %v520_v2 = vrot.slane %v832_v55, 1  ;;  %v296_v3 = vunpack.c.l.bf16 %v788_v51  ;;  %v339_v44 = vld [vmem:[%s917_s23 + $0xc0] sm:$0xff]  ;;  %v340_v54 = vld [vmem:[%s917_s23 + $0xc8] sm:$0xff] }
  0x36   : > { %665 = vst [vmem:[%s959_s5 + $0x78] sm:$0xff] %v633_v57  ;;  %v634_v5 = vmax.f32 %v602_v58, 0.0  ;;  %v603_v6 = vadd.f32 %v518_v62, %v410_v59  ;;  %v411_v7 = vadd.f32 %v922_v1, %v372_v60  ;;  %v373_v8 = vmul.f32 %v910_v0, %v334_v56  ;;  %v851_v59 = vld [vmem:[%s927_s28 + $0xa8] sm:$0xff]  }
  0x37   : > { %v521_v10 = vsel %vm473_vm0, %v519_v63, %v520_v2  ;;  %v522_v11 = vrot.slane %v296_v3, 1  ;;  %v297_v12 = vunpack.c.l.bf16 %v789_v61  ;;  %v298_v13 = vunpack.c.h.bf16 %v789_v61 }
  0x38   : > { %666 = vst [vmem:[%s959_s5 + $0x80] sm:$0xff] %v634_v5  ;;  %v635_v15 = vmax.f32 %v603_v6, 0.0  ;;  %v604_v16 = vadd.f32 %v521_v10, %v411_v7  ;;  %v412_v17 = vadd.f32 %v922_v1, %v373_v8  ;;  %v374_v18 = vmul.f32 %v910_v0, %v335_v4  ;;  %v800_v7 = vld [vmem:[%s927_s28 + $0xb0] sm:$0x1] }
  0x39   : > { %v523_v20 = vsel %vm473_vm0, %v520_v2, %v522_v11  ;;  %v524_v21 = vrot.slane %v297_v12, 1  ;;  %v525_v22 = vrot.slane %v298_v13, 1  ;;  %v299_v23 = vunpack.c.l.bf16 %v791_v9  ;;  %v341_v2 = vld [vmem:[%s917_s23 + $0xd0] sm:$0xff]  ;;  %v342_v12 = vld [vmem:[%s917_s23 + $0xd8] sm:$0xff] }
  0x3a   : > { %667 = vst [vmem:[%s959_s5 + $0x88] sm:$0xff] %v635_v15  ;;  %v636_v25 = vmax.f32 %v604_v16, 0.0  ;;  %v605_v26 = vadd.f32 %v523_v20, %v412_v17  ;;  %v413_v27 = vadd.f32 %v922_v1, %v374_v18  ;;  %v375_v28 = vmul.f32 %v910_v0, %v336_v14  ;;  %v801_v17 = vld [vmem:[%s927_s28 + $0xb4] sm:$0xff]  }
  0x3b   : > { %v526_v30 = vsel %vm473_vm0, %v524_v21, %v525_v22  ;;  %v527_v31 = vrot.slane %v299_v23, 1  ;;  %v835_v32 = vunpack.c.l.bf16 %v850_v19  ;;  %v836_v33 = vunpack.c.h.bf16 %v850_v19 }
  0x3c   : > { %668 = vst [vmem:[%s959_s5 + $0x90] sm:$0xff] %v636_v25  ;;  %v637_v35 = vmax.f32 %v605_v26, 0.0  ;;  %v606_v36 = vadd.f32 %v526_v30, %v413_v27  ;;  %v414_v37 = vadd.f32 %v922_v1, %v375_v28  ;;  %v376_v38 = vmul.f32 %v910_v0, %v337_v24  ;;  %v803_v27 = vld [vmem:[%s927_s28 + $0xbc] sm:$0x1] }
  0x3d   : > { %v528_v40 = vsel %vm473_vm0, %v525_v22, %v527_v31  ;;  %v529_v41 = vrot.slane %v835_v32, 1  ;;  %v530_v42 = vrot.slane %v836_v33, 1  ;;  %v302_v43 = vunpack.c.l.bf16 %v794_v29  ;;  %v343_v22 = vld [vmem:[%s917_s23 + $0xe0] sm:$0xff]  ;;  %v344_v32 = vld [vmem:[%s917_s23 + $0xe8] sm:$0xff] }
  0x3e   : > { %669 = vst [vmem:[%s959_s5 + $0x98] sm:$0xff] %v637_v35  ;;  %v638_v45 = vmax.f32 %v606_v36, 0.0  ;;  %v607_v46 = vadd.f32 %v528_v40, %v414_v37  ;;  %v415_v47 = vadd.f32 %v922_v1, %v376_v38  ;;  %v377_v48 = vmul.f32 %v910_v0, %v338_v34  ;;  %v852_v37 = vld [vmem:[%s927_s28 + $0xc0] sm:$0xff]  }
  0x3f   : > { %v531_v50 = vsel %vm473_vm0, %v529_v41, %v530_v42  ;;  %v532_v51 = vrot.slane %v302_v43, 1  ;;  %v303_v52 = vunpack.c.l.bf16 %v795_v39  ;;  %v304_v53 = vunpack.c.h.bf16 %v795_v39 }
  0x40   : > { %670 = vst [vmem:[%s959_s5 + $0xa0] sm:$0xff] %v638_v45  ;;  %v639_v55 = vmax.f32 %v607_v46, 0.0  ;;  %v608_v56 = vadd.f32 %v531_v50, %v415_v47  ;;  %v416_v57 = vadd.f32 %v922_v1, %v377_v48  ;;  %v378_v58 = vmul.f32 %v910_v0, %v339_v44  ;;  %v806_v47 = vld [vmem:[%s927_s28 + $0xc8] sm:$0x1] }
  0x41   : > { %v533_v60 = vsel %vm473_vm0, %v530_v42, %v532_v51  ;;  %v534_v61 = vrot.slane %v303_v52, 1  ;;  %v535_v62 = vrot.slane %v304_v53, 1  ;;  %v305_v63 = vunpack.c.l.bf16 %v797_v49  ;;  %v345_v42 = vld [vmem:[%s917_s23 + $0xf0] sm:$0xff]  ;;  %v346_v52 = vld [vmem:[%s917_s23 + $0xf8] sm:$0xff] }
  0x42   : > { %671 = vst [vmem:[%s959_s5 + $0xa8] sm:$0xff] %v639_v55  ;;  %v640_v3 = vmax.f32 %v608_v56, 0.0  ;;  %v609_v4 = vadd.f32 %v533_v60, %v416_v57  ;;  %v417_v5 = vadd.f32 %v922_v1, %v378_v58  ;;  %v379_v6 = vmul.f32 %v910_v0, %v340_v54 }
  0x43   : > { %v536_v8 = vsel %vm473_vm0, %v534_v61, %v535_v62  ;;  %v537_v9 = vrot.slane %v305_v63, 1  ;;  %v839_v10 = vunpack.c.l.bf16 %v851_v59  ;;  %v840_v11 = vunpack.c.h.bf16 %v851_v59 }
  0x44   : > { %672 = vst [vmem:[%s959_s5 + $0xb0] sm:$0xff] %v640_v3  ;;  %v641_v13 = vmax.f32 %v609_v4, 0.0  ;;  %v610_v14 = vadd.f32 %v536_v8, %v417_v5  ;;  %v418_v15 = vadd.f32 %v922_v1, %v379_v6  ;;  %v380_v16 = vmul.f32 %v910_v0, %v341_v2 }
  0x45   : > { %v538_v18 = vsel %vm473_vm0, %v535_v62, %v537_v9  ;;  %v539_v19 = vrot.slane %v839_v10, 1  ;;  %v540_v20 = vrot.slane %v840_v11, 1  ;;  %v308_v21 = vunpack.c.l.bf16 %v800_v7 }
  0x46   : > { %673 = vst [vmem:[%s959_s5 + $0xb8] sm:$0xff] %v641_v13  ;;  %v642_v23 = vmax.f32 %v610_v14, 0.0  ;;  %v611_v24 = vadd.f32 %v538_v18, %v418_v15  ;;  %v419_v25 = vadd.f32 %v922_v1, %v380_v16  ;;  %v381_v26 = vmul.f32 %v910_v0, %v342_v12 }
  0x47   : > { %v541_v28 = vsel %vm473_vm0, %v539_v19, %v540_v20  ;;  %v542_v29 = vrot.slane %v308_v21, 1  ;;  %v309_v30 = vunpack.c.l.bf16 %v801_v17  ;;  %v310_v31 = vunpack.c.h.bf16 %v801_v17 }
  0x48   : > { %674 = vst [vmem:[%s959_s5 + $0xc0] sm:$0xff] %v642_v23  ;;  %v643_v33 = vmax.f32 %v611_v24, 0.0  ;;  %v612_v34 = vadd.f32 %v541_v28, %v419_v25  ;;  %v420_v35 = vadd.f32 %v922_v1, %v381_v26  ;;  %v382_v36 = vmul.f32 %v910_v0, %v343_v22 }
  0x49   : > { %v543_v38 = vsel %vm473_vm0, %v540_v20, %v542_v29  ;;  %v544_v39 = vrot.slane %v309_v30, 1  ;;  %v545_v40 = vrot.slane %v310_v31, 1  ;;  %v311_v41 = vunpack.c.l.bf16 %v803_v27 }
  0x4a   : > { %675 = vst [vmem:[%s959_s5 + $0xc8] sm:$0xff] %v643_v33  ;;  %v644_v43 = vmax.f32 %v612_v34, 0.0  ;;  %v613_v44 = vadd.f32 %v543_v38, %v420_v35  ;;  %v421_v45 = vadd.f32 %v922_v1, %v382_v36  ;;  %v383_v46 = vmul.f32 %v910_v0, %v344_v32 }
  0x4b   : > { %v546_v48 = vsel %vm473_vm0, %v544_v39, %v545_v40  ;;  %v547_v49 = vrot.slane %v311_v41, 1  ;;  %v843_v50 = vunpack.c.l.bf16 %v852_v37  ;;  %v844_v51 = vunpack.c.h.bf16 %v852_v37 }
  0x4c   : > { %676 = vst [vmem:[%s959_s5 + $0xd0] sm:$0xff] %v644_v43  ;;  %v645_v53 = vmax.f32 %v613_v44, 0.0  ;;  %v614_v54 = vadd.f32 %v546_v48, %v421_v45  ;;  %v422_v55 = vadd.f32 %v922_v1, %v383_v46  ;;  %v384_v56 = vmul.f32 %v910_v0, %v345_v42 }
  0x4d   : > { %v548_v57 = vsel %vm473_vm0, %v545_v40, %v547_v49  ;;  %v549_v58 = vrot.slane %v843_v50, 1  ;;  %v550_v59 = vrot.slane %v844_v51, 1  ;;  %v314_v60 = vunpack.c.l.bf16 %v806_v47 }
  0x4e   : > { %677 = vst [vmem:[%s959_s5 + $0xd8] sm:$0xff] %v645_v53  ;;  %v646_v61 = vmax.f32 %v614_v54, 0.0  ;;  %v615_v62 = vadd.f32 %v548_v57, %v422_v55  ;;  %v423_v63 = vadd.f32 %v922_v1, %v384_v56  ;;  %v385_v2 = vmul.f32 %v910_v0, %v346_v52 }
  0x4f   : > { %v551_v3 = vsel %vm473_vm0, %v549_v58, %v550_v59  ;;  %v552_v4 = vrot.slane %v314_v60, 1 }
  0x50   : > { %678 = vst [vmem:[%s959_s5 + $0xe0] sm:$0xff] %v646_v61  ;;  %v647_v5 = vmax.f32 %v615_v62, 0.0  ;;  %v616_v6 = vadd.f32 %v551_v3, %v423_v63  ;;  %v424_v7 = vadd.f32 %v922_v1, %v385_v2 }
  0x51   : > { %v553_v8 = vsel %vm473_vm0, %v550_v59, %v552_v4 }
  0x52   : > { %679 = vst [vmem:[%s959_s5 + $0xe8] sm:$0xff] %v647_v5  ;;  %v648_v9 = vmax.f32 %v616_v6, 0.0  ;;  %v617_v10 = vadd.f32 %v553_v8, %v424_v7 }
  0x54   : > { %680 = vst [vmem:[%s959_s5 + $0xf0] sm:$0xff] %v648_v9  ;;  %v649_v11 = vmax.f32 %v617_v10, 0.0 }
  0x56   : > { %681 = vst [vmem:[%s959_s5 + $0xf8] sm:$0xff] %v649_v11 }
  0x57 PF: > { %s14_s15 = sadd.s32 1, %s868_s15  }
  0x58   : > { %p11_p4 = scmp.ge.s32.totalorder %s14_s15, 4  }
  0x5a   :  { %13 = sbr.rel (!%p11_p4) target bundleno = 1 (0x1), region = 70 }

// kernel: basic_block_forward.3
= control target key start
LH: loop header
LB: loop body
LE: loop exit
PB: predicated region body
PF: predicated region fallthrough
CT: control target
= control target key end

     0   :  { %s7281_s12 = smov 0   ;;  %s9243_s0 = inlined_call_operand.vmem [shape: bf16[2,18,18,128], index: 0, kind: input, shape index: {}]   ;;  %s9244_s1 = inlined_call_operand.vmem [shape: bf16[9,128,128], index: 1, kind: input, shape index: {}]   ;;  %s9245_s2 = inlined_call_operand.vmem [shape: bf16[2,16,16,128], index: 2, kind: output, shape index: {0}]   ;;  %s9246_s3 = inlined_call_operand.vmem [shape: f32[2,2,128], index: 3, kind: output, shape index: {1}]  }
   0x1 LB: > { %s5379_s13 = sadd.s32 4294967295, %s7259_s12   ;;  %p5383_p0 = scmp.ge.s32.totalorder %s7259_s12, 1  ;;  %s7259_s12 = sphi %s7281_s12, %s14_s12  }
   0x2   : > { %p140_p1 = scmp.lt.s32.totalorder %s7259_s12, 3 }
   0x4   : > { %p141_p2 = pnand %p5383_p0, %p140_p1 }
   0x6   : > { %144 = sbr.rel (%p141_p2) target bundleno = 687 (0x2af), region = 28 }
   0xd   : > { %v7063_v0 = vld [vmem:[%s9244_s1 + $0x40] sm:$0xff]   ;;  %p168_p3 = scmp.lt.s32.totalorder %s5379_s13, 1  ;;  %v7065_v2 = vld [vmem:[%s9244_s1 + $0x48] sm:$0xff]   ;;  %v7067_v4 = vld [vmem:[%s9244_s1 + $0x50] sm:$0xff]   ;;  %vm247_vm0 = vsmask.f32 3328 }
   0xe   : > { %v7064_v1 = vld [vmem:[%s9244_s1 + $0x100] sm:$0xff]   ;;  %6350 = vmatprep.subr.bf16.mxu1 %v7063_v0  ;;  %v7066_v3 = vld [vmem:[%s9244_s1 + $0x108] sm:$0xff]   ;;  %v7068_v5 = vld [vmem:[%s9244_s1 + $0x110] sm:$0xff]   ;;  %vm248_vm1 = vsmask.f32 7440  ;;  %vm1277_vm3 = vcmask 1042432  }
   0xf   : > { %6542 = vmatprep.subr.bf16.mxu0 %v7064_v1  ;;  %6351 = vmatpush3.bf16.msra.mxu1 %v7063_v0  ;;  %s9314_s13 = smov (!%p168_p3, %s5379_s13), 1  ;;  %v7069_v6 = vld [vmem:[%s9244_s1 + $0x58] sm:$0xff]   ;;  %v7071_v8 = vld [vmem:[%s9244_s1 + $0x60] sm:$0xff]   ;;  %v7073_v10 = vld [vmem:[%s9244_s1 + $0x68] sm:$0xff]   ;;  %vm1278_vm4 = vcmask 1046532  }
  0x10   : > { %6543 = vmatpush3.bf16.msra.mxu0 %v7064_v1  ;;  %6352 = vmatprep.subr.bf16.mxu1 %v7065_v2  ;;  %v7070_v7 = vld [vmem:[%s9244_s1 + $0x118] sm:$0xff]   ;;  %s7054_s30 = smul.u32 216, %s9314_s13  ;;  %v7072_v9 = vld [vmem:[%s9244_s1 + $0x120] sm:$0xff]   ;;  %v7074_v11 = vld [vmem:[%s9244_s1 + $0x128] sm:$0xff]   ;;  %s5387_s9 = sshll.u32 %s9314_s13, 1 }
  0x11   : > { %6544 = vmatprep.subr.bf16.mxu0 %v7066_v3  ;;  %v7075_v25 = vld [vmem:[%s9244_s1 + $0x70] sm:$0xff]   ;;  %v7077_v36 = vld [vmem:[%s9244_s1 + $0x78] sm:$0xff]   ;;  %vm7357_vm2 = vmor %vm247_vm0, %vm248_vm1  ;;  %s9179_s15 = scalar_lea.vmem %s9246_s3, %s5387_s9 }
  0x12   : > { %s7325_s10 = scalar_lea.vmem %s9243_s0, %s7054_s30  ;;  %v7076_v30 = vld [vmem:[%s9244_s1 + $0x130] sm:$0xff]   ;;  %v7078_v51 = vld [vmem:[%s9244_s1 + $0x138] sm:$0xff]   ;;  %vm7603_vm5 = vmor %vm1277_vm3, %vm1278_vm4 }
  0x13   : > { %6353 = vmatpush3.bf16.msra.mxu1 %v7065_v2  ;;  %v183_v12 = vld [vmem:[%s7325_s10] sm:$0xf]  ;;  %v184_v13 = vld [vmem:[%s7325_s10 + $0x4] sm:$0xf]  ;;  %v231_v14 = vld [vmem:[%s7325_s10 + $0x8] sm:$0x1] }
  0x14   : > { %6545 = vmatpush3.bf16.msra.mxu0 %v7066_v3  ;;  %6354 = vmatprep.subr.bf16.mxu1 %v7067_v4  ;;  %v251_v15 = vshrl.u32 %v183_v12, 16  ;;  %v254_v16 = vshll.u32 %v183_v12, 16  ;;  %v260_v17 = vshll.u32 %v184_v13, 16  ;;  %v264_v18 = vshrl.u32 %v184_v13, 16  ;;  %v5580_v20 = vld [vmem:[%s7325_s10 + $0xc] sm:$0xf] }
  0x15   : > { %6546 = vmatprep.subr.bf16.mxu0 %v7068_v5  ;;  %v270_v19 = vshll.u32 %v231_v14, 16  ;;  %v7338_v23 = vld [vmem:[%s7325_s10 + $0x10] sm:$0xf]  ;;  %v7341_v24 = vld [vmem:[%s7325_s10 + $0x14] sm:$0x1]  ;;  %v2150_v29 = vshrl.u32 %v5580_v20, 16 }
  0x16   : > { %v253_v21 = vrot.slane %v251_v15, 4  ;;  %v256_v22 = vrot.slane %v254_v16, 5  ;;  %v262_v26 = vrot.slane %v260_v17, 5  ;;  %v266_v27 = vrot.slane %v264_v18, 4  ;;  %v185_v35 = vld [vmem:[%s7325_s10 + $0xc] sm:$0xf] }
  0x17   : > { %6355 = vmatpush3.bf16.msra.mxu1 %v7067_v4  ;;  %v272_v28 = vrot.slane %v270_v19, 5  ;;  %v2153_v32 = vshll.u32 %v5580_v20, 16  ;;  %v2159_v33 = vshll.u32 %v7338_v23, 16  ;;  %v2163_v34 = vshrl.u32 %v7338_v23, 16  ;;  %v186_v42 = vld [vmem:[%s7325_s10 + $0x10] sm:$0xf] }
  0x18   : > { %6547 = vmatpush3.bf16.msra.mxu0 %v7068_v5  ;;  %6356 = vmatprep.subr.bf16.mxu1 %v7069_v6  ;;  %v257_v31 = vor.u32 %v256_v22, %v253_v21  ;;  %v267_v38 = vor.u32 %v266_v27, %v262_v26  ;;  %v2152_v39 = vrot.slane %v2150_v29, 4  ;;  %v2169_v40 = vshll.u32 %v7341_v24, 16  ;;  %v232_v55 = vld [vmem:[%s7325_s10 + $0x14] sm:$0x1]  ;;  %v5583_v57 = vld [vmem:[%s7325_s10 + $0x18] sm:$0xf] }
  0x19   : > { %6548 = vmatprep.subr.bf16.mxu0 %v7070_v7  ;;  %v2924_v41 = vrot.slane %v7341_v24, 5  ;;  %v2155_v44 = vrot.slane %v2153_v32, 5  ;;  %v2161_v45 = vrot.slane %v2159_v33, 5  ;;  %v2165_v46 = vrot.slane %v2163_v34, 4  ;;  %v7374_v62 = vld [vmem:[%s7325_s10 + $0x1c] sm:$0xf] }
  0x1a   : > { %v258_v43 = vrot.slane %v257_v31, 4  ;;  %v268_v47 = vrot.slane %v267_v38, 4  ;;  %v2171_v48 = vrot.slane %v2169_v40, 5  ;;  %v275_v49 = vshrl.u32 %v185_v35, 16  ;;  %v7079_v3 = vld [vmem:[%s9244_s1] sm:$0xff]  }
  0x1b   : > { %6357 = vmatpush3.bf16.msra.mxu1 %v7069_v6  ;;  %v278_v50 = vshll.u32 %v185_v35, 16  ;;  %v2156_v53 = vor.u32 %v2155_v44, %v2152_v39  ;;  %v2166_v54 = vor.u32 %v2165_v46, %v2161_v45  ;;  %v284_v56 = vshll.u32 %v186_v42, 16  ;;  %v7382_v4 = vld [vmem:[%s9244_s1 + $0x140] sm:$0xff]   ;;  %v187_v21 = vld [vmem:[%s7325_s10 + $0x18] sm:$0xf]  ;;  %v7082_v46 = vld [vmem:[%s9244_s1 + $0x8] sm:$0xff]  }
  0x1c   : > { %6549 = vmatpush3.bf16.msra.mxu0 %v7070_v7  ;;  %6358 = vmatprep.subr.bf16.mxu1 %v7071_v8  ;;  %v263_v52 = vsel %vm7357_vm2, %v258_v43, %v262_v26  ;;  %v273_v58 = vsel %vm7357_vm2, %v268_v47, %v272_v28  ;;  %v277_v59 = vrot.slane %v275_v49, 4  ;;  %v288_v61 = vshrl.u32 %v186_v42, 16  ;;  %v188_v28 = vld [vmem:[%s7325_s10 + $0x1c] sm:$0xf]  ;;  %v233_v33 = vld [vmem:[%s7325_s10 + $0x20] sm:$0x1] }
  0x1d   : > { %6550 = vmatprep.subr.bf16.mxu0 %v7072_v9  ;;  %v280_v60 = vrot.slane %v278_v50, 5  ;;  %v5404_v63 = vcombine.low %v263_v52, %v273_v58  ;;  %v2157_v0 = vrot.slane %v2156_v53, 4  ;;  %v2167_v1 = vrot.slane %v2166_v54, 4  ;;  %v5586_v39 = vld [vmem:[%s7325_s10 + $0x24] sm:$0xf] }
  0x1e   : > { %v286_v2 = vrot.slane %v284_v56, 5  ;;  %v290_v6 = vrot.slane %v288_v61, 4  ;;  %v294_v7 = vshll.u32 %v232_v55, 16  ;;  %v2177_v12 = vshll.u32 %v5583_v57, 16  ;;  %v189_v52 = vld [vmem:[%s7325_s10 + $0x24] sm:$0xf] }
  0x1f   : > { %6359 = vmatpush3.bf16.msra.mxu1 %v7071_v8  ;;  %v281_v5 = vor.u32 %v280_v60, %v277_v59  ;;  %v7385_v8 = vld [vmem:[%s7325_s10 + $0x20] sm:$0x1]  ;;  %6366 = vmatprep.mubr.bf16.mxu1 %v5404_v63  ;;  %v2183_v19 = vshll.u32 %v7374_v62, 16  ;;  %v2187_v20 = vshrl.u32 %v7374_v62, 16  ;;  %v2928_v27 = vrot.slane %v7374_v62, 5  ;;  %v7081_v63 = vld [vmem:[%s9244_s1 + $0x148] sm:$0xff]  }
  0x20   : > { %6551 = vmatpush3.bf16.msra.mxu0 %v7072_v9  ;;  %6360 = vmatprep.subr.bf16.mxu1 %v7073_v10  ;;  %v2162_v9 = vsel %vm7357_vm2, %v2157_v0, %v2161_v45  ;;  %v291_v15 = vor.u32 %v290_v6, %v286_v2  ;;  %v296_v16 = vrot.slane %v294_v7, 5  ;;  %v2179_v18 = vrot.slane %v2177_v12, 5  ;;  %v7410_v45 = vld [vmem:[%s7325_s10 + $0x28] sm:$0xf] }
  0x21   : > { %6552 = vmatprep.subr.bf16.mxu0 %v7074_v11  ;;  %v282_v14 = vrot.slane %v281_v5, 4  ;;  %v2193_v26 = vshll.u32 %v7385_v8, 16  ;;  %v2189_v31 = vrot.slane %v2187_v20, 4  ;;  %v2931_v32 = vrot.slane %v7385_v8, 5  ;;  %v190_v5 = vld [vmem:[%s7325_s10 + $0x28] sm:$0xf] }
  0x22   : > { %v299_v38 = vshrl.u32 %v187_v21, 16  ;;  %v302_v44 = vshll.u32 %v187_v21, 16  ;;  %v312_v49 = vshrl.u32 %v188_v28, 16  ;;  %v318_v50 = vshll.u32 %v233_v33, 16  ;;  %v7441_v33 = vld [vmem:[%s7325_s10 + $0x34] sm:$0xf] }
  0x23   : > { %6361 = vmatpush3.bf16.msra.mxu1 %v7073_v10  ;;  %v2172_v10 = vsel %vm7357_vm2, %v2167_v1, %v2171_v48  ;;  %v287_v22 = vsel %vm7357_vm2, %v282_v14, %v286_v2  ;;  %v2195_v35 = vrot.slane %v2193_v26, 5  ;;  %v308_v48 = vshll.u32 %v188_v28, 16 }
  0x24   : > { %6553 = vmatpush3.bf16.msra.mxu0 %v7074_v11  ;;  %6362 = vmatprep.subr.bf16.mxu1 %v7075_v25  ;;  %v2174_v11 = vshrl.u32 %v5583_v57, 16  ;;  %v5644_v13 = vcombine.low %v2162_v9, %v2172_v10  ;;  %v301_v47 = vrot.slane %v299_v38, 4  ;;  %v304_v55 = vrot.slane %v302_v44, 5 }
  0x25   : > { %6554 = vmatprep.subr.bf16.mxu0 %v7076_v30  ;;  %v2198_v56 = vshrl.u32 %v5586_v39, 16  ;;  %v310_v57 = vrot.slane %v308_v48, 5  ;;  %v314_v58 = vrot.slane %v312_v49, 4  ;;  %v320_v59 = vrot.slane %v318_v50, 5  ;;  %v7084_v48 = vld [vmem:[%s9244_s1 + $0x158] sm:$0xff]  }
  0x26   : > { %v2176_v17 = vrot.slane %v2174_v11, 4  ;;  %6558 = vmatprep.mubr.bf16.mxu0 %v5644_v13  ;;  %v2201_v60 = vshll.u32 %v5586_v39, 16  ;;  %v305_v0 = vor.u32 %v304_v55, %v301_v47  ;;  %v2207_v2 = vshll.u32 %v7410_v45, 16  ;;  %v234_v11 = vld [vmem:[%s7325_s10 + $0x2c] sm:$0x1] }
  0x27   : > { %6363 = vmatpush3.bf16.msra.mxu1 %v7075_v25  ;;  %v292_v25 = vrot.slane %v291_v15, 4  ;;  %v2200_v1 = vrot.slane %v2198_v56, 4  ;;  %v315_v7 = vor.u32 %v314_v58, %v310_v57  ;;  %v2211_v10 = vshrl.u32 %v7410_v45, 16 }
  0x28   : > { %6555 = vmatpush3.bf16.msra.mxu0 %v7076_v30  ;;  %6364 = vmatprep.subr.bf16.mxu1 %v7077_v36  ;;  %v2180_v29 = vor.u32 %v2179_v18, %v2176_v17  ;;  %v2185_v30 = vrot.slane %v2183_v19, 5  ;;  %v2203_v9 = vrot.slane %v2201_v60, 5  ;;  %v306_v12 = vrot.slane %v305_v0, 4  ;;  %v7091_v60 = vld [vmem:[%s9244_s1 + $0x20] sm:$0xff]  }
  0x29   : > { %6556 = vmatprep.subr.bf16.mxu0 %v7078_v51  ;;  %v297_v34 = vsel %vm7357_vm2, %v292_v25, %v296_v16  ;;  %v2209_v13 = vrot.slane %v2207_v2, 5  ;;  %v323_v15 = vshrl.u32 %v189_v52, 16  ;;  %v5589_v16 = vld [vmem:[%s7325_s10 + $0x30] sm:$0xf]  ;;  %v316_v17 = vrot.slane %v315_v7, 4 }
  0x2a   : > { %v5405_v40 = vcombine.low %v287_v22, %v297_v34  ;;  %v2181_v42 = vrot.slane %v2180_v29, 4  ;;  %v2190_v43 = vor.u32 %v2189_v31, %v2185_v30  ;;  %v2204_v18 = vor.u32 %v2203_v9, %v2200_v1  ;;  %v7088_v34 = vld [vmem:[%s9244_s1 + $0x18] sm:$0xff]  }
  0x2b   : > { %6365 = vmatpush3.bf16.msra.mxu1 %v7077_v36  ;;  %v7406_v36 = vrot.slane %v2928_v27, 4  ;;  %v2213_v19 = vrot.slane %v2211_v10, 4  ;;  %v326_v20 = vshll.u32 %v189_v52, 16  ;;  %v311_v21 = vsel %vm7357_vm2, %v306_v12, %v310_v57  ;;  %v235_v2 = vld [vmem:[%s7325_s10 + $0x38] sm:$0x1] }
  0x2c   : > { %6557 = vmatpush3.bf16.msra.mxu0 %v7078_v51  ;;  %6398 = vmatprep.subr.bf16.mxu1 %v7079_v3  ;;  %v7416_v51 = vld [vmem:[%s7325_s10 + $0x2c] sm:$0x1]  ;;  %v2186_v53 = vsel %vm7357_vm2, %v2181_v42, %v2185_v30  ;;  %v2191_v54 = vrot.slane %v2190_v43, 4  ;;  %v325_v25 = vrot.slane %v323_v15, 4  ;;  %v332_v26 = vshll.u32 %v190_v5, 16 }
  0x2d   : > { %6590 = vmatprep.subr.bf16.mxu0 %v7382_v4  ;;  %v2217_v14 = vshll.u32 %v7416_v51, 16  ;;  %v321_v28 = vsel %vm7357_vm2, %v316_v17, %v320_v59  ;;  %v2205_v29 = vrot.slane %v2204_v18, 4  ;;  %v2214_v30 = vor.u32 %v2213_v19, %v2209_v13  ;;  %v192_v59 = vld [vmem:[%s7325_s10 + $0x34] sm:$0xf]  ;;  %v5592_v9 = vld [vmem:[%s7325_s10 + $0x3c] sm:$0xf] }
  0x2e   : > { %6367 = vmatmul.mubr.bf16.vlgmr.msra.gmra.mrb[0].mxu1 %v5405_v40  ;;  %v2196_v61 = vsel %vm7357_vm2, %v2191_v54, %v2195_v35  ;;  %v328_v31 = vrot.slane %v326_v20, 5  ;;  %v5406_v35 = vcombine.low %v311_v21, %v321_v28  ;;  %v334_v38 = vrot.slane %v332_v26, 5  ;;  %v191_v54 = vld [vmem:[%s7325_s10 + $0x30] sm:$0xf]  ;;  %v7475_v19 = vld [vmem:[%s7325_s10 + $0x40] sm:$0xf] }
  0x2f   : > { %6399 = vmatpush3.bf16.msra.mxu1 %v7079_v3  ;;  %v7085_v3 = vld [vmem:[%s9244_s1 + $0x10] sm:$0xff]   ;;  %v5645_v6 = vcombine.low %v2186_v53, %v2196_v61  ;;  %v2219_v22 = vrot.slane %v2217_v14, 5  ;;  %v336_v39 = vshrl.u32 %v190_v5, 16  ;;  %v342_v40 = vshll.u32 %v234_v11, 16  ;;  %v7093_v14 = vld [vmem:[%s9244_s1 + $0x28] sm:$0xff]   ;;  %v7086_v20 = vld [vmem:[%s9244_s1 + $0x160] sm:$0xff]  }
  0x30   : > { %6400 = vmatprep.subr.bf16.mxu1 %v7082_v46  ;;  %v2210_v42 = vsel %vm7357_vm2, %v2205_v29, %v2209_v13  ;;  %v2215_v43 = vrot.slane %v2214_v30, 4  ;;  %v329_v44 = vor.u32 %v328_v31, %v325_v25  ;;  %v2222_v47 = vshrl.u32 %v5589_v16, 16  ;;  %6370 = vmatprep.mubr.bf16.mxu1 %v5406_v35  ;;  %v7483_v28 = vld [vmem:[%s7325_s10 + $0x44] sm:$0x1]  ;;  %v7095_v35 = vld [vmem:[%s9244_s1 + $0x30] sm:$0xff]  }
  0x31   : > { %6559 = vmatmul.mubr.bf16.vlgmr.msra.gmra.mrb[0].mxu0 %v5645_v6  ;;  %v338_v49 = vrot.slane %v336_v39, 4  ;;  %v344_v50 = vrot.slane %v342_v40, 5  ;;  %v2225_v52 = vshll.u32 %v5589_v16, 16  ;;  %v2231_v53 = vshll.u32 %v7441_v33, 16 }
  0x32   : > { %6591 = vmatpush3.bf16.msra.mxu0 %v7382_v4  ;;  %v7083_v4 = vld [vmem:[%s9244_s1 + $0x150] sm:$0xff]   ;;  %v2220_v55 = vsel %vm7357_vm2, %v2215_v43, %v2219_v22  ;;  %v330_v56 = vrot.slane %v329_v44, 4  ;;  %v2224_v57 = vrot.slane %v2222_v47, 4  ;;  %v2235_v58 = vshrl.u32 %v7441_v33, 16 }
  0x33   : > { %6401 = vmatpush3.bf16.msra.mxu1 %v7082_v46  ;;  %6592 = vmatprep.subr.bf16.mxu0 %v7081_v63  ;;  %v7452_v46 = vld [vmem:[%s7325_s10 + $0x38] sm:$0x1]  ;;  %v5646_v61 = vcombine.low %v2210_v42, %v2220_v55  ;;  %v2227_v0 = vrot.slane %v2225_v52, 5  ;;  %v2233_v1 = vrot.slane %v2231_v53, 5  ;;  %v347_v7 = vshrl.u32 %v191_v54, 16 }
  0x34   : > { %6402 = vmatprep.subr.bf16.mxu1 %v7085_v3  ;;  %v335_v5 = vsel %vm7357_vm2, %v330_v56, %v334_v38  ;;  %v2241_v6 = vshll.u32 %v7452_v46, 16  ;;  %v350_v12 = vshll.u32 %v191_v54, 16  ;;  %v356_v13 = vshll.u32 %v192_v59, 16  ;;  %v194_v55 = vld [vmem:[%s7325_s10 + $0x40] sm:$0xf] }
  0x35   : > { %6562 = vmatprep.mubr.bf16.mxu0 %v5646_v61  ;;  %v2228_v11 = vor.u32 %v2227_v0, %v2224_v57  ;;  %v349_v17 = vrot.slane %v347_v7, 4  ;;  %v360_v18 = vshrl.u32 %v192_v59, 16  ;;  %v2246_v40 = vshrl.u32 %v5592_v9, 16 }
  0x36   : > { %6593 = vmatpush3.bf16.msra.mxu0 %v7081_v63  ;;  %v339_v63 = vor.u32 %v338_v49, %v334_v38  ;;  %v2243_v16 = vrot.slane %v2241_v6, 5  ;;  %v352_v25 = vrot.slane %v350_v12, 5  ;;  %v358_v26 = vrot.slane %v356_v13, 5 }
  0x37   : > { %6403 = vmatpush3.bf16.msra.mxu1 %v7085_v3  ;;  %6594 = vmatprep.subr.bf16.mxu0 %v7083_v4  ;;  %v2237_v3 = vrot.slane %v2235_v58, 4  ;;  %v2229_v22 = vrot.slane %v2228_v11, 4  ;;  %v362_v31 = vrot.slane %v360_v18, 4  ;;  %v2249_v42 = vshll.u32 %v5592_v9, 16  ;;  %v5595_v9 = vld [vmem:[%s7325_s10 + $0x48] sm:$0xf] }
  0x38   : > { %6404 = vmatprep.subr.bf16.mxu1 %v7088_v34  ;;  %v340_v10 = vrot.slane %v339_v63, 4  ;;  %v353_v39 = vor.u32 %v352_v25, %v349_v17  ;;  %v2255_v49 = vshll.u32 %v7475_v19, 16  ;;  %v2248_v53 = vrot.slane %v2246_v40, 4  ;;  %v236_v63 = vld [vmem:[%s7325_s10 + $0x44] sm:$0x1] }
  0x39   : > { %v2238_v15 = vor.u32 %v2237_v3, %v2233_v1  ;;  %v2234_v38 = vsel %vm7357_vm2, %v2229_v22, %v2233_v1  ;;  %v363_v44 = vor.u32 %v362_v31, %v358_v26  ;;  %v2251_v54 = vrot.slane %v2249_v42, 5  ;;  %v7516_v22 = vld [vmem:[%s7325_s10 + $0x50] sm:$0x1]  ;;  %v7090_v31 = vld [vmem:[%s9244_s1 + $0x178] sm:$0xff]  }
  0x3a   : > { %6595 = vmatpush3.bf16.msra.mxu0 %v7083_v4  ;;  %v345_v21 = vsel %vm7357_vm2, %v340_v10, %v344_v50  ;;  %v366_v4 = vshll.u32 %v235_v2, 16  ;;  %v354_v52 = vrot.slane %v353_v39, 4  ;;  %v2257_v57 = vrot.slane %v2255_v49, 5  ;;  %v7097_v2 = vld [vmem:[%s9244_s1 + $0x38] sm:$0xff]  }
  0x3b   : > { %6405 = vmatpush3.bf16.msra.mxu1 %v7088_v34  ;;  %6596 = vmatprep.subr.bf16.mxu0 %v7084_v48  ;;  %v5407_v29 = vcombine.low %v335_v5, %v345_v21  ;;  %v2239_v30 = vrot.slane %v2238_v15, 4  ;;  %v193_v34 = vld [vmem:[%s7325_s10 + $0x3c] sm:$0xf]  ;;  %v364_v56 = vrot.slane %v363_v44, 4  ;;  %v2259_v58 = vshrl.u32 %v7475_v19, 16  ;;  %v7089_v15 = vld [vmem:[%s9244_s1 + $0x170] sm:$0xff]  }
  0x3c   : > { %6406 = vmatprep.subr.bf16.mxu1 %v7091_v60  ;;  %v368_v47 = vrot.slane %v366_v4, 5  ;;  %v2265_v59 = vshll.u32 %v7483_v28, 16  ;;  %v2252_v61 = vor.u32 %v2251_v54, %v2248_v53  ;;  %v371_v0 = vshrl.u32 %v193_v34, 16  ;;  %v7527_v4 = vld [vmem:[%s9244_s1 + $0x80] sm:$0xff]   ;;  %v196_v53 = vld [vmem:[%s7325_s10 + $0x4c] sm:$0xf] }
  0x3d   : > { %6371 = vmatmul.mubr.bf16.gmra.mrb[4].mxu1 %v5407_v29  ;;  %v2244_v43 = vsel %vm7357_vm2, %v2239_v30, %v2243_v16  ;;  %v374_v1 = vshll.u32 %v193_v34, 16  ;;  %v2261_v3 = vrot.slane %v2259_v58, 4  ;;  %v380_v7 = vshll.u32 %v194_v55, 16  ;;  %v195_v30 = vld [vmem:[%s7325_s10 + $0x48] sm:$0xf] }
  0x3e   : > { %6597 = vmatpush3.bf16.msra.mxu0 %v7084_v48  ;;  %v5647_v50 = vcombine.low %v2234_v38, %v2244_v43  ;;  %v7087_v48 = vld [vmem:[%s9244_s1 + $0x168] sm:$0xff]   ;;  %v369_v5 = vsel %vm7357_vm2, %v364_v56, %v368_v47  ;;  %v2267_v6 = vrot.slane %v2265_v59, 5  ;;  %v2253_v11 = vrot.slane %v2252_v61, 4  ;;  %v237_v54 = vld [vmem:[%s7325_s10 + $0x50] sm:$0x1] }
  0x3f   : > { %6407 = vmatpush3.bf16.msra.mxu1 %v7091_v60  ;;  %6598 = vmatprep.subr.bf16.mxu0 %v7086_v20  ;;  %v359_v60 = vsel %vm7357_vm2, %v354_v52, %v358_v26  ;;  %v373_v12 = vrot.slane %v371_v0, 4  ;;  %v376_v13 = vrot.slane %v374_v1, 5  ;;  %v2262_v16 = vor.u32 %v2261_v3, %v2257_v57  ;;  %v5598_v58 = vld [vmem:[%s7325_s10 + $0x54] sm:$0xf]  ;;  %v7541_v0 = vld [vmem:[%s7325_s10 + $0x58] sm:$0xf] }
  0x40   : > { %6408 = vmatprep.subr.bf16.mxu1 %v7093_v14  ;;  %6563 = vmatmul.mubr.bf16.gmra.mrb[4].mxu0 %v5647_v50  ;;  %v5408_v10 = vcombine.low %v359_v60, %v369_v5  ;;  %v382_v17 = vrot.slane %v380_v7, 5  ;;  %v384_v18 = vshrl.u32 %v194_v55, 16  ;;  %v390_v21 = vshll.u32 %v236_v63, 16 }
  0x41   : > { %v377_v25 = vor.u32 %v376_v13, %v373_v12  ;;  %v2270_v26 = vshrl.u32 %v5595_v9, 16  ;;  %v2273_v29 = vshll.u32 %v5595_v9, 16  ;;  %v2263_v34 = vrot.slane %v2262_v16, 4 }
  0x42   : > { %6599 = vmatpush3.bf16.msra.mxu0 %v7086_v20  ;;  %6374 = vmatprep.mubr.bf16.mxu1 %v5408_v10  ;;  %v2258_v20 = vsel %vm7357_vm2, %v2253_v11, %v2257_v57  ;;  %v392_v38 = vrot.slane %v390_v21, 5  ;;  %v2289_v52 = vshll.u32 %v7516_v22, 16  ;;  %v395_v61 = vshrl.u32 %v195_v30, 16 }
  0x43   : > { %6409 = vmatpush3.bf16.msra.mxu1 %v7093_v14  ;;  %v7510_v14 = vld [vmem:[%s7325_s10 + $0x4c] sm:$0xf]  ;;  %6600 = vmatprep.subr.bf16.mxu0 %v7087_v48  ;;  %v378_v40 = vrot.slane %v377_v25, 4  ;;  %v2272_v42 = vrot.slane %v2270_v26, 4  ;;  %v2275_v43 = vrot.slane %v2273_v29, 5  ;;  %v2268_v47 = vsel %vm7357_vm2, %v2263_v34, %v2267_v6  ;;  %v7546_v6 = vld [vmem:[%s9244_s1 + $0x180] sm:$0xff]  }
  0x44   : > { %6410 = vmatprep.subr.bf16.mxu1 %v7095_v35  ;;  %v2279_v39 = vshll.u32 %v7510_v14, 16  ;;  %v2283_v44 = vshrl.u32 %v7510_v14, 16  ;;  %v5648_v55 = vcombine.low %v2258_v20, %v2268_v47  ;;  %v2291_v60 = vrot.slane %v2289_v52, 5  ;;  %v7553_v20 = vld [vmem:[%s7325_s10 + $0x5c] sm:$0x1] }
  0x45   : > { %v2276_v56 = vor.u32 %v2275_v43, %v2272_v42  ;;  %v398_v63 = vshll.u32 %v195_v30, 16  ;;  %v408_v3 = vshrl.u32 %v196_v53, 16  ;;  %v397_v9 = vrot.slane %v395_v61, 4  ;;  %v198_v43 = vld [vmem:[%s7325_s10 + $0x58] sm:$0xf] }
  0x46   : > { %6601 = vmatpush3.bf16.msra.mxu0 %v7087_v48  ;;  %v2281_v50 = vrot.slane %v2279_v39, 5  ;;  %v383_v48 = vsel %vm7357_vm2, %v378_v40, %v382_v17  ;;  %v2285_v57 = vrot.slane %v2283_v44, 4  ;;  %6566 = vmatprep.mubr.bf16.mxu0 %v5648_v55  ;;  %v414_v11 = vshll.u32 %v237_v54, 16  ;;  %v5601_v52 = vld [vmem:[%s7325_s10 + $0x60] sm:$0xf] }
  0x47   : > { %6411 = vmatpush3.bf16.msra.mxu1 %v7095_v35  ;;  %v386_v35 = vrot.slane %v384_v18, 4  ;;  %6602 = vmatprep.subr.bf16.mxu0 %v7089_v15  ;;  %v2277_v1 = vrot.slane %v2276_v56, 4  ;;  %v400_v10 = vrot.slane %v398_v63, 5  ;;  %v410_v18 = vrot.slane %v408_v3, 4 }
  0x48   : > { %6412 = vmatprep.subr.bf16.mxu1 %v7097_v2  ;;  %v2286_v5 = vor.u32 %v2285_v57, %v2281_v50  ;;  %v416_v21 = vrot.slane %v414_v11, 5  ;;  %v2294_v25 = vshrl.u32 %v5598_v58, 16  ;;  %v2297_v29 = vshll.u32 %v5598_v58, 16 }
  0x49   : > { %v387_v49 = vor.u32 %v386_v35, %v382_v17  ;;  %v2282_v13 = vsel %vm7357_vm2, %v2277_v1, %v2281_v50  ;;  %v401_v17 = vor.u32 %v400_v10, %v397_v9  ;;  %v2303_v30 = vshll.u32 %v7541_v0, 16  ;;  %v197_v35 = vld [vmem:[%s7325_s10 + $0x54] sm:$0xf]  ;;  %v238_v50 = vld [vmem:[%s7325_s10 + $0x5c] sm:$0x1] }
  0x4a   : > { %6603 = vmatpush3.bf16.msra.mxu0 %v7089_v15  ;;  %v2287_v15 = vrot.slane %v2286_v5, 4  ;;  %v2307_v34 = vshrl.u32 %v7541_v0, 16  ;;  %v2296_v42 = vrot.slane %v2294_v25, 4  ;;  %v419_v55 = vshrl.u32 %v197_v35, 16  ;;  %v7581_v25 = vld [vmem:[%s7325_s10 + $0x60] sm:$0xf] }
  0x4b   : > { %6413 = vmatpush3.bf16.msra.mxu1 %v7097_v2  ;;  %v388_v59 = vrot.slane %v387_v49, 4  ;;  %v404_v2 = vshll.u32 %v196_v53, 16  ;;  %6604 = vmatprep.subr.bf16.mxu0 %v7090_v31  ;;  %v402_v39 = vrot.slane %v401_v17, 4  ;;  %v2305_v44 = vrot.slane %v2303_v30, 5  ;;  %v7577_v17 = vld [vmem:[%s7325_s10 + $0x68] sm:$0x1] }
  0x4c   : > { %6446 = vmatprep.subr.bf16.mxu1 %v7527_v4  ;;  %v2292_v26 = vsel %vm7357_vm2, %v2287_v15, %v2291_v60  ;;  %v2309_v47 = vrot.slane %v2307_v34, 4  ;;  %v2313_v49 = vshll.u32 %v7553_v20, 16  ;;  %v7568_v60 = vld [vmem:[%s7325_s10 + $0x64] sm:$0xf]  ;;  %v421_v63 = vrot.slane %v419_v55, 4 }
  0x4d   : > { %v393_v7 = vsel %vm7357_vm2, %v388_v59, %v392_v38  ;;  %v406_v16 = vrot.slane %v404_v2, 5  ;;  %v5649_v38 = vcombine.low %v2282_v13, %v2292_v26  ;;  %v428_v59 = vshll.u32 %v198_v43, 16 }
  0x4e   : > { %v5409_v12 = vcombine.low %v383_v48, %v393_v7  ;;  %6605 = vmatpush3.bf16.msra.mxu0 %v7090_v31  ;;  %v2299_v31 = vrot.slane %v2297_v29, 5  ;;  %v422_v48 = vshll.u32 %v197_v35, 16  ;;  %v2310_v57 = vor.u32 %v2309_v47, %v2305_v44  ;;  %v7584_v35 = vld [vmem:[%s7325_s10 + $0x64] sm:$0xf] }
  0x4f   : > { %6638 = vmatprep.subr.bf16.mxu0 %v7546_v6  ;;  %v411_v40 = vor.u32 %v410_v18, %v406_v16  ;;  %6567 = vmatmul.mubr.bf16.gmra.mrb[8].mxu0 %v5649_v38  ;;  %v407_v53 = vsel %vm7357_vm2, %v402_v39, %v406_v16  ;;  %v2315_v58 = vrot.slane %v2313_v49, 5  ;;  %v432_v5 = vshrl.u32 %v198_v43, 16  ;;  %v239_v43 = vld [vmem:[%s7325_s10 + $0x68] sm:$0x1] }
  0x50   : > { %6375 = vmatmul.mubr.bf16.gmra.mrb[8].mxu1 %v5409_v12  ;;  %v2300_v56 = vor.u32 %v2299_v31, %v2296_v42  ;;  %v424_v1 = vrot.slane %v422_v48, 5  ;;  %v2311_v7 = vrot.slane %v2310_v57, 4  ;;  %v430_v9 = vrot.slane %v428_v59, 5 }
  0x51   : > { %v412_v54 = vrot.slane %v411_v40, 4  ;;  %v434_v11 = vrot.slane %v432_v5, 4  ;;  %v438_v12 = vshll.u32 %v238_v50, 16  ;;  %v2318_v13 = vshrl.u32 %v5601_v52, 16  ;;  %v5668_v50 = vld [vmem:[%s7325_s10 + $0xc] sm:$0xe] }
  0x52   : > { %v2301_v3 = vrot.slane %v2300_v56, 4  ;;  %v425_v10 = vor.u32 %v424_v1, %v421_v63  ;;  %v2316_v16 = vsel %vm7357_vm2, %v2311_v7, %v2315_v58  ;;  %v2321_v18 = vshll.u32 %v5601_v52, 16  ;;  %v7599_v5 = vld [vmem:[%s7325_s10 + $0x6c] sm:$0xf] }
  0x53   : > { %v417_v61 = vsel %vm7357_vm2, %v412_v54, %v416_v21  ;;  %v2327_v21 = vshll.u32 %v7568_v60, 16  ;;  %v435_v30 = vor.u32 %v434_v11, %v430_v9  ;;  %v440_v34 = vrot.slane %v438_v12, 5 }
  0x54   : > { %v5410_v2 = vcombine.low %v407_v53, %v417_v61  ;;  %v2306_v15 = vsel %vm7357_vm2, %v2301_v3, %v2305_v44  ;;  %v426_v29 = vrot.slane %v425_v10, 4  ;;  %v2320_v38 = vrot.slane %v2318_v13, 4 }
  0x55   : > { %v5650_v26 = vcombine.low %v2306_v15, %v2316_v16  ;;  %v2323_v39 = vrot.slane %v2321_v18, 5  ;;  %v2329_v40 = vrot.slane %v2327_v21, 5  ;;  %v2331_v42 = vshrl.u32 %v7568_v60, 16  ;;  %v7611_v21 = vld [vmem:[%s7325_s10 + $0x70] sm:$0xf] }
  0x56   : > { %6378 = vmatprep.mubr.bf16.mxu1 %v5410_v2  ;;  %v431_v31 = vsel %vm7357_vm2, %v426_v29, %v430_v9  ;;  %v436_v44 = vrot.slane %v435_v30, 4  ;;  %v2337_v47 = vshll.u32 %v7577_v17, 16  ;;  %v443_v49 = vshrl.u32 %v7581_v25, 16  ;;  %v7181_v9 = vld [vmem:[%s7325_s10 + $0xb4] sm:$0xff]  }
  0x57   : > { %6570 = vmatprep.mubr.bf16.mxu0 %v5650_v26  ;;  %v2324_v52 = vor.u32 %v2323_v39, %v2320_v38  ;;  %v2333_v53 = vrot.slane %v2331_v42, 4  ;;  %v446_v54 = vshll.u32 %v7581_v25, 16  ;;  %v452_v55 = vshll.u32 %v7584_v35, 16 }
  0x58   : > { %v441_v48 = vsel %vm7357_vm2, %v436_v44, %v440_v34  ;;  %v2339_v56 = vrot.slane %v2337_v47, 5  ;;  %v445_v57 = vrot.slane %v443_v49, 4  ;;  %v456_v58 = vshrl.u32 %v7584_v35, 16  ;;  %v7622_v47 = vld [vmem:[%s7325_s10 + $0x78] sm:$0xf] }
  0x59   : > { %v5411_v59 = vcombine.low %v431_v31, %v441_v48  ;;  %v2325_v61 = vrot.slane %v2324_v52, 4  ;;  %v2334_v63 = vor.u32 %v2333_v53, %v2329_v40  ;;  %v448_v1 = vrot.slane %v446_v54, 5  ;;  %v7633_v54 = vld [vmem:[%s7325_s10 + $0x7c] sm:$0xf] }
  0x5a   : > { %v454_v2 = vrot.slane %v452_v55, 5  ;;  %v458_v3 = vrot.slane %v456_v58, 4  ;;  %v462_v7 = vshll.u32 %v239_v43, 16  ;;  %v5684_v10 = vrot.slane %v5668_v50, 9  ;;  %v241_v58 = vld [vmem:[%s7325_s10 + $0x80] sm:$0x1] }
  0x5b   : > { %6379 = vmatmul.mubr.bf16.gmra.mrb[12].mxu1 %v5411_v59  ;;  %v2330_v11 = vsel %vm7357_vm2, %v2325_v61, %v2329_v40  ;;  %v2335_v12 = vrot.slane %v2334_v63, 4  ;;  %v449_v13 = vor.u32 %v448_v1, %v445_v57  ;;  %v2921_v15 = vrot.slane %v7338_v23, 5  ;;  %v240_v40 = vld [vmem:[%s7325_s10 + $0x74] sm:$0x1]  ;;  %v5669_v23 = vld [vmem:[%s7325_s10 + $0x18] sm:$0xe] }
  0x5c   : > { %v459_v16 = vor.u32 %v458_v3, %v454_v2  ;;  %v464_v18 = vrot.slane %v462_v7, 5  ;;  %v467_v26 = vshrl.u32 %v7599_v5, 16  ;;  %v470_v29 = vshll.u32 %v7599_v5, 16 }
  0x5d   : > { %v2340_v30 = vsel %vm7357_vm2, %v2335_v12, %v2339_v56  ;;  %v450_v34 = vrot.slane %v449_v13, 4  ;;  %v2922_v38 = vsel %vm7603_vm5, %v5684_v10, %v2921_v15  ;;  %v2923_v39 = vrot.slane %v2921_v15, 4  ;;  %v5670_v13 = vld [vmem:[%s7325_s10 + $0x24] sm:$0xe] }
  0x5e   : > { %v5651_v42 = vcombine.low %v2330_v11, %v2340_v30  ;;  %v460_v43 = vrot.slane %v459_v16, 4  ;;  %v469_v31 = vrot.slane %v467_v26, 4  ;;  %v472_v44 = vrot.slane %v470_v29, 5  ;;  %v7655_v16 = vld [vmem:[%s7325_s10 + $0x84] sm:$0xf]  ;;  %v7094_v29 = vld [vmem:[%s9244_s1 + $0x188] sm:$0xff]  }
  0x5f   : > { %v455_v49 = vsel %vm7357_vm2, %v450_v34, %v454_v2  ;;  %v2925_v50 = vsel %vm7603_vm5, %v2923_v39, %v2924_v41  ;;  %v476_v52 = vshll.u32 %v7611_v21, 16  ;;  %v480_v53 = vshrl.u32 %v7611_v21, 16 }
  0x60   : > { %6571 = vmatmul.mubr.bf16.gmra.mrb[12].mxu0 %v5651_v42  ;;  %v465_v55 = vsel %vm7357_vm2, %v460_v43, %v464_v18  ;;  %v5716_v48 = vcombine.low %v2922_v38, %v2925_v50  ;;  %v473_v56 = vor.u32 %v472_v44, %v469_v31  ;;  %v486_v57 = vshll.u32 %v240_v40, 16  ;;  %v7663_v40 = vld [vmem:[%s7325_s10 + $0x88] sm:$0xf]  ;;  %v242_v31 = vld [vmem:[%s7325_s10 + $0x8c] sm:$0x1] }
  0x61   : > { %v5412_v59 = vcombine.low %v455_v49, %v465_v55  ;;  %v478_v24 = vrot.slane %v476_v52, 5  ;;  %v482_v61 = vrot.slane %v480_v53, 4  ;;  %v5685_v63 = vrot.slane %v5669_v23, 9 }
  0x62   : > { %6606 = vmatprep.mubr.bf16.mxu0 %v5716_v48  ;;  %v474_v41 = vrot.slane %v473_v56, 4  ;;  %v488_v1 = vrot.slane %v486_v57, 5  ;;  %v2932_v2 = vsel %vm7603_vm5, %v7406_v36, %v2931_v32  ;;  %v491_v3 = vshrl.u32 %v7622_v47, 16 }
  0x63   : > { %6382 = vmatprep.mubr.bf16.mxu1 %v5412_v59  ;;  %v483_v7 = vor.u32 %v482_v61, %v478_v24  ;;  %v2929_v10 = vsel %vm7603_vm5, %v5685_v63, %v2928_v27  ;;  %v494_v11 = vshll.u32 %v7622_v47, 16  ;;  %v500_v12 = vshll.u32 %v7633_v54, 16 }
  0x64   : > { %v479_v8 = vsel %vm7357_vm2, %v474_v41, %v478_v24  ;;  %v5717_v15 = vcombine.low %v2929_v10, %v2932_v2  ;;  %v493_v32 = vrot.slane %v491_v3, 4  ;;  %v504_v36 = vshrl.u32 %v7633_v54, 16  ;;  %v7684_v2 = vld [vmem:[%s7325_s10 + $0x90] sm:$0xf]  ;;  %v7687_v3 = vld [vmem:[%s7325_s10 + $0x94] sm:$0xf] }
  0x65   : > { %v484_v62 = vrot.slane %v483_v7, 4  ;;  %v496_v18 = vrot.slane %v494_v11, 5  ;;  %v502_v26 = vrot.slane %v500_v12, 5  ;;  %v510_v27 = vshll.u32 %v241_v58, 16 }
  0x66   : > { %v506_v30 = vrot.slane %v504_v36, 4  ;;  %v5686_v34 = vrot.slane %v5670_v13, 9  ;;  %v2935_v38 = vrot.slane %v7410_v45, 5  ;;  %v2938_v39 = vrot.slane %v7416_v51, 5  ;;  %v5671_v45 = vld [vmem:[%s7325_s10 + $0x30] sm:$0xe] }
  0x67   : > { %v489_v23 = vsel %vm7357_vm2, %v484_v62, %v488_v1  ;;  %v497_v42 = vor.u32 %v496_v18, %v493_v32  ;;  %v512_v43 = vrot.slane %v510_v27, 5  ;;  %v515_v44 = vshrl.u32 %v7655_v16, 16  ;;  %v243_v62 = vld [vmem:[%s7325_s10 + $0x98] sm:$0x1] }
  0x68   : > { %v5413_v49 = vcombine.low %v479_v8, %v489_v23  ;;  %6607 = vmatmul.mubr.bf16.vlgmr.msra.gmra.mrb[0].mxu0 %v5717_v15  ;;  %v507_v50 = vor.u32 %v506_v30, %v502_v26  ;;  %v2936_v52 = vsel %vm7603_vm5, %v5686_v34, %v2935_v38  ;;  %v2937_v53 = vrot.slane %v2935_v38, 4  ;;  %v7098_v30 = vld [vmem:[%s9244_s1 + $0x198] sm:$0xff]  }
  0x69   : > { %6639 = vmatpush3.bf16.msra.mxu0 %v7546_v6  ;;  %v498_v51 = vrot.slane %v497_v42, 4  ;;  %v517_v55 = vrot.slane %v515_v44, 4  ;;  %v518_v48 = vshll.u32 %v7655_v16, 16  ;;  %v524_v56 = vshll.u32 %v7663_v40, 16  ;;  %v7096_v6 = vld [vmem:[%s9244_s1 + $0x190] sm:$0xff]  }
  0x6a   : > { %6383 = vmatmul.mubr.bf16.gmra.mrb[16].mxu1 %v5413_v49  ;;  %v508_v57 = vrot.slane %v507_v50, 4  ;;  %v2939_v58 = vsel %vm7603_vm5, %v2937_v53, %v2938_v39  ;;  %v528_v59 = vshrl.u32 %v7663_v40, 16  ;;  %v534_v24 = vshll.u32 %v242_v31, 16  ;;  %6640 = vmatprep.subr.bf16.mxu0 %v7094_v29  ;;  %v5672_v38 = vld [vmem:[%s7325_s10 + $0x3c] sm:$0xe] }
  0x6b   : > { %v503_v61 = vsel %vm7357_vm2, %v498_v51, %v502_v26  ;;  %v5718_v63 = vcombine.low %v2936_v52, %v2939_v58  ;;  %v520_v41 = vrot.slane %v518_v48, 5  ;;  %v526_v1 = vrot.slane %v524_v56, 5  ;;  %v7705_v31 = vld [vmem:[%s7325_s10 + $0x9c] sm:$0xf]  ;;  %v7714_v48 = vld [vmem:[%s7325_s10 + $0xa0] sm:$0xf] }
  0x6c   : > { %v513_v7 = vsel %vm7357_vm2, %v508_v57, %v512_v43  ;;  %v530_v10 = vrot.slane %v528_v59, 4  ;;  %v536_v11 = vrot.slane %v534_v24, 5  ;;  %v5687_v12 = vrot.slane %v5671_v45, 9  ;;  %v7102_v56 = vld [vmem:[%s9244_s1 + $0x1a0] sm:$0xff]  }
  0x6d   : > { %v5414_v13 = vcombine.low %v503_v61, %v513_v7  ;;  %6610 = vmatprep.mubr.bf16.mxu0 %v5718_v63  ;;  %v521_v8 = vor.u32 %v520_v41, %v517_v55  ;;  %v2942_v15 = vrot.slane %v7441_v33, 5  ;;  %v2945_v32 = vrot.slane %v7452_v46, 5  ;;  %6641 = vmatpush3.bf16.msra.mxu0 %v7094_v29  ;;  %v244_v61 = vld [vmem:[%s7325_s10 + $0xa4] sm:$0x1] }
  0x6e   : > { %v531_v36 = vor.u32 %v530_v10, %v526_v1  ;;  %v539_v18 = vshrl.u32 %v7684_v2, 16  ;;  %v542_v26 = vshll.u32 %v7684_v2, 16  ;;  %v548_v27 = vshll.u32 %v7687_v3, 16  ;;  %6642 = vmatprep.subr.bf16.mxu0 %v7096_v6 }
  0x6f   : > { %6386 = vmatprep.mubr.bf16.mxu1 %v5414_v13  ;;  %v522_v34 = vrot.slane %v521_v8, 4  ;;  %v2943_v33 = vsel %vm7603_vm5, %v5687_v12, %v2942_v15  ;;  %v2944_v46 = vrot.slane %v2942_v15, 4  ;;  %v552_v29 = vshrl.u32 %v7687_v3, 16  ;;  %v5673_v15 = vld [vmem:[%s7325_s10 + $0x48] sm:$0xe] }
  0x70   : > { %v532_v39 = vrot.slane %v531_v36, 4  ;;  %v541_v23 = vrot.slane %v539_v18, 4  ;;  %v544_v42 = vrot.slane %v542_v26, 5  ;;  %v550_v43 = vrot.slane %v548_v27, 5  ;;  %v7739_v27 = vld [vmem:[%s7325_s10 + $0xa8] sm:$0xf] }
  0x71   : > { %v527_v44 = vsel %vm7357_vm2, %v522_v34, %v526_v1  ;;  %v2946_v49 = vsel %vm7603_vm5, %v2944_v46, %v2945_v32  ;;  %v554_v50 = vrot.slane %v552_v29, 4  ;;  %v558_v52 = vshll.u32 %v243_v62, 16  ;;  %6643 = vmatpush3.bf16.msra.mxu0 %v7096_v6  ;;  %v7106_v32 = vld [vmem:[%s9244_s1 + $0x1a8] sm:$0xff]  }
  0x72   : > { %v537_v53 = vsel %vm7357_vm2, %v532_v39, %v536_v11  ;;  %v5719_v45 = vcombine.low %v2943_v33, %v2946_v49  ;;  %v545_v51 = vor.u32 %v544_v42, %v541_v23  ;;  %v5688_v55 = vrot.slane %v5672_v38, 9  ;;  %6644 = vmatprep.subr.bf16.mxu0 %v7098_v30  ;;  %v7742_v29 = vld [vmem:[%s7325_s10 + $0xac] sm:$0xf] }
  0x73   : > { %v5415_v57 = vcombine.low %v527_v44, %v537_v53  ;;  %v555_v58 = vor.u32 %v554_v50, %v550_v43  ;;  %v560_v59 = vrot.slane %v558_v52, 5  ;;  %v2949_v24 = vrot.slane %v7475_v19, 5  ;;  %v5674_v53 = vld [vmem:[%s7325_s10 + $0x54] sm:$0xe] }
  0x74   : > { %6611 = vmatmul.mubr.bf16.gmra.mrb[4].mxu0 %v5719_v45  ;;  %v546_v6 = vrot.slane %v545_v51, 4  ;;  %v2952_v63 = vrot.slane %v7483_v28, 5  ;;  %v563_v41 = vshrl.u32 %v7705_v31, 16  ;;  %v566_v1 = vshll.u32 %v7705_v31, 16  ;;  %v7110_v45 = vld [vmem:[%s9244_s1 + $0x1b0] sm:$0xff]  }
  0x75   : > { %6387 = vmatmul.mubr.bf16.gmra.mrb[20].mxu1 %v5415_v57  ;;  %v556_v7 = vrot.slane %v555_v58, 4  ;;  %v2950_v10 = vsel %vm7603_vm5, %v5688_v55, %v2949_v24  ;;  %v2951_v11 = vrot.slane %v2949_v24, 4  ;;  %v572_v12 = vshll.u32 %v7714_v48, 16  ;;  %6645 = vmatpush3.bf16.msra.mxu0 %v7098_v30 }
  0x76   : > { %v551_v19 = vsel %vm7357_vm2, %v546_v6, %v550_v43  ;;  %v565_v13 = vrot.slane %v563_v41, 4  ;;  %v568_v28 = vrot.slane %v566_v1, 5  ;;  %v576_v8 = vshrl.u32 %v7714_v48, 16  ;;  %6646 = vmatprep.subr.bf16.mxu0 %v7102_v56  ;;  %v245_v43 = vld [vmem:[%s7325_s10 + $0xb0] sm:$0x1] }
  0x77   : > { %v561_v36 = vsel %vm7357_vm2, %v556_v7, %v560_v59  ;;  %v2953_v62 = vsel %vm7603_vm5, %v2951_v11, %v2952_v63  ;;  %v574_v18 = vrot.slane %v572_v12, 5  ;;  %v582_v26 = vshll.u32 %v244_v61, 16  ;;  %v7762_v41 = vld [vmem:[%s7325_s10 + $0xb4] sm:$0xf]  ;;  %v7767_v12 = vld [vmem:[%s7325_s10 + $0xb8] sm:$0xf] }
  0x78   : > { %v5416_v30 = vcombine.low %v551_v19, %v561_v36  ;;  %v5720_v34 = vcombine.low %v2950_v10, %v2953_v62  ;;  %v569_v33 = vor.u32 %v568_v28, %v565_v13  ;;  %v578_v46 = vrot.slane %v576_v8, 4  ;;  %v246_v19 = vld [vmem:[%s7325_s10 + $0xbc] sm:$0x1] }
  0x79   : > { %v584_v38 = vrot.slane %v582_v26, 5  ;;  %v5689_v39 = vrot.slane %v5673_v15, 9  ;;  %v2956_v23 = vrot.slane %v7510_v14, 5  ;;  %v2959_v42 = vrot.slane %v7516_v22, 5  ;;  %6647 = vmatpush3.bf16.msra.mxu0 %v7102_v56  ;;  %v7114_v13 = vld [vmem:[%s9244_s1 + $0x1b8] sm:$0xff]  }
  0x7a   : > { %6390 = vmatprep.mubr.bf16.mxu1 %v5416_v30  ;;  %6614 = vmatprep.mubr.bf16.mxu0 %v5720_v34  ;;  %v570_v44 = vrot.slane %v569_v33, 4  ;;  %v579_v49 = vor.u32 %v578_v46, %v574_v18  ;;  %v587_v50 = vshrl.u32 %v7739_v27, 16  ;;  %v590_v52 = vshll.u32 %v7739_v27, 16  ;;  %v5675_v30 = vld [vmem:[%s7325_s10 + $0x60] sm:$0xe] }
  0x7b   : > { %v2957_v14 = vsel %vm7603_vm5, %v5689_v39, %v2956_v23  ;;  %v2958_v22 = vrot.slane %v2956_v23, 4  ;;  %v596_v51 = vshll.u32 %v7742_v29, 16  ;;  %v600_v55 = vshrl.u32 %v7742_v29, 16  ;;  %6648 = vmatprep.subr.bf16.mxu0 %v7106_v32  ;;  %v5605_v39 = vld [vmem:[%s7325_s10 + $0x70] sm:$0xf] }
  0x7c   : > { %v575_v56 = vsel %vm7357_vm2, %v570_v44, %v574_v18  ;;  %v580_v57 = vrot.slane %v579_v49, 4  ;;  %v589_v58 = vrot.slane %v587_v50, 4  ;;  %v592_v59 = vrot.slane %v590_v52, 5  ;;  %v7789_v44 = vld [vmem:[%s9244_s1 + $0x1c0] sm:$0xff]  }
  0x7d   : > { %v2960_v24 = vsel %vm7603_vm5, %v2958_v22, %v2959_v42  ;;  %v598_v61 = vrot.slane %v596_v51, 5  ;;  %v602_v6 = vrot.slane %v600_v55, 4  ;;  %v606_v63 = vshll.u32 %v245_v43, 16  ;;  %6649 = vmatpush3.bf16.msra.mxu0 %v7106_v32  ;;  %v5676_v43 = vld [vmem:[%s7325_s10 + $0x6c] sm:$0xe] }
  0x7e   : > { %v585_v1 = vsel %vm7357_vm2, %v580_v57, %v584_v38  ;;  %v5721_v7 = vcombine.low %v2957_v14, %v2960_v24  ;;  %v593_v10 = vor.u32 %v592_v59, %v589_v58  ;;  %v5690_v11 = vrot.slane %v5674_v53, 9  ;;  %6650 = vmatprep.subr.bf16.mxu0 %v7110_v45  ;;  %v5606_v55 = vld [vmem:[%s7325_s10 + $0x74] sm:$0x1]  ;;  %v5677_v24 = vld [vmem:[%s7325_s10 + $0x78] sm:$0xe] }
  0x7f   : > { %v5417_v28 = vcombine.low %v575_v56, %v585_v1  ;;  %v603_v8 = vor.u32 %v602_v6, %v598_v61  ;;  %v608_v15 = vrot.slane %v606_v63, 5  ;;  %v2963_v32 = vrot.slane %v7541_v0, 5 }
  0x80   : > { %6615 = vmatmul.mubr.bf16.gmra.mrb[8].mxu0 %v5721_v7  ;;  %v594_v36 = vrot.slane %v593_v10, 4  ;;  %v2966_v62 = vrot.slane %v7553_v20, 5  ;;  %v611_v18 = vshrl.u32 %v7762_v41, 16  ;;  %v614_v26 = vshll.u32 %v7762_v41, 16 }
  0x81   : > { %6391 = vmatmul.mubr.bf16.gmra.mrb[24].mxu1 %v5417_v28  ;;  %v604_v34 = vrot.slane %v603_v8, 4  ;;  %v2964_v33 = vsel %vm7603_vm5, %v5690_v11, %v2963_v32  ;;  %v2965_v46 = vrot.slane %v2963_v32, 4  ;;  %v620_v38 = vshll.u32 %v7767_v12, 16  ;;  %6651 = vmatpush3.bf16.msra.mxu0 %v7110_v45  ;;  %v7802_v11 = vld [vmem:[%s7325_s10 + $0x7c] sm:$0xf] }
  0x82   : > { %v599_v0 = vsel %vm7357_vm2, %v594_v36, %v598_v61  ;;  %v613_v20 = vrot.slane %v611_v18, 4  ;;  %v616_v23 = vrot.slane %v614_v26, 5  ;;  %v624_v42 = vshrl.u32 %v7767_v12, 16  ;;  %6652 = vmatprep.subr.bf16.mxu0 %v7114_v13  ;;  %v7183_v36 = vld [vmem:[%s7325_s10] sm:$0xf] }
  0x83   : > { %v609_v49 = vsel %vm7357_vm2, %v604_v34, %v608_v15  ;;  %v2967_v50 = vsel %vm7603_vm5, %v2965_v46, %v2966_v62  ;;  %v622_v52 = vrot.slane %v620_v38, 5  ;;  %v630_v53 = vshll.u32 %v246_v19, 16  ;;  %v5611_v15 = vld [vmem:[%s7325_s10 + $0x88] sm:$0xf]  ;;  %v7817_v62 = vld [vmem:[%s7325_s10 + $0x4] sm:$0xf] }
  0x84   : > { %v5418_v45 = vcombine.low %v599_v0, %v609_v49  ;;  %v5722_v14 = vcombine.low %v2964_v33, %v2967_v50  ;;  %v617_v22 = vor.u32 %v616_v23, %v613_v20  ;;  %v626_v51 = vrot.slane %v624_v42, 4  ;;  %v5612_v26 = vld [vmem:[%s7325_s10 + $0x8c] sm:$0x1]  ;;  %v5615_v23 = vld [vmem:[%s7325_s10 + $0x98] sm:$0x1] }
  0x85   : > { %v632_v56 = vrot.slane %v630_v53, 5  ;;  %v5691_v57 = vrot.slane %v5675_v30, 9  ;;  %v2970_v58 = vrot.slane %v7568_v60, 5  ;;  %v2973_v59 = vrot.slane %v7577_v17, 5  ;;  %6653 = vmatpush3.bf16.msra.mxu0 %v7114_v13  ;;  %v7805_v17 = vld [vmem:[%s7325_s10 + $0x80] sm:$0x1] }
  0x86   : > { %6394 = vmatprep.mubr.bf16.mxu1 %v5418_v45  ;;  %6618 = vmatprep.mubr.bf16.mxu0 %v5722_v14  ;;  %v618_v61 = vrot.slane %v617_v22, 4  ;;  %v627_v6 = vor.u32 %v626_v51, %v622_v52  ;;  %v5692_v63 = vrot.slane %v5676_v43, 9  ;;  %v2977_v1 = vrot.slane %v5605_v39, 5  ;;  %v5678_v30 = vld [vmem:[%s7325_s10 + $0x84] sm:$0xe] }
  0x87   : > { %v2971_v7 = vsel %vm7603_vm5, %v5691_v57, %v2970_v58  ;;  %v2972_v10 = vrot.slane %v2970_v58, 4  ;;  %v2980_v60 = vrot.slane %v5606_v55, 5  ;;  %6686 = vmatprep.subr.bf16.mxu0 %v7789_v44  ;;  %v5428_v18 = vcombine.low %v7183_v36, %v7817_v62  ;;  %v5614_v39 = vld [vmem:[%s7325_s10 + $0x94] sm:$0xf]  ;;  %v5679_v42 = vld [vmem:[%s7325_s10 + $0x90] sm:$0xe] }
  0x88   : > { %v623_v19 = vsel %vm7357_vm2, %v618_v61, %v622_v52  ;;  %v628_v13 = vrot.slane %v627_v6, 4  ;;  %v2978_v28 = vsel %vm7603_vm5, %v5692_v63, %v2977_v1  ;;  %v2979_v8 = vrot.slane %v2977_v1, 4  ;;  %v5680_v50 = vld [vmem:[%s7325_s10 + $0x9c] sm:$0xe]  ;;  %v5617_v14 = vld [vmem:[%s7325_s10 + $0xa0] sm:$0xf] }
  0x89   : > { %v2974_v32 = vsel %vm7603_vm5, %v2972_v10, %v2973_v59  ;;  %v5693_v38 = vrot.slane %v5677_v24, 9  ;;  %v2984_v43 = vrot.slane %v7802_v11, 5  ;;  %v2987_v49 = vrot.slane %v7805_v17, 5  ;;  %v5618_v22 = vld [vmem:[%s7325_s10 + $0xa4] sm:$0x1] }
  0x8a   : > { %v633_v34 = vsel %vm7357_vm2, %v628_v13, %v632_v56  ;;  %v5723_v33 = vcombine.low %v2971_v7, %v2974_v32  ;;  %v2981_v46 = vsel %vm7603_vm5, %v2979_v8, %v2980_v60  ;;  %v5694_v52 = vrot.slane %v5678_v30, 9  ;;  %v5620_v59 = vld [vmem:[%s7325_s10 + $0xac] sm:$0xf]  ;;  %v7841_v61 = vld [vmem:[%s7325_s10 + $0x10] sm:$0xf] }
  0x8b   : > { %v5419_v0 = vcombine.low %v623_v19, %v633_v34  ;;  %v5724_v20 = vcombine.low %v2978_v28, %v2981_v46  ;;  %v2991_v53 = vrot.slane %v5611_v15, 5  ;;  %v2994_v45 = vrot.slane %v5612_v26, 5  ;;  %v7185_v24 = vld [vmem:[%s7325_s10 + $0xc] sm:$0xf]  ;;  %v7187_v8 = vld [vmem:[%s7325_s10 + $0x18] sm:$0xf] }
  0x8c   : > { %6619 = vmatmul.mubr.bf16.gmra.mrb[12].mxu0 %v5723_v33  ;;  %v2985_v51 = vsel %vm7603_vm5, %v5693_v38, %v2984_v43  ;;  %v2986_v55 = vrot.slane %v2984_v43, 4  ;;  %v2998_v58 = vrot.slane %v5614_v39, 5  ;;  %v5429_v6 = vcombine.low %v7185_v24, %v7841_v61  ;;  %v7105_v19 = vld [vmem:[%s9244_s1 + $0x88] sm:$0xff]   ;;  %v7853_v15 = vld [vmem:[%s7325_s10 + $0x1c] sm:$0xf] }
  0x8d   : > { %6395 = vmatmul.mubr.bf16.gmra.mrb[28].mxu1 %v5419_v0  ;;  %6622 = vmatprep.mubr.bf16.mxu0 %v5724_v20  ;;  %v2992_v56 = vsel %vm7603_vm5, %v5694_v52, %v2991_v53  ;;  %v2993_v57 = vrot.slane %v2991_v53, 4  ;;  %v5695_v1 = vrot.slane %v5679_v42, 9  ;;  %v3001_v7 = vrot.slane %v5615_v23, 5  ;;  %v5621_v30 = vld [vmem:[%s7325_s10 + $0xb0] sm:$0x1] }
  0x8e   : > { %6414 = vmatprep.mubr.bf16.mxu1 %v5428_v18  ;;  %v2988_v63 = vsel %vm7603_vm5, %v2986_v55, %v2987_v49  ;;  %v3000_v13 = vrot.slane %v2998_v58, 4  ;;  %v5696_v28 = vrot.slane %v5680_v50, 9  ;;  %v5430_v32 = vcombine.low %v7187_v8, %v7853_v15  ;;  %v5681_v34 = vld [vmem:[%s7325_s10 + $0xa8] sm:$0xe]  ;;  %v5623_v33 = vld [vmem:[%s7325_s10 + $0xb8] sm:$0xf] }
  0x8f   : > { %v5725_v10 = vcombine.low %v2985_v51, %v2988_v63  ;;  %v2995_v60 = vsel %vm7603_vm5, %v2993_v57, %v2994_v45  ;;  %v3005_v18 = vrot.slane %v5617_v14, 5  ;;  %v3008_v26 = vrot.slane %v5618_v22, 5  ;;  %v5624_v20 = vld [vmem:[%s7325_s10 + $0xbc] sm:$0x1]  ;;  %v5682_v23 = vld [vmem:[%s7325_s10 + $0xb4] sm:$0xe] }
  0x90   : > { %v5726_v36 = vcombine.low %v2992_v56, %v2995_v60  ;;  %v3012_v38 = vrot.slane %v5620_v59, 5  ;;  %v2999_v39 = vsel %vm7603_vm5, %v5695_v1, %v2998_v58  ;;  %v3002_v0 = vsel %vm7603_vm5, %v3000_v13, %v3001_v7  ;;  %v7109_v50 = vld [vmem:[%s9244_s1 + $0x90] sm:$0xff]   ;;  %v5626_v53 = vld [vmem:[%s7325_s10 + $0xc4] sm:$0xf]  ;;  %v7876_v51 = vld [vmem:[%s7325_s10 + $0x28] sm:$0xf] }
  0x91   : > { %v3007_v46 = vrot.slane %v3005_v18, 4  ;;  %v3006_v42 = vsel %vm7603_vm5, %v5696_v28, %v3005_v18  ;;  %v3019_v49 = vrot.slane %v5623_v33, 5  ;;  %v5697_v52 = vrot.slane %v5681_v34, 9  ;;  %v7189_v22 = vld [vmem:[%s7325_s10 + $0x24] sm:$0xf]  ;;  %v7113_v1 = vld [vmem:[%s9244_s1 + $0x98] sm:$0xff]  }
  0x92   : > { %v5727_v45 = vcombine.low %v2999_v39, %v3002_v0  ;;  %v3014_v14 = vrot.slane %v3012_v38, 4  ;;  %v5431_v55 = vcombine.low %v7189_v22, %v7876_v51  ;;  %v7191_v57 = vld [vmem:[%s7325_s10 + $0x30] sm:$0xf]  ;;  %v7881_v58 = vld [vmem:[%s7325_s10 + $0x34] sm:$0xf]  ;;  %v5698_v24 = vrot.slane %v5682_v23, 9 }
  0x93   : > { %v3009_v43 = vsel %vm7603_vm5, %v3007_v46, %v3008_v26  ;;  %v5432_v59 = vcombine.low %v7191_v57, %v7881_v58  ;;  %v3022_v63 = vrot.slane %v5624_v20, 5  ;;  %v5683_v7 = vld [vmem:[%s7325_s10 + $0xc0] sm:$0xe]  ;;  %v3013_v60 = vsel %vm7603_vm5, %v5697_v52, %v3012_v38  ;;  %v5627_v8 = vld [vmem:[%s7325_s10 + $0xc8] sm:$0x1]  ;;  %v7116_v22 = vld [vmem:[%s7325_s10 + $0x18] sm:$0xff]  }
  0x94   : > { %6623 = vmatmul.mubr.bf16.gmra.mrb[16].mxu0 %v5725_v10  ;;  %v5728_v56 = vcombine.low %v3006_v42, %v3009_v43  ;;  %v3026_v10 = vrot.slane %v5626_v53, 5  ;;  %v3020_v13 = vsel %vm7603_vm5, %v5698_v24, %v3019_v49  ;;  %v5699_v18 = vrot.slane %v5683_v7, 9  ;;  %v7193_v26 = vld [vmem:[%s7325_s10 + $0x3c] sm:$0xf]  ;;  %v7195_v39 = vld [vmem:[%s7325_s10 + $0x48] sm:$0xf] }
  0x95   : > { %6415 = vmatmul.mubr.bf16.vlgmr.msra.gmra.mrb[0].mxu1 %v5429_v6  ;;  %6626 = vmatprep.mubr.bf16.mxu0 %v5726_v36  ;;  %v3021_v6 = vrot.slane %v3019_v49, 4  ;;  %v3029_v38 = vrot.slane %v5627_v8, 5  ;;  %v7907_v0 = vld [vmem:[%s7325_s10 + $0x4c] sm:$0xf]  ;;  %v7130_v49 = vld [vmem:[%s9244_s1 + $0xb0] sm:$0xff]   ;;  %v2379_v52 = vshrl.u32 %v7802_v11, 16 }
  0x96   : > { %6447 = vmatpush3.bf16.msra.mxu1 %v7527_v4  ;;  %6418 = vmatprep.mubr.bf16.mxu1 %v5430_v32  ;;  %v3015_v4 = vrot.slane %v5621_v30, 5  ;;  %v7118_v32 = vld [vmem:[%s9244_s1 + $0xa0] sm:$0xff]   ;;  %v3028_v46 = vrot.slane %v3026_v10, 4  ;;  %v5434_v20 = vcombine.low %v7195_v39, %v7907_v0  ;;  %v7124_v23 = vld [vmem:[%s9244_s1 + $0xa8] sm:$0xff]   ;;  %v3027_v42 = vsel %vm7603_vm5, %v5699_v18, %v3026_v10  ;;  %v7122_v18 = vld [vmem:[%s7325_s10 + $0x30] sm:$0xff]  }
  0x97   : > { %6448 = vmatprep.subr.bf16.mxu1 %v7105_v19  ;;  %v3023_v28 = vsel %vm7603_vm5, %v3021_v6, %v3022_v63  ;;  %v7902_v30 = vld [vmem:[%s7325_s10 + $0x40] sm:$0xf]  ;;  %v7935_v57 = vrot.slane %v2379_v52, 4  ;;  %v7119_v6 = vld [vmem:[%s7325_s10 + $0x24] sm:$0xff]   ;;  %v1289_v7 = vrot.slane %v7841_v61, 5  ;;  %v2385_v8 = vshll.u32 %v7805_v17, 16 }
  0x98   : > { %v5433_v34 = vcombine.low %v7193_v26, %v7902_v30  ;;  %v5730_v33 = vcombine.low %v3020_v13, %v3023_v28  ;;  %v3030_v43 = vsel %vm7603_vm5, %v3028_v46, %v3029_v38  ;;  %v1229_v63 = vld [vmem:[%s7325_s10] sm:$0xe]  ;;  %v1230_v10 = vld [vmem:[%s7325_s10 + $0xc] sm:$0xe]  ;;  %v1296_v13 = vrot.slane %v7853_v15, 5 }
  0x99   : > { %v5731_v53 = vcombine.low %v3027_v42, %v3030_v43  ;;  %v1232_v61 = vld [vmem:[%s7325_s10 + $0x24] sm:$0xe]  ;;  %v5439_v15 = vcombine.low %v7655_v16, %v7663_v40  ;;  %v5440_v26 = vcombine.low %v7684_v2, %v7687_v3  ;;  %v5452_v17 = vrot.slane %v1229_v63, 9  ;;  %v7201_v38 = vld [vmem:[%s7325_s10 + $0x20] sm:$0x1]  ;;  %v7131_v2 = vld [vmem:[%s7325_s10 + $0x54] sm:$0xff]  }
  0x9a   : > { %6449 = vmatpush3.bf16.msra.mxu1 %v7105_v19  ;;  %v3016_v19 = vsel %vm7603_vm5, %v3014_v14, %v3015_v4  ;;  %v7924_v14 = vld [vmem:[%s7325_s10 + $0x58] sm:$0xf]  ;;  %v1298_v46 = vrot.slane %v1296_v13, 4  ;;  %v1299_v39 = vrot.slane %v7201_v38, 5  ;;  %v7202_v43 = vld [vmem:[%s7325_s10 + $0x2c] sm:$0x1] }
  0x9b   : > { %6450 = vmatprep.subr.bf16.mxu1 %v7109_v50  ;;  %v5729_v36 = vcombine.low %v3013_v60, %v3016_v19  ;;  %v7950_v60 = vld [vmem:[%s9244_s1 + $0xc0] sm:$0xff]   ;;  %v1231_v19 = vld [vmem:[%s7325_s10 + $0x18] sm:$0xe]  ;;  %v7205_v38 = vld [vmem:[%s7325_s10 + $0x50] sm:$0x1]  ;;  %v1331_v16 = vrot.slane %v7924_v14, 5 }
  0x9c   : > { %6627 = vmatmul.mubr.bf16.gmra.mrb[20].mxu0 %v5727_v45  ;;  %v7197_v45 = vld [vmem:[%s7325_s10 + $0x54] sm:$0xf]  ;;  %v8073_v40 = vld [vmem:[%s7325_s10 + $0x64] sm:$0xf] }
  0x9d   : > { %6419 = vmatmul.mubr.bf16.gmra.mrb[4].mxu1 %v5431_v55  ;;  %6630 = vmatprep.mubr.bf16.mxu0 %v5728_v56  ;;  %v5435_v4 = vcombine.low %v7197_v45, %v7924_v14  ;;  %v5436_v55 = vcombine.low %v7581_v25, %v7584_v35  ;;  %v7136_v56 = vld [vmem:[%s9244_s1 + $0xb8] sm:$0xff]   ;;  %v7200_v25 = vld [vmem:[%s7325_s10 + $0x14] sm:$0x1]  ;;  %v7134_v3 = vld [vmem:[%s7325_s10 + $0x60] sm:$0xff]  }
  0x9e   : > { %6422 = vmatprep.mubr.bf16.mxu1 %v5432_v59  ;;  %6451 = vmatpush3.bf16.msra.mxu1 %v7109_v50  ;;  %v2375_v50 = vshll.u32 %v7802_v11, 16  ;;  %v7938_v59 = vld [vmem:[%s7325_s10 + $0x8] sm:$0x1]  ;;  %v1292_v35 = vrot.slane %v7200_v25, 5 }
  0x9f   : > { %6452 = vmatprep.subr.bf16.mxu1 %v7113_v1  ;;  %v1285_v24 = vrot.slane %v7938_v59, 5 }
  0xa0   : > { %v7933_v11 = vrot.slane %v2375_v50, 5 }
  0xa2   : > { %6453 = vmatpush3.bf16.msra.mxu1 %v7113_v1  ;;  %v1282_v1 = vrot.slane %v7817_v62, 5  ;;  %v5437_v62 = vcombine.low %v7599_v5, %v7611_v21  ;;  %v5453_v21 = vrot.slane %v1230_v10, 9  ;;  %v5812_v10 = vld [vmem:[%s7325_s10 + $0x18] sm:$0xf] }
  0xa3   : > { %6454 = vmatprep.subr.bf16.mxu1 %v7118_v32 }
  0xa4   : > { %6631 = vmatmul.mubr.bf16.gmra.mrb[24].mxu0 %v5729_v36  ;;  %v5438_v36 = vcombine.low %v7622_v47, %v7633_v54  ;;  %v1284_v5 = vrot.slane %v1282_v1, 4  ;;  %v7126_v47 = vld [vmem:[%s9244_s1 + $0x1c8] sm:$0xff]   ;;  %v5454_v54 = vrot.slane %v1231_v19, 9  ;;  %v7993_v59 = vsel %vm7603_vm5, %v5452_v17, %v1282_v1  ;;  %v5813_v19 = vld [vmem:[%s7325_s10 + $0x1c] sm:$0xf] }
  0xa5   : > { %6423 = vmatmul.mubr.bf16.gmra.mrb[8].mxu1 %v5433_v34  ;;  %6634 = vmatprep.mubr.bf16.mxu0 %v5730_v33  ;;  %v1310_v34 = vrot.slane %v7881_v58, 5  ;;  %v1291_v33 = vrot.slane %v1289_v7, 4  ;;  %v5455_v58 = vrot.slane %v1232_v61, 9  ;;  %v1324_v1 = vrot.slane %v7907_v0, 5  ;;  %v7128_v0 = vld [vmem:[%s7325_s10 + $0x48] sm:$0xff]  }
  0xa6   : > { %6426 = vmatprep.mubr.bf16.mxu1 %v5434_v20  ;;  %6455 = vmatpush3.bf16.msra.mxu1 %v7118_v32  ;;  %v1303_v32 = vrot.slane %v7876_v51, 5  ;;  %v1233_v51 = vld [vmem:[%s7325_s10 + $0x30] sm:$0xe]  ;;  %v5441_v20 = vcombine.low %v7705_v31, %v7714_v48  ;;  %v8001_v25 = vsel %vm7603_vm5, %v1284_v5, %v1285_v24  ;;  %v8009_v63 = vsel %vm7603_vm5, %v5454_v54, %v1296_v13  ;;  %v1235_v13 = vld [vmem:[%s7325_s10 + $0x48] sm:$0xe] }
  0xa7   : > { %6456 = vmatprep.subr.bf16.mxu1 %v7124_v23  ;;  %v5456_v50 = vrot.slane %v1233_v51, 9  ;;  %v1312_v52 = vrot.slane %v1310_v34, 4  ;;  %v3789_v5 = vshrl.u32 %v5812_v10, 16  ;;  %v3802_v51 = vshrl.u32 %v5813_v19, 16  ;;  %v7137_v48 = vld [vmem:[%s7325_s10 + $0x6c] sm:$0xff]  }
  0xa8   : > { %v1305_v42 = vrot.slane %v1303_v32, 4  ;;  %v8021_v24 = vsel %vm7603_vm5, %v5455_v58, %v1303_v32  ;;  %v7204_v32 = vld [vmem:[%s7325_s10 + $0x44] sm:$0x1]  ;;  %v5458_v54 = vrot.slane %v1235_v13, 9  ;;  %v5816_v13 = vld [vmem:[%s7325_s10 + $0x28] sm:$0xf] }
  0xa9   : > { %v8031_v61 = vsel %vm7603_vm5, %v5456_v50, %v1310_v34  ;;  %v1320_v17 = vrot.slane %v7204_v32, 5  ;;  %v5814_v50 = vld [vmem:[%s7325_s10 + $0x20] sm:$0x1]  ;;  %v1237_v32 = vld [vmem:[%s7325_s10 + $0x60] sm:$0xe] }
  0xaa   : > { %6457 = vmatpush3.bf16.msra.mxu1 %v7124_v23  ;;  %v5442_v23 = vcombine.low %v7739_v27, %v7742_v29 }
  0xab   : > { %6458 = vmatprep.subr.bf16.mxu1 %v7130_v49 }
  0xac   : > { %6635 = vmatmul.mubr.bf16.gmra.mrb[28].mxu0 %v5731_v53  ;;  %v7203_v53 = vld [vmem:[%s7325_s10 + $0x38] sm:$0x1] }
  0xad   : > { %6427 = vmatmul.mubr.bf16.gmra.mrb[12].mxu1 %v5435_v4  ;;  %6654 = vmatprep.mubr.bf16.mxu0 %v7116_v22  ;;  %v1313_v45 = vrot.slane %v7203_v53, 5  ;;  %v1234_v4 = vld [vmem:[%s7325_s10 + $0x3c] sm:$0xe]  ;;  %v1317_v22 = vrot.slane %v7902_v30, 5  ;;  %v7997_v30 = vsel %vm7603_vm5, %v5453_v21, %v1289_v7  ;;  %v3792_v21 = vshll.u32 %v5812_v10, 16  ;;  %v7142_v53 = vld [vmem:[%s9244_s1 + $0x1e0] sm:$0xff]  }
  0xae   : > { %6430 = vmatprep.mubr.bf16.mxu1 %v5436_v55  ;;  %6459 = vmatpush3.bf16.msra.mxu1 %v7130_v49  ;;  %v1306_v49 = vrot.slane %v7202_v43, 5  ;;  %v7984_v55 = vrot.slane %v2385_v8, 5  ;;  %v7125_v7 = vld [vmem:[%s7325_s10 + $0x3c] sm:$0xff]   ;;  %v8017_v8 = vsel %vm7603_vm5, %v1298_v46, %v1299_v39  ;;  %v1326_v46 = vrot.slane %v1324_v1, 4  ;;  %v5818_v43 = vld [vmem:[%s7325_s10 + $0x30] sm:$0xf] }
  0xaf   : > { %6460 = vmatprep.subr.bf16.mxu1 %v7136_v56  ;;  %v1327_v39 = vrot.slane %v7205_v38, 5  ;;  %v3791_v10 = vrot.slane %v3789_v5, 4 }
  0xb0   : > { %9265 = vst [vmem:[#allocation2_spill] sm:$0xff] %v7984_v55 }
  0xb2   : > { %6461 = vmatpush3.bf16.msra.mxu1 %v7136_v56  ;;  %v7132_v56 = vld [vmem:[%s9244_s1 + $0x1d0] sm:$0xff]  }
  0xb3   : > { %6494 = vmatprep.subr.bf16.mxu1 %v7950_v60 }
  0xb4   : > { %6655 = vmatmul.mubr.bf16.vlgmr.msra.gmra.mrb[0].mxu0 %v7119_v6  ;;  %v8005_v6 = vsel %vm7603_vm5, %v1291_v33, %v1292_v35  ;;  %v8025_v35 = vsel %vm7603_vm5, %v1305_v42, %v1306_v49  ;;  %v3798_v33 = vshll.u32 %v5813_v19, 16  ;;  %v3794_v19 = vrot.slane %v3792_v21, 5  ;;  %v1238_v21 = vld [vmem:[%s7325_s10 + $0x6c] sm:$0xe] }
  0xb5   : > { %6431 = vmatmul.mubr.bf16.gmra.mrb[16].mxu1 %v5437_v62  ;;  %6687 = vmatpush3.bf16.msra.mxu0 %v7789_v44  ;;  %v5457_v62 = vrot.slane %v1234_v4, 9  ;;  %v5461_v58 = vrot.slane %v1238_v21, 9 }
  0xb6   : > { %6434 = vmatprep.mubr.bf16.mxu1 %v5438_v36  ;;  %6658 = vmatprep.mubr.bf16.mxu0 %v7122_v18  ;;  %v8035_v36 = vsel %vm7603_vm5, %v1312_v52, %v1313_v45  ;;  %v1319_v18 = vrot.slane %v1317_v22, 4  ;;  %v5815_v52 = vld [vmem:[%s7325_s10 + $0x24] sm:$0xf]  ;;  %v3826_v45 = vshrl.u32 %v5816_v13, 16 }
  0xb7   : > { %6688 = vmatprep.subr.bf16.mxu0 %v7126_v47  ;;  %v8052_v49 = vsel %vm7603_vm5, %v5457_v62, %v1317_v22  ;;  %v8069_v22 = vld [vmem:[%s7325_s10 + $0x54] sm:$0xe]  ;;  %v3804_v62 = vrot.slane %v3802_v51, 4  ;;  %v3813_v38 = vshrl.u32 %v5815_v52, 16  ;;  %v3816_v28 = vshll.u32 %v5815_v52, 16 }
  0xb8   : > { %v8066_v4 = vsel %vm7603_vm5, %v1319_v18, %v1320_v17  ;;  %v3808_v17 = vshll.u32 %v5814_v50, 16  ;;  %v5459_v5 = vrot.slane %v8069_v22, 9  ;;  %v7146_v50 = vld [vmem:[%s9244_s1 + $0x1e8] sm:$0xff]   ;;  %v1333_v52 = vrot.slane %v1331_v16, 4 }
  0xb9   : > { %6689 = vmatpush3.bf16.msra.mxu0 %v7126_v47  ;;  %v7138_v47 = vld [vmem:[%s9244_s1 + $0x1d8] sm:$0xff]   ;;  %v3795_v22 = vor.u32 %v3794_v19, %v3791_v10  ;;  %v3815_v34 = vrot.slane %v3813_v38, 4  ;;  %v3818_v44 = vrot.slane %v3816_v28, 5  ;;  %v7210_v10 = vld [vmem:[%s7325_s10 + $0x74] sm:$0x1]  ;;  %v3828_v28 = vrot.slane %v3826_v45, 4 }
  0xba   : > { %6690 = vmatprep.subr.bf16.mxu0 %v7132_v56  ;;  %v8107_v42 = vrot.slane %v3808_v17, 5  ;;  %v1348_v19 = vrot.slane %v7210_v10, 5  ;;  %v3837_v38 = vshrl.u32 %v5818_v43, 16  ;;  %v8132_v27 = vsel %vm7603_vm5, %v5459_v5, %v1331_v16 }
  0xbb   : > { %v3796_v21 = vrot.slane %v3795_v22, 4 }
  0xbc   : > { %6659 = vmatmul.mubr.bf16.gmra.mrb[4].mxu0 %v7125_v7  ;;  %v8079_v7 = vrot.slane %v3798_v33, 5  ;;  %v7208_v33 = vld [vmem:[%s7325_s10 + $0x70] sm:$0xf] }
  0xbd   : > { %6435 = vmatmul.mubr.bf16.gmra.mrb[20].mxu1 %v5439_v15  ;;  %6662 = vmatprep.mubr.bf16.mxu0 %v7128_v0  ;;  %v1338_v15 = vrot.slane %v8073_v40, 5  ;;  %v7207_v0 = vld [vmem:[%s7325_s10 + $0x5c] sm:$0x1]  ;;  %v1345_v51 = vrot.slane %v7208_v33, 5 }
  0xbe   : > { %6438 = vmatprep.mubr.bf16.mxu1 %v5440_v26  ;;  %6691 = vmatpush3.bf16.msra.mxu0 %v7132_v56  ;;  %v1334_v18 = vrot.slane %v7207_v0, 5  ;;  %v8088_v26 = vsel %vm7603_vm5, %v5458_v54, %v1324_v1  ;;  %v8092_v56 = vsel %vm7603_vm5, %v1326_v46, %v1327_v39  ;;  %v7209_v1 = vld [vmem:[%s7325_s10 + $0x68] sm:$0x1]  ;;  %v3822_v0 = vshll.u32 %v5816_v13, 16  ;;  %v7154_v40 = vld [vmem:[%s9244_s1 + $0x1f8] sm:$0xff]  }
  0xbf   : > { %6692 = vmatprep.subr.bf16.mxu0 %v7138_v47  ;;  %v1341_v54 = vrot.slane %v7209_v1, 5  ;;  %v5460_v46 = vrot.slane %v1237_v32, 9  ;;  %v1340_v39 = vrot.slane %v1338_v15, 4  ;;  %v3805_v33 = vor.u32 %v3804_v62, %v8079_v7  ;;  %v5819_v1 = vld [vmem:[%s7325_s10 + $0x34] sm:$0xf] }
  0xc0   : > { %v1347_v32 = vrot.slane %v1345_v51, 4  ;;  %v5817_v62 = vld [vmem:[%s7325_s10 + $0x2c] sm:$0x1]  ;;  %v8119_v17 = vrot.slane %v3822_v0, 5  ;;  %v3846_v13 = vshll.u32 %v5819_v1, 16  ;;  %v3850_v31 = vshrl.u32 %v5819_v1, 16 }
  0xc1   : > { %v3806_v10 = vrot.slane %v3805_v33, 4  ;;  %v8136_v29 = vsel %vm7603_vm5, %v1333_v52, %v1334_v18  ;;  %v8143_v45 = vsel %vm7603_vm5, %v5460_v46, %v1338_v15  ;;  %v8147_v14 = vsel %vm7603_vm5, %v1340_v39, %v1341_v54  ;;  %v1239_v18 = vld [vmem:[%s7325_s10 + $0x78] sm:$0xe] }
  0xc2   : > { %6693 = vmatpush3.bf16.msra.mxu0 %v7138_v47  ;;  %v8151_v16 = vsel %vm7603_vm5, %v5461_v58, %v1345_v51  ;;  %v8161_v15 = vsel %vm7603_vm5, %v1347_v32, %v1348_v19  ;;  %v3829_v5 = vor.u32 %v3828_v28, %v8119_v17  ;;  %v3839_v52 = vrot.slane %v3837_v38, 4  ;;  %v5821_v58 = vld [vmem:[%s7325_s10 + $0x3c] sm:$0xf]  ;;  %v5822_v51 = vld [vmem:[%s7325_s10 + $0x40] sm:$0xf] }
  0xc3   : > { %6694 = vmatprep.subr.bf16.mxu0 %v7142_v53  ;;  %v3801_v0 = vsel %vm7357_vm2, %v3796_v21, %v8079_v7  ;;  %v3811_v46 = vsel %vm7357_vm2, %v3806_v10, %v8107_v42  ;;  %v8172_v39 = vrot.slane %v3846_v13, 5  ;;  %v3852_v22 = vrot.slane %v3850_v31, 4  ;;  %v7212_v19 = vld [vmem:[%s7325_s10 + $0x80] sm:$0x1]  ;;  %v8331_v47 = vld [vmem:[%s7325_s10 + $0x68] sm:$0x1] }
  0xc4   : > { %6663 = vmatmul.mubr.bf16.gmra.mrb[8].mxu0 %v7131_v2  ;;  %v3840_v2 = vshll.u32 %v5818_v43, 16  ;;  %v3832_v43 = vshll.u32 %v5817_v62, 16  ;;  %v5462_v32 = vrot.slane %v1239_v18, 9  ;;  %v1240_v62 = vld [vmem:[%s7325_s10 + $0x84] sm:$0xe]  ;;  %v3861_v28 = vshrl.u32 %v5821_v58, 16 }
  0xc5   : > { %6439 = vmatmul.mubr.bf16.gmra.mrb[24].mxu1 %v5441_v20  ;;  %6666 = vmatprep.mubr.bf16.mxu0 %v7134_v3  ;;  %v7150_v20 = vld [vmem:[%s9244_s1 + $0x1f0] sm:$0xff]   ;;  %v7211_v3 = vld [vmem:[%s7325_s10 + $0x7c] sm:$0xf]  ;;  %v3864_v7 = vshll.u32 %v5821_v58, 16  ;;  %v3870_v38 = vshll.u32 %v5822_v51, 16  ;;  %v9266_v42 = vcombine.low %v7762_v41, %v7767_v12  ;;  %v8183_v13 = vrot.slane %v3829_v5, 4 }
  0xc6   : > { %6442 = vmatprep.mubr.bf16.mxu1 %v5442_v23  ;;  %6695 = vmatpush3.bf16.msra.mxu0 %v7142_v53  ;;  %v3819_v23 = vor.u32 %v3818_v44, %v3815_v34  ;;  %v7139_v53 = vld [vmem:[%s7325_s10 + $0x78] sm:$0xff]   ;;  %v1352_v44 = vrot.slane %v7211_v3, 5  ;;  %v3842_v54 = vrot.slane %v3840_v2, 5  ;;  %v8176_v1 = vrot.slane %v3832_v43, 5  ;;  %v8188_v21 = vld [vmem:[%s9244_s1 + $0x200] sm:$0xff]   ;;  %9274 = vst [vmem:[#allocation5_spill] sm:$0xff] %v8331_v47 }
  0xc7   : > { %6696 = vmatprep.subr.bf16.mxu0 %v7146_v50  ;;  %v5820_v34 = vld [vmem:[%s7325_s10 + $0x38] sm:$0x1]  ;;  %v3874_v2 = vshrl.u32 %v5822_v51, 16  ;;  %v7141_v43 = vld [vmem:[%s7325_s10 + $0x84] sm:$0xff]   ;;  %v3853_v12 = vor.u32 %v3852_v22, %v8172_v39  ;;  %v3866_v58 = vrot.slane %v3864_v7, 5  ;;  %v8210_v51 = vrot.slane %v3870_v38, 5 }
  0xc8   : > { %v8174_v33 = vrot.slane %v3819_v23, 4  ;;  %v1354_v10 = vrot.slane %v1352_v44, 4  ;;  %v3843_v31 = vor.u32 %v3842_v54, %v3839_v52  ;;  %v9267_v23 = vcombine.low %v7993_v59, %v8001_v25  ;;  %v7213_v18 = vld [vmem:[%s7325_s10 + $0x88] sm:$0xf]  ;;  %v5823_v5 = vld [vmem:[%s7325_s10 + $0x44] sm:$0x1] }
  0xc9   : > { %v1359_v3 = vrot.slane %v7213_v18, 5  ;;  %v8201_v59 = vcombine.low %v3801_v0, %v3811_v46  ;;  %v5824_v52 = vld [vmem:[%s7325_s10 + $0x48] sm:$0xf]  ;;  %v3863_v54 = vrot.slane %v3861_v28, 4  ;;  %v3876_v22 = vrot.slane %v3874_v2, 4 }
  0xca   : > { %6697 = vmatpush3.bf16.msra.mxu0 %v7146_v50  ;;  %v1355_v50 = vrot.slane %v7212_v19, 5  ;;  %v7143_v19 = vld [vmem:[%s7325_s10 + $0x90] sm:$0xff]   ;;  %v3825_v0 = vsel %vm7357_vm2, %v8174_v33, %v8119_v17  ;;  %v3844_v46 = vrot.slane %v3843_v31, 4  ;;  %v3835_v28 = vsel %vm7357_vm2, %v8183_v13, %v8176_v1  ;;  %v8232_v33 = vld [vmem:[%s7325_s10 + $0x58] sm:$0xf]  ;;  %v7144_v31 = vld [vmem:[%s9244_s1 + $0xc8] sm:$0xff]  }
  0xcb   : > { %6698 = vmatprep.subr.bf16.mxu0 %v7150_v20  ;;  %v3854_v38 = vrot.slane %v3853_v12, 4  ;;  %v1361_v2 = vrot.slane %v1359_v3, 4  ;;  %v5827_v17 = vld [vmem:[%s7325_s10 + $0x54] sm:$0xf]  ;;  %v3880_v1 = vshll.u32 %v5823_v5, 16  ;;  %v3885_v13 = vshrl.u32 %v5824_v52, 16 }
  0xcc   : > { %6667 = vmatmul.mubr.bf16.gmra.mrb[12].mxu0 %v7137_v48  ;;  %v3856_v48 = vshll.u32 %v5820_v34, 16  ;;  %v8228_v7 = vsel %vm7603_vm5, %v1354_v10, %v1355_v50  ;;  %v3888_v50 = vshll.u32 %v5824_v52, 16  ;;  %v3867_v10 = vor.u32 %v3866_v58, %v3863_v54  ;;  %v7145_v54 = vld [vmem:[%s7325_s10 + $0x9c] sm:$0xff]   ;;  %v7219_v41 = vld [vmem:[%s7325_s10 + $0xac] sm:$0xf] }
  0xcd   : > { %6443 = vmatmul.mubr.bf16.gmra.mrb[28].mxu1 %v9266_v42  ;;  %6670 = vmatprep.mubr.bf16.mxu0 %v7139_v53  ;;  %v5463_v53 = vrot.slane %v1240_v62, 9  ;;  %v7214_v42 = vld [vmem:[%s7325_s10 + $0x8c] sm:$0x1]  ;;  %v3918_v5 = vshll.u32 %v8232_v33, 16  ;;  %v9269_v52 = vcombine.low %v8009_v63, %v8017_v8  ;;  %v8268_v63 = vld [vmem:[%s7325_s10 + $0x50] sm:$0x1] }
  0xce   : > { %6462 = vmatprep.mubr.bf16.mxu1 %v9267_v23  ;;  %6699 = vmatpush3.bf16.msra.mxu0 %v7150_v20  ;;  %v8207_v20 = vsel %vm7603_vm5, %v5462_v32, %v1352_v44  ;;  %v3858_v62 = vrot.slane %v3856_v48, 5  ;;  %v1362_v23 = vrot.slane %v7214_v42, 5  ;;  %v1241_v44 = vld [vmem:[%s7325_s10 + $0x90] sm:$0xe]  ;;  %v8220_v32 = vld [vmem:[%s7325_s10 + $0x4c] sm:$0xf]  ;;  %v3877_v48 = vor.u32 %v3876_v22, %v8210_v51 }
  0xcf   : > { %6700 = vmatprep.subr.bf16.mxu0 %v7154_v40  ;;  %v3894_v12 = vshll.u32 %v8220_v32, 16  ;;  %v3898_v18 = vshrl.u32 %v8220_v32, 16  ;;  %v9268_v42 = vcombine.low %v7997_v30, %v8005_v6  ;;  %v7148_v30 = vld [vmem:[%s9244_s1 + $0xd0] sm:$0xff]   ;;  %v3849_v6 = vsel %vm7357_vm2, %v3844_v46, %v8172_v39  ;;  %v7147_v8 = vld [vmem:[%s7325_s10 + $0xa8] sm:$0xff]   ;;  %v8275_v39 = vld [vmem:[%s7325_s10 + $0x5c] sm:$0x1] }
  0xd0   : > { %v3859_v58 = vsel %vm7357_vm2, %v3854_v38, %v3858_v62  ;;  %v5464_v22 = vrot.slane %v1241_v44, 9  ;;  %v3890_v25 = vrot.slane %v3888_v50, 5  ;;  %9270 = vst [vmem:[#allocation3_spill] sm:$0xff] %v8275_v39  ;;  %v3868_v46 = vrot.slane %v3867_v10, 4 }
  0xd1   : > { %v3878_v62 = vrot.slane %v3877_v48, 4  ;;  %v8277_v38 = vrot.slane %v3894_v12, 5  ;;  %v8279_v34 = vrot.slane %v3918_v5, 5  ;;  %v8284_v50 = vcombine.low %v3825_v0, %v3835_v28  ;;  %v5830_v28 = vld [vmem:[%s7325_s10 + $0x60] sm:$0xf] }
  0xd2   : > { %6701 = vmatpush3.bf16.msra.mxu0 %v7154_v40  ;;  %v8240_v40 = vsel %vm7603_vm5, %v5463_v53, %v1359_v3  ;;  %v3909_v53 = vshrl.u32 %v5827_v17, 16  ;;  %v3912_v3 = vshll.u32 %v5827_v17, 16  ;;  %v7215_v17 = vld [vmem:[%s7325_s10 + $0x94] sm:$0xf]  ;;  %v8288_v48 = vcombine.low %v3849_v6, %v3859_v58 }
  0xd3   : > { %6734 = vmatprep.subr.bf16.mxu0 %v8188_v21  ;;  %v3904_v0 = vshll.u32 %v8268_v63, 16  ;;  %v3873_v6 = vsel %vm7357_vm2, %v3868_v46, %v8210_v51  ;;  %v9273_v46 = vcombine.low %v8031_v61, %v8035_v36 }
  0xd4   : > { %6671 = vmatmul.mubr.bf16.gmra.mrb[16].mxu0 %v7141_v43  ;;  %v3922_v43 = vshrl.u32 %v8232_v33, 16  ;;  %v3911_v44 = vrot.slane %v3909_v53, 4  ;;  %v7216_v53 = vld [vmem:[%s7325_s10 + $0x98] sm:$0x1] }
  0xd5   : > { %6463 = vmatmul.mubr.bf16.vlgmr.msra.gmra.mrb[0].mxu1 %v9268_v42  ;;  %6674 = vmatprep.mubr.bf16.mxu0 %v7143_v19  ;;  %v8271_v19 = vrot.slane %v3880_v1, 5  ;;  %v1366_v42 = vrot.slane %v7215_v17, 5  ;;  %v7217_v17 = vld [vmem:[%s7325_s10 + $0xa0] sm:$0xf]  ;;  %v3906_v36 = vrot.slane %v3904_v0, 5 }
  0xd6   : > { %6495 = vmatpush3.bf16.msra.mxu1 %v7950_v60  ;;  %6466 = vmatprep.mubr.bf16.mxu1 %v9269_v52  ;;  %v8265_v60 = vsel %vm7603_vm5, %v1361_v2, %v1362_v23  ;;  %v3887_v52 = vrot.slane %v3885_v13, 4  ;;  %v3900_v23 = vrot.slane %v3898_v18, 4  ;;  %v3914_v2 = vrot.slane %v3912_v3, 5  ;;  %v7152_v13 = vld [vmem:[%s9244_s1 + $0xd8] sm:$0xff]  }
  0xd7   : > { %6496 = vmatprep.subr.bf16.mxu1 %v7144_v31  ;;  %v3924_v1 = vrot.slane %v3922_v43, 4  ;;  %v1242_v18 = vld [vmem:[%s7325_s10 + $0x9c] sm:$0xe]  ;;  %v1369_v3 = vrot.slane %v7216_v53, 5  ;;  %v8301_v43 = vld [vmem:[%s7325_s10 + $0x64] sm:$0xf] }
  0xd8   : > { %v3891_v5 = vor.u32 %v3890_v25, %v3887_v52  ;;  %9271 = vst [vmem:[#allocation4_spill] sm:$0xff] %v8301_v43  ;;  %v3901_v58 = vor.u32 %v3900_v23, %v8277_v38  ;;  %v1373_v12 = vrot.slane %v7217_v17, 5  ;;  %v9272_v25 = vcombine.low %v8021_v24, %v8025_v35  ;;  %v7149_v23 = vld [vmem:[%s7325_s10 + $0xb4] sm:$0xff]   ;;  %v7155_v24 = vld [vmem:[%s9244_s1 + $0xe0] sm:$0xff]   ;;  %v5833_v17 = vld [vmem:[%s7325_s10 + $0x6c] sm:$0xf] }
  0xd9   : > { %v1368_v52 = vrot.slane %v1366_v42, 4  ;;  %v3915_v53 = vor.u32 %v3914_v2, %v3911_v44  ;;  %v3925_v51 = vor.u32 %v3924_v1, %v8279_v34  ;;  %v3933_v35 = vshrl.u32 %v5830_v28, 16  ;;  %v7218_v2 = vld [vmem:[%s7325_s10 + $0xa4] sm:$0x1] }
  0xda   : > { %6497 = vmatpush3.bf16.msra.mxu1 %v7144_v31  ;;  %v8295_v31 = vsel %vm7603_vm5, %v5464_v22, %v1366_v42  ;;  %v3928_v22 = vshll.u32 %v8275_v39, 16  ;;  %v3946_v42 = vshrl.u32 %v8301_v43, 16  ;;  %v3892_v61 = vrot.slane %v3891_v5, 4  ;;  %v8470_v39 = vld [vmem:[%s7325_s10 + $0x98] sm:$0x1] }
  0xdb   : > { %6498 = vmatprep.subr.bf16.mxu1 %v7148_v30  ;;  %v5465_v44 = vrot.slane %v1242_v18, 9  ;;  %v1376_v1 = vrot.slane %v7218_v2, 5  ;;  %v3916_v5 = vrot.slane %v3915_v53, 4  ;;  %v3926_v18 = vrot.slane %v3925_v51, 4  ;;  %9287 = vst [vmem:[#allocation14_spill] sm:$0xff] %v8470_v39 }
  0xdc   : > { %6675 = vmatmul.mubr.bf16.gmra.mrb[20].mxu0 %v7145_v54  ;;  %v3883_v54 = vsel %vm7357_vm2, %v3878_v62, %v8271_v19  ;;  %v3942_v19 = vshll.u32 %v8301_v43, 16  ;;  %v7151_v62 = vld [vmem:[%s7325_s10 + $0xc0] sm:$0xff]   ;;  %v3930_v10 = vrot.slane %v3928_v22, 5  ;;  %v8337_v43 = vsel %vm7603_vm5, %v1368_v52, %v1369_v3 }
  0xdd   : > { %6467 = vmatmul.mubr.bf16.gmra.mrb[4].mxu1 %v9272_v25  ;;  %6678 = vmatprep.mubr.bf16.mxu0 %v7147_v8  ;;  %v3936_v8 = vshll.u32 %v5830_v28, 16  ;;  %v3902_v25 = vrot.slane %v3901_v58, 4  ;;  %v1380_v28 = vrot.slane %v7219_v41, 5  ;;  %v8333_v55 = vcombine.low %v3873_v6, %v3883_v54  ;;  %v7157_v41 = vld [vmem:[%s9244_s1 + $0xe8] sm:$0xff]  }
  0xde   : > { %6470 = vmatprep.mubr.bf16.mxu1 %v9273_v46  ;;  %6499 = vmatpush3.bf16.msra.mxu1 %v7148_v30  ;;  %v1243_v30 = vld [vmem:[%s7325_s10 + $0xa8] sm:$0xe]  ;;  %v1375_v46 = vrot.slane %v1373_v12, 4  ;;  %v3935_v0 = vrot.slane %v3933_v35, 4  ;;  %v8339_v58 = vrot.slane %v3942_v19, 5  ;;  %v3948_v22 = vrot.slane %v3946_v42, 4 }
  0xdf   : > { %6500 = vmatprep.subr.bf16.mxu1 %v7152_v13  ;;  %v3938_v2 = vrot.slane %v3936_v8, 5  ;;  %v3897_v3 = vsel %vm7357_vm2, %v3892_v61, %v8277_v38  ;;  %v8349_v6 = vsel %vm7603_vm5, %v5465_v44, %v1373_v12  ;;  %v3957_v54 = vshrl.u32 %v5833_v17, 16  ;;  %v7220_v38 = vld [vmem:[%s7325_s10 + $0xb0] sm:$0x1]  ;;  %v1244_v19 = vld [vmem:[%s7325_s10 + $0xb4] sm:$0xe] }
  0xe0   : > { %v3960_v52 = vshll.u32 %v5833_v17, 16  ;;  %v3907_v53 = vsel %vm7357_vm2, %v3902_v25, %v3906_v36  ;;  %v8358_v51 = vsel %vm7603_vm5, %v1375_v46, %v1376_v1  ;;  %v5466_v35 = vrot.slane %v1243_v30, 9  ;;  %v8380_v30 = vld [vmem:[%s7325_s10 + $0x74] sm:$0x1]  ;;  %v7221_v25 = vld [vmem:[%s7325_s10 + $0xb8] sm:$0xf] }
  0xe1   : > { %v1383_v8 = vrot.slane %v7220_v38, 5  ;;  %v9276_v12 = vcombine.low %v8052_v49, %v8066_v4  ;;  %v3921_v42 = vsel %vm7357_vm2, %v3916_v5, %v8279_v34  ;;  %v3931_v61 = vsel %vm7357_vm2, %v3926_v18, %v3930_v10  ;;  %v7153_v4 = vld [vmem:[%s7325_s10 + $0xcc] sm:$0xff]   ;;  %9278 = vst [vmem:[#allocation7_spill] sm:$0xff] %v8380_v30  ;;  %v5839_v38 = vld [vmem:[%s7325_s10 + $0x84] sm:$0xf] }
  0xe2   : > { %6501 = vmatpush3.bf16.msra.mxu1 %v7152_v13  ;;  %v8352_v13 = vld [vmem:[%s7325_s10 + $0x70] sm:$0xf]  ;;  %v1382_v36 = vrot.slane %v1380_v28, 4  ;;  %v3952_v44 = vshll.u32 %v8331_v47, 16  ;;  %v9277_v49 = vcombine.low %v8088_v26, %v8092_v56  ;;  %v3949_v1 = vor.u32 %v3948_v22, %v8339_v58  ;;  %v8397_v22 = vld [vmem:[%s7325_s10 + $0x7c] sm:$0xf] }
  0xe3   : > { %6502 = vmatprep.subr.bf16.mxu1 %v7155_v24  ;;  %9275 = vst [vmem:[#allocation6_spill] sm:$0xff] %v8352_v13  ;;  %v3966_v34 = vshll.u32 %v8352_v13, 16  ;;  %v3970_v10 = vshrl.u32 %v8352_v13, 16  ;;  %v5467_v17 = vrot.slane %v1244_v19, 9  ;;  %v1387_v46 = vrot.slane %v7221_v25, 5  ;;  %9279 = vst [vmem:[#allocation8_spill] sm:$0xff] %v8397_v22 }
  0xe4   : > { %6679 = vmatmul.mubr.bf16.gmra.mrb[24].mxu0 %v7149_v23  ;;  %v7159_v23 = vld [vmem:[%s9244_s1 + $0xf0] sm:$0xff]   ;;  %v3959_v26 = vrot.slane %v3957_v54, 4  ;;  %v3962_v56 = vrot.slane %v3960_v52, 5  ;;  %v8388_v18 = vcombine.low %v3897_v3, %v3907_v53  ;;  %v8400_v19 = vcombine.low %v3921_v42, %v3931_v61  ;;  %v7222_v3 = vld [vmem:[%s7325_s10 + $0xbc] sm:$0x1] }
  0xe5   : > { %6471 = vmatmul.mubr.bf16.gmra.mrb[8].mxu1 %v9276_v12  ;;  %6682 = vmatprep.mubr.bf16.mxu0 %v7151_v62  ;;  %v3939_v62 = vor.u32 %v3938_v2, %v3935_v0  ;;  %v8394_v2 = vsel %vm7603_vm5, %v5466_v35, %v1380_v28  ;;  %v8404_v54 = vsel %vm7603_vm5, %v1382_v36, %v1383_v8  ;;  %v8406_v52 = vrot.slane %v3952_v44, 5  ;;  %v7161_v12 = vld [vmem:[%s9244_s1 + $0xf8] sm:$0xff]   ;;  %v8413_v28 = vld [vmem:[%s7325_s10 + $0x88] sm:$0xf] }
  0xe6   : > { %6474 = vmatprep.mubr.bf16.mxu1 %v9277_v49  ;;  %6503 = vmatpush3.bf16.msra.mxu1 %v7155_v24  ;;  %v5836_v24 = vld [vmem:[%s7325_s10 + $0x78] sm:$0xf]  ;;  %v1390_v53 = vrot.slane %v7222_v3, 5  ;;  %9280 = vst [vmem:[#allocation9_spill] sm:$0xff] %v8413_v28  ;;  %v8417_v42 = vrot.slane %v3949_v1, 4  ;;  %v8419_v61 = vrot.slane %v3966_v34, 5  ;;  %v8423_v36 = vsel %vm7603_vm5, %v5467_v17, %v1387_v46 }
  0xe7   : > { %6504 = vmatprep.subr.bf16.mxu1 %v7157_v41  ;;  %v8415_v35 = vrot.slane %v3939_v62, 4  ;;  %v3972_v8 = vrot.slane %v3970_v10, 4  ;;  %v1389_v44 = vrot.slane %v1387_v46, 4  ;;  %v3963_v49 = vor.u32 %v3962_v56, %v3959_v26  ;;  %v5842_v3 = vld [vmem:[%s7325_s10 + $0x90] sm:$0xf] }
  0xe8   : > { %v3976_v25 = vshll.u32 %v8380_v30, 16  ;;  %v3984_v0 = vshll.u32 %v5836_v24, 16  ;;  %v3990_v62 = vshll.u32 %v8397_v22, 16  ;;  %v3994_v1 = vshrl.u32 %v8397_v22, 16  ;;  %v8430_v34 = vld [vmem:[%s7325_s10 + $0x94] sm:$0xf] }
  0xe9   : > { %9281 = vst [vmem:[#allocation10_spill] sm:$0xff] %v8430_v34  ;;  %v9282_v10 = vcombine.low %v8132_v27, %v8136_v29  ;;  %v4005_v17 = vshrl.u32 %v5839_v38, 16  ;;  %v4008_v46 = vshll.u32 %v5839_v38, 16  ;;  %v4018_v26 = vshrl.u32 %v8413_v28, 16  ;;  %v5845_v38 = vld [vmem:[%s7325_s10 + $0x9c] sm:$0xf] }
  0xea   : > { %6505 = vmatpush3.bf16.msra.mxu1 %v7157_v41  ;;  %v3981_v41 = vshrl.u32 %v5836_v24, 16  ;;  %v9283_v56 = vcombine.low %v8143_v45, %v8147_v14  ;;  %v3973_v29 = vor.u32 %v3972_v8, %v8419_v61  ;;  %v4032_v24 = vshll.u32 %v5842_v3, 16  ;;  %v8452_v45 = vld [vmem:[%s7325_s10 + $0x80] sm:$0x1] }
  0xeb   : > { %6506 = vmatprep.subr.bf16.mxu1 %v7159_v23  ;;  %v8449_v5 = vrot.slane %v3976_v25, 5  ;;  %9284 = vst [vmem:[#allocation11_spill] sm:$0xff] %v8452_v45  ;;  %v4038_v14 = vshll.u32 %v8430_v34, 16  ;;  %v3986_v27 = vrot.slane %v3984_v0, 5  ;;  %v3996_v8 = vrot.slane %v3994_v1, 4 }
  0xec   : > { %6683 = vmatmul.mubr.bf16.gmra.mrb[28].mxu0 %v7153_v4  ;;  %v4014_v4 = vshll.u32 %v8413_v28, 16  ;;  %v8456_v28 = vrot.slane %v3990_v62, 5  ;;  %v8462_v22 = vld [vmem:[%s7325_s10 + $0xa0] sm:$0xf]  ;;  %v4007_v25 = vrot.slane %v4005_v17, 4  ;;  %v4010_v30 = vrot.slane %v4008_v46, 5 }
  0xed   : > { %6475 = vmatmul.mubr.bf16.gmra.mrb[12].mxu1 %v9282_v10  ;;  %6702 = vmatprep.mubr.bf16.mxu0 %v8201_v59  ;;  %v4029_v59 = vshrl.u32 %v5842_v3, 16  ;;  %v8447_v10 = vrot.slane %v3963_v49, 4  ;;  %v8459_v3 = vld [vmem:[%s7325_s10 + $0x8c] sm:$0x1]  ;;  %9286 = vst [vmem:[#allocation13_spill] sm:$0xff] %v8462_v22  ;;  %v4020_v47 = vrot.slane %v4018_v26, 4  ;;  %v8479_v62 = vsel %vm7603_vm5, %v1389_v44, %v1390_v53 }
  0xee   : > { %6478 = vmatprep.mubr.bf16.mxu1 %v9283_v56  ;;  %6507 = vmatpush3.bf16.msra.mxu1 %v7159_v23  ;;  %v4042_v23 = vshrl.u32 %v8430_v34, 16  ;;  %v3983_v56 = vrot.slane %v3981_v41, 4  ;;  %9285 = vst [vmem:[#allocation12_spill] sm:$0xff] %v8459_v3  ;;  %v7158_v49 = vld [vmem:[%s9244_s1 + $0x208] sm:$0xff]   ;;  %v8467_v13 = vrot.slane %v4014_v4, 5  ;;  %v4034_v34 = vrot.slane %v4032_v24, 5 }
  0xef   : > { %6508 = vmatprep.subr.bf16.mxu1 %v7161_v12  ;;  %v5848_v41 = vld [vmem:[%s7325_s10 + $0xa8] sm:$0xf]  ;;  %v4031_v1 = vrot.slane %v4029_v59, 4  ;;  %v8484_v17 = vld [vmem:[%s9244_s1 + $0x100] sm:$0xff]   ;;  %v8487_v46 = vrot.slane %v4038_v14, 5  ;;  %v4053_v26 = vshrl.u32 %v5845_v38, 16  ;;  %v9289_v24 = vcombine.low %v8151_v16, %v8161_v15 }
  0xf0   : > { %9288 = vst [vmem:[#allocation15_spill] sm:$0xff] %v8484_v17  ;;  %v4044_v4 = vrot.slane %v4042_v23, 4  ;;  %v4056_v0 = vshll.u32 %v5845_v38, 16  ;;  %v8490_v53 = vrot.slane %v3973_v29, 4  ;;  %v4062_v44 = vshll.u32 %v8462_v22, 16  ;;  %v7160_v16 = vld [vmem:[%s9244_s1 + $0x210] sm:$0xff]  }
  0xf1   : > { %v4066_v59 = vshrl.u32 %v8462_v22, 16  ;;  %v3987_v14 = vor.u32 %v3986_v27, %v3983_v56  ;;  %v3997_v38 = vor.u32 %v3996_v8, %v8456_v28  ;;  %v4011_v23 = vor.u32 %v4010_v30, %v4007_v25  ;;  %v8502_v29 = vld [vmem:[%s7325_s10 + $0xac] sm:$0xf]  ;;  %v8515_v25 = vld [vmem:[%s7325_s10 + $0xa4] sm:$0x1] }
  0xf2   : > { %6509 = vmatpush3.bf16.msra.mxu1 %v7161_v12  ;;  %v4000_v12 = vshll.u32 %v8452_v45, 16  ;;  %9290 = vst [vmem:[#allocation16_spill] sm:$0xff] %v8502_v29  ;;  %v4021_v15 = vor.u32 %v4020_v47, %v8467_v13  ;;  %v4077_v27 = vshrl.u32 %v5848_v41, 16  ;;  %v4080_v30 = vshll.u32 %v5848_v41, 16 }
  0xf3   : > { %6782 = vmatprep.subr.bf16.mxu1 %v8484_v17  ;;  %v9291_v17 = vcombine.low %v8207_v20, %v8228_v7  ;;  %v4035_v56 = vor.u32 %v4034_v34, %v4031_v1  ;;  %v4045_v8 = vor.u32 %v4044_v4, %v8487_v46  ;;  %v4055_v20 = vrot.slane %v4053_v26, 4 }
  0xf4   : > { %6703 = vmatmul.mubr.bf16.vlgmr.msra.gmra.mrb[0].mxu0 %v8284_v50  ;;  %v4024_v50 = vshll.u32 %v8459_v3, 16  ;;  %v4058_v7 = vrot.slane %v4056_v0, 5  ;;  %v4090_v22 = vshrl.u32 %v8502_v29, 16  ;;  %v3988_v47 = vrot.slane %v3987_v14, 4  ;;  %v7162_v0 = vld [vmem:[%s9244_s1 + $0x218] sm:$0xff]  }
  0xf5   : > { %6479 = vmatmul.mubr.bf16.gmra.mrb[16].mxu1 %v9289_v24  ;;  %6735 = vmatpush3.bf16.msra.mxu0 %v8188_v21  ;;  %v4048_v21 = vshll.u32 %v8470_v39, 16  ;;  %v4086_v24 = vshll.u32 %v8502_v29, 16  ;;  %v3998_v39 = vrot.slane %v3997_v38, 4  ;;  %v4002_v3 = vrot.slane %v4000_v12, 5 }
  0xf6   : > { %6482 = vmatprep.mubr.bf16.mxu1 %v9291_v17  ;;  %6706 = vmatprep.mubr.bf16.mxu0 %v8288_v48  ;;  %v8517_v17 = vrot.slane %v4062_v44, 5  ;;  %v4068_v48 = vrot.slane %v4066_v59, 4  ;;  %v4026_v41 = vrot.slane %v4024_v50, 5  ;;  %v4012_v34 = vrot.slane %v4011_v23, 4 }
  0xf7   : > { %6736 = vmatprep.subr.bf16.mxu0 %v7158_v49  ;;  %v4022_v1 = vrot.slane %v4021_v15, 4  ;;  %v4079_v4 = vrot.slane %v4077_v27, 4  ;;  %v4082_v45 = vrot.slane %v4080_v30, 5  ;;  %v4036_v26 = vrot.slane %v4035_v56, 4  ;;  %v8583_v27 = vld [vmem:[%s7325_s10 + $0xbc] sm:$0x1] }
  0xf8   : > { %v4050_v44 = vrot.slane %v4048_v21, 5  ;;  %v4059_v59 = vor.u32 %v4058_v7, %v4055_v20  ;;  %v4072_v29 = vshll.u32 %v8515_v25, 16  ;;  %v4069_v12 = vor.u32 %v4068_v48, %v8517_v17  ;;  %v8550_v21 = vld [vmem:[%s7325_s10 + $0xb0] sm:$0x1] }
  0xf9   : > { %6737 = vmatpush3.bf16.msra.mxu0 %v7158_v49  ;;  %v4046_v49 = vrot.slane %v4045_v8, 4  ;;  %v8527_v14 = vrot.slane %v4086_v24, 5  ;;  %v4092_v38 = vrot.slane %v4090_v22, 4  ;;  %v9292_v23 = vor.u32 %v7935_v57, %v7933_v11 }
  0xfa   : > { %6738 = vmatprep.subr.bf16.mxu0 %v7160_v16  ;;  %v9293_v15 = vcombine.low %v8240_v40, %v8265_v60  ;;  %v3979_v22 = vsel %vm7357_vm2, %v8490_v53, %v8449_v5  ;;  %v3993_v57 = vsel %vm7357_vm2, %v3988_v47, %v8456_v28  ;;  %v9294_v40 = vcombine.low %v8295_v31, %v8337_v43  ;;  %v7165_v31 = vld [vmem:[%s9244_s1 + $0x220] sm:$0xff]  }
  0xfb   : > { %v8532_v50 = vrot.slane %v9292_v23, 4  ;;  %v4003_v60 = vsel %vm7357_vm2, %v3998_v39, %v4002_v3  ;;  %v4083_v5 = vor.u32 %v4082_v45, %v4079_v4  ;;  %v4027_v28 = vsel %vm7357_vm2, %v4022_v1, %v4026_v41  ;;  %v5904_v41 = vld [vmem:[%s7325_s10 + $0x48] sm:$0xe] }
  0xfc   : > { %6707 = vmatmul.mubr.bf16.gmra.mrb[4].mxu0 %v8333_v55  ;;  %v3969_v55 = vsel %vm7357_vm2, %v8447_v10, %v8419_v61  ;;  %v5851_v61 = vld [vmem:[%s7325_s10 + $0xb4] sm:$0xf]  ;;  %v8562_v10 = vld [vmem:[%s7325_s10 + $0xb8] sm:$0xf]  ;;  %v4041_v39 = vsel %vm7357_vm2, %v4036_v26, %v8487_v46  ;;  %v8572_v43 = vrot.slane %v4059_v59, 4  ;;  %v8574_v3 = vrot.slane %v4072_v29, 5 }
  0xfd   : > { %6483 = vmatmul.mubr.bf16.gmra.mrb[20].mxu1 %v9293_v15  ;;  %6710 = vmatprep.mubr.bf16.mxu0 %v8388_v18  ;;  %v4017_v18 = vsel %vm7357_vm2, %v4012_v34, %v8467_v13  ;;  %v4051_v13 = vsel %vm7357_vm2, %v4046_v49, %v4050_v44  ;;  %v8578_v45 = vrot.slane %v4069_v12, 4  ;;  %v4093_v53 = vor.u32 %v4092_v38, %v8527_v14  ;;  %v5905_v26 = vld [vmem:[%s7325_s10 + $0x54] sm:$0xe] }
  0xfe   : > { %6486 = vmatprep.mubr.bf16.mxu1 %v9294_v40  ;;  %6739 = vmatpush3.bf16.msra.mxu0 %v7160_v16  ;;  %v4096_v16 = vshll.u32 %v8550_v21, 16  ;;  %v9295_v46 = vsel %vm7357_vm2, %v8417_v42, %v8406_v52  ;;  %v9296_v29 = vsel %vm7357_vm2, %v8415_v35, %v8339_v58  ;;  %v4101_v56 = vshrl.u32 %v5851_v61, 16 }
  0xff   : > { %6740 = vmatprep.subr.bf16.mxu0 %v7162_v0  ;;  %v5882_v30 = vcombine.low %v9296_v29, %v9295_v46  ;;  %v4104_v8 = vshll.u32 %v5851_v61, 16  ;;  %v4110_v20 = vshll.u32 %v8562_v10, 16  ;;  %v5498_v7 = vcombine.low %v8394_v2, %v8404_v54  ;;  %v7168_v2 = vld [vmem:[%s9244_s1 + $0x228] sm:$0xff]   ;;  %v5854_v54 = vld [vmem:[%s7325_s10 + $0xc0] sm:$0xf]  ;;  %v9300_v29 = vld [vmem:[#allocation5_spill] sm:$0xff] }
 0x100   : > { %v5499_v48 = vcombine.low %v8423_v36, %v8479_v62  ;;  %v5883_v24 = vcombine.low %v3969_v55, %v3979_v22  ;;  %v8600_v52 = vrot.slane %v4083_v5, 4  ;;  %v5884_v42 = vcombine.low %v3993_v57, %v4003_v60 }
 0x101   : > { %v8602_v58 = vcombine.low %v4017_v18, %v4027_v28  ;;  %v8604_v35 = vcombine.low %v4041_v39, %v4051_v13  ;;  %v4065_v47 = vsel %vm7357_vm2, %v8572_v43, %v8517_v17  ;;  %v4075_v34 = vsel %vm7357_vm2, %v8578_v45, %v8574_v3  ;;  %v5907_v28 = vld [vmem:[%s7325_s10 + $0x6c] sm:$0xe] }
 0x102   : > { %6741 = vmatpush3.bf16.msra.mxu0 %v7162_v0  ;;  %v8620_v1 = vrot.slane %v4093_v53, 4  ;;  %v8622_v4 = vrot.slane %v4096_v16, 5  ;;  %v4114_v0 = vshrl.u32 %v8562_v10, 16  ;;  %v9297_v44 = vcombine.low %v8349_v6, %v8358_v51  ;;  %v7171_v6 = vld [vmem:[%s9244_s1 + $0x230] sm:$0xff]   ;;  %v8644_v51 = vld [vmem:[%s7325_s10 + $0xc4] sm:$0xf] }
 0x103   : > { %6742 = vmatprep.subr.bf16.mxu0 %v7165_v31  ;;  %v8629_v59 = vrot.slane %v4101_v56, 4  ;;  %v8633_v49 = vrot.slane %v4110_v20, 5  ;;  %v4120_v12 = vshll.u32 %v8583_v27, 16  ;;  %v4089_v38 = vsel %vm7357_vm2, %v8600_v52, %v8527_v14  ;;  %v5906_v14 = vld [vmem:[%s7325_s10 + $0x60] sm:$0xe]  ;;  %v9298_v39 = vld [vmem:[#allocation3_spill] sm:$0xff] }
 0x104   : > { %6711 = vmatmul.mubr.bf16.gmra.mrb[8].mxu0 %v8400_v19  ;;  %v8631_v19 = vrot.slane %v4104_v8, 5  ;;  %v4125_v23 = vshrl.u32 %v5854_v54, 16  ;;  %v5920_v15 = vrot.slane %v5904_v41, 9  ;;  %v4588_v55 = vrot.slane %v8220_v32, 5  ;;  %v7163_v13 = vld [vmem:[%s7325_s10 + $0xc] sm:$0xff]   ;;  %v7174_v56 = vld [vmem:[%s9244_s1 + $0x238] sm:$0xff]  }
 0x105   : > { %6487 = vmatmul.mubr.bf16.gmra.mrb[24].mxu1 %v9297_v44  ;;  %6714 = vmatprep.mubr.bf16.mxu0 %v5882_v30  ;;  %v4128_v22 = vshll.u32 %v5854_v54, 16  ;;  %v4591_v57 = vrot.slane %v8268_v63, 5  ;;  %v5921_v40 = vrot.slane %v5905_v26, 9  ;;  %v4595_v60 = vrot.slane %v8232_v33, 5  ;;  %v9299_v16 = vld [vmem:[#allocation4_spill] sm:$0xff]  ;;  %v9301_v52 = vld [vmem:[#allocation6_spill] sm:$0xff] }
 0x106   : > { %6490 = vmatprep.mubr.bf16.mxu1 %v5498_v7  ;;  %6743 = vmatpush3.bf16.msra.mxu0 %v7165_v31  ;;  %v4099_v18 = vsel %vm7357_vm2, %v8620_v1, %v8622_v4  ;;  %v8654_v5 = vrot.slane %v4114_v0, 4  ;;  %v8658_v61 = vsel %vm7603_vm5, %v5920_v15, %v4588_v55  ;;  %v4590_v32 = vrot.slane %v4588_v55, 4  ;;  %v9302_v4 = vld [vmem:[#allocation7_spill] sm:$0xff] }
 0x107   : > { %6744 = vmatprep.subr.bf16.mxu0 %v7168_v2  ;;  %v4134_v31 = vshll.u32 %v8644_v51, 16  ;;  %v8664_v63 = vsel %vm7603_vm5, %v5921_v40, %v4595_v60  ;;  %v4597_v33 = vrot.slane %v4595_v60, 4  ;;  %v4598_v3 = vrot.slane %v9298_v39, 5  ;;  %v8695_v26 = vld [vmem:[%s7325_s10 + $0xc8] sm:$0x1]  ;;  %v7164_v40 = vld [vmem:[%s7325_s10 + $0x18] sm:$0xff]  }
 0x108   : > { %v8670_v45 = vsel %vm7603_vm5, %v4590_v32, %v4591_v57  ;;  %v5922_v53 = vrot.slane %v5906_v14, 9  ;;  %v4602_v46 = vrot.slane %v9299_v16, 5  ;;  %v4605_v30 = vrot.slane %v9300_v29, 5  ;;  %v7166_v39 = vld [vmem:[%s7325_s10 + $0x24] sm:$0xff]  }
 0x109   : > { %v5952_v8 = vcombine.low %v8658_v61, %v8670_v45  ;;  %v8681_v20 = vsel %vm7603_vm5, %v4597_v33, %v4598_v3  ;;  %v5923_v7 = vrot.slane %v5907_v28, 9  ;;  %v4612_v0 = vrot.slane %v9302_v4, 5  ;;  %v9304_v28 = vld [vmem:[#allocation11_spill] sm:$0xff]  ;;  %v5613_v61 = vld [vmem:[%s7325_s10 + $0x90] sm:$0xf] }
 0x10a   : > { %6745 = vmatpush3.bf16.msra.mxu0 %v7168_v2  ;;  %v4609_v2 = vrot.slane %v9301_v52, 5  ;;  %v5953_v54 = vcombine.low %v8664_v63, %v8681_v20  ;;  %v8688_v41 = vsel %vm7603_vm5, %v5922_v53, %v4602_v46  ;;  %v4604_v1 = vrot.slane %v4602_v46, 4  ;;  %v9305_v53 = vld [vmem:[#allocation2_spill] sm:$0xff]  ;;  %v7180_v45 = vld [vmem:[%s7325_s10 + $0xa8] sm:$0xff]  }
 0x10b   : > { %6746 = vmatprep.subr.bf16.mxu0 %v7171_v6  ;;  %v8697_v44 = vrot.slane %v4125_v23, 4  ;;  %v8710_v36 = vcombine.low %v4065_v47, %v4075_v34  ;;  %v4107_v62 = vor.u32 %v8631_v19, %v8629_v59  ;;  %v5908_v23 = vld [vmem:[%s7325_s10 + $0x78] sm:$0xe]  ;;  %v8722_v57 = vrot.slane %v4120_v12, 5  ;;  %v5857_v12 = vld [vmem:[%s7325_s10 + $0xcc] sm:$0xf] }
 0x10c   : > { %6715 = vmatmul.mubr.bf16.gmra.mrb[12].mxu0 %v5883_v24  ;;  %v8699_v24 = vrot.slane %v4128_v22, 5  ;;  %v8703_v15 = vsel %vm7603_vm5, %v5923_v7, %v4609_v2  ;;  %v4611_v55 = vrot.slane %v4609_v2, 4  ;;  %v8720_v22 = vcombine.low %v4089_v38, %v4099_v18  ;;  %v5607_v47 = vld [vmem:[%s7325_s10 + $0x78] sm:$0xf]  ;;  %v9303_v18 = vld [vmem:[#allocation8_spill] sm:$0xff] }
 0x10d   : > { %6491 = vmatmul.mubr.bf16.gmra.mrb[28].mxu1 %v5499_v48  ;;  %6718 = vmatprep.mubr.bf16.mxu0 %v5884_v42  ;;  %v4138_v48 = vshrl.u32 %v8644_v51, 16  ;;  %v8717_v42 = vsel %vm7603_vm5, %v4604_v1, %v4605_v30  ;;  %v4117_v34 = vor.u32 %v8654_v5, %v8633_v49  ;;  %v8733_v59 = vrot.slane %v4134_v31, 5  ;;  %v8747_v31 = vld [vmem:[%s7325_s10 + $0xd0] sm:$0xf]  ;;  %v9306_v1 = vld [vmem:[#allocation9_spill] sm:$0xff] }
 0x10e   : > { %6510 = vmatprep.mubr.bf16.mxu1 %v7163_v13  ;;  %6747 = vmatpush3.bf16.msra.mxu0 %v7171_v6  ;;  %v5954_v17 = vcombine.low %v8688_v41, %v8717_v42  ;;  %v8728_v43 = vsel %vm7603_vm5, %v4611_v55, %v4612_v0  ;;  %v4144_v19 = vshll.u32 %v8695_v26, 16  ;;  %v5909_v6 = vld [vmem:[%s7325_s10 + $0x84] sm:$0xe]  ;;  %v4131_v60 = vor.u32 %v8699_v24, %v8697_v44  ;;  %v9307_v24 = vld [vmem:[#allocation12_spill] sm:$0xff]  ;;  %v7244_v63 = vld [vmem:[%s7325_s10 + $0x8c] sm:$0x1] }
 0x10f   : > { %6748 = vmatprep.subr.bf16.mxu0 %v7174_v56  ;;  %v5955_v38 = vcombine.low %v8703_v15, %v8728_v43  ;;  %v5924_v14 = vrot.slane %v5908_v23, 9  ;;  %v4616_v32 = vrot.slane %v9303_v18, 5  ;;  %v4619_v33 = vrot.slane %v9304_v28, 5 }
 0x110   : > { %v4140_v5 = vrot.slane %v4138_v48, 4  ;;  %v2366_v3 = vshrl.u32 %v5607_v47, 16  ;;  %v2369_v13 = vshll.u32 %v5607_v47, 16  ;;  %v2388_v16 = vsel %vm7357_vm2, %v8532_v50, %v9305_v53 }
 0x111   : > { %v4149_v46 = vshrl.u32 %v5857_v12, 16  ;;  %v8755_v29 = vsel %vm7603_vm5, %v5924_v14, %v4616_v32  ;;  %v4618_v30 = vrot.slane %v4616_v32, 4  ;;  %v5925_v7 = vrot.slane %v5909_v6, 9  ;;  %v7224_v6 = vld [vmem:[%s9244_s1 + $0x108] sm:$0xff]  }
 0x112   : > { %6749 = vmatpush3.bf16.msra.mxu0 %v7174_v56  ;;  %v4152_v52 = vshll.u32 %v5857_v12, 16  ;;  %v2368_v2 = vrot.slane %v2366_v3, 4  ;;  %v2371_v56 = vrot.slane %v2369_v13, 5  ;;  %v4623_v4 = vrot.slane %v9306_v1, 5  ;;  %v5910_v12 = vld [vmem:[%s7325_s10 + $0x90] sm:$0xe] }
 0x113   : > { %v4158_v50 = vshll.u32 %v8747_v31, 16  ;;  %v4162_v0 = vshrl.u32 %v8747_v31, 16  ;;  %v8764_v44 = vsel %vm7603_vm5, %v4618_v30, %v4619_v33  ;;  %v4626_v55 = vrot.slane %v9307_v24, 5  ;;  %v7167_v3 = vld [vmem:[%s7325_s10 + $0x30] sm:$0xff]  }
 0x114   : > { %6719 = vmatmul.mubr.bf16.gmra.mrb[16].mxu0 %v8602_v58  ;;  %v9308_v58 = vld [vmem:[#allocation15_spill] sm:$0xff]  ;;  %v4141_v48 = vor.u32 %v4140_v5, %v8733_v59  ;;  %v2372_v23 = vor.u32 %v2371_v56, %v2368_v2  ;;  %v4625_v47 = vrot.slane %v4623_v4, 4  ;;  %v4118_v14 = vrot.slane %v4117_v34, 4  ;;  %v8785_v13 = vld [vmem:[%s7325_s10 + $0xd4] sm:$0x1]  ;;  %v9309_v2 = vld [vmem:[#allocation10_spill] sm:$0xff] }
 0x115   : > { %6511 = vmatmul.mubr.bf16.vlgmr.msra.gmra.mrb[0].mxu1 %v7164_v40  ;;  %6722 = vmatprep.mubr.bf16.mxu0 %v8604_v35  ;;  %v5956_v35 = vcombine.low %v8755_v29, %v8764_v44  ;;  %v4108_v40 = vrot.slane %v4107_v62, 4  ;;  %v4146_v18 = vrot.slane %v4144_v19, 5  ;;  %v8777_v32 = vsel %vm7603_vm5, %v5925_v7, %v4623_v4  ;;  %v7169_v19 = vld [vmem:[%s7325_s10 + $0x3c] sm:$0xff]   ;;  %v7225_v1 = vld [vmem:[%s9244_s1 + $0x110] sm:$0xff]  }
 0x116   : > { %6790 = vmatpush3.bf16.msra.mxu1 %v9308_v58  ;;  %6514 = vmatprep.mubr.bf16.mxu1 %v7166_v39  ;;  %v4151_v28 = vrot.slane %v4149_v46, 4  ;;  %v4154_v33 = vrot.slane %v4152_v52, 5  ;;  %v2373_v39 = vrot.slane %v2372_v23, 4  ;;  %v8781_v5 = vsel %vm7603_vm5, %v4625_v47, %v4626_v55  ;;  %v7226_v47 = vld [vmem:[%s7325_s10 + $0x1c] sm:$0xf] }
 0x117   : > { %6783 = vmatprep.subr.bf16.mxu1 %v7224_v6  ;;  %v8787_v53 = vrot.slane %v4158_v50, 5  ;;  %v4164_v30 = vrot.slane %v4162_v0, 4  ;;  %v5957_v62 = vcombine.low %v8777_v32, %v8781_v5  ;;  %v5926_v34 = vrot.slane %v5910_v12, 9 }
 0x118   : > { %v4132_v7 = vrot.slane %v4131_v60, 4  ;;  %v4142_v46 = vrot.slane %v4141_v48, 4  ;;  %v2378_v52 = vsel %vm7357_vm2, %v2373_v39, %v7933_v11  ;;  %v4630_v56 = vrot.slane %v9309_v2, 5  ;;  %v9310_v11 = vld [vmem:[#allocation14_spill] sm:$0xff]  ;;  %v7170_v39 = vld [vmem:[%s7325_s10 + $0x48] sm:$0xff]  }
 0x119   : > { %v4113_v4 = vsel %vm7357_vm2, %v4108_v40, %v8633_v49  ;;  %v4123_v60 = vsel %vm7357_vm2, %v4118_v14, %v8722_v57  ;;  %v8805_v50 = vcombine.low %v2378_v52, %v2388_v16  ;;  %v4633_v0 = vrot.slane %v9310_v11, 5  ;;  %v5900_v57 = vld [vmem:[%s7325_s10 + $0x18] sm:$0xe]  ;;  %v5911_v16 = vld [vmem:[%s7325_s10 + $0x9c] sm:$0xe] }
 0x11a   : > { %6791 = vmatpush3.bf16.msra.mxu1 %v7224_v6  ;;  %v4155_v24 = vor.u32 %v4154_v33, %v4151_v28  ;;  %v4168_v55 = vshll.u32 %v8785_v13, 16  ;;  %v8812_v58 = vsel %vm7603_vm5, %v5926_v34, %v4630_v56  ;;  %v4632_v48 = vrot.slane %v4630_v56, 4  ;;  %v7227_v40 = vld [vmem:[%s9244_s1 + $0x118] sm:$0xff]   ;;  %v7228_v2 = vld [vmem:[%s7325_s10 + $0x20] sm:$0x1] }
 0x11b   : > { %6784 = vmatprep.subr.bf16.mxu1 %v7225_v1  ;;  %v4165_v49 = vor.u32 %v4164_v30, %v8787_v53  ;;  %v4147_v23 = vsel %vm7357_vm2, %v4142_v46, %v4146_v18  ;;  %v4560_v12 = vrot.slane %v7226_v47, 5  ;;  %v5889_v6 = vcombine.low %v4113_v4, %v4123_v60  ;;  %v9311_v34 = vld [vmem:[#allocation13_spill] sm:$0xff]  ;;  %v5912_v11 = vld [vmem:[%s7325_s10 + $0xa8] sm:$0xe] }
 0x11c   : > { %6723 = vmatmul.mubr.bf16.gmra.mrb[20].mxu0 %v8710_v36  ;;  %v4137_v36 = vsel %vm7357_vm2, %v4132_v7, %v8733_v59  ;;  %v4156_v14 = vrot.slane %v4155_v24, 4  ;;  %v4170_v28 = vrot.slane %v4168_v55, 5  ;;  %v5916_v18 = vrot.slane %v5900_v57, 9  ;;  %v7172_v46 = vld [vmem:[%s7325_s10 + $0x54] sm:$0xff]   ;;  %v5901_v55 = vld [vmem:[%s7325_s10 + $0x24] sm:$0xe] }
 0x11d   : > { %6515 = vmatmul.mubr.bf16.gmra.mrb[4].mxu1 %v7167_v3  ;;  %6726 = vmatprep.mubr.bf16.mxu0 %v8720_v22  ;;  %v8826_v22 = vsel %vm7603_vm5, %v4632_v48, %v4633_v0  ;;  %v5927_v33 = vrot.slane %v5911_v16, 9  ;;  %v5890_v3 = vcombine.low %v4137_v36, %v4147_v23  ;;  %v4166_v30 = vrot.slane %v4165_v49, 4  ;;  %v7230_v48 = vld [vmem:[%s7325_s10 + $0x28] sm:$0xf]  ;;  %v7231_v36 = vld [vmem:[%s7325_s10 + $0x34] sm:$0xf] }
 0x11e   : > { %6518 = vmatprep.mubr.bf16.mxu1 %v7169_v19  ;;  %6792 = vmatpush3.bf16.msra.mxu1 %v7225_v1  ;;  %v5958_v59 = vcombine.low %v8812_v58, %v8826_v22  ;;  %v4637_v19 = vrot.slane %v9311_v34, 5  ;;  %v4640_v7 = vrot.slane %v8515_v25, 5  ;;  %v4562_v52 = vrot.slane %v4560_v12, 4  ;;  %v7229_v1 = vld [vmem:[%s9244_s1 + $0x120] sm:$0xff]  }
 0x11f   : > { %6785 = vmatprep.subr.bf16.mxu1 %v7227_v40  ;;  %v4563_v56 = vrot.slane %v7228_v2, 5  ;;  %v4561_v25 = vsel %vm7603_vm5, %v5916_v18, %v4560_v12  ;;  %v4161_v0 = vsel %vm7357_vm2, %v4156_v14, %v8787_v53  ;;  %v4171_v24 = vsel %vm7357_vm2, %v4166_v30, %v4170_v28  ;;  %v5902_v12 = vld [vmem:[%s7325_s10 + $0x30] sm:$0xe]  ;;  %v7173_v30 = vld [vmem:[%s7325_s10 + $0x60] sm:$0xff]  }
 0x120   : > { %v8843_v4 = vsel %vm7603_vm5, %v5927_v33, %v4637_v19  ;;  %v4639_v60 = vrot.slane %v4637_v19, 4  ;;  %v4567_v49 = vrot.slane %v7230_v48, 5  ;;  %v4574_v23 = vrot.slane %v7231_v36, 5  ;;  %v7233_v33 = vld [vmem:[%s7325_s10 + $0x2c] sm:$0x1] }
 0x121   : > { %v4564_v16 = vsel %vm7603_vm5, %v4562_v52, %v4563_v56  ;;  %v5928_v47 = vrot.slane %v5912_v11, 9  ;;  %v5891_v28 = vcombine.low %v4161_v0, %v4171_v24  ;;  %v5917_v18 = vrot.slane %v5901_v55, 9  ;;  %v7175_v52 = vld [vmem:[%s7325_s10 + $0x6c] sm:$0xff]   ;;  %v5913_v11 = vld [vmem:[%s7325_s10 + $0xb4] sm:$0xe] }
 0x122   : > { %6793 = vmatpush3.bf16.msra.mxu1 %v7227_v40  ;;  %v8857_v57 = vsel %vm7603_vm5, %v4639_v60, %v4640_v7  ;;  %v9312_v40 = vld [vmem:[#allocation16_spill] sm:$0xff]  ;;  %v5948_v34 = vcombine.low %v4561_v25, %v4564_v16  ;;  %v4569_v19 = vrot.slane %v4567_v49, 4  ;;  %v5918_v2 = vrot.slane %v5902_v12, 9  ;;  %v5903_v0 = vld [vmem:[%s7325_s10 + $0x3c] sm:$0xe] }
 0x123   : > { %6786 = vmatprep.subr.bf16.mxu1 %v7229_v1  ;;  %v5959_v53 = vcombine.low %v8843_v4, %v8857_v57  ;;  %v4644_v14 = vrot.slane %v9312_v40, 5  ;;  %v4576_v56 = vrot.slane %v4574_v23, 4  ;;  %v7235_v24 = vld [vmem:[%s7325_s10 + $0x40] sm:$0xf]  ;;  %v4568_v48 = vsel %vm7603_vm5, %v5917_v18, %v4567_v49  ;;  %v7237_v18 = vld [vmem:[%s7325_s10 + $0x44] sm:$0x1] }
 0x124   : > { %6727 = vmatmul.mubr.bf16.gmra.mrb[24].mxu0 %v5889_v6  ;;  %v7232_v6 = vld [vmem:[%s9244_s1 + $0x128] sm:$0xff]   ;;  %v4581_v55 = vrot.slane %v7235_v24, 5  ;;  %v4651_v12 = vrot.slane %v8562_v10, 5  ;;  %v4575_v49 = vsel %vm7603_vm5, %v5918_v2, %v4574_v23  ;;  %v7238_v10 = vld [vmem:[%s9244_s1 + $0x138] sm:$0xff]   ;;  %v5914_v23 = vld [vmem:[%s7325_s10 + $0xc0] sm:$0xe] }
 0x125   : > { %6519 = vmatmul.mubr.bf16.gmra.mrb[8].mxu1 %v7170_v39  ;;  %6730 = vmatprep.mubr.bf16.mxu0 %v5890_v3  ;;  %v4570_v39 = vrot.slane %v7233_v33, 5  ;;  %v4647_v3 = vrot.slane %v8550_v21, 5  ;;  %v8874_v7 = vsel %vm7603_vm5, %v5928_v47, %v4644_v14  ;;  %v7236_v21 = vld [vmem:[%s9244_s1 + $0x130] sm:$0xff]   ;;  %v5929_v47 = vrot.slane %v5913_v11, 9 }
 0x126   : > { %6522 = vmatprep.mubr.bf16.mxu1 %v7172_v46  ;;  %6794 = vmatpush3.bf16.msra.mxu1 %v7229_v1  ;;  %v4646_v46 = vrot.slane %v4644_v14, 4  ;;  %v7234_v1 = vld [vmem:[%s7325_s10 + $0x38] sm:$0x1]  ;;  %v5919_v14 = vrot.slane %v5903_v0, 9  ;;  %v4584_v33 = vrot.slane %v7237_v18, 5  ;;  %v4658_v11 = vrot.slane %v8644_v51, 5 }
 0x127   : > { %6787 = vmatprep.subr.bf16.mxu1 %v7232_v6  ;;  %v4577_v60 = vrot.slane %v7234_v1, 5  ;;  %v4571_v36 = vsel %vm7603_vm5, %v4569_v19, %v4570_v39  ;;  %v4653_v39 = vrot.slane %v4651_v12, 4  ;;  %v5604_v19 = vld [vmem:[%s7325_s10 + $0x6c] sm:$0xf]  ;;  %v7178_v18 = vld [vmem:[%s7325_s10 + $0x90] sm:$0xff]   ;;  %v2409_v20 = vshll.u32 %v7244_v63, 16 }
 0x128   : > { %v8886_v25 = vsel %vm7603_vm5, %v4646_v46, %v4647_v3  ;;  %v5949_v3 = vcombine.low %v4568_v48, %v4571_v36  ;;  %v4582_v1 = vsel %vm7603_vm5, %v5919_v14, %v4581_v55  ;;  %v2342_v0 = vshrl.u32 %v5604_v19, 16  ;;  %v5915_v51 = vld [vmem:[%s7325_s10 + $0xcc] sm:$0xe] }
 0x129   : > { %v5960_v16 = vcombine.low %v8874_v7, %v8886_v25  ;;  %v4578_v40 = vsel %vm7603_vm5, %v4576_v56, %v4577_v60  ;;  %v5930_v56 = vrot.slane %v5914_v23, 9  ;;  %v2345_v24 = vshll.u32 %v5604_v19, 16 }
 0x12a   : > { %6795 = vmatpush3.bf16.msra.mxu1 %v7232_v6  ;;  %v4654_v6 = vrot.slane %v8583_v27, 5  ;;  %v8906_v27 = vsel %vm7603_vm5, %v5929_v47, %v4651_v12  ;;  %v4661_v36 = vrot.slane %v8695_v26, 5  ;;  %v4660_v12 = vrot.slane %v4658_v11, 4 }
 0x12b   : > { %6788 = vmatprep.subr.bf16.mxu1 %v7236_v21  ;;  %v2347_v26 = vrot.slane %v2345_v24, 5  ;;  %v4668_v23 = vrot.slane %v8785_v13, 5 }
 0x12c   : > { %6731 = vmatmul.mubr.bf16.gmra.mrb[28].mxu0 %v5891_v28  ;;  %v4583_v28 = vrot.slane %v4581_v55, 4  ;;  %v8913_v46 = vsel %vm7603_vm5, %v4653_v39, %v4654_v6  ;;  %v8927_v55 = vsel %vm7603_vm5, %v5930_v56, %v4658_v11  ;;  %v4665_v39 = vrot.slane %v8747_v31, 5  ;;  %v7240_v56 = vld [vmem:[%s7325_s10 + $0x74] sm:$0x1] }
 0x12d   : > { %6523 = vmatmul.mubr.bf16.gmra.mrb[12].mxu1 %v7173_v30  ;;  %6750 = vmatprep.mubr.bf16.mxu0 %v5948_v34  ;;  %v7176_v30 = vld [vmem:[%s7325_s10 + $0x78] sm:$0xff]   ;;  %v5950_v34 = vcombine.low %v4575_v49, %v4578_v40  ;;  %v5961_v2 = vcombine.low %v8906_v27, %v8913_v46  ;;  %v8932_v49 = vsel %vm7603_vm5, %v4660_v12, %v4661_v36  ;;  %v2344_v40 = vrot.slane %v2342_v0, 4  ;;  %v7241_v0 = vld [vmem:[%s7325_s10 + $0x88] sm:$0xf] }
 0x12e   : > { %6526 = vmatprep.mubr.bf16.mxu1 %v7175_v52  ;;  %6796 = vmatpush3.bf16.msra.mxu1 %v7236_v21  ;;  %v7177_v52 = vld [vmem:[%s7325_s10 + $0x84] sm:$0xff]   ;;  %v4585_v60 = vsel %vm7603_vm5, %v4583_v28, %v4584_v33  ;;  %v7239_v21 = vld [vmem:[%s7325_s10 + $0x70] sm:$0xf]  ;;  %v5962_v28 = vcombine.low %v8927_v55, %v8932_v49  ;;  %v4667_v19 = vrot.slane %v4665_v39, 4  ;;  %v2399_v24 = vshll.u32 %v7241_v0, 16 }
 0x12f   : > { %6789 = vmatprep.subr.bf16.mxu1 %v7238_v10  ;;  %v2351_v48 = vshll.u32 %v7239_v21, 16  ;;  %v2355_v47 = vshrl.u32 %v7239_v21, 16  ;;  %v5951_v6 = vcombine.low %v4582_v1, %v4585_v60  ;;  %v2361_v1 = vshll.u32 %v7240_v56, 16 }
 0x130   : > { %v8954_v11 = vsel %vm7603_vm5, %v4667_v19, %v4668_v23  ;;  %v2403_v21 = vshrl.u32 %v7241_v0, 16  ;;  %v7243_v19 = vld [vmem:[%s7325_s10 + $0xa0] sm:$0xf] }
 0x131   : > { %v8934_v14 = vrot.slane %v2351_v48, 5  ;;  %v2357_v33 = vrot.slane %v2355_v47, 4  ;;  %v2451_v56 = vshrl.u32 %v7243_v19, 16 }
 0x132   : > { %6797 = vmatpush3.bf16.msra.mxu1 %v7238_v10  ;;  %v5931_v10 = vrot.slane %v5915_v51, 9 }
 0x133   : > { %v2358_v31 = vor.u32 %v2357_v33, %v8934_v14  ;;  %v2417_v33 = vshll.u32 %v5613_v61, 16 }
 0x134   : > { %6751 = vmatmul.mubr.bf16.vlgmr.msra.gmra.mrb[0].mxu0 %v5949_v3  ;;  %v7179_v3 = vld [vmem:[%s7325_s10 + $0x9c] sm:$0xff]  }
 0x135   : > { %6527 = vmatmul.mubr.bf16.gmra.mrb[16].mxu1 %v7176_v30  ;;  %6754 = vmatprep.mubr.bf16.mxu0 %v5950_v34  ;;  %v5610_v30 = vld [vmem:[%s7325_s10 + $0x84] sm:$0xf]  ;;  %v8945_v34 = vsel %vm7603_vm5, %v5931_v10, %v4665_v39  ;;  %v2359_v47 = vrot.slane %v2358_v31, 4  ;;  %v7242_v10 = vld [vmem:[%s7325_s10 + $0x94] sm:$0xf]  ;;  %v2419_v0 = vrot.slane %v2417_v33, 5 }
 0x136   : > { %6530 = vmatprep.mubr.bf16.mxu1 %v7177_v52  ;;  %v2348_v52 = vor.u32 %v2347_v26, %v2344_v40  ;;  %v2390_v13 = vshrl.u32 %v5610_v30, 16  ;;  %v2393_v60 = vshll.u32 %v5610_v30, 16  ;;  %v5963_v48 = vcombine.low %v8945_v34, %v8954_v11 }
 0x137   : > { %v8963_v40 = vrot.slane %v2399_v24, 5  ;;  %v2405_v26 = vrot.slane %v2403_v21, 4  ;;  %v2423_v39 = vshll.u32 %v7242_v10, 16  ;;  %v2427_v23 = vshrl.u32 %v7242_v10, 16  ;;  %v7246_v10 = vld [vmem:[%s7325_s10 + $0xa4] sm:$0x1] }
 0x138   : > { %v2349_v36 = vrot.slane %v2348_v52, 4  ;;  %v2392_v12 = vrot.slane %v2390_v13, 4  ;;  %v2395_v51 = vrot.slane %v2393_v60, 5  ;;  %v2447_v52 = vshll.u32 %v7243_v19, 16  ;;  %v7247_v19 = vld [vmem:[%s7325_s10 + $0xac] sm:$0xf] }
 0x139   : > { %v2406_v13 = vor.u32 %v2405_v26, %v8963_v40  ;;  %v8980_v41 = vrot.slane %v2423_v39, 5  ;;  %v2429_v42 = vrot.slane %v2427_v23, 4  ;;  %v2453_v21 = vrot.slane %v2451_v56, 4  ;;  %v5622_v23 = vld [vmem:[%s7325_s10 + $0xb4] sm:$0xf] }
 0x13a   : > { %v2457_v39 = vshll.u32 %v7246_v10, 16  ;;  %v2475_v15 = vshrl.u32 %v7247_v19, 16  ;;  %v2489_v63 = vshll.u32 %v5622_v23, 16 }
 0x13b   : > { %v2430_v26 = vor.u32 %v2429_v42, %v8980_v41 }
 0x13c   : > { %6755 = vmatmul.mubr.bf16.gmra.mrb[4].mxu0 %v5951_v6  ;;  %v5616_v6 = vld [vmem:[%s7325_s10 + $0x9c] sm:$0xf] }
 0x13d   : > { %6531 = vmatmul.mubr.bf16.gmra.mrb[20].mxu1 %v7178_v18  ;;  %6758 = vmatprep.mubr.bf16.mxu0 %v5952_v8  ;;  %v2363_v8 = vrot.slane %v2361_v1, 5  ;;  %v2414_v18 = vshrl.u32 %v5613_v61, 16  ;;  %v2441_v30 = vshll.u32 %v5616_v6, 16  ;;  %v2354_v1 = vsel %vm7357_vm2, %v2349_v36, %v8934_v14  ;;  %v7182_v61 = vld [vmem:[%s7325_s10 + $0xc0] sm:$0xff]  }
 0x13e   : > { %6534 = vmatprep.mubr.bf16.mxu1 %v7179_v3  ;;  %v2438_v3 = vshrl.u32 %v5616_v6, 16  ;;  %v8982_v14 = vrot.slane %v2447_v52, 5  ;;  %v2471_v52 = vshll.u32 %v7247_v19, 16 }
 0x13f   : > { %v2364_v31 = vsel %vm7357_vm2, %v2359_v47, %v2363_v8  ;;  %v2416_v60 = vrot.slane %v2414_v18, 4  ;;  %v2443_v24 = vrot.slane %v2441_v30, 5  ;;  %v2411_v8 = vrot.slane %v2409_v20, 5  ;;  %v7248_v20 = vld [vmem:[%s7325_s10 + $0xb8] sm:$0xf] }
 0x140   : > { %v2407_v47 = vrot.slane %v2406_v13, 4  ;;  %v2454_v33 = vor.u32 %v2453_v21, %v8982_v14  ;;  %v2495_v29 = vshll.u32 %v7248_v20, 16  ;;  %v2499_v44 = vshrl.u32 %v7248_v20, 16 }
 0x142   : > { %v2455_v13 = vrot.slane %v2454_v33, 4 }
 0x144   : > { %6759 = vmatmul.mubr.bf16.gmra.mrb[8].mxu0 %v5953_v54  ;;  %v2396_v54 = vor.u32 %v2395_v51, %v2392_v12  ;;  %v2420_v12 = vor.u32 %v2419_v0, %v2416_v60  ;;  %v7245_v51 = vld [vmem:[%s7325_s10 + $0x98] sm:$0x1]  ;;  %v2459_v60 = vrot.slane %v2457_v39, 5 }
 0x145   : > { %6535 = vmatmul.mubr.bf16.gmra.mrb[24].mxu1 %v7180_v45  ;;  %6762 = vmatprep.mubr.bf16.mxu0 %v5954_v17  ;;  %v2440_v17 = vrot.slane %v2438_v3, 4  ;;  %v5652_v45 = vcombine.low %v2354_v1, %v2364_v31  ;;  %v2433_v6 = vshll.u32 %v7245_v51, 16  ;;  %v2486_v31 = vshrl.u32 %v5622_v23, 16 }
 0x146   : > { %6538 = vmatprep.mubr.bf16.mxu1 %v7181_v9  ;;  %v2397_v36 = vrot.slane %v2396_v54, 4  ;;  %v5619_v9 = vld [vmem:[%s7325_s10 + $0xa8] sm:$0xf]  ;;  %v2421_v56 = vrot.slane %v2420_v12, 4  ;;  %v2460_v32 = vsel %vm7357_vm2, %v2455_v13, %v2459_v60 }
 0x147   : > { %v2444_v18 = vor.u32 %v2443_v24, %v2440_v17  ;;  %v2462_v3 = vshrl.u32 %v5619_v9, 16  ;;  %v2465_v30 = vshll.u32 %v5619_v9, 16  ;;  %v2435_v1 = vrot.slane %v2433_v6, 5 }
 0x148   : > { %v2402_v43 = vsel %vm7357_vm2, %v2397_v36, %v8963_v40  ;;  %v2473_v17 = vrot.slane %v2471_v52, 5  ;;  %v2477_v24 = vrot.slane %v2475_v15, 4  ;;  %v2488_v21 = vrot.slane %v2486_v31, 4  ;;  %v5625_v36 = vld [vmem:[%s7325_s10 + $0xc0] sm:$0xf] }
 0x149   : > { %v2445_v54 = vrot.slane %v2444_v18, 4  ;;  %v2464_v0 = vrot.slane %v2462_v3, 4  ;;  %v2467_v42 = vrot.slane %v2465_v30, 5  ;;  %v2510_v9 = vshrl.u32 %v5625_v36, 16  ;;  %v7250_v18 = vld [vmem:[%s7325_s10 + $0xc4] sm:$0xf] }
 0x14a   : > { %v2519_v33 = vshll.u32 %v7250_v18, 16 }
 0x14b   : > { %v2450_v51 = vsel %vm7357_vm2, %v2445_v54, %v8982_v14  ;;  %v2468_v5 = vor.u32 %v2467_v42, %v2464_v0  ;;  %v2523_v14 = vshrl.u32 %v7250_v18, 16  ;;  %v2512_v19 = vrot.slane %v2510_v9, 4 }
 0x14c   : > { %6763 = vmatmul.mubr.bf16.gmra.mrb[12].mxu0 %v5955_v38  ;;  %v2412_v38 = vsel %vm7357_vm2, %v2407_v47, %v2411_v8  ;;  %v2501_v8 = vrot.slane %v2499_v44, 4  ;;  %v2426_v47 = vsel %vm7357_vm2, %v2421_v56, %v8980_v41  ;;  %v7249_v41 = vld [vmem:[%s7325_s10 + $0xb0] sm:$0x1]  ;;  %v5656_v58 = vcombine.low %v2450_v51, %v2460_v32  ;;  %v7252_v44 = vld [vmem:[%s7325_s10 + $0xc8] sm:$0x1] }
 0x14d   : > { %6539 = vmatmul.mubr.bf16.gmra.mrb[28].mxu1 %v7182_v61  ;;  %6766 = vmatprep.mubr.bf16.mxu0 %v5956_v35  ;;  %v2431_v35 = vrot.slane %v2430_v26, 4  ;;  %v5654_v40 = vcombine.low %v2402_v43, %v2412_v38  ;;  %v2491_v61 = vrot.slane %v2489_v63, 5  ;;  %v2481_v6 = vshll.u32 %v7249_v41, 16 }
 0x14e   : > { %6574 = vmatprep.mubr.bf16.mxu1 %v5652_v45  ;;  %v2497_v45 = vrot.slane %v2495_v29, 5  ;;  %v2513_v26 = vshll.u32 %v5625_v36, 16  ;;  %v2469_v22 = vrot.slane %v2468_v5, 4  ;;  %v2521_v15 = vrot.slane %v2519_v33, 5 }
 0x14f   : > { %v2436_v12 = vsel %vm7357_vm2, %v2431_v35, %v2435_v1  ;;  %v2492_v10 = vor.u32 %v2491_v61, %v2488_v21  ;;  %v2483_v30 = vrot.slane %v2481_v6, 5  ;;  %v2525_v43 = vrot.slane %v2523_v14, 4 }
 0x150   : > { %v2502_v39 = vor.u32 %v2501_v8, %v2497_v45  ;;  %v5655_v3 = vcombine.low %v2426_v47, %v2436_v12  ;;  %v2515_v52 = vrot.slane %v2513_v26, 5  ;;  %v2474_v31 = vsel %vm7357_vm2, %v2469_v22, %v2473_v17 }
 0x151   : > { %v2493_v38 = vrot.slane %v2492_v10, 4  ;;  %v2526_v29 = vor.u32 %v2525_v43, %v2521_v15  ;;  %v2529_v35 = vshll.u32 %v7252_v44, 16 }
 0x152   : > { %v2503_v56 = vrot.slane %v2502_v39, 4  ;;  %v2516_v20 = vor.u32 %v2515_v52, %v2512_v19 }
 0x153   : > { %v2498_v4 = vsel %vm7357_vm2, %v2493_v38, %v2497_v45  ;;  %v2531_v54 = vrot.slane %v2529_v35, 5 }
 0x154   : > { %6767 = vmatmul.mubr.bf16.gmra.mrb[16].mxu0 %v5957_v62  ;;  %v2478_v62 = vor.u32 %v2477_v24, %v2473_v17  ;;  %v2517_v25 = vrot.slane %v2516_v20, 4 }
 0x155   : > { %6575 = vmatmul.mubr.bf16.vlgmr.msra.gmra.mrb[16].mxu1 %v8805_v50  ;;  %6770 = vmatprep.mubr.bf16.mxu0 %v5958_v59  ;;  %v7251_v50 = vld [vmem:[%s7325_s10 + $0xbc] sm:$0x1]  ;;  %s6006_s10 = sshll.u32 %s9314_s13, 7 }
 0x156   : > { %6578 = vmatprep.mubr.bf16.mxu1 %v5654_v40  ;;  %v2505_v23 = vshll.u32 %v7251_v50, 16  ;;  %v2479_v59 = vrot.slane %v2478_v62, 4  ;;  %v2522_v13 = vsel %vm7357_vm2, %v2517_v25, %v2521_v15  ;;  %s9063_s8 = scalar_lea.vmem %s9245_s2, %s6006_s10 }
 0x158   : > { %v2507_v1 = vrot.slane %v2505_v23, 5  ;;  %v2484_v63 = vsel %vm7357_vm2, %v2479_v59, %v2483_v30 }
 0x15a   : > { %v2508_v57 = vsel %vm7357_vm2, %v2503_v56, %v2507_v1 }
 0x15b   : > { %v5658_v7 = vcombine.low %v2498_v4, %v2508_v57 }
 0x15c   : > { %6771 = vmatmul.mubr.bf16.gmra.mrb[20].mxu0 %v5959_v53  ;;  %v5657_v53 = vcombine.low %v2474_v31, %v2484_v63 }
 0x15d   : > { %6579 = vmatmul.mubr.bf16.gmra.mrb[20].mxu1 %v5655_v3  ;;  %6774 = vmatprep.mubr.bf16.mxu0 %v5960_v16  ;;  %v2527_v16 = vrot.slane %v2526_v29, 4 }
 0x15e   : > { %6582 = vmatprep.mubr.bf16.mxu1 %v5656_v58 }
 0x15f   : > { %v2532_v60 = vsel %vm7357_vm2, %v2527_v16, %v2531_v54 }
 0x160   : > { %v5659_v0 = vcombine.low %v2522_v13, %v2532_v60 }
 0x164   : > { %6775 = vmatmul.mubr.bf16.gmra.mrb[24].mxu0 %v5961_v2 }
 0x165   : > { %6583 = vmatmul.mubr.bf16.gmra.mrb[24].mxu1 %v5657_v53  ;;  %6778 = vmatprep.mubr.bf16.mxu0 %v5962_v28 }
 0x166   : > { %6586 = vmatprep.mubr.bf16.mxu1 %v5658_v7 }
 0x16c   : > { %6779 = vmatmul.mubr.bf16.gmra.mrb[28].mxu0 %v5963_v48 }
 0x16d   : > { %6587 = vmatmul.mubr.bf16.gmra.mrb[28].mxu1 %v5659_v0 }
 0x1e8   : > { %v6512_v27 = vpop.f32.mrb[0].mxu1 }
 0x1e9   : > { %v1942_v46 = vpop.f32.mrb[1].mxu1 }
 0x1ea   : > { %v6513_v2 = vpop.f32.mrb[2].mxu1 }
 0x1eb   : > { %v1945_v42 = vpop.f32.mrb[3].mxu1 }
 0x1f0   : > { %v6516_v55 = vpop.f32.mrb[4].mxu1 }
 0x1f1   : > { %v1958_v49 = vpop.f32.mrb[5].mxu1 }
 0x1f2   : > { %v6517_v28 = vpop.f32.mrb[6].mxu1 }
 0x1f3   : > { %v1961_v17 = vpop.f32.mrb[7].mxu1 }
 0x1f8   : > { %v6520_v24 = vpop.f32.mrb[8].mxu1 }
 0x1f9   : > { %v1974_v40 = vpop.f32.mrb[9].mxu1 }
 0x1fa   : > { %v6521_v21 = vpop.f32.mrb[10].mxu1 }
 0x1fb   : > { %v1977_v37 = vpop.f32.mrb[11].mxu1 }
 0x200   : > { %v6524_v61 = vpop.f32.mrb[12].mxu1 }
 0x201   : > { %v1990_v45 = vpop.f32.mrb[13].mxu1 }
 0x202   : > { %v6525_v8 = vpop.f32.mrb[14].mxu1 }
 0x203   : > { %v1993_v36 = vpop.f32.mrb[15].mxu1 }
 0x207   : > { %v6752_v34 = vpop.f32.mrb[0].mxu0 }
 0x208   : > { %v9053_v11 = vadd.f32 %v6752_v34, %v6512_v27  ;;  %v4833_v48 = vpop.f32.mrb[1].mxu0 }
 0x209   : > { %v9056_v47 = vadd.f32 %v4833_v48, %v1942_v46  ;;  %v6753_v12 = vpop.f32.mrb[2].mxu0 }
 0x20a   : > { %v9058_v51 = vadd.f32 %v6753_v12, %v6513_v2  ;;  %v4836_v32 = vpop.f32.mrb[3].mxu0 }
 0x20b   : > { %v9065_v5 = vadd.f32 %v4836_v32, %v1945_v42 }
 0x20c   : > { %v6047_v62 = vpack.c.bf16 %v9058_v51, %v9053_v11 }
 0x20d   : > { %v4992_v41 = vadd.f32 %v9065_v5, %v9056_v47  ;;  %v6042_v6 = vpack.c.bf16 %v9065_v5, %v9056_v47 }
 0x20e   : > { %6119 = vst [vmem:[%s9063_s8 + $0x8] sm:$0xff] %v6047_v62  }
 0x20f   : > { %v4993_v9 = vadd.f32 %v9053_v11, %v4992_v41  ;;  %6043 = vst [vmem:[%s9063_s8] sm:$0xff] %v6042_v6   ;;  %v6756_v26 = vpop.f32.mrb[4].mxu0 }
 0x210   : > { %v9076_v18 = vadd.f32 %v6756_v26, %v6516_v55  ;;  %v4849_v33 = vpop.f32.mrb[5].mxu0 }
 0x211   : > { %v9078_v14 = vadd.f32 %v4849_v33, %v1958_v49  ;;  %v4994_v10 = vadd.f32 %v9058_v51, %v4993_v9  ;;  %v6757_v39 = vpop.f32.mrb[6].mxu0 }
 0x212   : > { %v9081_v50 = vadd.f32 %v6757_v39, %v6517_v28  ;;  %v4852_v23 = vpop.f32.mrb[7].mxu0 }
 0x213   : > { %v4995_v3 = vadd.f32 %v9078_v14, %v4994_v10  ;;  %v9084_v58 = vadd.f32 %v4852_v23, %v1961_v17 }
 0x214   : > { %v6057_v22 = vpack.c.bf16 %v9081_v50, %v9076_v18 }
 0x215   : > { %v4996_v59 = vadd.f32 %v9084_v58, %v4995_v3  ;;  %v6052_v30 = vpack.c.bf16 %v9084_v58, %v9078_v14 }
 0x216   : > { %6121 = vst [vmem:[%s9063_s8 + $0x18] sm:$0xff] %v6057_v22  }
 0x217   : > { %v4997_v19 = vadd.f32 %v9076_v18, %v4996_v59  ;;  %6120 = vst [vmem:[%s9063_s8 + $0x10] sm:$0xff] %v6052_v30   ;;  %v6760_v52 = vpop.f32.mrb[8].mxu0 }
 0x218   : > { %v9094_v15 = vadd.f32 %v6760_v52, %v6520_v24  ;;  %v4865_v43 = vpop.f32.mrb[9].mxu0 }
 0x219   : > { %v9096_v38 = vadd.f32 %v4865_v43, %v1974_v40  ;;  %v4998_v56 = vadd.f32 %v9081_v50, %v4997_v19  ;;  %v6761_v1 = vpop.f32.mrb[10].mxu0 }
 0x21a   : > { %v9099_v31 = vadd.f32 %v6761_v1, %v6521_v21  ;;  %v4868_v63 = vpop.f32.mrb[11].mxu0 }
 0x21b   : > { %v4999_v20 = vadd.f32 %v9096_v38, %v4998_v56  ;;  %v9102_v29 = vadd.f32 %v4868_v63, %v1977_v37 }
 0x21c   : > { %v6067_v44 = vpack.c.bf16 %v9099_v31, %v9094_v15 }
 0x21d   : > { %v5000_v35 = vadd.f32 %v9102_v29, %v4999_v20  ;;  %v6062_v4 = vpack.c.bf16 %v9102_v29, %v9096_v38 }
 0x21e   : > { %6123 = vst [vmem:[%s9063_s8 + $0x28] sm:$0xff] %v6067_v44  }
 0x21f   : > { %v5001_v57 = vadd.f32 %v9094_v15, %v5000_v35  ;;  %6122 = vst [vmem:[%s9063_s8 + $0x20] sm:$0xff] %v6062_v4   ;;  %v6764_v53 = vpop.f32.mrb[12].mxu0 }
 0x220   : > { %v9112_v7 = vadd.f32 %v6764_v53, %v6524_v61  ;;  %v4881_v25 = vpop.f32.mrb[13].mxu0 }
 0x221   : > { %v9114_v16 = vadd.f32 %v4881_v25, %v1990_v45  ;;  %v5002_v54 = vadd.f32 %v9099_v31, %v5001_v57  ;;  %v6765_v13 = vpop.f32.mrb[14].mxu0 }
 0x222   : > { %v9117_v60 = vadd.f32 %v6765_v13, %v6525_v8  ;;  %v4884_v0 = vpop.f32.mrb[15].mxu0 }
 0x223   : > { %v5003_v27 = vadd.f32 %v9114_v16, %v5002_v54  ;;  %v9120_v46 = vadd.f32 %v4884_v0, %v1993_v36 }
 0x224   : > { %v6077_v2 = vpack.c.bf16 %v9117_v60, %v9112_v7 }
 0x225   : > { %v5004_v42 = vadd.f32 %v9120_v46, %v5003_v27  ;;  %v6072_v55 = vpack.c.bf16 %v9120_v46, %v9114_v16 }
 0x226   : > { %6125 = vst [vmem:[%s9063_s8 + $0x38] sm:$0xff] %v6077_v2  }
 0x227   : > { %v5005_v49 = vadd.f32 %v9112_v7, %v5004_v42  ;;  %6124 = vst [vmem:[%s9063_s8 + $0x30] sm:$0xff] %v6072_v55   ;;  %v6768_v28 = vpop.f32.mrb[16].mxu0 }
 0x228   : > { %v6576_v17 = vpop.f32.mrb[16].mxu1  ;;  %v4897_v24 = vpop.f32.mrb[17].mxu0 }
 0x229   : > { %v9130_v40 = vadd.f32 %v6768_v28, %v6576_v17  ;;  %v2760_v21 = vpop.f32.mrb[17].mxu1  ;;  %v5006_v37 = vadd.f32 %v9117_v60, %v5005_v49  ;;  %v6769_v61 = vpop.f32.mrb[18].mxu0 }
 0x22a   : > { %v9133_v45 = vadd.f32 %v4897_v24, %v2760_v21  ;;  %v6577_v8 = vpop.f32.mrb[18].mxu1  ;;  %v4900_v36 = vpop.f32.mrb[19].mxu0 }
 0x22b   : > { %v9135_v34 = vadd.f32 %v6769_v61, %v6577_v8  ;;  %v2763_v48 = vpop.f32.mrb[19].mxu1 }
 0x22c   : > { %v5007_v12 = vadd.f32 %v9133_v45, %v5006_v37  ;;  %v9138_v32 = vadd.f32 %v4900_v36, %v2763_v48 }
 0x22d   : > { %v6087_v62 = vpack.c.bf16 %v9135_v34, %v9130_v40 }
 0x22e   : > { %v5008_v41 = vadd.f32 %v9138_v32, %v5007_v12  ;;  %v6082_v6 = vpack.c.bf16 %v9138_v32, %v9133_v45 }
 0x22f   : > { %6127 = vst [vmem:[%s9063_s8 + $0x48] sm:$0xff] %v6087_v62   ;;  %v6772_v9 = vpop.f32.mrb[20].mxu0 }
 0x230   : > { %v5009_v26 = vadd.f32 %v9130_v40, %v5008_v41  ;;  %6126 = vst [vmem:[%s9063_s8 + $0x40] sm:$0xff] %v6082_v6   ;;  %v6580_v33 = vpop.f32.mrb[20].mxu1  ;;  %v4913_v10 = vpop.f32.mrb[21].mxu0 }
 0x231   : > { %v9148_v39 = vadd.f32 %v6772_v9, %v6580_v33  ;;  %v2776_v23 = vpop.f32.mrb[21].mxu1  ;;  %v6773_v3 = vpop.f32.mrb[22].mxu0 }
 0x232   : > { %v9150_v22 = vadd.f32 %v4913_v10, %v2776_v23  ;;  %v5010_v59 = vadd.f32 %v9135_v34, %v5009_v26  ;;  %v6581_v30 = vpop.f32.mrb[22].mxu1  ;;  %v4916_v19 = vpop.f32.mrb[23].mxu0 }
 0x233   : > { %v9153_v52 = vadd.f32 %v6773_v3, %v6581_v30  ;;  %v2779_v43 = vpop.f32.mrb[23].mxu1 }
 0x234   : > { %v5011_v56 = vadd.f32 %v9150_v22, %v5010_v59  ;;  %v9156_v1 = vadd.f32 %v4916_v19, %v2779_v43 }
 0x235   : > { %v6097_v63 = vpack.c.bf16 %v9153_v52, %v9148_v39 }
 0x236   : > { %v5012_v20 = vadd.f32 %v9156_v1, %v5011_v56  ;;  %v6092_v44 = vpack.c.bf16 %v9156_v1, %v9150_v22 }
 0x237   : > { %6129 = vst [vmem:[%s9063_s8 + $0x58] sm:$0xff] %v6097_v63   ;;  %v6776_v35 = vpop.f32.mrb[24].mxu0 }
 0x238   : > { %v5013_v4 = vadd.f32 %v9148_v39, %v5012_v20  ;;  %6128 = vst [vmem:[%s9063_s8 + $0x50] sm:$0xff] %v6092_v44   ;;  %v6584_v57 = vpop.f32.mrb[24].mxu1  ;;  %v4929_v53 = vpop.f32.mrb[25].mxu0 }
 0x239   : > { %v9166_v25 = vadd.f32 %v6776_v35, %v6584_v57  ;;  %v2792_v54 = vpop.f32.mrb[25].mxu1  ;;  %v6777_v13 = vpop.f32.mrb[26].mxu0 }
 0x23a   : > { %v6823_v0 = vadd.f32 %v4929_v53, %v2792_v54  ;;  %v5014_v27 = vadd.f32 %v9153_v52, %v5013_v4  ;;  %v6585_v2 = vpop.f32.mrb[26].mxu1  ;;  %v4932_v42 = vpop.f32.mrb[27].mxu0 }
 0x23b   : > { %v6824_v55 = vadd.f32 %v6777_v13, %v6585_v2  ;;  %v2795_v49 = vpop.f32.mrb[27].mxu1 }
 0x23c   : > { %v5015_v28 = vadd.f32 %v6823_v0, %v5014_v27  ;;  %v6825_v17 = vadd.f32 %v4932_v42, %v2795_v49 }
 0x23d   : > { %v6107_v24 = vpack.c.bf16 %v6824_v55, %v9166_v25 }
 0x23e   : > { %v5016_v21 = vadd.f32 %v6825_v17, %v5015_v28  ;;  %v6102_v37 = vpack.c.bf16 %v6825_v17, %v6823_v0 }
 0x23f   : > { %6131 = vst [vmem:[%s9063_s8 + $0x68] sm:$0xff] %v6107_v24   ;;  %v6780_v61 = vpop.f32.mrb[28].mxu0 }
 0x240   : > { %v5017_v8 = vadd.f32 %v9166_v25, %v5016_v21  ;;  %6130 = vst [vmem:[%s9063_s8 + $0x60] sm:$0xff] %v6102_v37   ;;  %v6588_v36 = vpop.f32.mrb[28].mxu1  ;;  %v4945_v48 = vpop.f32.mrb[29].mxu0 }
 0x241   : > { %v6826_v12 = vadd.f32 %v6780_v61, %v6588_v36  ;;  %v2808_v62 = vpop.f32.mrb[29].mxu1  ;;  %v6781_v41 = vpop.f32.mrb[30].mxu0 }
 0x242   : > { %v6827_v6 = vadd.f32 %v4945_v48, %v2808_v62  ;;  %v5018_v9 = vadd.f32 %v6824_v55, %v5017_v8  ;;  %v6589_v26 = vpop.f32.mrb[30].mxu1  ;;  %v4948_v33 = vpop.f32.mrb[31].mxu0 }
 0x243   : > { %v6828_v10 = vadd.f32 %v6781_v41, %v6589_v26  ;;  %v2811_v23 = vpop.f32.mrb[31].mxu1 }
 0x244   : > { %v5019_v3 = vadd.f32 %v6827_v6, %v5018_v9  ;;  %v6829_v59 = vadd.f32 %v4948_v33, %v2811_v23 }
 0x245   : > { %v6117_v30 = vpack.c.bf16 %v6828_v10, %v6826_v12 }
 0x246   : > { %v5020_v19 = vadd.f32 %v6829_v59, %v5019_v3  ;;  %v6112_v43 = vpack.c.bf16 %v6829_v59, %v6827_v6 }
 0x247   : > { %6133 = vst [vmem:[%s9063_s8 + $0x78] sm:$0xff] %v6117_v30  }
 0x248   : > { %v5021_v56 = vadd.f32 %v6826_v12, %v5020_v19  ;;  %6132 = vst [vmem:[%s9063_s8 + $0x70] sm:$0xff] %v6112_v43  }
 0x24a   : > { %v5022_v63 = vadd.f32 %v6828_v10, %v5021_v56 }
 0x24c   : > { %v5023_v20 = vrot.slane %v5022_v63, 4 }
 0x24e   : > { %v5024_v44 = vadd.f32 %v5023_v20, %v5022_v63 }
 0x250   : > { %v5025_v35 = vrot.slane %v5024_v44, 2 }
 0x252   : > { %v5026_v4 = vadd.f32 %v5025_v35, %v5024_v44 }
 0x254   : > { %v5027_v57 = vrot.slane %v5026_v4, 1 }
 0x256   : > { %v5028_v53 = vadd.f32 %v5027_v57, %v5026_v4 }
 0x258   : > { %v5029_v54 = vmul.f32 0.00390625, %v5028_v53  ;;  %5062 = vst [vmem:[%s9179_s15] sm:$0x1] %v5028_v53 }
 0x25a   : > { %v5039_v13 = vsub.f32 %v9102_v29, %v5029_v54  ;;  %v5040_v27 = vsub.f32 %v9094_v15, %v5029_v54  ;;  %v5041_v2 = vsub.f32 %v9099_v31, %v5029_v54  ;;  %v5042_v42 = vsub.f32 %v9114_v16, %v5029_v54 }
 0x25b   : > { %v5043_v49 = vsub.f32 %v9120_v46, %v5029_v54  ;;  %v5044_v28 = vsub.f32 %v9112_v7, %v5029_v54  ;;  %v5045_v24 = vsub.f32 %v9117_v60, %v5029_v54  ;;  %v5046_v21 = vsub.f32 %v9133_v45, %v5029_v54 }
 0x25c   : > { %v5047_v37 = vsub.f32 %v9138_v32, %v5029_v54  ;;  %v5048_v61 = vsub.f32 %v9130_v40, %v5029_v54  ;;  %v5049_v29 = vsub.f32 %v9135_v34, %v5029_v54  ;;  %v5050_v15 = vsub.f32 %v9150_v22, %v5029_v54 }
 0x25d   : > { %v5051_v31 = vsub.f32 %v9156_v1, %v5029_v54  ;;  %v5052_v16 = vsub.f32 %v9148_v39, %v5029_v54  ;;  %v5053_v46 = vsub.f32 %v9153_v52, %v5029_v54  ;;  %v9197_v8 = vsub.f32 %v6823_v0, %v5029_v54 }
 0x25e   : > { %v9199_v7 = vsub.f32 %v6825_v17, %v5029_v54  ;;  %v9202_v60 = vsub.f32 %v9166_v25, %v5029_v54  ;;  %v9204_v45 = vsub.f32 %v6824_v55, %v5029_v54  ;;  %v9206_v40 = vsub.f32 %v6827_v6, %v5029_v54 }
 0x25f   : > { %v9208_v34 = vsub.f32 %v6829_v59, %v5029_v54  ;;  %v9210_v32 = vsub.f32 %v6826_v12, %v5029_v54  ;;  %v9212_v22 = vsub.f32 %v6828_v10, %v5029_v54  ;;  %v5030_v39 = vsub.f32 %v9056_v47, %v5029_v54 }
 0x260   : > { %v5031_v52 = vsub.f32 %v9065_v5, %v5029_v54  ;;  %v5032_v1 = vsub.f32 %v9053_v11, %v5029_v54  ;;  %v5033_v25 = vsub.f32 %v9058_v51, %v5029_v54  ;;  %v5034_v55 = vsub.f32 %v9078_v14, %v5029_v54 }
 0x261   : > { %v5063_v0 = vmul.f32 %v5030_v39, %v5030_v39  ;;  %v5035_v62 = vsub.f32 %v9084_v58, %v5029_v54  ;;  %v5036_v6 = vsub.f32 %v9076_v18, %v5029_v54  ;;  %v5037_v5 = vsub.f32 %v9081_v50, %v5029_v54 }
 0x262   : > { %v5064_v17 = vmul.f32 %v5031_v52, %v5031_v52  ;;  %v5065_v36 = vmul.f32 %v5032_v1, %v5032_v1  ;;  %v5066_v12 = vmul.f32 %v5033_v25, %v5033_v25  ;;  %v5067_v9 = vmul.f32 %v5034_v55, %v5034_v55 }
 0x263   : > { %v5068_v26 = vmul.f32 %v5035_v62, %v5035_v62  ;;  %v5038_v33 = vsub.f32 %v9096_v38, %v5029_v54  ;;  %v5069_v10 = vmul.f32 %v5036_v6, %v5036_v6  ;;  %v5070_v23 = vmul.f32 %v5037_v5, %v5037_v5 }
 0x264   : > { %v5095_v48 = vadd.f32 %v5064_v17, %v5063_v0  ;;  %v5072_v30 = vmul.f32 %v5039_v13, %v5039_v13  ;;  %v5073_v19 = vmul.f32 %v5040_v27, %v5040_v27  ;;  %v5074_v56 = vmul.f32 %v5041_v2, %v5041_v2 }
 0x265   : > { %v5071_v3 = vmul.f32 %v5038_v33, %v5038_v33  ;;  %v5075_v63 = vmul.f32 %v5042_v42, %v5042_v42  ;;  %v5076_v44 = vmul.f32 %v5043_v49, %v5043_v49  ;;  %v5077_v35 = vmul.f32 %v5044_v28, %v5044_v28 }
 0x266   : > { %v5096_v41 = vadd.f32 %v5095_v48, %v5065_v36  ;;  %v5078_v57 = vmul.f32 %v5045_v24, %v5045_v24  ;;  %v5079_v53 = vmul.f32 %v5046_v21, %v5046_v21  ;;  %v5080_v39 = vmul.f32 %v5047_v37, %v5047_v37 }
 0x267   : > { %v5081_v1 = vmul.f32 %v5048_v61, %v5048_v61  ;;  %v5082_v13 = vmul.f32 %v5049_v29, %v5049_v29  ;;  %v5083_v27 = vmul.f32 %v5050_v15, %v5050_v15  ;;  %v5084_v2 = vmul.f32 %v5051_v31, %v5051_v31 }
 0x268   : > { %v5097_v47 = vadd.f32 %v5096_v41, %v5066_v12  ;;  %v5085_v42 = vmul.f32 %v5052_v16, %v5052_v16  ;;  %v5086_v49 = vmul.f32 %v5053_v46, %v5053_v46  ;;  %v5087_v28 = vmul.f32 %v9197_v8, %v9197_v8 }
 0x269   : > { %v5088_v21 = vmul.f32 %v9199_v7, %v9199_v7  ;;  %v5089_v61 = vmul.f32 %v9202_v60, %v9202_v60  ;;  %v5090_v15 = vmul.f32 %v9204_v45, %v9204_v45  ;;  %v5091_v16 = vmul.f32 %v9206_v40, %v9206_v40 }
 0x26a   : > { %v5098_v11 = vadd.f32 %v5097_v47, %v5067_v9  ;;  %v5092_v8 = vmul.f32 %v9208_v34, %v9208_v34  ;;  %v5093_v7 = vmul.f32 %v9210_v32, %v9210_v32  ;;  %v5094_v60 = vmul.f32 %v9212_v22, %v9212_v22 }
 0x26c   : > { %v5099_v51 = vadd.f32 %v5098_v11, %v5068_v26 }
 0x26e   : > { %v5100_v14 = vadd.f32 %v5099_v51, %v5069_v10 }
 0x270   : > { %v5101_v59 = vadd.f32 %v5100_v14, %v5070_v23 }
 0x272   : > { %v5102_v58 = vadd.f32 %v5101_v59, %v5071_v3 }
 0x274   : > { %v5103_v43 = vadd.f32 %v5102_v58, %v5072_v30 }
 0x276   : > { %v5104_v18 = vadd.f32 %v5103_v43, %v5073_v19 }
 0x278   : > { %v5105_v20 = vadd.f32 %v5104_v18, %v5074_v56 }
 0x27a   : > { %v5106_v50 = vadd.f32 %v5105_v20, %v5075_v63 }
 0x27c   : > { %v5107_v4 = vadd.f32 %v5106_v50, %v5076_v44 }
 0x27e   : > { %v5108_v38 = vadd.f32 %v5107_v4, %v5077_v35 }
 0x280   : > { %v5109_v54 = vadd.f32 %v5108_v38, %v5078_v57 }
 0x282   : > { %v5110_v52 = vadd.f32 %v5109_v54, %v5079_v53 }
 0x284   : > { %v5111_v0 = vadd.f32 %v5110_v52, %v5080_v39 }
 0x286   : > { %v5112_v17 = vadd.f32 %v5111_v0, %v5081_v1 }
 0x288   : > { %v5113_v25 = vadd.f32 %v5112_v17, %v5082_v13 }
 0x28a   : > { %v5114_v55 = vadd.f32 %v5113_v25, %v5083_v27 }
 0x28c   : > { %v5115_v36 = vadd.f32 %v5114_v55, %v5084_v2 }
 0x28e   : > { %v5116_v48 = vadd.f32 %v5115_v36, %v5085_v42 }
 0x290   : > { %v5117_v24 = vadd.f32 %v5116_v48, %v5086_v49 }
 0x292   : > { %v5118_v37 = vadd.f32 %v5117_v24, %v5087_v28 }
 0x294   : > { %v5119_v29 = vadd.f32 %v5118_v37, %v5088_v21 }
 0x296   : > { %v5120_v31 = vadd.f32 %v5119_v29, %v5089_v61 }
 0x298   : > { %v5121_v46 = vadd.f32 %v5120_v31, %v5090_v15 }
 0x29a   : > { %v5122_v62 = vadd.f32 %v5121_v46, %v5091_v16 }
 0x29c   : > { %v5123_v12 = vadd.f32 %v5122_v62, %v5092_v8 }
 0x29e   : > { %v5124_v41 = vadd.f32 %v5123_v12, %v5093_v7 }
 0x2a0   : > { %v5125_v6 = vadd.f32 %v5124_v41, %v5094_v60 }
 0x2a2   : > { %v5126_v45 = vrot.slane %v5125_v6, 4 }
 0x2a4   : > { %v5127_v9 = vadd.f32 %v5126_v45, %v5125_v6 }
 0x2a6   : > { %v5128_v47 = vrot.slane %v5127_v9, 2 }
 0x2a8   : > { %v5129_v5 = vadd.f32 %v5128_v47, %v5127_v9 }
 0x2aa   : > { %v5130_v26 = vrot.slane %v5129_v5, 1 }
 0x2ac   : > { %v5131_v40 = vadd.f32 %v5130_v26, %v5129_v5 }
 0x2ae   : > { %5132 = vst [vmem:[%s9179_s15 + $0x1] sm:$0x1] %v5131_v40 }
 0x2af PF: > { %s14_s12 = sadd.s32 1, %s7259_s12  }
 0x2b0   : > { %p11_p4 = scmp.ge.s32.totalorder %s14_s12, 4  }
 0x2b2   :  { %13 = sbr.rel (!%p11_p4) target bundleno = 1 (0x1), region = 80 }

// kernel: basic_block_forward.4
= control target key start
LH: loop header
LB: loop body
LE: loop exit
PB: predicated region body
PF: predicated region fallthrough
CT: control target
= control target key end

     0   :  { %s7858_s18 = smov 0   ;;  %s9925_s0 = inlined_call_operand.vmem [shape: bf16[2,16,16,128], index: 0, kind: input, shape index: {}]   ;;  %s9926_s1 = inlined_call_operand.vmem [shape: f32[1,128], index: 1, kind: input, shape index: {}]   ;;  %s9927_s2 = inlined_call_operand.vmem [shape: f32[1,128], index: 2, kind: input, shape index: {}]   ;;  %s9928_s3 = inlined_call_operand.vmem [shape: bf16[9,128,128], index: 3, kind: input, shape index: {}]   ;;  %s9929_s4 = inlined_call_operand.vmem [shape: f32[2,16,16,128], index: 4, kind: output, shape index: {0}]   ;;  %s9930_s5 = inlined_call_operand.vmem [shape: f32[2,2,128], index: 5, kind: output, shape index: {1}]  }
   0x1 LB: > { %s6131_s19 = sadd.s32 4294967295, %s7825_s18   ;;  %p6135_p0 = scmp.ge.s32.totalorder %s7825_s18, 1  ;;  %s7825_s18 = sphi %s7858_s18, %s16_s18  }
   0x2   : > { %p190_p1 = scmp.lt.s32.totalorder %s7825_s18, 3 }
   0x4   : > { %p191_p2 = pnand %p6135_p0, %p190_p1 }
   0x6   : > { %194 = sbr.rel (%p191_p2) target bundleno = 799 (0x31f), region = 36 }
   0xd   : > { %v7611_v0 = vld [vmem:[%s9928_s3 + $0x40] sm:$0xff]   ;;  %v7827_v2 = vmov 0   ;;  %v7613_v3 = vld [vmem:[%s9928_s3 + $0x48] sm:$0xff]   ;;  %v7615_v5 = vld [vmem:[%s9928_s3 + $0x50] sm:$0xff]   ;;  %p222_p3 = scmp.lt.s32.totalorder %s6131_s19, 1  ;;  %vm434_vm0 = vcmask 1040384  }
   0xe   : > { %v7612_v1 = vld [vmem:[%s9928_s3 + $0x100] sm:$0xff]   ;;  %427 = vst [vmem:[#allocation2] sm:$0xf] %v7827_v2  ;;  %428 = vst [vmem:[#allocation2 + $0x4] sm:$0xf] %v7827_v2  ;;  %6898 = vmatprep.subr.bf16.mxu1 %v7611_v0  ;;  %v7614_v4 = vld [vmem:[%s9928_s3 + $0x108] sm:$0xff]  }
   0xf   : > { %429 = vst [vmem:[#allocation2 + $0x8] sm:$0x1] %v7827_v2  ;;  %431 = vst [vmem:[#allocation2 + $0xcc] sm:$0xf] %v7827_v2  ;;  %7090 = vmatprep.subr.bf16.mxu0 %v7612_v1  ;;  %6899 = vmatpush3.bf16.msra.mxu1 %v7611_v0  ;;  %v7616_v6 = vld [vmem:[%s9928_s3 + $0x110] sm:$0xff]   ;;  %v7617_v7 = vld [vmem:[%s9928_s3 + $0x58] sm:$0xff]  }
  0x10   : > { %432 = vst [vmem:[#allocation2 + $0xd0] sm:$0xf] %v7827_v2  ;;  %433 = vst [vmem:[#allocation2 + $0xd4] sm:$0x1] %v7827_v2  ;;  %7091 = vmatpush3.bf16.msra.mxu0 %v7612_v1  ;;  %6900 = vmatprep.subr.bf16.mxu1 %v7613_v3  ;;  %s10000_s19 = smov (!%p222_p3, %s6131_s19), 1  ;;  %v7618_v8 = vld [vmem:[%s9928_s3 + $0x118] sm:$0xff]  }
  0x11   : > { %7092 = vmatprep.subr.bf16.mxu0 %v7614_v4  ;;  %v7619_v9 = vld [vmem:[%s9928_s3 + $0x60] sm:$0xff]   ;;  %s6569_s13 = sshll.u32 %s10000_s19, 7  ;;  %v7621_v11 = vld [vmem:[%s9928_s3 + $0x68] sm:$0xff]   ;;  %vm435_vm1 = vsmask.f32 256  ;;  %v7623_v17 = vld [vmem:[%s9928_s3 + $0x70] sm:$0xff]  }
  0x12   : > { %v7620_v10 = vld [vmem:[%s9928_s3 + $0x120] sm:$0xff]   ;;  %v7622_v12 = vld [vmem:[%s9928_s3 + $0x128] sm:$0xff]   ;;  %s7908_s24 = scalar_lea.vmem %s9925_s0, %s6569_s13  ;;  %vm491_vm2 = vsmask.f32 7938  ;;  %vm7912_vm3 = vmand %vm434_vm0, %vm435_vm1  ;;  %vm950_vm5 = vcmask 1043456   ;;  %vm2158_vm12 = vcmask 1042432  }
  0x13   : > { %6901 = vmatpush3.bf16.msra.mxu1 %v7613_v3  ;;  %vm7923_vm4 = vmand %vm434_vm0, %vm491_vm2  ;;  %v6604_v22 = vld [vmem:[%s7908_s24] sm:$0xff]   ;;  %v7624_v23 = vld [vmem:[%s9928_s3 + $0x130] sm:$0xff]   ;;  %vm1128_vm6 = vsmask.f32 3328  ;;  %vm1129_vm7 = vsmask.f32 7440 }
  0x14   : > { %7093 = vmatpush3.bf16.msra.mxu0 %v7614_v4  ;;  %6902 = vmatprep.subr.bf16.mxu1 %v7615_v5  ;;  %v6605_v25 = vunpack.c.l.bf16 %v6604_v22  ;;  %v6606_v26 = vunpack.c.h.bf16 %v6604_v22  ;;  %v7936_v27 = vld [vmem:[%s9926_s1] ss:$0 sm:$0xff]  ;;  %v440_v31 = vld [vmem:[#allocation2 + $0xc] sm:$0x1]  ;;  %v496_v32 = vld [vmem:[#allocation2 + $0x14] sm:$0x1] }
  0x15   : > { %7094 = vmatprep.subr.bf16.mxu0 %v7616_v6  ;;  %v437_v13 = vld [vmem:[#allocation2] sm:$0x1]  ;;  %v1065_v16 = vld [vmem:[#allocation2 + $0x4] sm:$0xf]  ;;  %v441_v35 = vsel %vm7912_vm3, 0, %v440_v31  ;;  %v497_v36 = vsel %vm7923_vm4, 0, %v496_v32  ;;  %vm7977_vm9 = vmor %vm1128_vm6, %vm1129_vm7 }
  0x16   : > { %v493_v15 = vld [vmem:[#allocation2 + $0x8] sm:$0x1]  ;;  %v438_v18 = vsel %vm7912_vm3, 0, %v437_v13  ;;  %v1141_v20 = vshll.u32 %v1065_v16, 16  ;;  %v1145_v21 = vshrl.u32 %v1065_v16, 16  ;;  %v308_v33 = vmul.f32 %v6605_v25, %v7936_v27  ;;  %v7625_v37 = vld [vmem:[%s9928_s3 + $0x78] sm:$0xff]   ;;  %vm7990_vm10 = vmand %vm950_vm5, %vm491_vm2 }
  0x17   : > { %6903 = vmatpush3.bf16.msra.mxu1 %v7615_v5  ;;  %439 = vst [vmem:[#allocation2] sm:$0x1] %v438_v18  ;;  %v494_v24 = vsel %vm7923_vm4, 0, %v493_v15  ;;  %v7941_v28 = vld [vmem:[%s9927_s2] ss:$0 sm:$0xff]  ;;  %v309_v34 = vmul.f32 %v6606_v26, %v7936_v27  ;;  %v7626_v38 = vld [vmem:[%s9928_s3 + $0x138] sm:$0xff]  }
  0x18   : > { %7095 = vmatpush3.bf16.msra.mxu0 %v7616_v6  ;;  %6904 = vmatprep.subr.bf16.mxu1 %v7617_v7  ;;  %495 = vst [vmem:[#allocation2 + $0x8] sm:$0x1] %v494_v24  ;;  %v7943_v29 = vrot.slane %v1141_v20, 5  ;;  %v1147_v30 = vrot.slane %v1145_v21, 4  ;;  %442 = vst [vmem:[#allocation2 + $0xc] sm:$0x1] %v441_v35  ;;  %v347_v39 = vadd.f32 %v7941_v28, %v308_v33 }
  0x19   : > { %7096 = vmatprep.subr.bf16.mxu0 %v7618_v8  ;;  %498 = vst [vmem:[#allocation2 + $0x14] sm:$0x1] %v497_v36  ;;  %v348_v40 = vadd.f32 %v7941_v28, %v309_v34  ;;  %v6667_v41 = vld [vmem:[%s7908_s24 + $0x8] sm:$0xff]   ;;  %v443_v45 = vld [vmem:[#allocation2 + $0x18] sm:$0x1]  ;;  %v7970_v61 = vld [vmem:[%s9928_s3] sm:$0xff]  }
  0x1a   : > { %v1148_v42 = vor.u32 %v1147_v30, %v7943_v29  ;;  %v6609_v43 = vunpack.c.l.bf16 %v6667_v41  ;;  %v6610_v44 = vunpack.c.h.bf16 %v6667_v41  ;;  %v499_v46 = vld [vmem:[#allocation2 + $0x20] sm:$0x1]  ;;  %v379_v47 = vmax.f32 %v347_v39, 0.0  ;;  %v6668_v0 = vld [vmem:[%s7908_s24 + $0x10] sm:$0xff]   ;;  %v446_v32 = vld [vmem:[#allocation2 + $0x24] sm:$0x1] }
  0x1b   : > { %6905 = vmatpush3.bf16.msra.mxu1 %v7617_v7  ;;  %v380_v48 = vmax.f32 %v348_v40, 0.0  ;;  %v444_v49 = vsel %vm7912_vm3, 0, %v443_v45  ;;  %v500_v50 = vsel %vm7923_vm4, 0, %v499_v46  ;;  %vm627_vm8 = vsmask.f32 4368  ;;  %v7984_v6 = vld [vmem:[%s9928_s3 + $0x140] sm:$0xff]  }
  0x1c   : > { %7097 = vmatpush3.bf16.msra.mxu0 %v7618_v8  ;;  %6906 = vmatprep.subr.bf16.mxu1 %v7619_v9  ;;  %v310_v52 = vmul.f32 %v6609_v43, %v7936_v27  ;;  %v311_v53 = vmul.f32 %v6610_v44, %v7936_v27  ;;  %445 = vst [vmem:[#allocation2 + $0x18] sm:$0x1] %v444_v49  ;;  %501 = vst [vmem:[#allocation2 + $0x20] sm:$0x1] %v500_v50  ;;  %v1149_v59 = vrot.slane %v1148_v42, 4  ;;  %vm2159_vm13 = vcmask 1046532  }
  0x1d   : > { %7098 = vmatprep.subr.bf16.mxu0 %v7620_v10  ;;  %v6571_v57 = vpack.c.bf16 %v379_v47, %v379_v47  ;;  %v6572_v58 = vpack.c.bf16 %v380_v48, %v380_v48  ;;  %v6613_v16 = vunpack.c.l.bf16 %v6668_v0  ;;  %v6614_v22 = vunpack.c.h.bf16 %v6668_v0  ;;  %vm7997_vm11 = vmor %vm435_vm1, %vm627_vm8  ;;  %v9222_v19 = vld [vmem:[%s9928_s3 + $0x100] sm:$0xff]   ;;  %s6570_s16 = sshll.u32 %s10000_s19, 8  ;;  %s6140_s22 = sshll.u32 %s10000_s19, 1 }
  0x1e   : > { %v1064_v51 = vld [vmem:[#allocation2] sm:$0xf]  ;;  %v349_v62 = vadd.f32 %v7941_v28, %v310_v52  ;;  %v350_v63 = vadd.f32 %v7941_v28, %v311_v53  ;;  %v449_v52 = vld [vmem:[#allocation2 + $0x30] sm:$0x1]  ;;  %vm8361_vm14 = vmor %vm2158_vm12, %vm2159_vm13  ;;  %s9723_s21 = scalar_lea.vmem %s9929_s4, %s6570_s16  ;;  %s9861_s26 = scalar_lea.vmem %s9930_s5, %s6140_s22 }
  0x1f   : > { %6907 = vmatpush3.bf16.msra.mxu1 %v7619_v9  ;;  %v1112_v54 = vld [vmem:[#allocation2 + $0x8] sm:$0x1]  ;;  %v1132_v55 = vshrl.u32 %v1064_v51, 16  ;;  %v1135_v56 = vshll.u32 %v1064_v51, 16  ;;  %v630_v4 = vshrl.u32 %v6571_v57, 16  ;;  %v633_v5 = vshll.u32 %v6571_v57, 16 }
  0x20   : > { %7099 = vmatpush3.bf16.msra.mxu0 %v7620_v10  ;;  %6908 = vmatprep.subr.bf16.mxu1 %v7621_v11  ;;  %v1151_v60 = vshll.u32 %v1112_v54, 16  ;;  %v638_v8 = vshrl.u32 %v6572_v58, 16  ;;  %v641_v9 = vshll.u32 %v6572_v58, 16  ;;  %v381_v10 = vmax.f32 %v349_v62, 0.0  ;;  %v952_v13 = vld [vmem:[#allocation2 + $0xc] sm:$0xf] }
  0x21   : > { %7100 = vmatprep.subr.bf16.mxu0 %v7622_v12  ;;  %v1134_v2 = vrot.slane %v1132_v55, 4  ;;  %v1137_v3 = vrot.slane %v1135_v56, 5  ;;  %v382_v15 = vmax.f32 %v350_v63, 0.0  ;;  %v956_v30 = vld [vmem:[#allocation2 + $0x14] sm:$0x1]  ;;  %v313_v50 = vmul.f32 %v6614_v22, %v7936_v27  ;;  %v8021_v63 = vld [vmem:[%s7908_s24 + $0x20] sm:$0xff]  }
  0x22   : > { %v1153_v7 = vrot.slane %v1151_v60, 5  ;;  %v640_v18 = vrot.slane %v638_v8, 7  ;;  %v6573_v21 = vpack.c.bf16 %v381_v10, %v381_v10  ;;  %v447_v51 = vsel %vm7912_vm3, 0, %v446_v32  ;;  %v505_v57 = vld [vmem:[#allocation2 + $0x38] sm:$0x1] }
  0x23   : > { %6909 = vmatpush3.bf16.msra.mxu1 %v7621_v11  ;;  %v1138_v11 = vor.u32 %v1137_v3, %v1134_v2  ;;  %v6574_v31 = vpack.c.bf16 %v382_v15, %v382_v15  ;;  %v959_v43 = vld [vmem:[#allocation2 + $0x18] sm:$0xf]  ;;  %v963_v48 = vld [vmem:[#allocation2 + $0x20] sm:$0x1]  ;;  %448 = vst [vmem:[#allocation2 + $0x24] sm:$0x1] %v447_v51  ;;  %v352_v62 = vadd.f32 %v7941_v28, %v313_v50  ;;  %v6622_v32 = vunpack.c.h.bf16 %v8021_v63 }
  0x24   : > { %7101 = vmatpush3.bf16.msra.mxu0 %v7622_v12  ;;  %6910 = vmatprep.subr.bf16.mxu1 %v7623_v17  ;;  %v632_v12 = vrot.slane %v630_v4, 7  ;;  %v643_v33 = vor.u32 %v641_v9, %v640_v18  ;;  %v645_v34 = vrot.slane %v640_v18, 4  ;;  %v647_v35 = vshrl.u32 %v6573_v21, 16 }
  0x25   : > { %7102 = vmatprep.subr.bf16.mxu0 %v7624_v23  ;;  %v650_v36 = vshll.u32 %v6573_v21, 16  ;;  %v655_v41 = vshrl.u32 %v6574_v31, 16  ;;  %v658_v42 = vshll.u32 %v6574_v31, 16  ;;  %v450_v4 = vsel %vm7912_vm3, 0, %v449_v52 }
  0x26   : > { %v635_v25 = vor.u32 %v633_v5, %v632_v12  ;;  %v636_v26 = vrot.slane %v632_v12, 4  ;;  %v957_v46 = vsel %vm7912_vm3, %v645_v34, %v956_v30  ;;  %v649_v47 = vrot.slane %v647_v35, 7  ;;  %v452_v5 = vld [vmem:[#allocation2 + $0x3c] sm:$0x1]  ;;  %451 = vst [vmem:[#allocation2 + $0x30] sm:$0x1] %v450_v4 }
  0x27   : > { %6911 = vmatpush3.bf16.msra.mxu1 %v7623_v17  ;;  %v1154_v17 = vsel %vm7977_vm9, %v1149_v59, %v1153_v7  ;;  %958 = vst [vmem:[#allocation2 + $0x14] sm:$0x1] %v957_v46  ;;  %v657_v49 = vrot.slane %v655_v41, 7  ;;  %v384_v10 = vmax.f32 %v352_v62, 0.0  ;;  %v506_v12 = vsel %vm7923_vm4, 0, %v505_v57 }
  0x28   : > { %7103 = vmatpush3.bf16.msra.mxu0 %v7624_v23  ;;  %6912 = vmatprep.subr.bf16.mxu1 %v7625_v37  ;;  %v1139_v23 = vrot.slane %v1138_v11, 4  ;;  %v953_v40 = vsel %vm7990_vm10, %v635_v25, %v952_v13  ;;  %v644_v45 = vsel %vm7997_vm11, %v636_v26, %v643_v33  ;;  %v652_v53 = vor.u32 %v650_v36, %v649_v47 }
  0x29   : > { %7104 = vmatprep.subr.bf16.mxu0 %v7626_v38  ;;  %954 = vst [vmem:[#allocation2 + $0xc] sm:$0xf] %v953_v40  ;;  %955 = vst [vmem:[#allocation2 + $0x10] sm:$0xf] %v644_v45  ;;  %v653_v54 = vrot.slane %v649_v47, 4  ;;  %v660_v58 = vor.u32 %v658_v42, %v657_v49  ;;  %v662_v59 = vrot.slane %v657_v49, 4  ;;  %v6621_v13 = vunpack.c.l.bf16 %v8021_v63 }
  0x2a   : > { %v1144_v39 = vsel %vm7977_vm9, %v1139_v23, %v7943_v29  ;;  %v312_v29 = vmul.f32 %v6613_v16, %v7936_v27  ;;  %v960_v0 = vsel %vm7990_vm10, %v652_v53, %v959_v43  ;;  %v8038_v18 = vpack.c.bf16 %v384_v10, %v384_v10  ;;  %507 = vst [vmem:[#allocation2 + $0x38] sm:$0x1] %v506_v12 }
  0x2b   : > { %6913 = vmatpush3.bf16.msra.mxu1 %v7625_v37  ;;  %v502_v37 = vld [vmem:[#allocation2 + $0x2c] sm:$0x1]  ;;  %v6191_v44 = vcombine.low %v1144_v39, %v1154_v17  ;;  %v661_v7 = vsel %vm7997_vm11, %v653_v54, %v660_v58  ;;  %961 = vst [vmem:[#allocation2 + $0x18] sm:$0xf] %v960_v0  ;;  %v964_v8 = vsel %vm7912_vm3, %v662_v59, %v963_v48  ;;  %v453_v22 = vsel %vm7912_vm3, 0, %v452_v5 }
  0x2c   : > { %7105 = vmatpush3.bf16.msra.mxu0 %v7626_v38  ;;  %6946 = vmatprep.subr.bf16.mxu1 %v7970_v61  ;;  %v6669_v38 = vld [vmem:[%s7908_s24 + $0x18] sm:$0xff]   ;;  %v503_v55 = vsel %vm7923_vm4, 0, %v502_v37  ;;  %v351_v60 = vadd.f32 %v7941_v28, %v312_v29  ;;  %962 = vst [vmem:[#allocation2 + $0x1c] sm:$0xf] %v661_v7  ;;  %965 = vst [vmem:[#allocation2 + $0x20] sm:$0x1] %v964_v8  ;;  %v8050_v37 = vmul.f32 %v6621_v13, %v7936_v27 }
  0x2d   : > { %7138 = vmatprep.subr.bf16.mxu0 %v7984_v6  ;;  %6914 = vmatprep.mubr.bf16.mxu1 %v6191_v44  ;;  %v6617_v56 = vunpack.c.l.bf16 %v6669_v38  ;;  %504 = vst [vmem:[#allocation2 + $0x2c] sm:$0x1] %v503_v55  ;;  %v6618_v2 = vunpack.c.h.bf16 %v6669_v38  ;;  %454 = vst [vmem:[#allocation2 + $0x3c] sm:$0x1] %v453_v22 }
  0x2e   : > { %v383_v9 = vmax.f32 %v351_v60, 0.0  ;;  %v1113_v25 = vld [vmem:[#allocation2 + $0x14] sm:$0x1] }
  0x2f   : > { %v314_v3 = vmul.f32 %v6617_v56, %v7936_v27  ;;  %v315_v11 = vmul.f32 %v6618_v2, %v7936_v27  ;;  %v1175_v35 = vshll.u32 %v1113_v25, 16  ;;  %v8052_v40 = vld [vmem:[#allocation2 + $0x14] sm:$0x1] }
  0x30   : > { %v1066_v15 = vld [vmem:[#allocation2 + $0xc] sm:$0xf]  ;;  %v8036_v17 = vpack.c.bf16 %v383_v9, %v383_v9  ;;  %v1067_v23 = vld [vmem:[#allocation2 + $0x10] sm:$0xf]  ;;  %v3049_v53 = vshll.u32 %v8052_v40, 16  ;;  %v3804_v54 = vrot.slane %v8052_v40, 5 }
  0x31   : > { %v2981_v16 = vld [vmem:[#allocation2 + $0xc] sm:$0xf]  ;;  %v8041_v21 = vadd.f32 %v7941_v28, %v314_v3  ;;  %v1156_v26 = vshrl.u32 %v1066_v15, 16  ;;  %v1159_v30 = vshll.u32 %v1066_v15, 16  ;;  %v8046_v31 = vadd.f32 %v7941_v28, %v315_v11  ;;  %v2982_v36 = vld [vmem:[#allocation2 + $0x10] sm:$0xf] }
  0x32   : > { %v1165_v33 = vshll.u32 %v1067_v23, 16  ;;  %v1169_v34 = vshrl.u32 %v1067_v23, 16  ;;  %v3030_v41 = vshrl.u32 %v2981_v16, 16  ;;  %v3033_v42 = vshll.u32 %v2981_v16, 16  ;;  %v2984_v50 = vld [vmem:[#allocation2 + $0x18] sm:$0xf] }
  0x33   : > { %v1158_v38 = vrot.slane %v1156_v26, 4  ;;  %v1161_v39 = vrot.slane %v1159_v30, 5  ;;  %v1177_v45 = vrot.slane %v1175_v35, 5  ;;  %v3039_v46 = vshll.u32 %v2982_v36, 16  ;;  %v8056_v55 = vld [vmem:[#allocation2 + $0x1c] sm:$0xf] }
  0x34   : > { %v1167_v43 = vrot.slane %v1165_v33, 5  ;;  %v1171_v44 = vrot.slane %v1169_v34, 4  ;;  %v3032_v48 = vrot.slane %v3030_v41, 4  ;;  %v3035_v49 = vrot.slane %v3033_v42, 5  ;;  %v8058_v0 = vld [vmem:[#allocation2 + $0x20] sm:$0x1] }
  0x35   : > { %v1162_v47 = vor.u32 %v1161_v39, %v1158_v38  ;;  %v3043_v29 = vshrl.u32 %v2982_v36, 16  ;;  %v3041_v52 = vrot.slane %v3039_v46, 5  ;;  %v3054_v59 = vshrl.u32 %v2984_v50, 16  ;;  %v1068_v13 = vld [vmem:[#allocation2 + $0x18] sm:$0xf]  ;;  %v7630_v26 = vld [vmem:[%s9928_s3 + $0x8] sm:$0xff]  }
  0x36   : > { %v1172_v51 = vor.u32 %v1171_v44, %v1167_v43  ;;  %v3036_v57 = vor.u32 %v3035_v49, %v3032_v48  ;;  %v3051_v62 = vrot.slane %v3049_v53, 5  ;;  %v3057_v2 = vshll.u32 %v2984_v50, 16  ;;  %v1069_v25 = vld [vmem:[#allocation2 + $0x1c] sm:$0xf]  ;;  %v1114_v36 = vld [vmem:[#allocation2 + $0x20] sm:$0x1] }
  0x37   : > { %v1163_v56 = vrot.slane %v1162_v47, 4  ;;  %v3045_v58 = vrot.slane %v3043_v29, 4  ;;  %v3063_v3 = vshll.u32 %v8056_v55, 16  ;;  %v3056_v8 = vrot.slane %v3054_v59, 4 }
  0x38   : > { %v1173_v60 = vrot.slane %v1172_v51, 4  ;;  %v3037_v5 = vrot.slane %v3036_v57, 4  ;;  %v3059_v10 = vrot.slane %v3057_v2, 5  ;;  %v3067_v12 = vshrl.u32 %v8056_v55, 16 }
  0x39   : > { %v1168_v4 = vsel %vm7977_vm9, %v1163_v56, %v1167_v43  ;;  %v3046_v7 = vor.u32 %v3045_v58, %v3041_v52  ;;  %v3065_v11 = vrot.slane %v3063_v3, 5  ;;  %v3073_v23 = vshll.u32 %v8058_v0, 16  ;;  %v7633_v43 = vld [vmem:[%s9928_s3 + $0x10] sm:$0xff]  }
  0x3a   : > { %v1178_v9 = vsel %vm7977_vm9, %v1173_v60, %v1177_v45  ;;  %v3042_v16 = vsel %vm7977_vm9, %v3037_v5, %v3041_v52  ;;  %v3060_v30 = vor.u32 %v3059_v10, %v3056_v8  ;;  %v3069_v33 = vrot.slane %v3067_v12, 4  ;;  %v966_v10 = vld [vmem:[#allocation2 + $0x24] sm:$0xf] }
  0x3b   : > { %v6192_v15 = vcombine.low %v1168_v4, %v1178_v9  ;;  %v3047_v22 = vrot.slane %v3046_v7, 4  ;;  %v3808_v34 = vrot.slane %v8056_v55, 5  ;;  %v3811_v35 = vrot.slane %v8058_v0, 5 }
  0x3c   : > { %v3075_v39 = vrot.slane %v3073_v23, 5  ;;  %v1180_v41 = vshrl.u32 %v1068_v13, 16  ;;  %v1183_v42 = vshll.u32 %v1068_v13, 16  ;;  %v3061_v45 = vrot.slane %v3060_v30, 4  ;;  %v970_v13 = vld [vmem:[#allocation2 + $0x2c] sm:$0x1] }
  0x3d   : > { %6915 = vmatmul.mubr.bf16.vlgmr.msra.gmra.mrb[0].mxu1 %v6192_v15  ;;  %v3052_v38 = vsel %vm7977_vm9, %v3047_v22, %v3051_v62  ;;  %v3070_v46 = vor.u32 %v3069_v33, %v3065_v11  ;;  %v8082_v47 = vrot.slane %v3808_v34, 4  ;;  %v1189_v29 = vshll.u32 %v1069_v25, 16  ;;  %v7629_v62 = vld [vmem:[%s9928_s3 + $0x148] sm:$0xff]   ;;  %v7631_v33 = vld [vmem:[%s9928_s3 + $0x150] sm:$0xff]  }
  0x3e   : > { %v6351_v44 = vcombine.low %v3042_v16, %v3052_v38  ;;  %6947 = vmatpush3.bf16.msra.mxu1 %v7970_v61  ;;  %v1182_v48 = vrot.slane %v1180_v41, 4  ;;  %v1185_v49 = vrot.slane %v1183_v42, 5  ;;  %v1193_v50 = vshrl.u32 %v1069_v25, 16  ;;  %v7636_v16 = vld [vmem:[%s9928_s3 + $0x18] sm:$0xff]   ;;  %v508_v38 = vld [vmem:[#allocation2 + $0x44] sm:$0x1] }
  0x3f   : > { %6948 = vmatprep.subr.bf16.mxu1 %v7630_v26  ;;  %v3066_v51 = vsel %vm7977_vm9, %v3061_v45, %v3065_v11  ;;  %v3071_v52 = vrot.slane %v3070_v46, 4  ;;  %v1199_v53 = vshll.u32 %v1114_v36, 16  ;;  %v664_v56 = vshrl.u32 %v8036_v17, 16  ;;  %v455_v45 = vld [vmem:[#allocation2 + $0x48] sm:$0x1]  ;;  %v7639_v46 = vld [vmem:[%s9928_s3 + $0x20] sm:$0xff]  }
  0x40   : > { %7106 = vmatprep.mubr.bf16.mxu0 %v6351_v44  ;;  %v1186_v61 = vor.u32 %v1185_v49, %v1182_v48  ;;  %v1191_v57 = vrot.slane %v1189_v29, 5  ;;  %v1195_v58 = vrot.slane %v1193_v50, 4  ;;  %v667_v59 = vshll.u32 %v8036_v17, 16  ;;  %v973_v29 = vld [vmem:[#allocation2 + $0x30] sm:$0xf] }
  0x41   : > { %v3076_v60 = vsel %vm7977_vm9, %v3071_v52, %v3075_v39  ;;  %v1201_v2 = vrot.slane %v1199_v53, 5  ;;  %v666_v3 = vrot.slane %v664_v56, 7  ;;  %v672_v4 = vshrl.u32 %v8038_v18, 16  ;;  %v6671_v39 = vld [vmem:[%s7908_s24 + $0x28] sm:$0xff]   ;;  %v7632_v52 = vld [vmem:[%s9928_s3 + $0x158] sm:$0xff]  }
  0x42   : > { %6949 = vmatpush3.bf16.msra.mxu1 %v7630_v26  ;;  %v6352_v5 = vcombine.low %v3066_v51, %v3076_v60  ;;  %v1187_v7 = vrot.slane %v1186_v61, 4  ;;  %v1196_v8 = vor.u32 %v1195_v58, %v1191_v57  ;;  %v675_v9 = vshll.u32 %v8038_v18, 16 }
  0x43   : > { %6950 = vmatprep.subr.bf16.mxu1 %v7633_v43  ;;  %v669_v17 = vor.u32 %v667_v59, %v666_v3  ;;  %v670_v11 = vrot.slane %v666_v3, 4  ;;  %v674_v12 = vrot.slane %v672_v4, 7  ;;  %v385_v15 = vmax.f32 %v8041_v21, 0.0 }
  0x44   : > { %7107 = vmatmul.mubr.bf16.vlgmr.msra.gmra.mrb[0].mxu0 %v6352_v5  ;;  %v1192_v22 = vsel %vm7977_vm9, %v1187_v7, %v1191_v57  ;;  %v1197_v23 = vrot.slane %v1196_v8, 4  ;;  %v386_v25 = vmax.f32 %v8046_v31, 0.0  ;;  %v317_v18 = vmul.f32 %v6622_v32, %v7936_v27  ;;  %v7641_v5 = vld [vmem:[%s9928_s3 + $0x28] sm:$0xff]  }
  0x45   : > { %7139 = vmatpush3.bf16.msra.mxu0 %v7984_v6  ;;  %v677_v26 = vor.u32 %v675_v9, %v674_v12  ;;  %v679_v21 = vrot.slane %v674_v12, 4  ;;  %v967_v30 = vsel %vm7990_vm10, %v669_v17, %v966_v10  ;;  %v6577_v36 = vpack.c.bf16 %v385_v15, %v385_v15  ;;  %v977_v9 = vld [vmem:[#allocation2 + $0x38] sm:$0x1] }
  0x46   : > { %6951 = vmatpush3.bf16.msra.mxu1 %v7633_v43  ;;  %7140 = vmatprep.subr.bf16.mxu0 %v7629_v62  ;;  %v1202_v31 = vsel %vm7977_vm9, %v1197_v23, %v1201_v2  ;;  %968 = vst [vmem:[#allocation2 + $0x24] sm:$0xf] %v967_v30  ;;  %v6578_v63 = vpack.c.bf16 %v386_v25, %v386_v25  ;;  %v509_v56 = vsel %vm7923_vm4, 0, %v508_v38  ;;  %v6625_v61 = vunpack.c.l.bf16 %v6671_v39 }
  0x47   : > { %v355_v6 = vadd.f32 %v7941_v28, %v8050_v37  ;;  %v356_v32 = vadd.f32 %v7941_v28, %v317_v18  ;;  %v6193_v41 = vcombine.low %v1192_v22, %v1202_v31  ;;  %v678_v42 = vsel %vm7997_vm11, %v670_v11, %v677_v26  ;;  %6952 = vmatprep.subr.bf16.mxu1 %v7636_v16 }
  0x48   : > { %v971_v43 = vsel %vm7912_vm3, %v679_v21, %v970_v13  ;;  %v681_v44 = vshrl.u32 %v6577_v36, 16  ;;  %969 = vst [vmem:[#allocation2 + $0x28] sm:$0xf] %v678_v42  ;;  %v684_v37 = vshll.u32 %v6577_v36, 16  ;;  %v689_v48 = vshrl.u32 %v6578_v63, 16  ;;  %v7634_v21 = vld [vmem:[%s9928_s3 + $0x160] sm:$0xff]  }
  0x49   : > { %972 = vst [vmem:[#allocation2 + $0x2c] sm:$0x1] %v971_v43  ;;  %v692_v49 = vshll.u32 %v6578_v63, 16  ;;  %v387_v50 = vmax.f32 %v355_v6, 0.0  ;;  %7141 = vmatpush3.bf16.msra.mxu0 %v7629_v62  ;;  %6918 = vmatprep.mubr.bf16.mxu1 %v6193_v41  ;;  %v388_v53 = vmax.f32 %v356_v32, 0.0  ;;  %v6626_v59 = vunpack.c.h.bf16 %v6671_v39 }
  0x4a   : > { %v683_v51 = vrot.slane %v681_v44, 7  ;;  %7142 = vmatprep.subr.bf16.mxu0 %v7631_v33  ;;  %v691_v57 = vrot.slane %v689_v48, 7  ;;  %510 = vst [vmem:[#allocation2 + $0x44] sm:$0x1] %v509_v56  ;;  %v456_v60 = vsel %vm7912_vm3, 0, %v455_v45  ;;  %6953 = vmatpush3.bf16.msra.mxu1 %v7636_v16  ;;  %v318_v4 = vmul.f32 %v6625_v61, %v7936_v27 }
  0x4b   : > { %v8129_v58 = vpack.c.bf16 %v387_v50, %v387_v50  ;;  %v8133_v3 = vpack.c.bf16 %v388_v53, %v388_v53  ;;  %457 = vst [vmem:[#allocation2 + $0x48] sm:$0x1] %v456_v60  ;;  %6954 = vmatprep.subr.bf16.mxu1 %v7639_v46  ;;  %v319_v22 = vmul.f32 %v6626_v59, %v7936_v27 }
  0x4c   : > { %v686_v62 = vor.u32 %v684_v37, %v683_v51  ;;  %v687_v2 = vrot.slane %v683_v51, 4  ;;  %v694_v7 = vor.u32 %v692_v49, %v691_v57  ;;  %v696_v8 = vrot.slane %v691_v57, 4  ;;  %v8163_v51 = vld [vmem:[%s7908_s24 + $0x30] sm:$0xff]  }
  0x4d   : > { %v698_v10 = vshrl.u32 %v8129_v58, 16  ;;  %v701_v17 = vshll.u32 %v8129_v58, 16  ;;  %v1070_v11 = vld [vmem:[#allocation2 + $0x24] sm:$0xf]  ;;  %7143 = vmatpush3.bf16.msra.mxu0 %v7631_v33  ;;  %v706_v15 = vshrl.u32 %v8133_v3, 16  ;;  %v709_v16 = vshll.u32 %v8133_v3, 16 }
  0x4e   : > { %v2987_v12 = vld [vmem:[#allocation2 + $0x24] sm:$0xf]  ;;  %v974_v13 = vsel %vm7990_vm10, %v686_v62, %v973_v29  ;;  %v1204_v23 = vshrl.u32 %v1070_v11, 16  ;;  %v1207_v25 = vshll.u32 %v1070_v11, 16  ;;  %7144 = vmatprep.subr.bf16.mxu0 %v7632_v52  ;;  %6955 = vmatpush3.bf16.msra.mxu1 %v7639_v46  ;;  %v695_v31 = vsel %vm7997_vm11, %v687_v2, %v694_v7 }
  0x4f   : > { %v3078_v18 = vshrl.u32 %v2987_v12, 16  ;;  %v3081_v26 = vshll.u32 %v2987_v12, 16  ;;  %975 = vst [vmem:[#allocation2 + $0x30] sm:$0xf] %v974_v13  ;;  %v1071_v30 = vld [vmem:[#allocation2 + $0x28] sm:$0xf]  ;;  %v978_v63 = vsel %vm7912_vm3, %v696_v8, %v977_v9  ;;  %v8154_v6 = vadd.f32 %v7941_v28, %v318_v4  ;;  %6956 = vmatprep.subr.bf16.mxu1 %v7641_v5 }
  0x50   : > { %v1115_v36 = vld [vmem:[#allocation2 + $0x2c] sm:$0x1]  ;;  %v2988_v33 = vld [vmem:[#allocation2 + $0x28] sm:$0xf]  ;;  %v8157_v32 = vadd.f32 %v7941_v28, %v319_v22  ;;  %v1206_v38 = vrot.slane %v1204_v23, 4  ;;  %v1209_v39 = vrot.slane %v1207_v25, 5  ;;  %v6629_v9 = vunpack.c.l.bf16 %v8163_v51 }
  0x51   : > { %v1213_v41 = vshll.u32 %v1071_v30, 16  ;;  %v1217_v42 = vshrl.u32 %v1071_v30, 16  ;;  %v2989_v43 = vld [vmem:[#allocation2 + $0x2c] sm:$0x1]  ;;  %976 = vst [vmem:[#allocation2 + $0x34] sm:$0xf] %v695_v31  ;;  %7145 = vmatpush3.bf16.msra.mxu0 %v7632_v52  ;;  %v6630_v11 = vunpack.c.h.bf16 %v8163_v51 }
  0x52   : > { %979 = vst [vmem:[#allocation2 + $0x38] sm:$0x1] %v978_v63  ;;  %v1223_v44 = vshll.u32 %v1115_v36, 16  ;;  %v3080_v45 = vrot.slane %v3078_v18, 4  ;;  %v3083_v46 = vrot.slane %v3081_v26, 5  ;;  %v3087_v37 = vshll.u32 %v2988_v33, 16  ;;  %7146 = vmatprep.subr.bf16.mxu0 %v7634_v21  ;;  %6957 = vmatpush3.bf16.msra.mxu1 %v7641_v5 }
  0x53   : > { %v1210_v48 = vor.u32 %v1209_v39, %v1206_v38  ;;  %v1215_v49 = vrot.slane %v1213_v41, 5  ;;  %v1219_v29 = vrot.slane %v1217_v42, 4  ;;  %v3091_v50 = vshrl.u32 %v2988_v33, 16  ;;  %v7635_v28 = vld [vmem:[%s9928_s3 + $0x168] sm:$0xff]   ;;  %v8230_v51 = vld [vmem:[%s7908_s24 + $0x40] sm:$0xff]  }
  0x54   : > { %v1225_v53 = vrot.slane %v1223_v44, 5  ;;  %v3084_v56 = vor.u32 %v3083_v46, %v3080_v45  ;;  %v3089_v61 = vrot.slane %v3087_v37, 5  ;;  %v3097_v57 = vshll.u32 %v2989_v43, 16 }
  0x55   : > { %v1211_v59 = vrot.slane %v1210_v48, 4  ;;  %v1220_v60 = vor.u32 %v1219_v29, %v1215_v49  ;;  %v3093_v62 = vrot.slane %v3091_v50, 4  ;;  %v8165_v52 = vrot.slane %v698_v10, 7  ;;  %7147 = vmatpush3.bf16.msra.mxu0 %v7634_v21  ;;  %v7637_v10 = vld [vmem:[%s9928_s3 + $0x170] sm:$0xff]  }
  0x56   : > { %v3085_v2 = vrot.slane %v3084_v56, 4  ;;  %v3099_v4 = vrot.slane %v3097_v57, 5  ;;  %v2990_v7 = vld [vmem:[#allocation2 + $0x30] sm:$0xf]  ;;  %7148 = vmatprep.subr.bf16.mxu0 %v7635_v28 }
  0x57   : > { %v1072_v8 = vld [vmem:[#allocation2 + $0x30] sm:$0xf]  ;;  %v1216_v5 = vsel %vm7977_vm9, %v1211_v59, %v1215_v49  ;;  %v1221_v12 = vrot.slane %v1220_v60, 4  ;;  %v3094_v13 = vor.u32 %v3093_v62, %v3089_v61  ;;  %v3102_v22 = vshrl.u32 %v2990_v7, 16 }
  0x58   : > { %v3090_v23 = vsel %vm7977_vm9, %v3085_v2, %v3089_v61  ;;  %v2991_v25 = vld [vmem:[#allocation2 + $0x34] sm:$0xf]  ;;  %v3105_v26 = vshll.u32 %v2990_v7, 16  ;;  %v1228_v21 = vshrl.u32 %v1072_v8, 16  ;;  %v703_v30 = vor.u32 %v701_v17, %v8165_v52  ;;  %v7638_v17 = vld [vmem:[%s9928_s3 + $0x178] sm:$0xff]  }
  0x59   : > { %v2992_v18 = vld [vmem:[#allocation2 + $0x38] sm:$0x1]  ;;  %v1226_v36 = vsel %vm7977_vm9, %v1221_v12, %v1225_v53  ;;  %v3095_v33 = vrot.slane %v3094_v13, 4  ;;  %v3104_v31 = vrot.slane %v3102_v22, 4  ;;  %v3111_v63 = vshll.u32 %v2991_v25, 16  ;;  %7149 = vmatpush3.bf16.msra.mxu0 %v7635_v28  ;;  %v8192_v22 = vld [vmem:[%s9928_s3 + $0x180] sm:$0xff]  }
  0x5a   : > { %v1073_v38 = vld [vmem:[#allocation2 + $0x34] sm:$0xf]  ;;  %v6194_v39 = vcombine.low %v1216_v5, %v1226_v36  ;;  %v3107_v41 = vrot.slane %v3105_v26, 5  ;;  %v3115_v42 = vshrl.u32 %v2991_v25, 16  ;;  %v3121_v43 = vshll.u32 %v2992_v18, 16  ;;  %7150 = vmatprep.subr.bf16.mxu0 %v7637_v10 }
  0x5b   : > { %v1116_v44 = vld [vmem:[#allocation2 + $0x38] sm:$0x1]  ;;  %v3100_v45 = vsel %vm7977_vm9, %v3095_v33, %v3099_v4  ;;  %v3113_v46 = vrot.slane %v3111_v63, 5  ;;  %v1230_v37 = vrot.slane %v1228_v21, 4  ;;  %v1231_v58 = vshll.u32 %v1072_v8, 16 }
  0x5c   : > { %6919 = vmatmul.mubr.bf16.gmra.mrb[4].mxu1 %v6194_v39  ;;  %v6353_v48 = vcombine.low %v3090_v23, %v3100_v45  ;;  %v3108_v49 = vor.u32 %v3107_v41, %v3104_v31  ;;  %v3117_v29 = vrot.slane %v3115_v42, 4  ;;  %v3123_v50 = vrot.slane %v3121_v43, 5  ;;  %v980_v2 = vld [vmem:[#allocation2 + $0x3c] sm:$0xf]  ;;  %v511_v4 = vld [vmem:[#allocation2 + $0x50] sm:$0x1] }
  0x5d   : > { %v1233_v53 = vrot.slane %v1231_v58, 5  ;;  %v1237_v56 = vshll.u32 %v1073_v38, 16  ;;  %v1241_v61 = vshrl.u32 %v1073_v38, 16  ;;  %v1247_v28 = vshll.u32 %v1116_v44, 16  ;;  %7151 = vmatpush3.bf16.msra.mxu0 %v7637_v10  ;;  %v984_v13 = vld [vmem:[#allocation2 + $0x44] sm:$0x1] }
  0x5e   : > { %7110 = vmatprep.mubr.bf16.mxu0 %v6353_v48  ;;  %v3109_v57 = vrot.slane %v3108_v49, 4  ;;  %v3118_v59 = vor.u32 %v3117_v29, %v3113_v46  ;;  %v704_v60 = vrot.slane %v8165_v52, 4  ;;  %v708_v62 = vrot.slane %v706_v15, 7  ;;  %7152 = vmatprep.subr.bf16.mxu0 %v7638_v17  ;;  %v458_v25 = vld [vmem:[#allocation2 + $0x54] sm:$0x1]  ;;  %v6673_v39 = vld [vmem:[%s7908_s24 + $0x38] sm:$0xff]  }
  0x5f   : > { %v1234_v7 = vor.u32 %v1233_v53, %v1230_v37  ;;  %v1239_v8 = vrot.slane %v1237_v56, 5  ;;  %v1243_v5 = vrot.slane %v1241_v61, 4  ;;  %v1249_v12 = vrot.slane %v1247_v28, 5  ;;  %v514_v18 = vld [vmem:[#allocation2 + $0x5c] sm:$0x1]  ;;  %v7643_v31 = vld [vmem:[%s9928_s3 + $0x30] sm:$0xff]  }
  0x60   : > { %v3114_v52 = vsel %vm7977_vm9, %v3109_v57, %v3113_v46  ;;  %v3119_v23 = vrot.slane %v3118_v59, 4  ;;  %v711_v15 = vor.u32 %v709_v16, %v708_v62  ;;  %v713_v10 = vrot.slane %v708_v62, 4  ;;  %v461_v43 = vld [vmem:[#allocation2 + $0x60] sm:$0x1]  ;;  %6958 = vmatprep.subr.bf16.mxu1 %v7643_v31 }
  0x61   : > { %v1235_v26 = vrot.slane %v1234_v7, 4  ;;  %v1244_v21 = vor.u32 %v1243_v5, %v1239_v8  ;;  %v981_v36 = vsel %vm7990_vm10, %v703_v30, %v980_v2  ;;  %v389_v33 = vmax.f32 %v8154_v6, 0.0  ;;  %7153 = vmatpush3.bf16.msra.mxu0 %v7638_v17  ;;  %6959 = vmatpush3.bf16.msra.mxu1 %v7643_v31  ;;  %v8244_v59 = vld [vmem:[%s9926_s1] ss:$0 sm:$0xff] }
  0x62   : > { %v3124_v63 = vsel %vm7977_vm9, %v3119_v23, %v3123_v50  ;;  %v712_v3 = vsel %vm7997_vm11, %v704_v60, %v711_v15  ;;  %982 = vst [vmem:[#allocation2 + $0x3c] sm:$0xf] %v981_v36  ;;  %v985_v16 = vsel %vm7912_vm3, %v713_v10, %v984_v13  ;;  %v390_v38 = vmax.f32 %v8157_v32, 0.0  ;;  %7186 = vmatprep.subr.bf16.mxu0 %v8192_v22 }
  0x63   : > { %v6354_v30 = vcombine.low %v3114_v52, %v3124_v63  ;;  %v1240_v6 = vsel %vm7977_vm9, %v1235_v26, %v1239_v8  ;;  %v1245_v41 = vrot.slane %v1244_v21, 4  ;;  %983 = vst [vmem:[#allocation2 + $0x40] sm:$0xf] %v712_v3  ;;  %986 = vst [vmem:[#allocation2 + $0x44] sm:$0x1] %v985_v16  ;;  %v512_v42 = vsel %vm7923_vm4, 0, %v511_v4 }
  0x64   : > { %513 = vst [vmem:[#allocation2 + $0x50] sm:$0x1] %v512_v42  ;;  %v6581_v44 = vpack.c.bf16 %v389_v33, %v389_v33  ;;  %v6582_v32 = vpack.c.bf16 %v390_v38, %v390_v38  ;;  %v320_v45 = vmul.f32 %v6629_v9, %v7936_v27  ;;  %v321_v46 = vmul.f32 %v6630_v11, %v7936_v27  ;;  %v8235_v11 = vld [vmem:[%s9927_s2] ss:$0 sm:$0xff]  ;;  %v987_v42 = vld [vmem:[#allocation2 + $0x48] sm:$0xf] }
  0x65   : > { %7111 = vmatmul.mubr.bf16.gmra.mrb[4].mxu0 %v6354_v30  ;;  %v1250_v37 = vsel %vm7977_vm9, %v1245_v41, %v1249_v12  ;;  %v459_v58 = vsel %vm7912_vm3, 0, %v458_v25  ;;  %v515_v17 = vsel %vm7923_vm4, 0, %v514_v18  ;;  %v6633_v48 = vunpack.c.l.bf16 %v6673_v39 }
  0x66   : > { %v6195_v49 = vcombine.low %v1240_v6, %v1250_v37  ;;  %v715_v29 = vshrl.u32 %v6581_v44, 16  ;;  %v718_v50 = vshll.u32 %v6581_v44, 16  ;;  %v723_v9 = vshrl.u32 %v6582_v32, 16  ;;  %460 = vst [vmem:[#allocation2 + $0x54] sm:$0x1] %v459_v58 }
  0x67   : > { %516 = vst [vmem:[#allocation2 + $0x5c] sm:$0x1] %v515_v17  ;;  %v726_v27 = vshll.u32 %v6582_v32, 16  ;;  %v359_v53 = vadd.f32 %v8235_v11, %v320_v45  ;;  %v8239_v56 = vadd.f32 %v8235_v11, %v321_v46  ;;  %v6634_v61 = vunpack.c.h.bf16 %v6673_v39 }
  0x68   : > { %6922 = vmatprep.mubr.bf16.mxu1 %v6195_v49  ;;  %v717_v28 = vrot.slane %v715_v29, 7  ;;  %v725_v57 = vrot.slane %v723_v9, 7  ;;  %v322_v60 = vmul.f32 %v8244_v59, %v6633_v48  ;;  %v462_v62 = vsel %vm7912_vm3, 0, %v461_v43 }
  0x69   : > { %v1074_v2 = vld [vmem:[#allocation2 + $0x3c] sm:$0xf]  ;;  %v391_v7 = vmax.f32 %v359_v53, 0.0  ;;  %v392_v8 = vmax.f32 %v8239_v56, 0.0  ;;  %v323_v5 = vmul.f32 %v8244_v59, %v6634_v61  ;;  %463 = vst [vmem:[#allocation2 + $0x60] sm:$0x1] %v462_v62  ;;  %v6637_v12 = vunpack.c.l.bf16 %v8230_v51 }
  0x6a   : > { %v2993_v4 = vld [vmem:[#allocation2 + $0x3c] sm:$0xf]  ;;  %v1075_v13 = vld [vmem:[#allocation2 + $0x40] sm:$0xf]  ;;  %v1117_v52 = vld [vmem:[#allocation2 + $0x44] sm:$0x1]  ;;  %v720_v10 = vor.u32 %v718_v50, %v717_v28  ;;  %v728_v25 = vor.u32 %v726_v27, %v725_v57 }
  0x6b   : > { %v1252_v23 = vshrl.u32 %v1074_v2, 16  ;;  %v1255_v15 = vshll.u32 %v1074_v2, 16  ;;  %v1261_v18 = vshll.u32 %v1075_v13, 16  ;;  %v1265_v26 = vshrl.u32 %v1075_v13, 16  ;;  %v2994_v36 = vld [vmem:[#allocation2 + $0x40] sm:$0xf] }
  0x6c   : > { %v1271_v21 = vshll.u32 %v1117_v52, 16  ;;  %v3126_v33 = vshrl.u32 %v2993_v4, 16  ;;  %v2995_v3 = vld [vmem:[#allocation2 + $0x44] sm:$0x1]  ;;  %v3129_v16 = vshll.u32 %v2993_v4, 16  ;;  %v3135_v38 = vshll.u32 %v2994_v36, 16 }
  0x6d   : > { %v1254_v31 = vrot.slane %v1252_v23, 4  ;;  %v1257_v63 = vrot.slane %v1255_v15, 5  ;;  %v1263_v39 = vrot.slane %v1261_v18, 5  ;;  %v1267_v30 = vrot.slane %v1265_v26, 4  ;;  %v991_v46 = vld [vmem:[#allocation2 + $0x50] sm:$0x1] }
  0x6e   : > { %v1273_v6 = vrot.slane %v1271_v21, 5  ;;  %v3128_v41 = vrot.slane %v3126_v33, 4  ;;  %v3131_v44 = vrot.slane %v3129_v16, 5  ;;  %v3137_v32 = vrot.slane %v3135_v38, 5  ;;  %v517_v62 = vld [vmem:[#allocation2 + $0x68] sm:$0x1] }
  0x6f   : > { %v1258_v43 = vor.u32 %v1257_v63, %v1254_v31  ;;  %v3139_v45 = vshrl.u32 %v2994_v36, 16  ;;  %v1268_v37 = vor.u32 %v1267_v30, %v1263_v39  ;;  %v3145_v58 = vshll.u32 %v2995_v3, 16  ;;  %v8709_v20 = vld [vmem:[#allocation2 + $0x40] sm:$0xf] }
  0x70   : > { %v721_v17 = vrot.slane %v717_v28, 4  ;;  %v730_v48 = vrot.slane %v725_v57, 4  ;;  %v3132_v29 = vor.u32 %v3131_v44, %v3128_v41  ;;  %v988_v9 = vsel %vm7990_vm10, %v720_v10, %v987_v42 }
  0x71   : > { %v1259_v49 = vrot.slane %v1258_v43, 4  ;;  %v3141_v50 = vrot.slane %v3139_v45, 4  ;;  %v1269_v27 = vrot.slane %v1268_v37, 4  ;;  %v3147_v53 = vrot.slane %v3145_v58, 5  ;;  %989 = vst [vmem:[#allocation2 + $0x48] sm:$0xf] %v988_v9 }
  0x72   : > { %v729_v56 = vsel %vm7997_vm11, %v721_v17, %v728_v25  ;;  %v992_v61 = vsel %vm7912_vm3, %v730_v48, %v991_v46  ;;  %v3133_v57 = vrot.slane %v3132_v29, 4  ;;  %v6583_v4 = vpack.c.bf16 %v391_v7, %v391_v7 }
  0x73   : > { %v1264_v28 = vsel %vm7977_vm9, %v1259_v49, %v1263_v39  ;;  %v3142_v2 = vor.u32 %v3141_v50, %v3137_v32  ;;  %990 = vst [vmem:[#allocation2 + $0x4c] sm:$0xf] %v729_v56  ;;  %993 = vst [vmem:[#allocation2 + $0x50] sm:$0x1] %v992_v61  ;;  %v1274_v13 = vsel %vm7977_vm9, %v1269_v27, %v1273_v6  ;;  %v6638_v38 = vunpack.c.h.bf16 %v8230_v51 }
  0x74   : > { %v6584_v52 = vpack.c.bf16 %v392_v8, %v392_v8  ;;  %v361_v23 = vadd.f32 %v8235_v11, %v322_v60  ;;  %v362_v15 = vadd.f32 %v8235_v11, %v323_v5  ;;  %v6196_v10 = vcombine.low %v1264_v28, %v1274_v13 }
  0x75   : > { %v3138_v25 = vsel %vm7977_vm9, %v3133_v57, %v3137_v32  ;;  %v3143_v18 = vrot.slane %v3142_v2, 4  ;;  %v732_v26 = vshrl.u32 %v6583_v4, 16  ;;  %v735_v21 = vshll.u32 %v6583_v4, 16  ;;  %v994_v57 = vld [vmem:[#allocation2 + $0x54] sm:$0xf] }
  0x76   : > { %v740_v36 = vshrl.u32 %v6584_v52, 16  ;;  %v743_v33 = vshll.u32 %v6584_v52, 16  ;;  %v393_v31 = vmax.f32 %v361_v23, 0.0  ;;  %6923 = vmatmul.mubr.bf16.gmra.mrb[8].mxu1 %v6196_v10  ;;  %v394_v8 = vmax.f32 %v362_v15, 0.0  ;;  %v998_v23 = vld [vmem:[#allocation2 + $0x5c] sm:$0x1] }
  0x77   : > { %v3148_v7 = vsel %vm7977_vm9, %v3143_v18, %v3147_v53  ;;  %v734_v63 = vrot.slane %v732_v26, 7  ;;  %v518_v60 = vsel %vm7923_vm4, 0, %v517_v62  ;;  %v324_v43 = vmul.f32 %v8244_v59, %v6637_v12  ;;  %v7645_v15 = vld [vmem:[%s9928_s3 + $0x38] sm:$0xff]  }
  0x78   : > { %v6355_v5 = vcombine.low %v3138_v25, %v3148_v7  ;;  %v742_v3 = vrot.slane %v740_v36, 7  ;;  %519 = vst [vmem:[#allocation2 + $0x68] sm:$0x1] %v518_v60  ;;  %v8270_v16 = vpack.c.bf16 %v393_v31, %v393_v31  ;;  %v2996_v39 = vld [vmem:[#allocation2 + $0x48] sm:$0xf]  ;;  %v8273_v42 = vpack.c.bf16 %v394_v8, %v394_v8  ;;  %6960 = vmatprep.subr.bf16.mxu1 %v7645_v15 }
  0x79   : > { %v1076_v30 = vld [vmem:[#allocation2 + $0x48] sm:$0xf]  ;;  %v737_v6 = vor.u32 %v735_v21, %v734_v63  ;;  %v738_v41 = vrot.slane %v734_v63, 4  ;;  %v3150_v45 = vshrl.u32 %v2996_v39, 16  ;;  %v3153_v46 = vshll.u32 %v2996_v39, 16  ;;  %6961 = vmatpush3.bf16.msra.mxu1 %v7645_v15 }
  0x7a   : > { %7114 = vmatprep.mubr.bf16.mxu0 %v6355_v5  ;;  %v8278_v44 = vld [vmem:[#allocation2 + $0x4c] sm:$0xf]  ;;  %v8280_v32 = vld [vmem:[#allocation2 + $0x50] sm:$0x1]  ;;  %v745_v37 = vor.u32 %v743_v33, %v742_v3  ;;  %v325_v58 = vmul.f32 %v8244_v59, %v6638_v38  ;;  %v1276_v51 = vshrl.u32 %v1076_v30, 16  ;;  %v1279_v27 = vshll.u32 %v1076_v30, 16 }
  0x7b   : > { %v3159_v17 = vshll.u32 %v8278_v44, 16  ;;  %v3163_v48 = vshrl.u32 %v8278_v44, 16  ;;  %v3169_v49 = vshll.u32 %v8280_v32, 16  ;;  %v1077_v29 = vld [vmem:[#allocation2 + $0x4c] sm:$0xf]  ;;  %v3152_v50 = vrot.slane %v3150_v45, 4 }
  0x7c   : > { %v3155_v12 = vrot.slane %v3153_v46, 5  ;;  %v1118_v9 = vld [vmem:[#allocation2 + $0x50] sm:$0x1]  ;;  %v1285_v53 = vshll.u32 %v1077_v29, 16  ;;  %v1278_v28 = vrot.slane %v1276_v51, 4  ;;  %v1281_v4 = vrot.slane %v1279_v27, 5 }
  0x7d   : > { %v3161_v56 = vrot.slane %v3159_v17, 5  ;;  %v3165_v61 = vrot.slane %v3163_v48, 4  ;;  %v3171_v62 = vrot.slane %v3169_v49, 5  ;;  %v1289_v52 = vshrl.u32 %v1077_v29, 16  ;;  %v464_v5 = vld [vmem:[#allocation2 + $0x6c] sm:$0x1] }
  0x7e   : > { %v3156_v2 = vor.u32 %v3155_v12, %v3152_v50  ;;  %v1287_v13 = vrot.slane %v1285_v53, 5  ;;  %v1295_v25 = vshll.u32 %v1118_v9, 16  ;;  %v746_v18 = vsel %vm7997_vm11, %v738_v41, %v745_v37  ;;  %v520_v38 = vld [vmem:[#allocation2 + $0x74] sm:$0x1]  ;;  %v1001_v29 = vld [vmem:[#allocation2 + $0x60] sm:$0xf] }
  0x7f   : > { %v3166_v10 = vor.u32 %v3165_v61, %v3161_v56  ;;  %v747_v26 = vrot.slane %v742_v3, 4  ;;  %v1282_v36 = vor.u32 %v1281_v4, %v1278_v28  ;;  %v1291_v33 = vrot.slane %v1289_v52, 4  ;;  %997 = vst [vmem:[#allocation2 + $0x58] sm:$0xf] %v746_v18  ;;  %v1005_v27 = vld [vmem:[#allocation2 + $0x68] sm:$0x1] }
  0x80   : > { %v3157_v21 = vrot.slane %v3156_v2, 4  ;;  %v995_v31 = vsel %vm7990_vm10, %v737_v6, %v994_v57  ;;  %v1297_v63 = vrot.slane %v1295_v25, 5  ;;  %v749_v60 = vshrl.u32 %v8270_v16, 16  ;;  %v8712_v24 = vld [vmem:[#allocation2 + $0x4c] sm:$0xf] }
  0x81   : > { %v3167_v7 = vrot.slane %v3166_v10, 4  ;;  %996 = vst [vmem:[#allocation2 + $0x54] sm:$0xf] %v995_v31  ;;  %v999_v8 = vsel %vm7912_vm3, %v747_v26, %v998_v23  ;;  %v1283_v39 = vrot.slane %v1282_v36, 4  ;;  %v1292_v30 = vor.u32 %v1291_v33, %v1287_v13 }
  0x82   : > { %v3162_v3 = vsel %vm7977_vm9, %v3157_v21, %v3161_v56  ;;  %1000 = vst [vmem:[#allocation2 + $0x5c] sm:$0x1] %v999_v8  ;;  %v752_v6 = vshll.u32 %v8270_v16, 16  ;;  %v751_v45 = vrot.slane %v749_v60, 7  ;;  %v757_v46 = vshrl.u32 %v8273_v42, 16  ;;  %v7649_v16 = vld [vmem:[%s9928_s3 + $0x80] sm:$0xff]  }
  0x83   : > { %v3172_v41 = vsel %vm7977_vm9, %v3167_v7, %v3171_v62  ;;  %v760_v37 = vshll.u32 %v8273_v42, 16  ;;  %v1288_v48 = vsel %vm7977_vm9, %v1283_v39, %v1287_v13  ;;  %v1293_v49 = vrot.slane %v1292_v30, 4  ;;  %v8313_v42 = vld [vmem:[%s7908_s24 + $0x48] sm:$0xff]   ;;  %6994 = vmatprep.subr.bf16.mxu1 %v7649_v16 }
  0x84   : > { %v6356_v17 = vcombine.low %v3162_v3, %v3172_v41  ;;  %v363_v51 = vadd.f32 %v8235_v11, %v324_v43  ;;  %v754_v50 = vor.u32 %v752_v6, %v751_v45  ;;  %v755_v12 = vrot.slane %v751_v45, 4 }
  0x85   : > { %v759_v9 = vrot.slane %v757_v46, 7  ;;  %v8310_v53 = vadd.f32 %v8235_v11, %v325_v58  ;;  %v1298_v56 = vsel %vm7977_vm9, %v1293_v49, %v1297_v63  ;;  %v465_v43 = vsel %vm7912_vm3, 0, %v464_v5 }
  0x86   : > { %7115 = vmatmul.mubr.bf16.gmra.mrb[8].mxu0 %v6356_v17  ;;  %v395_v61 = vmax.f32 %v363_v51, 0.0  ;;  %v521_v62 = vsel %vm7923_vm4, 0, %v520_v38  ;;  %v6197_v28 = vcombine.low %v1288_v48, %v1298_v56  ;;  %v1079_v57 = vld [vmem:[#allocation2 + $0x58] sm:$0xf]  ;;  %v1002_v13 = vsel %vm7990_vm10, %v754_v50, %v1001_v29  ;;  %466 = vst [vmem:[#allocation2 + $0x6c] sm:$0x1] %v465_v43 }
  0x87   : > { %v3000_v2 = vld [vmem:[#allocation2 + $0x58] sm:$0xf]  ;;  %v762_v4 = vor.u32 %v760_v37, %v759_v9  ;;  %v764_v58 = vrot.slane %v759_v9, 4  ;;  %522 = vst [vmem:[#allocation2 + $0x74] sm:$0x1] %v521_v62  ;;  %v1309_v23 = vshll.u32 %v1079_v57, 16  ;;  %v6641_v18 = vunpack.c.l.bf16 %v8313_v42 }
  0x88   : > { %v1078_v52 = vld [vmem:[#allocation2 + $0x54] sm:$0xf]  ;;  %v1313_v15 = vshrl.u32 %v1079_v57, 16  ;;  %1003 = vst [vmem:[#allocation2 + $0x60] sm:$0xf] %v1002_v13  ;;  %v8323_v25 = vpack.c.bf16 %v395_v61, %v395_v61  ;;  %6926 = vmatprep.mubr.bf16.mxu1 %v6197_v28  ;;  %v3183_v30 = vshll.u32 %v3000_v2, 16  ;;  %v6642_v43 = vunpack.c.h.bf16 %v8313_v42 }
  0x89   : > { %v2999_v10 = vld [vmem:[#allocation2 + $0x54] sm:$0xf]  ;;  %v1119_v26 = vld [vmem:[#allocation2 + $0x5c] sm:$0x1]  ;;  %v1300_v21 = vshrl.u32 %v1078_v52, 16  ;;  %v1303_v36 = vshll.u32 %v1078_v52, 16  ;;  %v763_v33 = vsel %vm7997_vm11, %v755_v12, %v762_v4  ;;  %v1006_v31 = vsel %vm7912_vm3, %v764_v58, %v1005_v27 }
  0x8a   : > { %v1311_v7 = vrot.slane %v1309_v23, 5  ;;  %v1315_v63 = vrot.slane %v1313_v15, 4  ;;  %v1319_v8 = vshll.u32 %v1119_v26, 16  ;;  %v3001_v60 = vld [vmem:[#allocation2 + $0x5c] sm:$0x1]  ;;  %v3174_v5 = vshrl.u32 %v2999_v10, 16 }
  0x8b   : > { %1004 = vst [vmem:[#allocation2 + $0x64] sm:$0xf] %v763_v33  ;;  %1007 = vst [vmem:[#allocation2 + $0x68] sm:$0x1] %v1006_v31  ;;  %v1302_v38 = vrot.slane %v1300_v21, 4  ;;  %v1305_v3 = vrot.slane %v1303_v36, 5 }
  0x8c   : > { %v3177_v39 = vshll.u32 %v2999_v10, 16  ;;  %v1316_v6 = vor.u32 %v1315_v63, %v1311_v7  ;;  %v1321_v41 = vrot.slane %v1319_v8, 5  ;;  %v3176_v45 = vrot.slane %v3174_v5, 4 }
  0x8d   : > { %v3187_v46 = vshrl.u32 %v3000_v2, 16  ;;  %v1306_v37 = vor.u32 %v1305_v3, %v1302_v38  ;;  %v3185_v48 = vrot.slane %v3183_v30, 5  ;;  %v3193_v49 = vshll.u32 %v3001_v60, 16 }
  0x8e   : > { %v3179_v17 = vrot.slane %v3177_v39, 5  ;;  %v1317_v29 = vrot.slane %v1316_v6, 4  ;;  %v396_v16 = vmax.f32 %v8310_v53, 0.0  ;;  %v766_v50 = vshrl.u32 %v8323_v25, 16 }
  0x8f   : > { %v3189_v51 = vrot.slane %v3187_v46, 4  ;;  %v1307_v12 = vrot.slane %v1306_v37, 4  ;;  %v3195_v27 = vrot.slane %v3193_v49, 5  ;;  %v3002_v56 = vld [vmem:[#allocation2 + $0x60] sm:$0xf] }
  0x90   : > { %v3180_v9 = vor.u32 %v3179_v17, %v3176_v45  ;;  %v1080_v61 = vld [vmem:[#allocation2 + $0x60] sm:$0xf]  ;;  %v1322_v62 = vsel %vm7977_vm9, %v1317_v29, %v1321_v41  ;;  %v3198_v57 = vshrl.u32 %v3002_v56, 16  ;;  %v3201_v2 = vshll.u32 %v3002_v56, 16 }
  0x91   : > { %v3190_v28 = vor.u32 %v3189_v51, %v3185_v48  ;;  %v1312_v4 = vsel %vm7977_vm9, %v1307_v12, %v1311_v7  ;;  %v1324_v52 = vshrl.u32 %v1080_v61, 16  ;;  %v8341_v23 = vpack.c.bf16 %v396_v16, %v396_v16 }
  0x92   : > { %v3181_v58 = vrot.slane %v3180_v9, 4  ;;  %v8337_v53 = vld [vmem:[#allocation2 + $0x64] sm:$0xf]  ;;  %v8339_v13 = vld [vmem:[#allocation2 + $0x68] sm:$0x1]  ;;  %v6198_v15 = vcombine.low %v1312_v4, %v1322_v62  ;;  %v3200_v26 = vrot.slane %v3198_v57, 4 }
  0x93   : > { %v3191_v10 = vrot.slane %v3190_v28, 4  ;;  %v3203_v21 = vrot.slane %v3201_v2, 5  ;;  %v3207_v33 = vshll.u32 %v8337_v53, 16  ;;  %v3211_v31 = vshrl.u32 %v8337_v53, 16  ;;  %v1081_v63 = vld [vmem:[#allocation2 + $0x64] sm:$0xf] }
  0x94   : > { %v3186_v36 = vsel %vm7977_vm9, %v3181_v58, %v3185_v48  ;;  %v3217_v7 = vshll.u32 %v8339_v13, 16  ;;  %6927 = vmatmul.mubr.bf16.gmra.mrb[12].mxu1 %v6198_v15  ;;  %v1120_v5 = vld [vmem:[#allocation2 + $0x68] sm:$0x1]  ;;  %v1326_v38 = vrot.slane %v1324_v52, 4  ;;  %v1327_v3 = vshll.u32 %v1080_v61, 16 }
  0x95   : > { %v3196_v8 = vsel %vm7977_vm9, %v3191_v10, %v3195_v27  ;;  %v3204_v60 = vor.u32 %v3203_v21, %v3200_v26  ;;  %v3209_v30 = vrot.slane %v3207_v33, 5  ;;  %v3213_v6 = vrot.slane %v3211_v31, 4  ;;  %v1008_v48 = vld [vmem:[#allocation2 + $0x6c] sm:$0xf]  ;;  %v3736_v62 = vld [vmem:[#allocation2 + $0x18] sm:$0xe] }
  0x96   : > { %v6357_v39 = vcombine.low %v3186_v36, %v3196_v8  ;;  %v3219_v41 = vrot.slane %v3217_v7, 5  ;;  %v1329_v46 = vrot.slane %v1327_v3, 5  ;;  %v1333_v37 = vshll.u32 %v1081_v63, 16  ;;  %v3735_v61 = vld [vmem:[#allocation2 + $0xc] sm:$0xe] }
  0x97   : > { %v3205_v45 = vrot.slane %v3204_v60, 4  ;;  %v1337_v17 = vshrl.u32 %v1081_v63, 16  ;;  %v3214_v49 = vor.u32 %v3213_v6, %v3209_v30  ;;  %v1343_v29 = vshll.u32 %v1120_v5, 16  ;;  %v1012_v31 = vld [vmem:[#allocation2 + $0x74] sm:$0x1] }
  0x98   : > { %7118 = vmatprep.mubr.bf16.mxu0 %v6357_v39  ;;  %v768_v51 = vrot.slane %v766_v50, 7  ;;  %v769_v16 = vshll.u32 %v8323_v25, 16  ;;  %v1330_v9 = vor.u32 %v1329_v46, %v1326_v38  ;;  %v1335_v27 = vrot.slane %v1333_v37, 5  ;;  %v523_v63 = vld [vmem:[#allocation2 + $0x80] sm:$0x1] }
  0x99   : > { %v3210_v12 = vsel %vm7977_vm9, %v3205_v45, %v3209_v30  ;;  %v1339_v56 = vrot.slane %v1337_v17, 4  ;;  %v3215_v28 = vrot.slane %v3214_v49, 4  ;;  %v1345_v57 = vrot.slane %v1343_v29, 5  ;;  %v7733_v60 = vld [vmem:[#allocation2 + $0x10] sm:$0xf] }
  0x9a   : > { %v771_v2 = vor.u32 %v769_v16, %v768_v51  ;;  %v772_v4 = vrot.slane %v768_v51, 4  ;;  %v1331_v58 = vrot.slane %v1330_v9, 4  ;;  %v774_v15 = vshrl.u32 %v8341_v23, 16  ;;  %v470_v45 = vld [vmem:[#allocation2 + $0x84] sm:$0x1] }
  0x9b   : > { %v1340_v52 = vor.u32 %v1339_v56, %v1335_v27  ;;  %v777_v50 = vshll.u32 %v8341_v23, 16  ;;  %v3220_v25 = vsel %vm7977_vm9, %v3215_v28, %v3219_v41  ;;  %v467_v23 = vld [vmem:[#allocation2 + $0x78] sm:$0x1]  ;;  %v6375_v8 = vrot.slane %v3735_v61, 9  ;;  %v526_v46 = vld [vmem:[#allocation2 + $0x8c] sm:$0x1] }
  0x9c   : > { %v1009_v10 = vsel %vm7990_vm10, %v771_v2, %v1008_v48  ;;  %v6358_v26 = vcombine.low %v3210_v12, %v3220_v25  ;;  %v1336_v21 = vsel %vm7977_vm9, %v1331_v58, %v1335_v27  ;;  %v776_v33 = vrot.slane %v774_v15, 7  ;;  %v3737_v37 = vld [vmem:[#allocation2 + $0x24] sm:$0xe]  ;;  %v7642_v58 = vld [vmem:[%s9928_s3 + $0x188] sm:$0xff]  }
  0x9d   : > { %v1341_v36 = vrot.slane %v1340_v52, 4  ;;  %1010 = vst [vmem:[#allocation2 + $0x6c] sm:$0xf] %v1009_v10  ;;  %v3801_v5 = vrot.slane %v7733_v60, 5  ;;  %v6376_v38 = vrot.slane %v3736_v62, 9  ;;  %v3812_v3 = vsel %vm8361_vm14, %v8082_v47, %v3811_v35  ;;  %v6676_v47 = vld [vmem:[%s7908_s24 + $0x50] sm:$0xff]  }
  0x9e   : > { %7119 = vmatmul.mubr.bf16.gmra.mrb[12].mxu0 %v6358_v26  ;;  %v779_v30 = vor.u32 %v777_v50, %v776_v33  ;;  %v781_v6 = vrot.slane %v776_v33, 4  ;;  %v326_v41 = vmul.f32 %v8244_v59, %v6641_v18  ;;  %v327_v51 = vmul.f32 %v8244_v59, %v6642_v43  ;;  %v7734_v50 = vld [vmem:[#allocation2 + $0x28] sm:$0xf]  ;;  %v8408_v10 = vld [vmem:[#allocation2 + $0x2c] sm:$0x1] }
  0x9f   : > { %v1346_v39 = vsel %vm7977_vm9, %v1341_v36, %v1345_v57  ;;  %v3802_v0 = vsel %vm8361_vm14, %v6375_v8, %v3801_v5  ;;  %v3803_v48 = vrot.slane %v3801_v5, 4  ;;  %v3809_v35 = vsel %vm8361_vm14, %v6376_v38, %v3808_v34 }
  0xa0   : > { %v6199_v17 = vcombine.low %v1336_v21, %v1346_v39  ;;  %v780_v49 = vsel %vm7997_vm11, %v772_v4, %v779_v30  ;;  %v1013_v18 = vsel %vm7912_vm3, %v781_v6, %v1012_v31  ;;  %v6408_v29 = vcombine.low %v3809_v35, %v3812_v3  ;;  %v8412_v21 = vld [vmem:[%s7908_s24 + $0x58] sm:$0xff]  }
  0xa1   : > { %1011 = vst [vmem:[#allocation2 + $0x70] sm:$0xf] %v780_v49  ;;  %1014 = vst [vmem:[#allocation2 + $0x74] sm:$0x1] %v1013_v18  ;;  %v3805_v55 = vsel %vm8361_vm14, %v3803_v48, %v3804_v54  ;;  %v365_v34 = vadd.f32 %v8235_v11, %v326_v41  ;;  %v468_v16 = vsel %vm7912_vm3, 0, %v467_v23  ;;  %v524_v12 = vsel %vm7923_vm4, 0, %v523_v63 }
  0xa2   : > { %6930 = vmatprep.mubr.bf16.mxu1 %v6199_v17  ;;  %v6407_v9 = vcombine.low %v3802_v0, %v3805_v55  ;;  %v366_v42 = vadd.f32 %v8235_v11, %v327_v51  ;;  %469 = vst [vmem:[#allocation2 + $0x78] sm:$0x1] %v468_v16  ;;  %525 = vst [vmem:[#allocation2 + $0x80] sm:$0x1] %v524_v12  ;;  %v6645_v43 = vunpack.c.l.bf16 %v6676_v47  ;;  %v6646_v27 = vunpack.c.h.bf16 %v6676_v47  ;;  %v7644_v63 = vld [vmem:[%s9928_s3 + $0x190] sm:$0xff]  }
  0xa3   : > { %v397_v40 = vmax.f32 %v365_v34, 0.0  ;;  %v471_v54 = vsel %vm7912_vm3, 0, %v470_v45  ;;  %v527_v61 = vsel %vm7923_vm4, 0, %v526_v46  ;;  %v6377_v62 = vrot.slane %v3737_v37, 9 }
  0xa4   : > { %v1082_v56 = vld [vmem:[#allocation2 + $0x6c] sm:$0xf]  ;;  %7154 = vmatprep.mubr.bf16.mxu0 %v6407_v9  ;;  %v398_v2 = vmax.f32 %v366_v42, 0.0  ;;  %v328_v4 = vmul.f32 %v8244_v59, %v6645_v43  ;;  %472 = vst [vmem:[#allocation2 + $0x84] sm:$0x1] %v471_v54  ;;  %v329_v15 = vmul.f32 %v8244_v59, %v6646_v27  ;;  %v3815_v25 = vrot.slane %v7734_v50, 5 }
  0xa5   : > { %v1348_v28 = vshrl.u32 %v1082_v56, 16  ;;  %v1351_v57 = vshll.u32 %v1082_v56, 16  ;;  %528 = vst [vmem:[#allocation2 + $0x8c] sm:$0x1] %v527_v61  ;;  %v6589_v52 = vpack.c.bf16 %v397_v40, %v397_v40  ;;  %v3818_v26 = vrot.slane %v8408_v10, 5  ;;  %v7646_v43 = vld [vmem:[%s9928_s3 + $0x198] sm:$0xff]  }
  0xa6   : > { %7155 = vmatmul.mubr.bf16.vlgmr.msra.gmra.mrb[0].mxu0 %v6408_v29  ;;  %v6590_v31 = vpack.c.bf16 %v398_v2, %v398_v2  ;;  %v367_v23 = vadd.f32 %v8235_v11, %v328_v4  ;;  %v368_v5 = vadd.f32 %v8235_v11, %v329_v15  ;;  %v8422_v38 = vsel %vm8361_vm14, %v6377_v62, %v3815_v25  ;;  %v3738_v61 = vld [vmem:[#allocation2 + $0x30] sm:$0xe] }
  0xa7   : > { %v1350_v36 = vrot.slane %v1348_v28, 4  ;;  %v1353_v33 = vrot.slane %v1351_v57, 5  ;;  %7187 = vmatpush3.bf16.msra.mxu0 %v8192_v22  ;;  %v783_v8 = vshrl.u32 %v6589_v52, 16  ;;  %v786_v60 = vshll.u32 %v6589_v52, 16 }
  0xa8   : > { %v1083_v3 = vld [vmem:[#allocation2 + $0x70] sm:$0xf]  ;;  %v1121_v39 = vld [vmem:[#allocation2 + $0x74] sm:$0x1]  ;;  %v791_v6 = vshrl.u32 %v6590_v31, 16  ;;  %v794_v41 = vshll.u32 %v6590_v31, 16  ;;  %7188 = vmatprep.subr.bf16.mxu0 %v7642_v58  ;;  %v6649_v45 = vunpack.c.l.bf16 %v8412_v21 }
  0xa9   : > { %v1354_v30 = vor.u32 %v1353_v33, %v1350_v36  ;;  %v1357_v46 = vshll.u32 %v1083_v3, 16  ;;  %v1361_v37 = vshrl.u32 %v1083_v3, 16  ;;  %v1367_v17 = vshll.u32 %v1121_v39, 16  ;;  %v1015_v35 = vld [vmem:[#allocation2 + $0x78] sm:$0xf] }
  0xaa   : > { %v785_v22 = vrot.slane %v783_v8, 7  ;;  %v793_v48 = vrot.slane %v791_v6, 7  ;;  %v399_v47 = vmax.f32 %v367_v23, 0.0  ;;  %v400_v49 = vmax.f32 %v368_v5, 0.0  ;;  %v1019_v34 = vld [vmem:[#allocation2 + $0x80] sm:$0x1] }
  0xab   : > { %v1355_v0 = vrot.slane %v1354_v30, 4  ;;  %v1359_v18 = vrot.slane %v1357_v46, 5  ;;  %v1363_v29 = vrot.slane %v1361_v37, 4  ;;  %v1369_v51 = vrot.slane %v1367_v17, 5  ;;  %7189 = vmatpush3.bf16.msra.mxu0 %v7642_v58  ;;  %v1022_v15 = vld [vmem:[#allocation2 + $0x84] sm:$0xf] }
  0xac   : > { %v788_v55 = vor.u32 %v786_v60, %v785_v22  ;;  %v789_v16 = vrot.slane %v785_v22, 4  ;;  %v796_v12 = vor.u32 %v794_v41, %v793_v48  ;;  %v798_v9 = vrot.slane %v793_v48, 4  ;;  %7190 = vmatprep.subr.bf16.mxu0 %v7644_v63  ;;  %v473_v36 = vld [vmem:[#allocation2 + $0x90] sm:$0x1]  ;;  %v1026_v31 = vld [vmem:[#allocation2 + $0x8c] sm:$0x1] }
  0xad   : > { %v6591_v42 = vpack.c.bf16 %v399_v47, %v399_v47  ;;  %v1360_v27 = vsel %vm7977_vm9, %v1355_v0, %v1359_v18  ;;  %v1364_v56 = vor.u32 %v1363_v29, %v1359_v18  ;;  %v6592_v54 = vpack.c.bf16 %v400_v49, %v400_v49  ;;  %v7736_v8 = vld [vmem:[#allocation2 + $0x34] sm:$0xf]  ;;  %v7737_v5 = vld [vmem:[#allocation2 + $0x38] sm:$0x1]  ;;  %v7650_v41 = vld [vmem:[%s9928_s3 + $0x1a0] sm:$0xff]  }
  0xae   : > { %v1016_v40 = vsel %vm7990_vm10, %v788_v55, %v1015_v35  ;;  %v797_v62 = vsel %vm7997_vm11, %v789_v16, %v796_v12  ;;  %v1020_v28 = vsel %vm7912_vm3, %v798_v9, %v1019_v34  ;;  %v3817_v50 = vrot.slane %v3815_v25, 4  ;;  %v529_v39 = vld [vmem:[#allocation2 + $0x98] sm:$0x1]  ;;  %v7654_v18 = vld [vmem:[%s9928_s3 + $0x1a8] sm:$0xff]   ;;  %v6678_v34 = vld [vmem:[%s7908_s24 + $0x60] sm:$0xff]  }
  0xaf   : > { %1017 = vst [vmem:[#allocation2 + $0x78] sm:$0xf] %v1016_v40  ;;  %v800_v57 = vshrl.u32 %v6591_v42, 16  ;;  %v803_v2 = vshll.u32 %v6591_v42, 16  ;;  %v1365_v4 = vrot.slane %v1364_v56, 4  ;;  %v808_v58 = vshrl.u32 %v6592_v54, 16  ;;  %7191 = vmatpush3.bf16.msra.mxu0 %v7644_v63 }
  0xb0   : > { %1018 = vst [vmem:[#allocation2 + $0x7c] sm:$0xf] %v797_v62  ;;  %1021 = vst [vmem:[#allocation2 + $0x80] sm:$0x1] %v1020_v28  ;;  %v811_v52 = vshll.u32 %v6592_v54, 16  ;;  %v6378_v23 = vrot.slane %v3738_v61, 9  ;;  %7192 = vmatprep.subr.bf16.mxu0 %v7646_v43  ;;  %v3819_v25 = vsel %vm8361_vm14, %v3817_v50, %v3818_v26  ;;  %v6650_v63 = vunpack.c.h.bf16 %v8412_v21 }
  0xb1   : > { %v802_v33 = vrot.slane %v800_v57, 7  ;;  %v3822_v60 = vrot.slane %v7736_v8, 5  ;;  %v3825_v3 = vrot.slane %v7737_v5, 5  ;;  %v1370_v30 = vsel %vm7977_vm9, %v1365_v4, %v1369_v51  ;;  %v476_v62 = vld [vmem:[#allocation2 + $0x9c] sm:$0x1] }
  0xb2   : > { %v810_v6 = vrot.slane %v808_v58, 7  ;;  %v6200_v46 = vcombine.low %v1360_v27, %v1370_v30  ;;  %v6409_v22 = vcombine.low %v8422_v38, %v3819_v25  ;;  %v330_v47 = vmul.f32 %v8244_v59, %v6649_v45  ;;  %v532_v58 = vld [vmem:[#allocation2 + $0xa4] sm:$0x1] }
  0xb3   : > { %v805_v37 = vor.u32 %v803_v2, %v802_v33  ;;  %v806_v17 = vrot.slane %v802_v33, 4  ;;  %v3823_v35 = vsel %vm8361_vm14, %v6378_v23, %v3822_v60  ;;  %v3824_v10 = vrot.slane %v3822_v60, 4  ;;  %7193 = vmatpush3.bf16.msra.mxu0 %v7646_v43  ;;  %v8476_v60 = vld [vmem:[%s7908_s24 + $0x68] sm:$0xff]  }
  0xb4   : > { %v813_v0 = vor.u32 %v811_v52, %v810_v6  ;;  %v815_v48 = vrot.slane %v810_v6, 4  ;;  %6931 = vmatmul.mubr.bf16.gmra.mrb[16].mxu1 %v6200_v46  ;;  %7158 = vmatprep.mubr.bf16.mxu0 %v6409_v22  ;;  %v331_v49 = vmul.f32 %v8244_v59, %v6650_v63  ;;  %v474_v38 = vsel %vm7912_vm3, 0, %v473_v36  ;;  %v7658_v52 = vld [vmem:[%s9928_s3 + $0x1b0] sm:$0xff]  }
  0xb5   : > { %v1023_v26 = vsel %vm7990_vm10, %v805_v37, %v1022_v15  ;;  %v3826_v21 = vsel %vm8361_vm14, %v3824_v10, %v3825_v3  ;;  %475 = vst [vmem:[#allocation2 + $0x90] sm:$0x1] %v474_v38  ;;  %v530_v45 = vsel %vm7923_vm4, 0, %v529_v39  ;;  %7194 = vmatprep.subr.bf16.mxu0 %v7650_v41  ;;  %v369_v27 = vadd.f32 %v8235_v11, %v330_v47  ;;  %v7662_v37 = vld [vmem:[%s9928_s3 + $0x1b8] sm:$0xff]  }
  0xb6   : > { %v1084_v29 = vld [vmem:[#allocation2 + $0x78] sm:$0xf]  ;;  %v814_v51 = vsel %vm7997_vm11, %v806_v17, %v813_v0  ;;  %1024 = vst [vmem:[#allocation2 + $0x84] sm:$0xf] %v1023_v26  ;;  %v1027_v55 = vsel %vm7912_vm3, %v815_v48, %v1026_v31  ;;  %v6410_v43 = vcombine.low %v3823_v35, %v3826_v21  ;;  %531 = vst [vmem:[#allocation2 + $0x98] sm:$0x1] %v530_v45  ;;  %v6653_v4 = vunpack.c.l.bf16 %v6678_v34 }
  0xb7   : > { %v1085_v16 = vld [vmem:[#allocation2 + $0x7c] sm:$0xf]  ;;  %v1122_v12 = vld [vmem:[#allocation2 + $0x80] sm:$0x1]  ;;  %v1372_v9 = vshrl.u32 %v1084_v29, 16  ;;  %v1375_v42 = vshll.u32 %v1084_v29, 16  ;;  %v370_v61 = vadd.f32 %v8235_v11, %v331_v49  ;;  %7195 = vmatpush3.bf16.msra.mxu0 %v7650_v41  ;;  %v6654_v23 = vunpack.c.h.bf16 %v6678_v34 }
  0xb8   : > { %1025 = vst [vmem:[#allocation2 + $0x88] sm:$0xf] %v814_v51  ;;  %1028 = vst [vmem:[#allocation2 + $0x8c] sm:$0x1] %v1027_v55  ;;  %v1381_v56 = vshll.u32 %v1085_v16, 16  ;;  %v1385_v40 = vshrl.u32 %v1085_v16, 16  ;;  %7159 = vmatmul.mubr.bf16.gmra.mrb[4].mxu0 %v6410_v43  ;;  %7196 = vmatprep.subr.bf16.mxu0 %v7654_v18  ;;  %v332_v8 = vmul.f32 %v8244_v59, %v6653_v4  ;;  %v6657_v26 = vunpack.c.l.bf16 %v8476_v60 }
  0xb9   : > { %v1391_v54 = vshll.u32 %v1122_v12, 16  ;;  %v1374_v28 = vrot.slane %v1372_v9, 4  ;;  %v1377_v57 = vrot.slane %v1375_v42, 5  ;;  %v401_v2 = vmax.f32 %v369_v27, 0.0  ;;  %v8487_v59 = vld [vmem:[%s9926_s1] ss:$0 sm:$0xff] }
  0xba   : > { %v1383_v15 = vrot.slane %v1381_v56, 5  ;;  %v1387_v50 = vrot.slane %v1385_v40, 4  ;;  %v402_v33 = vmax.f32 %v370_v61, 0.0  ;;  %v477_v39 = vsel %vm7912_vm3, 0, %v476_v62  ;;  %v8499_v35 = vld [vmem:[%s9927_s2] ss:$0 sm:$0xff] }
  0xbb   : > { %v1393_v36 = vrot.slane %v1391_v54, 5  ;;  %v1378_v31 = vor.u32 %v1377_v57, %v1374_v28  ;;  %v6593_v11 = vpack.c.bf16 %v401_v2, %v401_v2  ;;  %v533_v30 = vsel %vm7923_vm4, 0, %v532_v58  ;;  %7197 = vmatpush3.bf16.msra.mxu0 %v7654_v18  ;;  %478 = vst [vmem:[#allocation2 + $0x9c] sm:$0x1] %v477_v39  ;;  %v7667_v42 = vld [vmem:[%s9928_s3 + $0x1c0] sm:$0xff]  }
  0xbc   : > { %v1388_v5 = vor.u32 %v1387_v50, %v1383_v15  ;;  %v6594_v3 = vpack.c.bf16 %v402_v33, %v402_v33  ;;  %v333_v46 = vmul.f32 %v8487_v59, %v6654_v23  ;;  %534 = vst [vmem:[#allocation2 + $0xa4] sm:$0x1] %v533_v30  ;;  %7198 = vmatprep.subr.bf16.mxu0 %v7658_v52  ;;  %v1029_v9 = vld [vmem:[#allocation2 + $0x90] sm:$0xf]  ;;  %v3739_v54 = vld [vmem:[#allocation2 + $0x3c] sm:$0xe] }
  0xbd   : > { %v1379_v6 = vrot.slane %v1378_v31, 4  ;;  %v8482_v25 = vld [vmem:[#allocation2 + $0x84] sm:$0xf]  ;;  %v817_v63 = vshrl.u32 %v6593_v11, 16  ;;  %v820_v41 = vshll.u32 %v6593_v11, 16  ;;  %v371_v10 = vadd.f32 %v8499_v35, %v332_v8 }
  0xbe   : > { %v1389_v17 = vrot.slane %v1388_v5, 4  ;;  %v1396_v48 = vshrl.u32 %v8482_v25, 16  ;;  %v1399_v49 = vshll.u32 %v8482_v25, 16  ;;  %v825_v40 = vshrl.u32 %v6594_v3, 16  ;;  %v7740_v5 = vld [vmem:[#allocation2 + $0x40] sm:$0xf] }
  0xbf   : > { %v8493_v22 = vld [vmem:[#allocation2 + $0x88] sm:$0xf]  ;;  %v1123_v0 = vld [vmem:[#allocation2 + $0x8c] sm:$0x1]  ;;  %v1384_v47 = vsel %vm7977_vm9, %v1379_v6, %v1383_v15  ;;  %v819_v21 = vrot.slane %v817_v63, 7  ;;  %7199 = vmatpush3.bf16.msra.mxu0 %v7658_v52  ;;  %v828_v28 = vshll.u32 %v6594_v3, 16  ;;  %v372_v57 = vadd.f32 %v8499_v35, %v333_v46 }
  0xc0   : > { %v1405_v38 = vshll.u32 %v8493_v22, 16  ;;  %v1409_v18 = vshrl.u32 %v8493_v22, 16  ;;  %v1394_v29 = vsel %vm7977_vm9, %v1389_v17, %v1393_v36  ;;  %v1398_v51 = vrot.slane %v1396_v48, 4  ;;  %7200 = vmatprep.subr.bf16.mxu0 %v7662_v37  ;;  %v1033_v36 = vld [vmem:[#allocation2 + $0x98] sm:$0x1] }
  0xc1   : > { %v1415_v55 = vshll.u32 %v1123_v0, 16  ;;  %v6201_v45 = vcombine.low %v1384_v47, %v1394_v29  ;;  %v1401_v34 = vrot.slane %v1399_v49, 5  ;;  %v822_v27 = vor.u32 %v820_v41, %v819_v21  ;;  %v7741_v63 = vld [vmem:[#allocation2 + $0x44] sm:$0x1]  ;;  %v3740_v46 = vld [vmem:[#allocation2 + $0x48] sm:$0xe] }
  0xc2   : > { %v1407_v16 = vrot.slane %v1405_v38, 5  ;;  %v1411_v12 = vrot.slane %v1409_v18, 4  ;;  %v823_v56 = vrot.slane %v819_v21, 4  ;;  %v827_v2 = vrot.slane %v825_v40, 7  ;;  %v1036_v38 = vld [vmem:[#allocation2 + $0x9c] sm:$0xf] }
  0xc3   : > { %v1417_v43 = vrot.slane %v1415_v55, 5  ;;  %6934 = vmatprep.mubr.bf16.mxu1 %v6201_v45  ;;  %v1402_v61 = vor.u32 %v1401_v34, %v1398_v51  ;;  %v1030_v4 = vsel %vm7990_vm10, %v822_v27, %v1029_v9  ;;  %v403_v58 = vmax.f32 %v371_v10, 0.0  ;;  %7201 = vmatpush3.bf16.msra.mxu0 %v7662_v37  ;;  %v479_v9 = vld [vmem:[#allocation2 + $0xa8] sm:$0x1] }
  0xc4   : > { %v1412_v62 = vor.u32 %v1411_v12, %v1407_v16  ;;  %v6658_v52 = vunpack.c.h.bf16 %v8476_v60  ;;  %1031 = vst [vmem:[#allocation2 + $0x90] sm:$0xf] %v1030_v4  ;;  %v404_v33 = vmax.f32 %v372_v57, 0.0  ;;  %v6379_v31 = vrot.slane %v3739_v54, 9  ;;  %7234 = vmatprep.subr.bf16.mxu0 %v7667_v42 }
  0xc5   : > { %v1403_v15 = vrot.slane %v1402_v61, 4  ;;  %v830_v11 = vor.u32 %v828_v28, %v827_v2  ;;  %v832_v23 = vrot.slane %v827_v2, 4  ;;  %v6595_v8 = vpack.c.bf16 %v403_v58, %v403_v58  ;;  %v535_v2 = vld [vmem:[#allocation2 + $0xb0] sm:$0x1] }
  0xc6   : > { %v1413_v50 = vrot.slane %v1412_v62, 4  ;;  %v3829_v3 = vrot.slane %v7740_v5, 5  ;;  %v6596_v6 = vpack.c.bf16 %v404_v33, %v404_v33  ;;  %v3832_v41 = vrot.slane %v7741_v63, 5 }
  0xc7   : > { %v1408_v39 = vsel %vm7977_vm9, %v1403_v15, %v1407_v16  ;;  %v831_v17 = vsel %vm7997_vm11, %v823_v56, %v830_v11  ;;  %v1034_v0 = vsel %vm7912_vm3, %v832_v23, %v1033_v36  ;;  %v834_v48 = vshrl.u32 %v6595_v8, 16  ;;  %v1040_v56 = vld [vmem:[#allocation2 + $0xa4] sm:$0x1] }
  0xc8   : > { %v1418_v30 = vsel %vm7977_vm9, %v1413_v50, %v1417_v43  ;;  %1032 = vst [vmem:[#allocation2 + $0x94] sm:$0xf] %v831_v17  ;;  %1035 = vst [vmem:[#allocation2 + $0x98] sm:$0x1] %v1034_v0  ;;  %v837_v10 = vshll.u32 %v6595_v8, 16  ;;  %v842_v47 = vshrl.u32 %v6596_v6, 16  ;;  %v3830_v18 = vsel %vm8361_vm14, %v6379_v31, %v3829_v3 }
  0xc9   : > { %v6202_v37 = vcombine.low %v1408_v39, %v1418_v30  ;;  %v845_v49 = vshll.u32 %v6596_v6, 16  ;;  %v836_v29 = vrot.slane %v834_v48, 7  ;;  %v3831_v51 = vrot.slane %v3829_v3, 4  ;;  %v6680_v30 = vld [vmem:[%s7908_s24 + $0x70] sm:$0xff]  }
  0xca   : > { %v6380_v55 = vrot.slane %v3740_v46, 9  ;;  %v3836_v21 = vrot.slane %v8278_v44, 5  ;;  %v844_v45 = vrot.slane %v842_v47, 7  ;;  %v3839_v34 = vrot.slane %v8280_v32, 5 }
  0xcb   : > { %6935 = vmatmul.mubr.bf16.gmra.mrb[20].mxu1 %v6202_v37  ;;  %v334_v16 = vmul.f32 %v8487_v59, %v6657_v26  ;;  %v335_v12 = vmul.f32 %v8487_v59, %v6658_v52  ;;  %v8533_v42 = vld [vmem:[#allocation2 + $0x90] sm:$0xf]  ;;  %v839_v43 = vor.u32 %v837_v10, %v836_v29  ;;  %v840_v27 = vrot.slane %v836_v29, 4  ;;  %v482_v37 = vld [vmem:[#allocation2 + $0xb4] sm:$0x1] }
  0xcc   : > { %v3833_v40 = vsel %vm8361_vm14, %v3831_v51, %v3832_v41  ;;  %v3837_v44 = vsel %vm8361_vm14, %v6380_v55, %v3836_v21  ;;  %v1420_v32 = vshrl.u32 %v8533_v42, 16  ;;  %v1423_v60 = vshll.u32 %v8533_v42, 16 }
  0xcd   : > { %v847_v54 = vor.u32 %v845_v49, %v844_v45  ;;  %v849_v26 = vrot.slane %v844_v45, 4  ;;  %v1037_v61 = vsel %vm7990_vm10, %v839_v43, %v1036_v38  ;;  %v6411_v62 = vcombine.low %v3830_v18, %v3833_v40 }
  0xce   : > { %v3838_v28 = vrot.slane %v3836_v21, 4  ;;  %v373_v57 = vadd.f32 %v8499_v35, %v334_v16  ;;  %v1422_v4 = vrot.slane %v1420_v32, 4  ;;  %v1425_v58 = vrot.slane %v1423_v60, 5  ;;  %1038 = vst [vmem:[#allocation2 + $0x9c] sm:$0xf] %v1037_v61 }
  0xcf   : > { %v848_v52 = vsel %vm7997_vm11, %v840_v27, %v847_v54  ;;  %v1041_v15 = vsel %vm7912_vm3, %v849_v26, %v1040_v56  ;;  %v8548_v50 = vld [vmem:[#allocation2 + $0x94] sm:$0xf]  ;;  %v1124_v36 = vld [vmem:[#allocation2 + $0x98] sm:$0x1]  ;;  %7162 = vmatprep.mubr.bf16.mxu0 %v6411_v62  ;;  %v374_v31 = vadd.f32 %v8499_v35, %v335_v12  ;;  %v480_v23 = vsel %vm7912_vm3, 0, %v479_v9 }
  0xd0   : > { %1039 = vst [vmem:[#allocation2 + $0xa0] sm:$0xf] %v848_v52  ;;  %1042 = vst [vmem:[#allocation2 + $0xa4] sm:$0x1] %v1041_v15  ;;  %v3840_v33 = vsel %vm8361_vm14, %v3838_v28, %v3839_v34  ;;  %v405_v11 = vmax.f32 %v373_v57, 0.0  ;;  %v1426_v8 = vor.u32 %v1425_v58, %v1422_v4  ;;  %v1429_v5 = vshll.u32 %v8548_v50, 16 }
  0xd1   : > { %v1433_v3 = vshrl.u32 %v8548_v50, 16  ;;  %v1439_v39 = vshll.u32 %v1124_v36, 16  ;;  %481 = vst [vmem:[#allocation2 + $0xa8] sm:$0x1] %v480_v23  ;;  %v6412_v6 = vcombine.low %v3837_v44, %v3840_v33  ;;  %v406_v63 = vmax.f32 %v374_v31, 0.0 }
  0xd2   : > { %v536_v41 = vsel %vm7923_vm4, 0, %v535_v2  ;;  %v6597_v46 = vpack.c.bf16 %v405_v11, %v405_v11  ;;  %v1427_v17 = vrot.slane %v1426_v8, 4  ;;  %v1431_v0 = vrot.slane %v1429_v5, 5  ;;  %v538_v4 = vld [vmem:[#allocation2 + $0xbc] sm:$0x1] }
  0xd3   : > { %v1435_v48 = vrot.slane %v1433_v3, 4  ;;  %537 = vst [vmem:[#allocation2 + $0xb0] sm:$0x1] %v536_v41  ;;  %v1441_v10 = vrot.slane %v1439_v39, 5  ;;  %7163 = vmatmul.mubr.bf16.gmra.mrb[8].mxu0 %v6412_v6  ;;  %v6598_v47 = vpack.c.bf16 %v406_v63, %v406_v63  ;;  %v6661_v38 = vunpack.c.l.bf16 %v6680_v30  ;;  %v3741_v33 = vld [vmem:[#allocation2 + $0x54] sm:$0xe] }
  0xd4   : > { %v851_v49 = vshrl.u32 %v6597_v46, 16  ;;  %v854_v29 = vshll.u32 %v6597_v46, 16  ;;  %v6662_v51 = vunpack.c.h.bf16 %v6680_v30  ;;  %v483_v55 = vsel %vm7912_vm3, 0, %v482_v37 }
  0xd5   : > { %v1436_v18 = vor.u32 %v1435_v48, %v1431_v0  ;;  %v1432_v21 = vsel %vm7977_vm9, %v1427_v17, %v1431_v0  ;;  %v8564_v45 = vld [vmem:[#allocation2 + $0x9c] sm:$0xf]  ;;  %v859_v16 = vshrl.u32 %v6598_v47, 16  ;;  %v862_v12 = vshll.u32 %v6598_v47, 16  ;;  %484 = vst [vmem:[#allocation2 + $0xb4] sm:$0x1] %v483_v55 }
  0xd6   : > { %v853_v34 = vrot.slane %v851_v49, 7  ;;  %v1444_v56 = vshrl.u32 %v8564_v45, 16  ;;  %v336_v40 = vmul.f32 %v8487_v59, %v6661_v38  ;;  %v337_v44 = vmul.f32 %v8487_v59, %v6662_v51  ;;  %v3742_v55 = vld [vmem:[#allocation2 + $0x60] sm:$0xe] }
  0xd7   : > { %v1437_v9 = vrot.slane %v1436_v18, 4  ;;  %v8566_v43 = vld [vmem:[#allocation2 + $0xa0] sm:$0xf]  ;;  %v1125_v27 = vld [vmem:[#allocation2 + $0xa4] sm:$0x1]  ;;  %v1447_v32 = vshll.u32 %v8564_v45, 16 }
  0xd8   : > { %v1453_v60 = vshll.u32 %v8566_v43, 16  ;;  %v1457_v54 = vshrl.u32 %v8566_v43, 16  ;;  %v1463_v26 = vshll.u32 %v1125_v27, 16  ;;  %v1043_v61 = vld [vmem:[#allocation2 + $0xa8] sm:$0xf]  ;;  %v1446_v28 = vrot.slane %v1444_v56, 4 }
  0xd9   : > { %v1442_v62 = vsel %vm7977_vm9, %v1437_v9, %v1441_v10  ;;  %v856_v57 = vor.u32 %v854_v29, %v853_v34  ;;  %v857_v2 = vrot.slane %v853_v34, 4  ;;  %v1449_v52 = vrot.slane %v1447_v32, 5  ;;  %v7742_v10 = vld [vmem:[#allocation2 + $0x58] sm:$0xf]  ;;  %v7743_v29 = vld [vmem:[#allocation2 + $0x5c] sm:$0x1] }
  0xda   : > { %v6203_v58 = vcombine.low %v1432_v21, %v1442_v62  ;;  %v1455_v15 = vrot.slane %v1453_v60, 5  ;;  %v1459_v36 = vrot.slane %v1457_v54, 4  ;;  %v1465_v31 = vrot.slane %v1463_v26, 5  ;;  %v1047_v39 = vld [vmem:[#allocation2 + $0xb0] sm:$0x1] }
  0xdb   : > { %v861_v11 = vrot.slane %v859_v16, 7  ;;  %v1044_v23 = vsel %vm7990_vm10, %v856_v57, %v1043_v61  ;;  %v375_v8 = vadd.f32 %v8499_v35, %v336_v40  ;;  %v1450_v5 = vor.u32 %v1449_v52, %v1446_v28  ;;  %v3743_v26 = vld [vmem:[#allocation2 + $0x6c] sm:$0xe] }
  0xdc   : > { %6938 = vmatprep.mubr.bf16.mxu1 %v6203_v58  ;;  %v1460_v3 = vor.u32 %v1459_v36, %v1455_v15  ;;  %1045 = vst [vmem:[#allocation2 + $0xa8] sm:$0xf] %v1044_v23  ;;  %v376_v30 = vadd.f32 %v8499_v35, %v337_v44  ;;  %v539_v6 = vsel %vm7923_vm4, 0, %v538_v4  ;;  %v6381_v37 = vrot.slane %v3741_v33, 9 }
  0xdd   : > { %v864_v63 = vor.u32 %v862_v12, %v861_v11  ;;  %v866_v41 = vrot.slane %v861_v11, 4  ;;  %v407_v46 = vmax.f32 %v375_v8, 0.0  ;;  %540 = vst [vmem:[#allocation2 + $0xbc] sm:$0x1] %v539_v6  ;;  %v1451_v17 = vrot.slane %v1450_v5, 4 }
  0xde   : > { %v1461_v0 = vrot.slane %v1460_v3, 4  ;;  %v408_v48 = vmax.f32 %v376_v30, 0.0  ;;  %v3843_v47 = vrot.slane %v7742_v10, 5  ;;  %v3846_v51 = vrot.slane %v7743_v29, 5  ;;  %v3007_v10 = vld [vmem:[#allocation2 + $0x74] sm:$0x1] }
  0xdf   : > { %v865_v49 = vsel %vm7997_vm11, %v857_v2, %v864_v63  ;;  %v1048_v38 = vsel %vm7912_vm3, %v866_v41, %v1047_v39  ;;  %v6599_v18 = vpack.c.bf16 %v407_v46, %v407_v46  ;;  %v1456_v21 = vsel %vm7977_vm9, %v1451_v17, %v1455_v15  ;;  %v3006_v2 = vld [vmem:[#allocation2 + $0x70] sm:$0xf]  ;;  %v1050_v15 = vld [vmem:[#allocation2 + $0xb4] sm:$0xf] }
  0xe0   : > { %v1466_v34 = vsel %vm7977_vm9, %v1461_v0, %v1465_v31  ;;  %1046 = vst [vmem:[#allocation2 + $0xac] sm:$0xf] %v865_v49  ;;  %1049 = vst [vmem:[#allocation2 + $0xb0] sm:$0x1] %v1048_v38  ;;  %v6600_v16 = vpack.c.bf16 %v408_v48, %v408_v48  ;;  %v3844_v12 = vsel %vm8361_vm14, %v6381_v37, %v3843_v47  ;;  %v3845_v40 = vrot.slane %v3843_v47, 4 }
  0xe1   : > { %v6204_v9 = vcombine.low %v1456_v21, %v1466_v34  ;;  %v868_v27 = vshrl.u32 %v6599_v18, 16  ;;  %v871_v56 = vshll.u32 %v6599_v18, 16  ;;  %v6382_v60 = vrot.slane %v3742_v55, 9  ;;  %v3744_v18 = vld [vmem:[#allocation2 + $0x78] sm:$0xe] }
  0xe2   : > { %v876_v44 = vshrl.u32 %v6600_v16, 16  ;;  %v879_v32 = vshll.u32 %v6600_v16, 16  ;;  %v3850_v54 = vrot.slane %v8337_v53, 5  ;;  %v3847_v28 = vsel %vm8361_vm14, %v3845_v40, %v3846_v51  ;;  %v8614_v21 = vld [vmem:[#allocation2 + $0x7c] sm:$0xf] }
  0xe3   : > { %6939 = vmatmul.mubr.bf16.gmra.mrb[24].mxu1 %v6204_v9  ;;  %v8593_v61 = vld [vmem:[#allocation2 + $0xa8] sm:$0xf]  ;;  %v870_v62 = vrot.slane %v868_v27, 7  ;;  %v3853_v57 = vrot.slane %v8339_v13, 5  ;;  %v6413_v36 = vcombine.low %v3844_v12, %v3847_v28  ;;  %v6383_v41 = vrot.slane %v3743_v26, 9 }
  0xe4   : > { %v1468_v4 = vshrl.u32 %v8593_v61, 16  ;;  %v1471_v58 = vshll.u32 %v8593_v61, 16  ;;  %v878_v52 = vrot.slane %v876_v44, 7  ;;  %v3851_v31 = vsel %vm8361_vm14, %v6382_v60, %v3850_v54  ;;  %v1054_v39 = vld [vmem:[#allocation2 + $0xbc] sm:$0x1] }
  0xe5   : > { %v873_v33 = vor.u32 %v871_v56, %v870_v62  ;;  %v874_v53 = vrot.slane %v870_v62, 4  ;;  %v3852_v11 = vrot.slane %v3850_v54, 4  ;;  %7166 = vmatprep.mubr.bf16.mxu0 %v6413_v36  ;;  %v3857_v46 = vrot.slane %v3006_v2, 5  ;;  %v8618_v9 = vld [vmem:[#allocation2 + $0x80] sm:$0x1] }
  0xe6   : > { %v1470_v23 = vrot.slane %v1468_v4, 4  ;;  %v1473_v8 = vrot.slane %v1471_v58, 5  ;;  %v881_v5 = vor.u32 %v879_v32, %v878_v52  ;;  %v883_v3 = vrot.slane %v878_v52, 4  ;;  %v3012_v28 = vld [vmem:[#allocation2 + $0x88] sm:$0xf] }
  0xe7   : > { %v8602_v13 = vld [vmem:[#allocation2 + $0xac] sm:$0xf]  ;;  %v1126_v30 = vld [vmem:[#allocation2 + $0xb0] sm:$0x1]  ;;  %v1051_v6 = vsel %vm7990_vm10, %v873_v33, %v1050_v15  ;;  %v3854_v63 = vsel %vm8361_vm14, %v3852_v11, %v3853_v57  ;;  %v3858_v34 = vsel %vm8361_vm14, %v6383_v41, %v3857_v46  ;;  %v3859_v16 = vrot.slane %v3857_v46, 4 }
  0xe8   : > { %v1474_v37 = vor.u32 %v1473_v8, %v1470_v23  ;;  %v1477_v17 = vshll.u32 %v8602_v13, 16  ;;  %v1481_v0 = vshrl.u32 %v8602_v13, 16  ;;  %v1487_v48 = vshll.u32 %v1126_v30, 16  ;;  %1052 = vst [vmem:[#allocation2 + $0xb4] sm:$0xf] %v1051_v6 }
  0xe9   : > { %v882_v47 = vsel %vm7997_vm11, %v874_v53, %v881_v5  ;;  %v1055_v49 = vsel %vm7912_vm3, %v883_v3, %v1054_v39  ;;  %v6414_v38 = vcombine.low %v3851_v31, %v3854_v63  ;;  %v3860_v12 = vrot.slane %v3007_v10, 5  ;;  %v3745_v57 = vld [vmem:[#allocation2 + $0x84] sm:$0xe]  ;;  %v3013_v58 = vld [vmem:[#allocation2 + $0x8c] sm:$0x1] }
  0xea   : > { %v1475_v29 = vrot.slane %v1474_v37, 4  ;;  %v1479_v51 = vrot.slane %v1477_v17, 5  ;;  %v1483_v55 = vrot.slane %v1481_v0, 4  ;;  %1053 = vst [vmem:[#allocation2 + $0xb8] sm:$0xf] %v882_v47  ;;  %v1489_v56 = vrot.slane %v1487_v48, 5 }
  0xeb   : > { %1056 = vst [vmem:[#allocation2 + $0xbc] sm:$0x1] %v1055_v49  ;;  %7167 = vmatmul.mubr.bf16.gmra.mrb[12].mxu0 %v6414_v38  ;;  %v6384_v40 = vrot.slane %v3744_v18, 9  ;;  %v3861_v44 = vsel %vm8361_vm14, %v3859_v16, %v3860_v12  ;;  %v3864_v32 = vrot.slane %v8614_v21, 5  ;;  %v3867_v62 = vrot.slane %v8618_v9, 5 }
  0xec   : > { %v1484_v27 = vor.u32 %v1483_v55, %v1479_v51  ;;  %v1480_v60 = vsel %vm7977_vm9, %v1475_v29, %v1479_v51  ;;  %v6415_v26 = vcombine.low %v3858_v34, %v3861_v44  ;;  %v3746_v53 = vld [vmem:[#allocation2 + $0x90] sm:$0xe]  ;;  %v6385_v5 = vrot.slane %v3745_v57, 9  ;;  %v3015_v63 = vld [vmem:[#allocation2 + $0x94] sm:$0xf] }
  0xed   : > { %v3866_v4 = vrot.slane %v3864_v32, 4  ;;  %v3865_v33 = vsel %vm8361_vm14, %v6384_v40, %v3864_v32  ;;  %v3871_v37 = vrot.slane %v3012_v28, 5  ;;  %v3874_v17 = vrot.slane %v3013_v58, 5  ;;  %v3016_v0 = vld [vmem:[#allocation2 + $0x98] sm:$0x1] }
  0xee   : > { %v1485_v54 = vrot.slane %v1484_v27, 4  ;;  %7170 = vmatprep.mubr.bf16.mxu0 %v6415_v26  ;;  %v6386_v49 = vrot.slane %v3746_v53, 9  ;;  %v3018_v38 = vld [vmem:[#allocation2 + $0xa0] sm:$0xf]  ;;  %v3878_v51 = vrot.slane %v3015_v63, 5  ;;  %v3259_v14 = vshrl.u32 %v8614_v21, 16 }
  0xef   : > { %v8626_v2 = vld [vmem:[#allocation2 + $0xb4] sm:$0xf]  ;;  %v3868_v8 = vsel %vm8361_vm14, %v3866_v4, %v3867_v62  ;;  %v3872_v18 = vsel %vm8361_vm14, %v6385_v5, %v3871_v37  ;;  %v3873_v29 = vrot.slane %v3871_v37, 4  ;;  %v3019_v55 = vld [vmem:[#allocation2 + $0xa4] sm:$0x1] }
  0xf0   : > { %v1490_v52 = vsel %vm7977_vm9, %v1485_v54, %v1489_v56  ;;  %v1492_v15 = vshrl.u32 %v8626_v2, 16  ;;  %v1495_v36 = vshll.u32 %v8626_v2, 16  ;;  %v6416_v46 = vcombine.low %v3865_v33, %v3868_v8  ;;  %v3747_v34 = vld [vmem:[#allocation2 + $0x9c] sm:$0xe]  ;;  %v3748_v40 = vld [vmem:[#allocation2 + $0xa8] sm:$0xe] }
  0xf1   : > { %v6205_v31 = vcombine.low %v1480_v60, %v1490_v52  ;;  %v8634_v11 = vld [vmem:[#allocation2 + $0xb8] sm:$0xf]  ;;  %v3881_v56 = vrot.slane %v3016_v0, 5  ;;  %v8642_v44 = vld [vmem:[#allocation2 + $0x4] sm:$0xf]  ;;  %v3875_v54 = vsel %vm8361_vm14, %v3873_v29, %v3874_v17  ;;  %v3879_v26 = vsel %vm8361_vm14, %v6386_v49, %v3878_v51 }
  0xf2   : > { %v1127_v23 = vld [vmem:[#allocation2 + $0xbc] sm:$0x1]  ;;  %v1494_v3 = vrot.slane %v1492_v15, 4  ;;  %v1497_v39 = vrot.slane %v1495_v36, 5  ;;  %v1501_v30 = vshll.u32 %v8634_v11, 16  ;;  %v1505_v6 = vshrl.u32 %v8634_v11, 16 }
  0xf3   : > { %6942 = vmatprep.mubr.bf16.mxu1 %v6205_v31  ;;  %v1511_v41 = vshll.u32 %v1127_v23, 16  ;;  %7171 = vmatmul.mubr.bf16.gmra.mrb[16].mxu0 %v6416_v46  ;;  %v7745_v32 = vld [vmem:[#allocation2] sm:$0xf]  ;;  %v3880_v62 = vrot.slane %v3878_v51, 4  ;;  %v3021_v28 = vld [vmem:[#allocation2 + $0xac] sm:$0xf]  ;;  %v6417_v52 = vcombine.low %v3872_v18, %v3875_v54 }
  0xf4   : > { %v1498_v48 = vor.u32 %v1497_v39, %v1494_v3  ;;  %v1503_v10 = vrot.slane %v1501_v30, 5  ;;  %v1507_v47 = vrot.slane %v1505_v6, 4  ;;  %v6215_v60 = vcombine.low %v7745_v32, %v8642_v44  ;;  %v3022_v57 = vld [vmem:[#allocation2 + $0xb0] sm:$0x1]  ;;  %v3749_v23 = vld [vmem:[#allocation2 + $0xb4] sm:$0xe] }
  0xf5   : > { %v1513_v27 = vrot.slane %v1511_v41, 5  ;;  %v6387_v15 = vrot.slane %v3747_v34, 9  ;;  %v3882_v36 = vsel %vm8361_vm14, %v3880_v62, %v3881_v56  ;;  %v3885_v33 = vrot.slane %v3018_v38, 5  ;;  %v6681_v8 = vld [vmem:[%s7908_s24 + $0x78] sm:$0xff]   ;;  %7174 = vmatprep.mubr.bf16.mxu0 %v6417_v52  ;;  %v485_v17 = vld [vmem:[#allocation2 + $0xc0] sm:$0x1] }
  0xf6   : > { %v1499_v16 = vrot.slane %v1498_v48, 4  ;;  %v1508_v12 = vor.u32 %v1507_v47, %v1503_v10  ;;  %v3888_v53 = vrot.slane %v3019_v55, 5  ;;  %v6388_v31 = vrot.slane %v3748_v40, 9  ;;  %v3024_v6 = vld [vmem:[#allocation2 + $0xb8] sm:$0xf] }
  0xf7   : > { %v6418_v3 = vcombine.low %v3879_v26, %v3882_v36  ;;  %v3892_v39 = vrot.slane %v3021_v28, 5  ;;  %v3895_v30 = vrot.slane %v3022_v57, 5  ;;  %v3025_v63 = vld [vmem:[#allocation2 + $0xbc] sm:$0x1]  ;;  %v3886_v46 = vsel %vm8361_vm14, %v6387_v15, %v3885_v33  ;;  %v541_v29 = vld [vmem:[#allocation2 + $0xc8] sm:$0x1] }
  0xf8   : > { %v1504_v4 = vsel %vm7977_vm9, %v1499_v16, %v1503_v10  ;;  %v1509_v58 = vrot.slane %v1508_v12, 4  ;;  %v3887_v37 = vrot.slane %v3885_v33, 4  ;;  %v6389_v10 = vrot.slane %v3749_v23, 9  ;;  %v8672_v54 = vld [vmem:[#allocation2 + $0x10] sm:$0xf]  ;;  %v7653_v15 = vld [vmem:[%s9928_s3 + $0x88] sm:$0xff]  }
  0xf9   : > { %v3893_v0 = vsel %vm8361_vm14, %v6388_v31, %v3892_v39  ;;  %v3894_v48 = vrot.slane %v3892_v39, 4  ;;  %v3899_v49 = vrot.slane %v3024_v6, 5  ;;  %v3902_v38 = vrot.slane %v3025_v63, 5  ;;  %v7750_v23 = vld [vmem:[%s9928_s3 + $0x80] sm:$0xff]   ;;  %v8691_v63 = vld [vmem:[#allocation2 + $0x28] sm:$0xf] }
  0xfa   : > { %v1514_v5 = vsel %vm7977_vm9, %v1509_v58, %v1513_v27  ;;  %v3889_v47 = vsel %vm8361_vm14, %v3887_v37, %v3888_v53  ;;  %v6665_v18 = vunpack.c.l.bf16 %v6681_v8  ;;  %v6666_v34 = vunpack.c.h.bf16 %v6681_v8  ;;  %v8678_v58 = vld [vmem:[#allocation2 + $0x1c] sm:$0xf]  ;;  %v7751_v6 = vld [vmem:[#allocation2 + $0x24] sm:$0xf]  ;;  %v7753_v37 = vld [vmem:[#allocation2 + $0x30] sm:$0xf] }
  0xfb   : > { %v6206_v41 = vcombine.low %v1504_v4, %v1514_v5  ;;  %7175 = vmatmul.mubr.bf16.gmra.mrb[20].mxu0 %v6418_v3  ;;  %v6419_v51 = vcombine.low %v3886_v46, %v3889_v47  ;;  %v3896_v55 = vsel %vm8361_vm14, %v3894_v48, %v3895_v30  ;;  %v486_v16 = vsel %vm7912_vm3, 0, %v485_v17  ;;  %v7748_v4 = vld [vmem:[#allocation2 + $0x18] sm:$0xf]  ;;  %v8694_v17 = vld [vmem:[#allocation2 + $0x34] sm:$0xf] }
  0xfc   : > { %v3901_v12 = vrot.slane %v3899_v49, 4  ;;  %v338_v27 = vmul.f32 %v8487_v59, %v6665_v18  ;;  %487 = vst [vmem:[#allocation2 + $0xc0] sm:$0x1] %v486_v16  ;;  %v3900_v56 = vsel %vm8361_vm14, %v6389_v10, %v3899_v49  ;;  %v339_v40 = vmul.f32 %v8487_v59, %v6666_v34  ;;  %v7661_v47 = vld [vmem:[%s9928_s3 + $0x98] sm:$0xff]  }
  0xfd   : > { %6943 = vmatmul.mubr.bf16.gmra.mrb[28].mxu1 %v6206_v41  ;;  %7178 = vmatprep.mubr.bf16.mxu0 %v6419_v51  ;;  %v542_v32 = vsel %vm7923_vm4, 0, %v541_v29  ;;  %v6420_v62 = vcombine.low %v3893_v0, %v3896_v55  ;;  %v6217_v59 = vcombine.low %v7748_v4, %v8678_v58  ;;  %v6218_v41 = vcombine.low %v7751_v6, %v8691_v63  ;;  %v2111_v6 = vld [vmem:[#allocation2 + $0xc] sm:$0xe] }
  0xfe   : > { %6962 = vmatprep.mubr.bf16.mxu1 %v6215_v60  ;;  %v7746_v60 = vld [vmem:[#allocation2 + $0xc] sm:$0xf]  ;;  %v3903_v28 = vsel %vm8361_vm14, %v3901_v12, %v3902_v38  ;;  %v377_v57 = vadd.f32 %v8499_v35, %v338_v27  ;;  %543 = vst [vmem:[#allocation2 + $0xc8] sm:$0x1] %v542_v32  ;;  %v378_v52 = vadd.f32 %v8499_v35, %v339_v40  ;;  %v7657_v35 = vld [vmem:[%s9928_s3 + $0x90] sm:$0xff]   ;;  %v7665_v12 = vld [vmem:[%s9928_s3 + $0xa0] sm:$0xff]  }
  0xff   : > { %v6216_v26 = vcombine.low %v7746_v60, %v8672_v54  ;;  %v6421_v36 = vcombine.low %v3900_v56, %v3903_v28  ;;  %v6219_v0 = vcombine.low %v7753_v37, %v8694_v17  ;;  %v488_v27 = vld [vmem:[#allocation2 + $0xcc] sm:$0x1]  ;;  %v7755_v56 = vld [vmem:[#allocation2 + $0x3c] sm:$0xf]  ;;  %v7757_v32 = vld [vmem:[#allocation2 + $0x48] sm:$0xf] }
 0x100   : > { %v409_v33 = vmax.f32 %v377_v57, 0.0  ;;  %v410_v53 = vmax.f32 %v378_v52, 0.0  ;;  %v6220_v40 = vcombine.low %v7755_v56, %v8709_v20  ;;  %v6221_v60 = vcombine.low %v7757_v32, %v8712_v24 }
 0x101   : > { %v2163_v37 = vrot.slane %v8642_v44, 5 }
 0x102   : > { %v6601_v31 = vpack.c.bf16 %v409_v33, %v409_v33  ;;  %v6602_v8 = vpack.c.bf16 %v410_v53, %v410_v53  ;;  %v3255_v33 = vshll.u32 %v8614_v21, 16  ;;  %v8725_v53 = vld [vmem:[#allocation2 + $0x58] sm:$0xf] }
 0x103   : > { %7179 = vmatmul.mubr.bf16.gmra.mrb[24].mxu0 %v6420_v62  ;;  %v1057_v10 = vld [vmem:[#allocation2 + $0xc0] sm:$0xf]  ;;  %v489_v62 = vsel %vm7912_vm3, 0, %v488_v27 }
 0x104   : > { %7182 = vmatprep.mubr.bf16.mxu0 %v6421_v36  ;;  %v885_v5 = vshrl.u32 %v6601_v31, 16  ;;  %v888_v3 = vshll.u32 %v6601_v31, 16  ;;  %v893_v39 = vshrl.u32 %v6602_v8, 16  ;;  %v896_v30 = vshll.u32 %v6602_v8, 16  ;;  %490 = vst [vmem:[#allocation2 + $0xcc] sm:$0x1] %v489_v62 }
 0x105   : > { %6963 = vmatmul.mubr.bf16.vlgmr.msra.gmra.mrb[0].mxu1 %v6216_v26  ;;  %v1061_v18 = vld [vmem:[#allocation2 + $0xc8] sm:$0x1]  ;;  %v7677_v36 = vld [vmem:[%s9928_s3 + $0xb0] sm:$0xff]   ;;  %v7765_v27 = vld [vmem:[#allocation2 + $0x20] sm:$0x1]  ;;  %v2184_v62 = vrot.slane %v8691_v63, 5  ;;  %v6227_v63 = vcombine.low %v8533_v42, %v8548_v50 }
 0x106   : > { %6995 = vmatpush3.bf16.msra.mxu1 %v7750_v23  ;;  %6966 = vmatprep.mubr.bf16.mxu1 %v6217_v59  ;;  %v887_v46 = vrot.slane %v885_v5, 7  ;;  %v895_v48 = vrot.slane %v893_v39, 7  ;;  %v7671_v26 = vld [vmem:[%s9928_s3 + $0xa8] sm:$0xff]   ;;  %v7760_v31 = vld [vmem:[#allocation2 + $0x54] sm:$0xf]  ;;  %v2180_v56 = vrot.slane %v7765_v27, 5 }
 0x107   : > { %6996 = vmatprep.subr.bf16.mxu1 %v7653_v15  ;;  %v6222_v23 = vcombine.low %v7760_v31, %v8725_v53  ;;  %v7761_v5 = vld [vmem:[#allocation2 + $0x60] sm:$0xf]  ;;  %v2191_v31 = vrot.slane %v8694_v17, 5  ;;  %v7673_v17 = vld [vmem:[%s9928_s3 + $0x1c8] sm:$0xff]   ;;  %v7777_v50 = vld [vmem:[#allocation2 + $0x74] sm:$0x1] }
 0x108   : > { %v890_v49 = vor.u32 %v888_v3, %v887_v46  ;;  %v891_v38 = vrot.slane %v887_v46, 4  ;;  %v898_v29 = vor.u32 %v896_v30, %v895_v48  ;;  %v900_v51 = vrot.slane %v895_v48, 4  ;;  %v8730_v3 = vld [vmem:[#allocation2 + $0x64] sm:$0xf]  ;;  %v2110_v30 = vld [vmem:[#allocation2] sm:$0xe] }
 0x109   : > { %v6223_v39 = vcombine.low %v7761_v5, %v8730_v3  ;;  %v7666_v46 = vld [vmem:[#allocation2 + $0x18] sm:$0xff]   ;;  %v2177_v48 = vrot.slane %v8678_v58, 5  ;;  %v6240_v58 = vrot.slane %v2111_v6, 9 }
 0x10a   : > { %6997 = vmatpush3.bf16.msra.mxu1 %v7653_v15  ;;  %v1058_v55 = vsel %vm7990_vm10, %v890_v49, %v1057_v10  ;;  %v899_v34 = vsel %vm7997_vm11, %v891_v38, %v898_v29  ;;  %v1062_v16 = vsel %vm7912_vm3, %v900_v51, %v1061_v18  ;;  %v8738_v10 = vrot.slane %v3255_v33, 5  ;;  %v7683_v18 = vld [vmem:[%s9928_s3 + $0xb8] sm:$0xff]   ;;  %v7763_v29 = vld [vmem:[#allocation2 + $0x8] sm:$0x1] }
 0x10b   : > { %6998 = vmatprep.subr.bf16.mxu1 %v7657_v35  ;;  %1059 = vst [vmem:[#allocation2 + $0xc0] sm:$0xf] %v1058_v55  ;;  %1060 = vst [vmem:[#allocation2 + $0xc4] sm:$0xf] %v899_v34  ;;  %v3265_v49 = vshll.u32 %v8618_v9, 16  ;;  %v2166_v51 = vrot.slane %v7763_v29, 5  ;;  %v6226_v33 = vcombine.low %v8482_v25, %v8493_v22 }
 0x10c   : > { %1063 = vst [vmem:[#allocation2 + $0xc8] sm:$0x1] %v1062_v16  ;;  %9952 = vst [vmem:[#allocation3_spill] sm:$0xff] %v8738_v10  ;;  %v7764_v55 = vld [vmem:[#allocation2 + $0x14] sm:$0x1]  ;;  %v2165_v16 = vrot.slane %v2163_v37, 4 }
 0x10d   : > { %6967 = vmatmul.mubr.bf16.gmra.mrb[4].mxu1 %v6218_v41  ;;  %v2112_v41 = vld [vmem:[#allocation2 + $0x18] sm:$0xe]  ;;  %v2173_v44 = vrot.slane %v7764_v55, 5  ;;  %v2179_v9 = vrot.slane %v2177_v48, 4  ;;  %v8748_v32 = vrot.slane %v3265_v49, 5 }
 0x10e   : > { %6970 = vmatprep.mubr.bf16.mxu1 %v6219_v0  ;;  %6999 = vmatpush3.bf16.msra.mxu1 %v7657_v35  ;;  %v2170_v0 = vrot.slane %v8672_v54, 5  ;;  %v6239_v54 = vrot.slane %v2110_v30, 9  ;;  %v6241_v34 = vrot.slane %v2112_v41, 9  ;;  %v2115_v5 = vld [vmem:[#allocation2 + $0x3c] sm:$0xe]  ;;  %v8784_v30 = vsel %vm8361_vm14, %v2165_v16, %v2166_v51  ;;  %v7772_v16 = vld [vmem:[%s9928_s3 + $0x1c0] sm:$0xff]  }
 0x10f   : > { %7000 = vmatprep.subr.bf16.mxu1 %v7661_v47  ;;  %9953 = vst [vmem:[#allocation4_spill] sm:$0xff] %v8748_v32  ;;  %v8792_v41 = vsel %vm8361_vm14, %v2179_v9, %v2180_v56  ;;  %v8796_v49 = vld [vmem:[#allocation2 + $0x48] sm:$0xe]  ;;  %v7771_v29 = vld [vmem:[#allocation2 + $0x38] sm:$0x1]  ;;  %v6244_v55 = vrot.slane %v2115_v5, 9 }
 0x110   : > { %v2194_v51 = vrot.slane %v7771_v29, 5  ;;  %v8831_v5 = vld [vmem:[#allocation2 + $0x54] sm:$0xe]  ;;  %v4624_v29 = vld [vmem:[#allocation2 + $0x28] sm:$0xf] }
 0x112   : > { %7001 = vmatpush3.bf16.msra.mxu1 %v7661_v47  ;;  %v3750_v28 = vld [vmem:[#allocation2 + $0xc0] sm:$0xe]  ;;  %v3027_v57 = vld [vmem:[#allocation2 + $0xc4] sm:$0xf]  ;;  %v8740_v47 = vrot.slane %v3259_v14, 4 }
 0x113   : > { %7002 = vmatprep.subr.bf16.mxu1 %v7665_v12  ;;  %v3028_v4 = vld [vmem:[#allocation2 + $0xc8] sm:$0x1]  ;;  %v6390_v59 = vrot.slane %v3750_v28, 9  ;;  %v3906_v52 = vrot.slane %v3027_v57, 5  ;;  %v7766_v28 = vld [vmem:[#allocation2 + $0x6c] sm:$0xf] }
 0x114   : > { %v3909_v15 = vrot.slane %v3028_v4, 5  ;;  %v8756_v57 = vld [vmem:[#allocation2 + $0x70] sm:$0xf] }
 0x115   : > { %6971 = vmatmul.mubr.bf16.gmra.mrb[8].mxu1 %v6220_v40  ;;  %v3907_v8 = vsel %vm8361_vm14, %v6390_v59, %v3906_v52  ;;  %v3908_v35 = vrot.slane %v3906_v52, 4  ;;  %v3262_v40 = vor.u32 %v8740_v47, %v8738_v10  ;;  %v6224_v4 = vcombine.low %v7766_v28, %v8756_v57  ;;  %v7668_v59 = vld [vmem:[#allocation2 + $0x24] sm:$0xff]   ;;  %v7768_v52 = vld [vmem:[#allocation2 + $0x78] sm:$0xf]  ;;  %v2114_v14 = vld [vmem:[#allocation2 + $0x30] sm:$0xe] }
 0x116   : > { %6974 = vmatprep.mubr.bf16.mxu1 %v6221_v60  ;;  %7003 = vmatpush3.bf16.msra.mxu1 %v7665_v12  ;;  %v2172_v12 = vrot.slane %v2170_v0, 4  ;;  %v8753_v60 = vld [vmem:[%s9928_s3 + $0xc0] sm:$0xff]   ;;  %v2198_v47 = vrot.slane %v8709_v20, 5  ;;  %v4702_v20 = vshll.u32 %v4624_v29, 16 }
 0x117   : > { %7004 = vmatprep.subr.bf16.mxu1 %v7671_v26  ;;  %v3910_v21 = vsel %vm8361_vm14, %v3908_v35, %v3909_v15  ;;  %v8759_v15 = vld [vmem:[#allocation2 + $0x7c] sm:$0xf]  ;;  %v8777_v35 = vsel %vm8361_vm14, %v6241_v34, %v2177_v48  ;;  %v6243_v48 = vrot.slane %v2114_v14, 9 }
 0x118   : > { %v6422_v38 = vcombine.low %v3907_v8, %v3910_v21  ;;  %v8773_v8 = vsel %vm8361_vm14, %v6240_v58, %v2170_v0  ;;  %v8788_v6 = vsel %vm8361_vm14, %v2172_v12, %v2173_v44  ;;  %v4620_v44 = vld [vmem:[#allocation2 + $0x18] sm:$0xf]  ;;  %v7679_v12 = vld [vmem:[%s9928_s3 + $0x1d0] sm:$0xff]   ;;  %v7674_v28 = vld [vmem:[#allocation2 + $0x3c] sm:$0xff]   ;;  %v4706_v58 = vshrl.u32 %v4624_v29, 16 }
 0x119   : > { %v4672_v27 = vshll.u32 %v4620_v44, 16  ;;  %v7776_v29 = vld [vmem:[#allocation2 + $0x68] sm:$0x1] }
 0x11a   : > { %7005 = vmatpush3.bf16.msra.mxu1 %v7671_v26  ;;  %7183 = vmatmul.mubr.bf16.gmra.mrb[28].mxu0 %v6422_v38  ;;  %v2113_v26 = vld [vmem:[#allocation2 + $0x24] sm:$0xe]  ;;  %v4625_v38 = vld [vmem:[#allocation2 + $0x2c] sm:$0x1] }
 0x11b   : > { %7006 = vmatprep.subr.bf16.mxu1 %v7677_v36  ;;  %7202 = vmatprep.mubr.bf16.mxu0 %v7666_v46  ;;  %v6242_v21 = vrot.slane %v2113_v26, 9  ;;  %v2186_v46 = vrot.slane %v2184_v62, 4  ;;  %v4621_v26 = vld [vmem:[#allocation2 + $0x1c] sm:$0xf] }
 0x11c   : > { %v4678_v9 = vshll.u32 %v4621_v26, 16  ;;  %v4682_v34 = vshrl.u32 %v4621_v26, 16 }
 0x11d   : > { %6975 = vmatmul.mubr.bf16.gmra.mrb[12].mxu1 %v6222_v23  ;;  %v8769_v23 = vsel %vm8361_vm14, %v6239_v54, %v2163_v37  ;;  %v7770_v37 = vld [vmem:[#allocation2 + $0x2c] sm:$0x1]  ;;  %v8800_v54 = vrot.slane %v3262_v40, 4  ;;  %v8820_v56 = vsel %vm8361_vm14, %v6242_v21, %v2184_v62  ;;  %v9931_v40 = vrot.slane %v8712_v24, 5  ;;  %v8833_v62 = vld [vmem:[#allocation2 + $0x60] sm:$0xe] }
 0x11e   : > { %6978 = vmatprep.mubr.bf16.mxu1 %v6223_v39  ;;  %7007 = vmatpush3.bf16.msra.mxu1 %v7677_v36  ;;  %v6225_v36 = vcombine.low %v7768_v52, %v8759_v15  ;;  %v7672_v39 = vld [vmem:[#allocation2 + $0x30] sm:$0xff]   ;;  %v2187_v0 = vrot.slane %v7770_v37, 5  ;;  %v2200_v52 = vrot.slane %v2198_v47, 4  ;;  %v6245_v37 = vrot.slane %v8796_v49, 9 }
 0x11f   : > { %7008 = vmatprep.subr.bf16.mxu1 %v7683_v18  ;;  %9954 = vst [vmem:[#allocation5_spill] sm:$0xff] %v8800_v54  ;;  %v2219_v49 = vrot.slane %v8730_v3, 5  ;;  %v6247_v3 = vrot.slane %v8833_v62, 9  ;;  %v8869_v25 = vrot.slane %v4678_v9, 5  ;;  %v4684_v22 = vrot.slane %v4682_v34, 4 }
 0x120   : > { %v7781_v34 = vld [vmem:[#allocation2 + $0x94] sm:$0xf] }
 0x121   : > { %v2221_v62 = vrot.slane %v2219_v49, 4  ;;  %v2247_v54 = vrot.slane %v7781_v34, 5 }
 0x122   : > { %7009 = vmatpush3.bf16.msra.mxu1 %v7683_v18  ;;  %v2193_v18 = vrot.slane %v2191_v31, 4  ;;  %7203 = vmatmul.mubr.bf16.vlgmr.msra.gmra.mrb[0].mxu0 %v7668_v59  ;;  %v8829_v59 = vsel %vm8361_vm14, %v6243_v48, %v2191_v31  ;;  %v7774_v31 = vld [vmem:[#allocation2 + $0x50] sm:$0x1]  ;;  %v4623_v48 = vld [vmem:[#allocation2 + $0x24] sm:$0xf] }
 0x123   : > { %7042 = vmatprep.subr.bf16.mxu1 %v8753_v60  ;;  %7235 = vmatpush3.bf16.msra.mxu0 %v7772_v16  ;;  %v8844_v16 = vld [vmem:[#allocation2 + $0x6c] sm:$0xe]  ;;  %v4693_v26 = vshrl.u32 %v4623_v48, 16 }
 0x124   : > { %7206 = vmatprep.mubr.bf16.mxu0 %v7672_v39  ;;  %7236 = vmatprep.subr.bf16.mxu0 %v7673_v17  ;;  %v7678_v39 = vld [vmem:[#allocation2 + $0x48] sm:$0xff]   ;;  %v8837_v21 = vsel %vm8361_vm14, %v2193_v18, %v2194_v51  ;;  %v2207_v18 = vrot.slane %v9931_v40, 4  ;;  %v6246_v51 = vrot.slane %v8831_v5, 9 }
 0x125   : > { %6979 = vmatmul.mubr.bf16.gmra.mrb[16].mxu1 %v6224_v4  ;;  %v8825_v4 = vsel %vm8361_vm14, %v2186_v46, %v2187_v0  ;;  %v8841_v46 = vsel %vm8361_vm14, %v6244_v55, %v2198_v47  ;;  %v2208_v0 = vrot.slane %v7774_v31, 5  ;;  %v2212_v47 = vrot.slane %v8725_v53, 5  ;;  %v7685_v55 = vld [vmem:[%s9928_s3 + $0x1d8] sm:$0xff]  }
 0x126   : > { %6982 = vmatprep.mubr.bf16.mxu1 %v6225_v36  ;;  %v7773_v36 = vld [vmem:[#allocation2 + $0x44] sm:$0x1]  ;;  %v4696_v31 = vshll.u32 %v4623_v48, 16  ;;  %v7775_v53 = vld [vmem:[#allocation2 + $0x5c] sm:$0x1]  ;;  %v4674_v48 = vrot.slane %v4672_v27, 5 }
 0x127   : > { %v2201_v14 = vrot.slane %v7773_v36, 5  ;;  %v4669_v36 = vshrl.u32 %v4620_v44, 16  ;;  %7237 = vmatpush3.bf16.msra.mxu0 %v7673_v17  ;;  %v2226_v17 = vrot.slane %v8756_v57, 5  ;;  %v2215_v5 = vrot.slane %v7775_v53, 5  ;;  %v7689_v57 = vld [vmem:[%s9928_s3 + $0x1e0] sm:$0xff]  }
 0x128   : > { %7238 = vmatprep.subr.bf16.mxu0 %v7679_v12  ;;  %v6248_v53 = vrot.slane %v8844_v16, 9  ;;  %v4695_v40 = vrot.slane %v4693_v26, 4  ;;  %v4698_v10 = vrot.slane %v4696_v31, 5  ;;  %v4708_v27 = vrot.slane %v4706_v58, 4 }
 0x129   : > { %v8856_v44 = vsel %vm8361_vm14, %v2200_v52, %v2201_v14  ;;  %v4622_v52 = vld [vmem:[#allocation2 + $0x20] sm:$0x1]  ;;  %v4671_v14 = vrot.slane %v4669_v36, 4  ;;  %v2228_v42 = vrot.slane %v2226_v17, 4  ;;  %v9955_v36 = vrot.slane %v8712_v24, 5 }
 0x12a   : > { %7207 = vmatmul.mubr.bf16.gmra.mrb[4].mxu0 %v7674_v28  ;;  %v2222_v28 = vrot.slane %v7776_v29, 5  ;;  %v4685_v26 = vor.u32 %v4684_v22, %v8869_v25  ;;  %v4688_v31 = vshll.u32 %v4622_v52, 16  ;;  %v8893_v24 = vsel %vm8361_vm14, %v6246_v51, %v2212_v47 }
 0x12b   : > { %7210 = vmatprep.mubr.bf16.mxu0 %v7678_v39  ;;  %7239 = vmatpush3.bf16.msra.mxu0 %v7679_v12  ;;  %v8876_v12 = vrot.slane %v4702_v20, 5  ;;  %v7680_v39 = vld [vmem:[#allocation2 + $0x54] sm:$0xff]   ;;  %v8882_v16 = vsel %vm8361_vm14, %v6245_v37, %v9955_v36  ;;  %v4675_v29 = vor.u32 %v4674_v48, %v4671_v14  ;;  %v8889_v20 = vsel %vm8361_vm14, %v2207_v18, %v2208_v0  ;;  %v7693_v37 = vld [vmem:[%s9928_s3 + $0x1e8] sm:$0xff]  }
 0x12c   : > { %7240 = vmatprep.subr.bf16.mxu0 %v7685_v55  ;;  %v8908_v0 = vsel %vm8361_vm14, %v2221_v62, %v2222_v28  ;;  %v8912_v18 = vsel %vm8361_vm14, %v6248_v53, %v2226_v17  ;;  %v4712_v51 = vshll.u32 %v4625_v38, 16  ;;  %v2120_v14 = vld [vmem:[#allocation2 + $0x78] sm:$0xe]  ;;  %v2233_v48 = vrot.slane %v8759_v15, 5  ;;  %v4627_v15 = vld [vmem:[#allocation2 + $0x34] sm:$0xf] }
 0x12d   : > { %6983 = vmatmul.mubr.bf16.gmra.mrb[20].mxu1 %v6226_v33  ;;  %v2214_v33 = vrot.slane %v2212_v47, 4  ;;  %v4626_v47 = vld [vmem:[#allocation2 + $0x30] sm:$0xf]  ;;  %v9957_v17 = vcombine.low %v8593_v61, %v8602_v13  ;;  %v4690_v22 = vrot.slane %v4688_v31, 5  ;;  %v6249_v53 = vrot.slane %v2120_v14, 9 }
 0x12e   : > { %6986 = vmatprep.mubr.bf16.mxu1 %v6227_v63  ;;  %v2229_v63 = vrot.slane %v7777_v50, 5  ;;  %v7684_v50 = vld [vmem:[#allocation2 + $0x60] sm:$0xff]   ;;  %v4720_v62 = vshll.u32 %v4626_v47, 16  ;;  %v7697_v61 = vld [vmem:[%s9928_s3 + $0x1f0] sm:$0xff]   ;;  %v4714_v28 = vrot.slane %v4712_v51, 5  ;;  %v2235_v36 = vrot.slane %v2233_v48, 4 }
 0x12f   : > { %7241 = vmatpush3.bf16.msra.mxu0 %v7685_v55  ;;  %v8897_v58 = vsel %vm8361_vm14, %v2214_v33, %v2215_v5  ;;  %v8904_v55 = vsel %vm8361_vm14, %v6247_v3, %v2219_v49  ;;  %v9956_v5 = vcombine.low %v8564_v45, %v8566_v43  ;;  %v4699_v49 = vor.u32 %v4698_v10, %v4695_v40  ;;  %v2121_v31 = vld [vmem:[#allocation2 + $0x84] sm:$0xe] }
 0x130   : > { %7242 = vmatprep.subr.bf16.mxu0 %v7689_v57  ;;  %v8919_v52 = vsel %vm8361_vm14, %v2228_v42, %v2229_v63  ;;  %v4709_v3 = vor.u32 %v4708_v27, %v8876_v12  ;;  %v4676_v45 = vrot.slane %v4675_v29, 4  ;;  %v4686_v43 = vrot.slane %v4685_v26, 4  ;;  %v4629_v63 = vld [vmem:[#allocation2 + $0x3c] sm:$0xf]  ;;  %v7779_v29 = vld [vmem:[#allocation2 + $0x80] sm:$0x1] }
 0x131   : > { %v4717_v33 = vshrl.u32 %v4626_v47, 16  ;;  %v4700_v27 = vrot.slane %v4699_v49, 4  ;;  %v2236_v26 = vrot.slane %v7779_v29, 5  ;;  %v7688_v47 = vld [vmem:[#allocation2 + $0x78] sm:$0xff]   ;;  %v4726_v51 = vshll.u32 %v4627_v15, 16 }
 0x132   : > { %7211 = vmatmul.mubr.bf16.gmra.mrb[8].mxu0 %v7680_v39  ;;  %v4710_v39 = vrot.slane %v4709_v3, 4  ;;  %v4730_v14 = vshrl.u32 %v4627_v15, 16  ;;  %v4722_v13 = vrot.slane %v4720_v62, 5  ;;  %v4630_v49 = vld [vmem:[#allocation2 + $0x40] sm:$0xf]  ;;  %v4741_v3 = vshrl.u32 %v4629_v63, 16 }
 0x133   : > { %7214 = vmatprep.mubr.bf16.mxu0 %v7684_v50  ;;  %7243 = vmatpush3.bf16.msra.mxu0 %v7689_v57  ;;  %v7778_v57 = vld [vmem:[#allocation2 + $0x88] sm:$0xf]  ;;  %v7686_v50 = vld [vmem:[#allocation2 + $0x6c] sm:$0xff]   ;;  %v4744_v40 = vshll.u32 %v4629_v63, 16  ;;  %v7701_v29 = vld [vmem:[%s9928_s3 + $0x1f8] sm:$0xff]   ;;  %v8947_v10 = vsel %vm8361_vm14, %v6249_v53, %v2233_v48  ;;  %v4705_v62 = vsel %vm7977_vm9, %v4700_v27, %v8876_v12  ;;  %v8961_v48 = vsel %vm8361_vm14, %v2235_v36, %v2236_v26 }
 0x134   : > { %7244 = vmatprep.subr.bf16.mxu0 %v7693_v37  ;;  %v2240_v42 = vrot.slane %v7778_v57, 5  ;;  %v4719_v57 = vrot.slane %v4717_v33, 4  ;;  %v4628_v15 = vld [vmem:[#allocation2 + $0x38] sm:$0x1]  ;;  %v4715_v63 = vsel %vm7977_vm9, %v4710_v39, %v4714_v28  ;;  %v4632_v53 = vld [vmem:[#allocation2 + $0x48] sm:$0xf] }
 0x135   : > { %6987 = vmatmul.mubr.bf16.gmra.mrb[24].mxu1 %v9956_v5  ;;  %v4681_v5 = vsel %vm7977_vm9, %v4676_v45, %v8869_v25  ;;  %v6250_v25 = vrot.slane %v2121_v31, 9  ;;  %v9959_v31 = vcombine.low %v8769_v23, %v8784_v30  ;;  %v4736_v28 = vshll.u32 %v4628_v15, 16  ;;  %v4631_v27 = vld [vmem:[#allocation2 + $0x44] sm:$0x1]  ;;  %v9010_v26 = vld [vmem:[#allocation2 + $0x9c] sm:$0xe] }
 0x136   : > { %6990 = vmatprep.mubr.bf16.mxu1 %v9957_v17  ;;  %v4691_v17 = vsel %vm7977_vm9, %v4686_v43, %v4690_v22  ;;  %v2242_v45 = vrot.slane %v2240_v42, 4  ;;  %v7780_v43 = vld [vmem:[#allocation2 + $0x8c] sm:$0x1]  ;;  %v4723_v12 = vor.u32 %v4722_v13, %v4719_v57  ;;  %v8970_v39 = vrot.slane %v4741_v3, 4  ;;  %v8977_v23 = vld [vmem:[%s9928_s3 + $0x200] sm:$0xff]  }
 0x137   : > { %7245 = vmatpush3.bf16.msra.mxu0 %v7693_v37  ;;  %v2243_v22 = vrot.slane %v7780_v43, 5  ;;  %v9958_v37 = vcombine.low %v8626_v2, %v8634_v11  ;;  %v8952_v33 = vcombine.low %v4681_v5, %v4691_v17  ;;  %v8966_v2 = vrot.slane %v4726_v51, 5  ;;  %v8968_v43 = vld [vmem:[#allocation2 + $0x4c] sm:$0xf]  ;;  %9961 = vst [vmem:[#allocation7_spill] sm:$0xff] %v8977_v23  ;;  %v7690_v3 = vld [vmem:[#allocation2 + $0x84] sm:$0xff]  }
 0x138   : > { %7246 = vmatprep.subr.bf16.mxu0 %v7697_v61  ;;  %v4732_v11 = vrot.slane %v4730_v14, 4  ;;  %v4750_v5 = vshll.u32 %v4630_v49, 16  ;;  %v4754_v17 = vshrl.u32 %v4630_v49, 16  ;;  %9960 = vst [vmem:[#allocation6_spill] sm:$0xff] %v8968_v43  ;;  %v8972_v36 = vrot.slane %v4744_v40, 5 }
 0x139   : > { %v8979_v30 = vcombine.low %v4705_v62, %v4715_v63  ;;  %v8989_v13 = vsel %vm8361_vm14, %v2242_v45, %v2243_v22  ;;  %v8991_v40 = vld [vmem:[#allocation2 + $0x90] sm:$0xe]  ;;  %v4768_v51 = vshll.u32 %v4632_v53, 16  ;;  %v4774_v14 = vshll.u32 %v8968_v43, 16  ;;  %v8995_v49 = vld [vmem:[#allocation2 + $0x58] sm:$0xf] }
 0x13a   : > { %7215 = vmatmul.mubr.bf16.gmra.mrb[12].mxu0 %v7686_v50  ;;  %v4635_v50 = vld [vmem:[#allocation2 + $0x54] sm:$0xf]  ;;  %v4778_v57 = vshrl.u32 %v8968_v43, 16  ;;  %9962 = vst [vmem:[#allocation8_spill] sm:$0xff] %v8995_v49  ;;  %v9001_v45 = vrot.slane %v4750_v5, 5  ;;  %v4756_v22 = vrot.slane %v4754_v17, 4 }
 0x13b   : > { %7218 = vmatprep.mubr.bf16.mxu0 %v7688_v47  ;;  %7247 = vmatpush3.bf16.msra.mxu0 %v7697_v61  ;;  %v8985_v61 = vsel %vm8361_vm14, %v6250_v25, %v2240_v42  ;;  %v4765_v47 = vshrl.u32 %v4632_v53, 16  ;;  %v7691_v42 = vld [vmem:[%s9928_s3 + $0xc8] sm:$0xff]   ;;  %v4733_v25 = vor.u32 %v4732_v11, %v8966_v2  ;;  %v4760_v15 = vshll.u32 %v4631_v27, 16  ;;  %v9013_v11 = vld [vmem:[#allocation2 + $0x50] sm:$0x1] }
 0x13c   : > { %7248 = vmatprep.subr.bf16.mxu0 %v7701_v29  ;;  %v9003_v62 = vrot.slane %v4723_v12, 4  ;;  %v9005_v63 = vrot.slane %v4736_v28, 5  ;;  %v4747_v53 = vor.u32 %v8972_v36, %v8970_v39  ;;  %9963 = vst [vmem:[#allocation9_spill] sm:$0xff] %v9013_v11  ;;  %v4789_v5 = vshrl.u32 %v4635_v50, 16 }
 0x13d   : > { %6991 = vmatmul.mubr.bf16.gmra.mrb[28].mxu1 %v9958_v37  ;;  %v7692_v37 = vld [vmem:[#allocation2 + $0x90] sm:$0xff]   ;;  %v4792_v17 = vshll.u32 %v4635_v50, 16  ;;  %v4798_v27 = vshll.u32 %v8995_v49, 16  ;;  %v9964_v12 = vcombine.low %v8773_v8, %v8788_v6  ;;  %v4767_v28 = vrot.slane %v4765_v47, 4  ;;  %v7782_v47 = vld [vmem:[#allocation2 + $0x98] sm:$0x1] }
 0x13e   : > { %7010 = vmatprep.mubr.bf16.mxu1 %v9959_v31  ;;  %v6251_v31 = vrot.slane %v8991_v40, 9  ;;  %v4770_v39 = vrot.slane %v4768_v51, 5  ;;  %v9020_v36 = vrot.slane %v4774_v14, 5  ;;  %v4780_v40 = vrot.slane %v4778_v57, 4  ;;  %v7695_v6 = vld [vmem:[%s9928_s3 + $0xd0] sm:$0xff]  }
 0x13f   : > { %7249 = vmatpush3.bf16.msra.mxu0 %v7701_v29  ;;  %v4802_v29 = vshrl.u32 %v8995_v49, 16  ;;  %v9023_v38 = vrot.slane %v4733_v25, 4  ;;  %v4757_v50 = vor.u32 %v4756_v22, %v9001_v45  ;;  %v9026_v9 = vrot.slane %v4760_v15, 5  ;;  %v7783_v14 = vld [vmem:[#allocation2 + $0xa0] sm:$0xf]  ;;  %v7699_v49 = vld [vmem:[%s9928_s3 + $0xd8] sm:$0xff]  }
 0x140   : > { %7282 = vmatprep.subr.bf16.mxu0 %v8977_v23  ;;  %v9965_v8 = vcombine.low %v8777_v35, %v8792_v41  ;;  %v6252_v51 = vrot.slane %v9010_v26, 9  ;;  %v2254_v57 = vrot.slane %v7783_v14, 5  ;;  %v4791_v25 = vrot.slane %v4789_v5, 4  ;;  %v2124_v26 = vld [vmem:[#allocation2 + $0xa8] sm:$0xe] }
 0x141   : > { %v4794_v34 = vrot.slane %v4792_v17, 5  ;;  %v9036_v22 = vrot.slane %v4798_v27, 5  ;;  %v4804_v35 = vrot.slane %v4802_v29, 4  ;;  %v4771_v15 = vor.u32 %v4770_v39, %v4767_v28  ;;  %v7696_v5 = vld [vmem:[#allocation2 + $0xa8] sm:$0xff]   ;;  %v7785_v41 = vld [vmem:[#allocation2 + $0xa4] sm:$0x1] }
 0x142   : > { %7219 = vmatmul.mubr.bf16.gmra.mrb[16].mxu0 %v7690_v3  ;;  %v4784_v3 = vshll.u32 %v9013_v11, 16  ;;  %v4739_v17 = vsel %vm7977_vm9, %v9023_v38, %v9005_v63  ;;  %v4748_v27 = vrot.slane %v4747_v53, 4  ;;  %v9051_v29 = vsel %vm8361_vm14, %v6251_v31, %v2247_v54 }
 0x143   : > { %7222 = vmatprep.mubr.bf16.mxu0 %v7692_v37  ;;  %v7694_v37 = vld [vmem:[#allocation2 + $0x9c] sm:$0xff]   ;;  %v2249_v28 = vrot.slane %v2247_v54, 4  ;;  %v4758_v39 = vrot.slane %v4757_v50, 4  ;;  %v2257_v32 = vrot.slane %v7785_v41, 5  ;;  %v4795_v11 = vor.u32 %v4794_v34, %v4791_v25  ;;  %v7786_v41 = vld [vmem:[#allocation2 + $0xb0] sm:$0x1] }
 0x144   : > { %v4805_v38 = vor.u32 %v4804_v35, %v9036_v22  ;;  %v6253_v53 = vrot.slane %v2124_v26, 9  ;;  %v9966_v54 = vcombine.low %v8820_v56, %v8825_v4  ;;  %v4772_v31 = vrot.slane %v4771_v15, 4  ;;  %v2125_v56 = vld [vmem:[#allocation2 + $0xb4] sm:$0xe] }
 0x145   : > { %7011 = vmatmul.mubr.bf16.vlgmr.msra.gmra.mrb[0].mxu1 %v9964_v12  ;;  %v4781_v12 = vor.u32 %v4780_v40, %v9020_v36  ;;  %v2256_v40 = vrot.slane %v2254_v57, 4  ;;  %v9967_v23 = vcombine.low %v8829_v59, %v8837_v21  ;;  %v4753_v25 = vsel %vm7977_vm9, %v4748_v27, %v9001_v45  ;;  %v7698_v27 = vld [vmem:[#allocation2 + $0xb4] sm:$0xff]  }
 0x146   : > { %7043 = vmatpush3.bf16.msra.mxu1 %v8753_v60  ;;  %7014 = vmatprep.mubr.bf16.mxu1 %v9965_v8  ;;  %v2250_v60 = vrot.slane %v7782_v47, 5  ;;  %v9043_v8 = vld [vmem:[#allocation2 + $0x5c] sm:$0x1]  ;;  %v7784_v47 = vld [vmem:[#allocation2 + $0xac] sm:$0xf]  ;;  %v4763_v15 = vsel %vm7977_vm9, %v4758_v39, %v9026_v9  ;;  %v9076_v59 = vsel %vm8361_vm14, %v6252_v51, %v2254_v57  ;;  %v4806_v26 = vrot.slane %v4805_v38, 4 }
 0x147   : > { %7044 = vmatprep.subr.bf16.mxu1 %v7691_v42  ;;  %v2261_v14 = vrot.slane %v7784_v47, 5  ;;  %v4786_v47 = vrot.slane %v4784_v3, 5  ;;  %v4808_v63 = vshll.u32 %v9043_v8, 16  ;;  %v4782_v50 = vrot.slane %v4781_v12, 4  ;;  %v7788_v38 = vld [vmem:[#allocation2 + $0xbc] sm:$0x1] }
 0x148   : > { %v2264_v3 = vrot.slane %v7786_v41, 5  ;;  %v9069_v34 = vsel %vm8361_vm14, %v2249_v28, %v2250_v60  ;;  %v9080_v21 = vsel %vm8361_vm14, %v2256_v40, %v2257_v32  ;;  %v9082_v60 = vld [vmem:[#allocation2 + $0x64] sm:$0xf]  ;;  %v4796_v12 = vrot.slane %v4795_v11, 4 }
 0x149   : > { %v2263_v43 = vrot.slane %v2261_v14, 4  ;;  %v4810_v9 = vrot.slane %v4808_v63, 5  ;;  %v9089_v51 = vsel %vm8361_vm14, %v6253_v53, %v2261_v14  ;;  %v4777_v32 = vsel %vm7977_vm9, %v4772_v31, %v9020_v36  ;;  %v7700_v40 = vld [vmem:[#allocation2 + $0xc0] sm:$0xff]   ;;  %v9111_v53 = vld [vmem:[#allocation2 + $0x68] sm:$0x1] }
 0x14a   : > { %7045 = vmatpush3.bf16.msra.mxu1 %v7691_v42  ;;  %v4638_v42 = vld [vmem:[#allocation2 + $0x60] sm:$0xf]  ;;  %7223 = vmatmul.mubr.bf16.gmra.mrb[20].mxu0 %v7694_v37  ;;  %v4787_v57 = vsel %vm7977_vm9, %v4782_v50, %v4786_v47  ;;  %v4822_v39 = vshll.u32 %v9082_v60, 16  ;;  %v4826_v14 = vshrl.u32 %v9082_v60, 16  ;;  %v9969_v47 = vsel %vm7977_vm9, %v9003_v62, %v8966_v2 }
 0x14b   : > { %7046 = vmatprep.subr.bf16.mxu1 %v7695_v6  ;;  %v4813_v4 = vshrl.u32 %v4638_v42, 16  ;;  %v4816_v35 = vshll.u32 %v4638_v42, 16  ;;  %7226 = vmatprep.mubr.bf16.mxu0 %v7696_v5  ;;  %v9098_v37 = vsel %vm8361_vm14, %v2263_v43, %v2264_v3  ;;  %v6254_v5 = vrot.slane %v2125_v56, 9 }
 0x14c   : > { %9968 = vst [vmem:[#allocation10_spill] sm:$0xff] %v9098_v37  ;;  %v9109_v43 = vcombine.low %v9969_v47, %v4739_v17  ;;  %v2271_v63 = vrot.slane %v7788_v38, 5  ;;  %v4801_v2 = vsel %vm7977_vm9, %v4796_v12, %v9036_v22  ;;  %v4811_v62 = vsel %vm7977_vm9, %v4806_v26, %v4810_v9  ;;  %v4641_v17 = vld [vmem:[#allocation2 + $0x6c] sm:$0xf]  ;;  %v9138_v22 = vld [vmem:[#allocation2 + $0x70] sm:$0xf] }
 0x14d   : > { %7015 = vmatmul.mubr.bf16.gmra.mrb[4].mxu1 %v9966_v54  ;;  %v4815_v11 = vrot.slane %v4813_v4, 4  ;;  %v4818_v28 = vrot.slane %v4816_v35, 5  ;;  %v9116_v54 = vcombine.low %v4753_v25, %v4763_v15  ;;  %v9970_v50 = vcombine.low %v8841_v46, %v8856_v44  ;;  %v4644_v4 = vld [vmem:[#allocation2 + $0x78] sm:$0xf]  ;;  %v9140_v35 = vld [vmem:[#allocation2 + $0x7c] sm:$0xf] }
 0x14e   : > { %7018 = vmatprep.mubr.bf16.mxu1 %v9967_v23  ;;  %7047 = vmatpush3.bf16.msra.mxu1 %v7695_v6  ;;  %v7787_v23 = vld [vmem:[#allocation2 + $0xb8] sm:$0xf]  ;;  %v7703_v6 = vld [vmem:[%s9928_s3 + $0xe0] sm:$0xff]   ;;  %v9130_v3 = vcombine.low %v4777_v32, %v4787_v57  ;;  %9971 = vst [vmem:[#allocation11_spill] sm:$0xff] %v9140_v35  ;;  %v9972_v46 = vcombine.low %v8882_v16, %v8889_v20  ;;  %v9145_v15 = vrot.slane %v4822_v39, 5  ;;  %v4832_v12 = vshll.u32 %v9111_v53, 16 }
 0x14f   : > { %v2268_v45 = vrot.slane %v7787_v23, 5  ;;  %7048 = vmatprep.subr.bf16.mxu1 %v7699_v49  ;;  %v4819_v44 = vor.u32 %v4818_v28, %v4815_v11  ;;  %v4828_v23 = vrot.slane %v4826_v14, 4  ;;  %v4647_v26 = vld [vmem:[#allocation2 + $0x84] sm:$0xf]  ;;  %v9151_v9 = vcombine.low %v4801_v2, %v4811_v62  ;;  %v9157_v16 = vld [vmem:[#allocation2 + $0x74] sm:$0x1] }
 0x150   : > { %v4837_v20 = vshrl.u32 %v4641_v17, 16  ;;  %v4840_v57 = vshll.u32 %v4641_v17, 16  ;;  %v4864_v11 = vshll.u32 %v4644_v4, 16  ;;  %v9161_v28 = vld [vmem:[#allocation2 + $0x88] sm:$0xf]  ;;  %v4870_v39 = vshll.u32 %v9140_v35, 16 }
 0x151   : > { %v2270_v42 = vrot.slane %v2268_v45, 4  ;;  %v9136_v56 = vsel %vm8361_vm14, %v6254_v5, %v2268_v45  ;;  %v7707_v45 = vld [vmem:[%s9928_s3 + $0xf0] sm:$0xff]   ;;  %v4846_v5 = vshll.u32 %v9138_v22, 16  ;;  %9973 = vst [vmem:[#allocation12_spill] sm:$0xff] %v9161_v28  ;;  %v4874_v14 = vshrl.u32 %v9140_v35, 16  ;;  %v7709_v38 = vld [vmem:[%s9928_s3 + $0xf8] sm:$0xff]  }
 0x152   : > { %7049 = vmatpush3.bf16.msra.mxu1 %v7699_v49  ;;  %v7705_v49 = vld [vmem:[%s9928_s3 + $0xe8] sm:$0xff]   ;;  %7227 = vmatmul.mubr.bf16.gmra.mrb[24].mxu0 %v7698_v27  ;;  %v4850_v27 = vshrl.u32 %v9138_v22, 16  ;;  %v4888_v47 = vshll.u32 %v4647_v26, 16  ;;  %v4829_v2 = vor.u32 %v4828_v23, %v9145_v15  ;;  %v9171_v62 = vrot.slane %v4832_v12, 5  ;;  %v4650_v25 = vld [vmem:[#allocation2 + $0x90] sm:$0xf] }
 0x153   : > { %7050 = vmatprep.subr.bf16.mxu1 %v7703_v6  ;;  %7230 = vmatprep.mubr.bf16.mxu0 %v7700_v40  ;;  %v9155_v32 = vsel %vm8361_vm14, %v2270_v42, %v2271_v63  ;;  %v4885_v40 = vshrl.u32 %v4647_v26, 16  ;;  %v7702_v42 = vld [vmem:[#allocation2 + $0xcc] sm:$0xff]   ;;  %v9168_v63 = vrot.slane %v4819_v44, 4  ;;  %v4856_v17 = vshll.u32 %v9157_v16, 16  ;;  %v9178_v35 = vld [vmem:[#allocation2 + $0x94] sm:$0xf] }
 0x154   : > { %v4898_v26 = vshrl.u32 %v9161_v28, 16  ;;  %v9176_v41 = vrot.slane %v4846_v5, 5  ;;  %v4852_v31 = vrot.slane %v4850_v27, 4  ;;  %v4866_v36 = vrot.slane %v4864_v11, 5  ;;  %v4653_v37 = vld [vmem:[#allocation2 + $0x9c] sm:$0xf] }
 0x155   : > { %7019 = vmatmul.mubr.bf16.gmra.mrb[8].mxu1 %v9970_v50  ;;  %v4839_v50 = vrot.slane %v4837_v20, 4  ;;  %v9974_v23 = vcombine.low %v8893_v24, %v8897_v58  ;;  %v4876_v12 = vrot.slane %v4874_v14, 4  ;;  %v4887_v20 = vrot.slane %v4885_v40, 4  ;;  %v9192_v11 = vld [vmem:[#allocation2 + $0x80] sm:$0x1] }
 0x156   : > { %7022 = vmatprep.mubr.bf16.mxu1 %v9972_v46  ;;  %7051 = vmatpush3.bf16.msra.mxu1 %v7703_v6  ;;  %v4861_v6 = vshrl.u32 %v4644_v4, 16  ;;  %v4842_v4 = vrot.slane %v4840_v57, 5  ;;  %v4894_v46 = vshll.u32 %v9161_v28, 16  ;;  %v4890_v57 = vrot.slane %v4888_v47, 5 }
 0x157   : > { %7052 = vmatprep.subr.bf16.mxu1 %v7705_v49  ;;  %v9975_v5 = vcombine.low %v8904_v55, %v8908_v0  ;;  %v9188_v27 = vrot.slane %v4829_v2, 4  ;;  %v4909_v28 = vshrl.u32 %v4650_v25, 16  ;;  %v4912_v24 = vshll.u32 %v4650_v25, 16  ;;  %v544_v55 = vld [vmem:[#allocation2 + $0xd4] sm:$0x1] }
 0x158   : > { %v4863_v44 = vrot.slane %v4861_v6, 4  ;;  %v9190_v6 = vrot.slane %v4856_v17, 5  ;;  %v9195_v58 = vrot.slane %v4894_v46, 5  ;;  %v4918_v14 = vshll.u32 %v9178_v35, 16 }
 0x159   : > { %v4922_v40 = vshrl.u32 %v9178_v35, 16  ;;  %v4843_v0 = vor.u32 %v4842_v4, %v4839_v50  ;;  %v4853_v47 = vor.u32 %v4852_v31, %v9176_v41  ;;  %v4933_v2 = vshrl.u32 %v4653_v37, 16 }
 0x15a   : > { %7053 = vmatpush3.bf16.msra.mxu1 %v7705_v49  ;;  %v9183_v49 = vrot.slane %v4870_v39, 5  ;;  %7231 = vmatmul.mubr.bf16.gmra.mrb[28].mxu0 %v7702_v42  ;;  %v4900_v39 = vrot.slane %v4898_v26, 4  ;;  %v9200_v42 = vld [vmem:[#allocation2 + $0x8c] sm:$0x1]  ;;  %v4936_v17 = vshll.u32 %v4653_v37, 16  ;;  %v4867_v25 = vor.u32 %v4866_v36, %v4863_v44 }
 0x15b   : > { %7054 = vmatprep.subr.bf16.mxu1 %v7707_v45  ;;  %7250 = vmatprep.mubr.bf16.mxu0 %v8952_v33  ;;  %v4891_v46 = vor.u32 %v4890_v57, %v4887_v20  ;;  %v4825_v26 = vsel %vm7977_vm9, %v9168_v63, %v9145_v15  ;;  %v545_v31 = vsel %vm7923_vm4, 0, %v544_v55  ;;  %v7706_v37 = vld [vmem:[%s9928_s3 + $0x208] sm:$0xff]   ;;  %v4904_v50 = vshll.u32 %v9200_v42, 16 }
 0x15c   : > { %v4877_v33 = vor.u32 %v4876_v12, %v9183_v49  ;;  %v4901_v36 = vor.u32 %v4900_v39, %v9195_v58  ;;  %v9215_v4 = vrot.slane %v4918_v14, 5  ;;  %v4924_v44 = vrot.slane %v4922_v40, 4  ;;  %v9217_v12 = vld [vmem:[#allocation2 + $0xa0] sm:$0xf]  ;;  %546 = vst [vmem:[#allocation2 + $0xd4] sm:$0x1] %v545_v31 }
 0x15d   : > { %7023 = vmatmul.mubr.bf16.gmra.mrb[12].mxu1 %v9974_v23  ;;  %v4911_v23 = vrot.slane %v4909_v28, 4  ;;  %v4844_v28 = vrot.slane %v4843_v0, 4  ;;  %v4854_v20 = vrot.slane %v4853_v47, 4  ;;  %v4935_v57 = vrot.slane %v4933_v2, 4  ;;  %v4656_v47 = vld [vmem:[#allocation2 + $0xa8] sm:$0xf] }
 0x15e   : > { %7026 = vmatprep.mubr.bf16.mxu1 %v9975_v5  ;;  %7055 = vmatpush3.bf16.msra.mxu1 %v7707_v45  ;;  %v4880_v45 = vshll.u32 %v9192_v11, 16  ;;  %v4914_v5 = vrot.slane %v4912_v24, 5  ;;  %v4938_v24 = vrot.slane %v4936_v17, 5  ;;  %v9976_v39 = vcombine.low %v8912_v18, %v8919_v52 }
 0x15f   : > { %7056 = vmatprep.subr.bf16.mxu1 %v7709_v38  ;;  %v4868_v14 = vrot.slane %v4867_v25, 4  ;;  %v4878_v40 = vrot.slane %v4877_v33, 4  ;;  %v4892_v0 = vrot.slane %v4891_v46, 4  ;;  %v9977_v31 = vcombine.low %v8947_v10, %v8961_v48  ;;  %v9978_v25 = vld [vmem:[#allocation7_spill] sm:$0xff]  ;;  %v9244_v48 = vld [vmem:[#allocation2 + $0xa4] sm:$0x1] }
 0x160   : > { %v4882_v55 = vrot.slane %v4880_v45, 5  ;;  %v4835_v2 = vsel %vm7977_vm9, %v9188_v27, %v9171_v62  ;;  %v4915_v17 = vor.u32 %v4914_v5, %v4911_v23  ;;  %v4942_v18 = vshll.u32 %v9217_v12, 16  ;;  %v7708_v62 = vld [vmem:[%s9928_s3 + $0x210] sm:$0xff]   ;;  %v9252_v23 = vld [vmem:[#allocation2 + $0xac] sm:$0xf] }
 0x161   : > { %v4946_v52 = vshrl.u32 %v9217_v12, 16  ;;  %v4902_v33 = vrot.slane %v4901_v36, 4  ;;  %v4925_v45 = vor.u32 %v4924_v44, %v9215_v4  ;;  %v4849_v27 = vsel %vm7977_vm9, %v4844_v28, %v9176_v41 }
 0x162   : > { %7057 = vmatpush3.bf16.msra.mxu1 %v7709_v38  ;;  %v9225_v38 = vld [vmem:[#allocation2 + $0x98] sm:$0x1]  ;;  %7251 = vmatmul.mubr.bf16.vlgmr.msra.gmra.mrb[0].mxu0 %v8979_v30  ;;  %v4906_v30 = vrot.slane %v4904_v50, 5  ;;  %v4939_v46 = vor.u32 %v4938_v24, %v4935_v57  ;;  %v4960_v5 = vshll.u32 %v4656_v47, 16  ;;  %v4859_v36 = vsel %vm7977_vm9, %v4854_v20, %v9190_v6 }
 0x163   : > { %7330 = vmatprep.subr.bf16.mxu1 %v9222_v19  ;;  %7283 = vmatpush3.bf16.msra.mxu0 %v9978_v25  ;;  %v4928_v10 = vshll.u32 %v9225_v38, 16  ;;  %v4873_v50 = vsel %vm7977_vm9, %v4868_v14, %v9183_v49  ;;  %v4883_v44 = vsel %vm7977_vm9, %v4878_v40, %v4882_v55  ;;  %v4897_v41 = vsel %vm7977_vm9, %v4892_v0, %v9195_v58  ;;  %v7710_v6 = vld [vmem:[%s9928_s3 + $0x218] sm:$0xff]   ;;  %v9279_v58 = vld [vmem:[#allocation2 + $0xb0] sm:$0x1] }
 0x164   : > { %7254 = vmatprep.mubr.bf16.mxu0 %v9109_v43  ;;  %7284 = vmatprep.subr.bf16.mxu0 %v7706_v37  ;;  %v4957_v43 = vshrl.u32 %v4656_v47, 16  ;;  %v9265_v28 = vrot.slane %v4915_v17, 4  ;;  %v9267_v57 = vrot.slane %v4942_v18, 5  ;;  %v4948_v24 = vrot.slane %v4946_v52, 4 }
 0x165   : > { %7027 = vmatmul.mubr.bf16.gmra.mrb[16].mxu1 %v9976_v39  ;;  %v4952_v39 = vshll.u32 %v9244_v48, 16  ;;  %v4907_v49 = vsel %vm7977_vm9, %v4902_v33, %v4906_v30  ;;  %v9275_v20 = vrot.slane %v4925_v45, 4  ;;  %v9277_v14 = vrot.slane %v4928_v10, 5  ;;  %v9303_v30 = vld [vmem:[#allocation2 + $0xb4] sm:$0xf] }
 0x166   : > { %7030 = vmatprep.mubr.bf16.mxu1 %v9977_v31  ;;  %v4966_v40 = vshll.u32 %v9252_v23, 16  ;;  %v9282_v55 = vrot.slane %v4939_v46, 4  ;;  %v9284_v0 = vrot.slane %v4957_v43, 4  ;;  %v4970_v47 = vshrl.u32 %v9252_v23, 16  ;;  %v5378_v31 = vld [vmem:[#allocation2 + $0x48] sm:$0xe] }
 0x167   : > { %7285 = vmatpush3.bf16.msra.mxu0 %v7706_v37  ;;  %v9286_v37 = vrot.slane %v4960_v5, 5  ;;  %v9979_v17 = vcombine.low %v8985_v61, %v8989_v13  ;;  %v6286_v18 = vcombine.low %v9136_v56, %v9155_v32  ;;  %v6493_v52 = vcombine.low %v4825_v26, %v4835_v2  ;;  %v5379_v2 = vld [vmem:[#allocation2 + $0x54] sm:$0xe]  ;;  %v5380_v10 = vld [vmem:[#allocation2 + $0x60] sm:$0xe] }
 0x168   : > { %7286 = vmatprep.subr.bf16.mxu0 %v7708_v62  ;;  %v9299_v25 = vcombine.low %v4849_v27, %v4859_v36  ;;  %v9301_v33 = vcombine.low %v4873_v50, %v4883_v44  ;;  %v9980_v61 = vcombine.low %v9051_v29, %v9069_v34  ;;  %v9309_v13 = vcombine.low %v4897_v41, %v4907_v49  ;;  %v7713_v27 = vld [vmem:[%s9928_s3 + $0x220] sm:$0xff]   ;;  %v9981_v5 = vld [vmem:[#allocation6_spill] sm:$0xff]  ;;  %v9982_v50 = vld [vmem:[#allocation9_spill] sm:$0xff] }
 0x169   : > { %v4949_v63 = vor.u32 %v4948_v24, %v9267_v57  ;;  %v9316_v26 = vrot.slane %v4952_v39, 5  ;;  %v4931_v29 = vsel %vm7977_vm9, %v9275_v20, %v9277_v14  ;;  %v9323_v34 = vrot.slane %v4966_v40, 5  ;;  %v9983_v24 = vld [vmem:[#allocation8_spill] sm:$0xff] }
 0x16a   : > { %7255 = vmatmul.mubr.bf16.gmra.mrb[4].mxu0 %v9116_v54  ;;  %v4976_v54 = vshll.u32 %v9279_v58, 16  ;;  %v6515_v45 = vrot.slane %v5378_v31, 9  ;;  %v9335_v46 = vrot.slane %v4970_v47, 4  ;;  %v4981_v43 = vshrl.u32 %v9303_v30, 16 }
 0x16b   : > { %7258 = vmatprep.mubr.bf16.mxu0 %v9130_v3  ;;  %7287 = vmatpush3.bf16.msra.mxu0 %v7708_v62  ;;  %v4963_v62 = vor.u32 %v9286_v37, %v9284_v0  ;;  %v5468_v36 = vrot.slane %v9981_v5, 5  ;;  %v5471_v44 = vrot.slane %v9982_v50, 5  ;;  %v6516_v41 = vrot.slane %v5379_v2, 9 }
 0x16c   : > { %7288 = vmatprep.subr.bf16.mxu0 %v7710_v6  ;;  %v5475_v39 = vrot.slane %v9983_v24, 5  ;;  %v9341_v49 = vrot.slane %v4949_v63, 4  ;;  %v5478_v40 = vrot.slane %v9043_v8, 5  ;;  %v6517_v31 = vrot.slane %v5380_v10, 9  ;;  %v7716_v8 = vld [vmem:[%s9928_s3 + $0x228] sm:$0xff]   ;;  %v9985_v24 = vld [vmem:[#allocation10_spill] sm:$0xff] }
 0x16d   : > { %7031 = vmatmul.mubr.bf16.gmra.mrb[20].mxu1 %v9979_v17  ;;  %v5482_v17 = vrot.slane %v9082_v60, 5  ;;  %v9345_v0 = vrot.slane %v4976_v54, 5  ;;  %v9349_v37 = vsel %vm8361_vm14, %v6515_v45, %v5468_v36  ;;  %v5470_v47 = vrot.slane %v5468_v36, 4  ;;  %v9366_v10 = vld [vmem:[#allocation2 + $0xb8] sm:$0xf] }
 0x16e   : > { %7034 = vmatprep.mubr.bf16.mxu1 %v9980_v61  ;;  %v5381_v61 = vld [vmem:[#allocation2 + $0x6c] sm:$0xe]  ;;  %v9353_v2 = vsel %vm8361_vm14, %v6516_v41, %v5475_v39  ;;  %v5477_v63 = vrot.slane %v5475_v39, 4  ;;  %v5485_v54 = vrot.slane %v9111_v53, 5  ;;  %v9984_v45 = vcombine.low %v9076_v59, %v9080_v21 }
 0x16f   : > { %7289 = vmatpush3.bf16.msra.mxu0 %v7710_v6  ;;  %v9360_v60 = vsel %vm8361_vm14, %v6517_v31, %v5482_v17  ;;  %v5484_v6 = vrot.slane %v5482_v17, 4  ;;  %v9370_v5 = vsel %vm8361_vm14, %v5470_v47, %v5471_v44  ;;  %v6518_v36 = vrot.slane %v5381_v61, 9  ;;  %v4662_v47 = vld [vmem:[#allocation2 + $0xc0] sm:$0xf]  ;;  %v9988_v21 = vld [vmem:[#allocation5_spill] sm:$0xff] }
 0x170   : > { %7290 = vmatprep.subr.bf16.mxu0 %v7713_v27  ;;  %v5489_v50 = vrot.slane %v9138_v22, 5  ;;  %v5492_v41 = vrot.slane %v9157_v16, 5  ;;  %v9986_v53 = vcombine.low %v9089_v51, %v9985_v24  ;;  %v4984_v59 = vshll.u32 %v9303_v30, 16  ;;  %v3008_v16 = vld [vmem:[#allocation2 + $0x78] sm:$0xf]  ;;  %v9987_v51 = vld [vmem:[#allocation4_spill] sm:$0xff] }
 0x171   : > { %v9383_v44 = vsel %vm8361_vm14, %v5477_v63, %v5478_v40  ;;  %v9387_v22 = vsel %vm8361_vm14, %v5484_v6, %v5485_v54  ;;  %v9399_v31 = vrot.slane %v4963_v62, 4  ;;  %v9406_v17 = vrot.slane %v4981_v43, 4 }
 0x172   : > { %7259 = vmatmul.mubr.bf16.gmra.mrb[8].mxu0 %v9151_v9  ;;  %v9389_v9 = vld [vmem:[#allocation2 + $0xbc] sm:$0x1]  ;;  %v9397_v39 = vsel %vm8361_vm14, %v6518_v36, %v5489_v50  ;;  %v5491_v40 = vrot.slane %v5489_v50, 4  ;;  %v4990_v61 = vshll.u32 %v9366_v10, 16  ;;  %v4994_v63 = vshrl.u32 %v9366_v10, 16  ;;  %v7711_v36 = vld [vmem:[#allocation2 + $0xc] sm:$0xff]  }
 0x173   : > { %7262 = vmatprep.mubr.bf16.mxu0 %v6493_v52  ;;  %7291 = vmatpush3.bf16.msra.mxu0 %v7713_v27  ;;  %v4973_v52 = vor.u32 %v9335_v46, %v9323_v34  ;;  %v7719_v27 = vld [vmem:[%s9928_s3 + $0x230] sm:$0xff]   ;;  %v3246_v62 = vshrl.u32 %v3008_v16, 16  ;;  %v3249_v54 = vshll.u32 %v3008_v16, 16  ;;  %v4955_v46 = vsel %vm7977_vm9, %v9341_v49, %v9316_v26 }
 0x174   : > { %7292 = vmatprep.subr.bf16.mxu0 %v7716_v8  ;;  %v9412_v6 = vsel %vm8361_vm14, %v5491_v40, %v5492_v41  ;;  %v9418_v43 = vrot.slane %v4984_v59, 5  ;;  %v9423_v41 = vld [vmem:[#allocation2 + $0xc4] sm:$0xf]  ;;  %v5005_v40 = vshrl.u32 %v4662_v47, 16  ;;  %v3268_v3 = vsel %vm7977_vm9, %v9988_v21, %v9987_v51  ;;  %v7722_v59 = vld [vmem:[%s9928_s3 + $0x238] sm:$0xff]  }
 0x175   : > { %7035 = vmatmul.mubr.bf16.gmra.mrb[24].mxu1 %v9984_v45  ;;  %v5382_v45 = vld [vmem:[#allocation2 + $0x78] sm:$0xe]  ;;  %v3248_v16 = vrot.slane %v3246_v62, 4  ;;  %v3251_v30 = vrot.slane %v3249_v54, 5  ;;  %v9429_v26 = vrot.slane %v4973_v52, 4  ;;  %v5008_v49 = vshll.u32 %v4662_v47, 16 }
 0x176   : > { %7038 = vmatprep.mubr.bf16.mxu1 %v9986_v53  ;;  %v5383_v53 = vld [vmem:[#allocation2 + $0x84] sm:$0xe]  ;;  %v6519_v24 = vrot.slane %v5382_v45, 9  ;;  %v5499_v54 = vrot.slane %v9192_v11, 5  ;;  %v5014_v52 = vshll.u32 %v9423_v41, 16  ;;  %v5018_v47 = vshrl.u32 %v9423_v41, 16 }
 0x177   : > { %7293 = vmatpush3.bf16.msra.mxu0 %v7716_v8  ;;  %v9989_v8 = vld [vmem:[#allocation11_spill] sm:$0xff]  ;;  %v3252_v62 = vor.u32 %v3251_v30, %v3248_v16  ;;  %v6520_v15 = vrot.slane %v5383_v53, 9  ;;  %v9990_v21 = vld [vmem:[#allocation12_spill] sm:$0xff]  ;;  %v4996_v30 = vrot.slane %v4994_v63, 4  ;;  %v4665_v16 = vld [vmem:[#allocation2 + $0xcc] sm:$0xf]  ;;  %v4987_v20 = vor.u32 %v9418_v43, %v9406_v17 }
 0x178   : > { %7294 = vmatprep.subr.bf16.mxu0 %v7719_v27  ;;  %v5496_v50 = vrot.slane %v9989_v8, 5  ;;  %v5503_v51 = vrot.slane %v9990_v21, 5  ;;  %v9991_v53 = vld [vmem:[#allocation3_spill] sm:$0xff]  ;;  %v9470_v63 = vrot.slane %v5014_v52, 5  ;;  %v9992_v21 = vsel %vm7977_vm9, %v9265_v28, %v9215_v4  ;;  %v9490_v52 = vld [vmem:[#allocation2 + $0xd0] sm:$0xf] }
 0x179   : > { %v3253_v56 = vrot.slane %v3252_v62, 4  ;;  %v5384_v28 = vld [vmem:[#allocation2 + $0x90] sm:$0xe] }
 0x17a   : > { %7263 = vmatmul.mubr.bf16.gmra.mrb[12].mxu0 %v9299_v25  ;;  %v9445_v45 = vsel %vm8361_vm14, %v6519_v24, %v5496_v50  ;;  %v5498_v8 = vrot.slane %v5496_v50, 4  ;;  %v9450_v32 = vsel %vm8361_vm14, %v6520_v15, %v5503_v51  ;;  %v5505_v11 = vrot.slane %v5503_v51, 4  ;;  %v7712_v50 = vld [vmem:[#allocation2 + $0x18] sm:$0xff]  }
 0x17b   : > { %7266 = vmatprep.mubr.bf16.mxu0 %v9301_v33  ;;  %7295 = vmatpush3.bf16.msra.mxu0 %v7719_v27  ;;  %v9453_v25 = vrot.slane %v4990_v61, 5  ;;  %v9459_v33 = vld [vmem:[#allocation2 + $0xc8] sm:$0x1]  ;;  %v5010_v27 = vrot.slane %v5008_v49, 5  ;;  %v3258_v15 = vsel %vm7977_vm9, %v3253_v56, %v9991_v53  ;;  %v6497_v51 = vcombine.low %v9992_v21, %v4931_v29  ;;  %v5385_v56 = vld [vmem:[#allocation2 + $0x9c] sm:$0xe] }
 0x17c   : > { %7296 = vmatprep.subr.bf16.mxu0 %v7722_v59  ;;  %v9457_v24 = vsel %vm8361_vm14, %v5498_v8, %v5499_v54  ;;  %v9472_v62 = vcombine.low %v3258_v15, %v3268_v3  ;;  %v7714_v54 = vld [vmem:[#allocation2 + $0x24] sm:$0xff]   ;;  %v4969_v3 = vsel %vm7977_vm9, %v9399_v31, %v9323_v34  ;;  %v5024_v4 = vshll.u32 %v9459_v33, 16 }
 0x17d   : > { %7039 = vmatmul.mubr.bf16.gmra.mrb[28].mxu1 %v6286_v18  ;;  %v5506_v18 = vrot.slane %v9200_v42, 5  ;;  %v6551_v42 = vcombine.low %v9445_v45, %v9457_v24  ;;  %v4997_v14 = vor.u32 %v4996_v30, %v9453_v25  ;;  %v9993_v29 = vsel %vm7977_vm9, %v9282_v55, %v9267_v57  ;;  %v7790_v57 = vld [vmem:[%s9928_s3 + $0x108] sm:$0xff]   ;;  %v3026_v45 = vld [vmem:[#allocation2 + $0xc0] sm:$0xf] }
 0x17e   : > { %7058 = vmatprep.mubr.bf16.mxu1 %v7711_v36  ;;  %v5007_v36 = vrot.slane %v5005_v40, 4  ;;  %v5020_v40 = vrot.slane %v5018_v47, 4  ;;  %v4979_v47 = vsel %vm7977_vm9, %v9429_v26, %v9345_v0  ;;  %v6498_v34 = vcombine.low %v9993_v29, %v4955_v46 }
 0x17f   : > { %v9468_v61 = vsel %vm8361_vm14, %v5505_v11, %v5506_v18  ;;  %7297 = vmatpush3.bf16.msra.mxu0 %v7722_v59  ;;  %v5029_v59 = vshrl.u32 %v4665_v16, 16  ;;  %v9994_v0 = vshll.u32 %v9389_v9, 16  ;;  %v5032_v26 = vshll.u32 %v4665_v16, 16  ;;  %v7717_v16 = vld [vmem:[#allocation2 + $0x3c] sm:$0xff]  }
 0x180   : > { %v6552_v49 = vcombine.low %v9450_v32, %v9468_v61  ;;  %v5011_v31 = vor.u32 %v5010_v27, %v5007_v36  ;;  %v5021_v43 = vor.u32 %v5020_v40, %v9470_v63  ;;  %v5038_v8 = vshll.u32 %v9490_v52, 16 }
 0x181   : > { %v5002_v17 = vrot.slane %v9994_v0, 5  ;;  %v6499_v55 = vcombine.low %v4969_v3, %v4979_v47  ;;  %v5042_v46 = vshrl.u32 %v9490_v52, 16  ;;  %v4988_v11 = vrot.slane %v4987_v20, 4  ;;  %v7791_v3 = vld [vmem:[%s9928_s3 + $0x110] sm:$0xff]  }
 0x182   : > { %7267 = vmatmul.mubr.bf16.gmra.mrb[16].mxu0 %v9309_v13  ;;  %v5510_v13 = vrot.slane %v9178_v35, 5  ;;  %v4998_v18 = vrot.slane %v4997_v14, 4  ;;  %v5026_v30 = vrot.slane %v5024_v4, 5  ;;  %v5513_v36 = vrot.slane %v9225_v38, 5  ;;  %v9532_v4 = vld [vmem:[#allocation2 + $0xd4] sm:$0x1] }
 0x183   : > { %7270 = vmatprep.mubr.bf16.mxu0 %v6497_v51  ;;  %v5012_v27 = vrot.slane %v5011_v31, 4  ;;  %v5031_v53 = vrot.slane %v5029_v59, 4  ;;  %v5034_v21 = vrot.slane %v5032_v26, 5  ;;  %v9521_v35 = vrot.slane %v5038_v8, 5 }
 0x184   : > { %v5512_v40 = vrot.slane %v5510_v13, 4  ;;  %v6522_v51 = vrot.slane %v5385_v56, 9  ;;  %v5044_v38 = vrot.slane %v5042_v46, 4  ;;  %v5517_v20 = vrot.slane %v9217_v12, 5  ;;  %v7718_v46 = vld [vmem:[#allocation2 + $0x48] sm:$0xff]   ;;  %v7720_v56 = vld [vmem:[#allocation2 + $0x54] sm:$0xff]  }
 0x185   : > { %7059 = vmatmul.mubr.bf16.vlgmr.msra.gmra.mrb[0].mxu1 %v7712_v50  ;;  %v7715_v50 = vld [vmem:[#allocation2 + $0x30] sm:$0xff]   ;;  %v5520_v14 = vrot.slane %v9244_v48, 5  ;;  %v4993_v29 = vsel %vm7977_vm9, %v4988_v11, %v9453_v25  ;;  %v5003_v12 = vsel %vm7977_vm9, %v4998_v18, %v5002_v17  ;;  %v5017_v48 = vsel %vm7977_vm9, %v5012_v27, %v9470_v63  ;;  %v7792_v17 = vld [vmem:[%s9928_s3 + $0x118] sm:$0xff]  }
 0x186   : > { %7338 = vmatpush3.bf16.msra.mxu1 %v9222_v19  ;;  %7062 = vmatprep.mubr.bf16.mxu1 %v7714_v54  ;;  %v6521_v19 = vrot.slane %v5384_v28, 9  ;;  %v5022_v54 = vrot.slane %v5021_v43, 4  ;;  %v9528_v47 = vsel %vm8361_vm14, %v5512_v40, %v5513_v36  ;;  %v9541_v31 = vsel %vm8361_vm14, %v6522_v51, %v5517_v20  ;;  %v7793_v63 = vld [vmem:[#allocation2 + $0x1c] sm:$0xf]  ;;  %v5387_v40 = vld [vmem:[#allocation2 + $0xb4] sm:$0xe] }
 0x187   : > { %7331 = vmatprep.subr.bf16.mxu1 %v7790_v57  ;;  %v5519_v59 = vrot.slane %v5517_v20, 4  ;;  %v5035_v0 = vor.u32 %v5034_v21, %v5031_v53  ;;  %v5045_v43 = vor.u32 %v5044_v38, %v9521_v35  ;;  %v5048_v26 = vshll.u32 %v9532_v4, 16  ;;  %v7795_v51 = vld [vmem:[#allocation2 + $0x20] sm:$0x1] }
 0x188   : > { %v9519_v15 = vsel %vm8361_vm14, %v6521_v19, %v5510_v13  ;;  %v5027_v25 = vsel %vm7977_vm9, %v5022_v54, %v5026_v30  ;;  %v5440_v8 = vrot.slane %v7793_v63, 5  ;;  %v5374_v19 = vld [vmem:[#allocation2 + $0x18] sm:$0xe]  ;;  %v6500_v13 = vcombine.low %v4993_v29, %v5003_v12  ;;  %v5375_v30 = vld [vmem:[#allocation2 + $0x24] sm:$0xe] }
 0x189   : > { %v6553_v28 = vcombine.low %v9519_v15, %v9528_v47  ;;  %v6501_v11 = vcombine.low %v5017_v48, %v5027_v25  ;;  %v5036_v18 = vrot.slane %v5035_v0, 4  ;;  %v5046_v36 = vrot.slane %v5045_v43, 4  ;;  %v7796_v29 = vld [vmem:[#allocation2 + $0x28] sm:$0xf]  ;;  %v5376_v12 = vld [vmem:[#allocation2 + $0x30] sm:$0xe] }
 0x18a   : > { %7339 = vmatpush3.bf16.msra.mxu1 %v7790_v57  ;;  %7271 = vmatmul.mubr.bf16.gmra.mrb[20].mxu0 %v6498_v34  ;;  %v9554_v34 = vsel %vm8361_vm14, %v5519_v59, %v5520_v14  ;;  %v5524_v53 = vrot.slane %v9252_v23, 5  ;;  %v6511_v54 = vrot.slane %v5374_v19, 9  ;;  %v5442_v21 = vrot.slane %v5440_v8, 4  ;;  %v7797_v48 = vld [vmem:[#allocation2 + $0x34] sm:$0xf] }
 0x18b   : > { %7332 = vmatprep.subr.bf16.mxu1 %v7791_v3  ;;  %7274 = vmatprep.mubr.bf16.mxu0 %v6499_v55  ;;  %v6554_v57 = vcombine.low %v9541_v31, %v9554_v34  ;;  %v5386_v55 = vld [vmem:[#allocation2 + $0xa8] sm:$0xe]  ;;  %v5527_v14 = vrot.slane %v9279_v58, 5  ;;  %v6512_v23 = vrot.slane %v5375_v30, 9  ;;  %v5447_v59 = vrot.slane %v7796_v29, 5 }
 0x18c   : > { %v6523_v27 = vrot.slane %v5386_v55, 9  ;;  %v5526_v20 = vrot.slane %v5524_v53, 4  ;;  %v5454_v0 = vrot.slane %v7797_v48, 5  ;;  %v6524_v25 = vrot.slane %v5387_v40, 9  ;;  %v7802_v48 = vld [vmem:[#allocation2 + $0x40] sm:$0xf] }
 0x18d   : > { %7063 = vmatmul.mubr.bf16.gmra.mrb[4].mxu1 %v7715_v50  ;;  %v5050_v50 = vrot.slane %v5048_v26, 5  ;;  %v5041_v43 = vsel %vm7977_vm9, %v5036_v18, %v9521_v35  ;;  %v5441_v63 = vsel %vm8361_vm14, %v6511_v54, %v5440_v8  ;;  %v7798_v35 = vld [vmem:[%s9928_s3 + $0x128] sm:$0xff]   ;;  %v5534_v19 = vrot.slane %v9389_v9, 5  ;;  %v5388_v54 = vld [vmem:[#allocation2 + $0xc0] sm:$0xe] }
 0x18e   : > { %7066 = vmatprep.mubr.bf16.mxu1 %v7717_v16  ;;  %7340 = vmatpush3.bf16.msra.mxu1 %v7791_v3  ;;  %v7794_v16 = vld [vmem:[%s9928_s3 + $0x120] sm:$0xff]   ;;  %v5443_v3 = vrot.slane %v7795_v51, 5  ;;  %v9567_v38 = vsel %vm8361_vm14, %v6523_v27, %v5524_v53  ;;  %v9577_v58 = vsel %vm8361_vm14, %v5526_v20, %v5527_v14  ;;  %v5456_v27 = vrot.slane %v5454_v0, 4  ;;  %v7800_v53 = vld [vmem:[#allocation2 + $0x38] sm:$0x1] }
 0x18f   : > { %7333 = vmatprep.subr.bf16.mxu1 %v7792_v17  ;;  %v5051_v26 = vsel %vm7977_vm9, %v5046_v36, %v5050_v50  ;;  %v7723_v36 = vld [vmem:[#allocation2 + $0x6c] sm:$0xff]   ;;  %v5449_v50 = vrot.slane %v5447_v59, 4  ;;  %v5457_v40 = vrot.slane %v7800_v53, 5  ;;  %v5377_v14 = vld [vmem:[#allocation2 + $0x3c] sm:$0xe] }
 0x190   : > { %v5444_v55 = vsel %vm8361_vm14, %v5442_v21, %v5443_v3  ;;  %v6502_v30 = vcombine.low %v5041_v43, %v5051_v26  ;;  %v7801_v21 = vld [vmem:[%s9928_s3 + $0x130] sm:$0xff]   ;;  %v5448_v3 = vsel %vm8361_vm14, %v6512_v23, %v5447_v59  ;;  %v6525_v43 = vrot.slane %v5388_v54, 9  ;;  %v5389_v26 = vld [vmem:[#allocation2 + $0xcc] sm:$0xe]  ;;  %v7803_v23 = vld [vmem:[%s9928_s3 + $0x138] sm:$0xff]  }
 0x191   : > { %v3005_v59 = vld [vmem:[#allocation2 + $0x6c] sm:$0xf]  ;;  %v7805_v53 = vld [vmem:[#allocation2 + $0x70] sm:$0xf] }
 0x192   : > { %7341 = vmatpush3.bf16.msra.mxu1 %v7792_v17  ;;  %7275 = vmatmul.mubr.bf16.gmra.mrb[24].mxu0 %v6500_v13  ;;  %v5531_v17 = vrot.slane %v9366_v10, 5  ;;  %v7721_v13 = vld [vmem:[#allocation2 + $0x60] sm:$0xff]   ;;  %v6513_v10 = vrot.slane %v5376_v12, 9  ;;  %v5458_v12 = vsel %vm8361_vm14, %v5456_v27, %v5457_v40  ;;  %v3222_v27 = vshrl.u32 %v3005_v59, 16 }
 0x193   : > { %7334 = vmatprep.subr.bf16.mxu1 %v7794_v16  ;;  %7278 = vmatprep.mubr.bf16.mxu0 %v6501_v11  ;;  %v5548_v40 = vrot.slane %v9532_v4, 5 }
 0x194   : > { %v9592_v8 = vsel %vm8361_vm14, %v6524_v25, %v5531_v17  ;;  %v5533_v18 = vrot.slane %v5531_v17, 4  ;;  %v5455_v20 = vsel %vm8361_vm14, %v6513_v10, %v5454_v0  ;;  %v5461_v25 = vrot.slane %v7802_v48, 5  ;;  %v7725_v10 = vld [vmem:[#allocation2 + $0x84] sm:$0xff]  }
 0x195   : > { %7067 = vmatmul.mubr.bf16.gmra.mrb[8].mxu1 %v7718_v46  ;;  %v6555_v46 = vcombine.low %v9567_v38, %v9577_v58  ;;  %v6514_v17 = vrot.slane %v5377_v14, 9  ;;  %v5538_v0 = vrot.slane %v9423_v41, 5  ;;  %v3225_v41 = vshll.u32 %v3005_v59, 16 }
 0x196   : > { %7070 = vmatprep.mubr.bf16.mxu1 %v7720_v56  ;;  %7342 = vmatpush3.bf16.msra.mxu1 %v7794_v16  ;;  %v7799_v56 = vld [vmem:[#allocation2 + $0x2c] sm:$0x1]  ;;  %v6543_v16 = vcombine.low %v5441_v63, %v5444_v55  ;;  %v9596_v9 = vsel %vm8361_vm14, %v5533_v18, %v5534_v19  ;;  %v5541_v63 = vrot.slane %v9459_v33, 5  ;;  %v7724_v55 = vld [vmem:[#allocation2 + $0x78] sm:$0xff]   ;;  %v6545_v19 = vcombine.low %v5455_v20, %v5458_v12 }
 0x197   : > { %7335 = vmatprep.subr.bf16.mxu1 %v7798_v35  ;;  %v5450_v11 = vrot.slane %v7799_v56, 5  ;;  %v6556_v51 = vcombine.low %v9592_v8, %v9596_v9  ;;  %v5463_v18 = vrot.slane %v5461_v25, 4  ;;  %v3231_v33 = vshll.u32 %v7805_v53, 16 }
 0x198   : > { %v5462_v20 = vsel %vm8361_vm14, %v6514_v17, %v5461_v25  ;;  %v3227_v12 = vrot.slane %v3225_v41, 5  ;;  %v7728_v41 = vld [vmem:[#allocation2 + $0xa8] sm:$0xff]  }
 0x199   : > { %v5451_v29 = vsel %vm8361_vm14, %v5449_v50, %v5450_v11  ;;  %v6526_v11 = vrot.slane %v5389_v26, 9  ;;  %v5545_v50 = vrot.slane %v9490_v52, 5 }
 0x19a   : > { %7343 = vmatpush3.bf16.msra.mxu1 %v7798_v35  ;;  %7279 = vmatmul.mubr.bf16.gmra.mrb[28].mxu0 %v6502_v30  ;;  %v6544_v35 = vcombine.low %v5448_v3, %v5451_v29  ;;  %v9618_v30 = vsel %vm8361_vm14, %v6525_v43, %v5538_v0  ;;  %v3224_v29 = vrot.slane %v3222_v27, 4  ;;  %v3233_v43 = vrot.slane %v3231_v33, 5 }
 0x19b   : > { %7336 = vmatprep.subr.bf16.mxu1 %v7801_v21  ;;  %7298 = vmatprep.mubr.bf16.mxu0 %v6543_v16  ;;  %v3235_v16 = vshrl.u32 %v7805_v53, 16  ;;  %v5547_v3 = vrot.slane %v5545_v50, 4  ;;  %v7729_v53 = vld [vmem:[#allocation2 + $0xb4] sm:$0xff]  }
 0x19c   : > { %v3228_v25 = vor.u32 %v3227_v12, %v3224_v29  ;;  %v3017_v29 = vld [vmem:[#allocation2 + $0x9c] sm:$0xf] }
 0x19d   : > { %7071 = vmatmul.mubr.bf16.gmra.mrb[12].mxu1 %v7721_v13  ;;  %v7804_v13 = vld [vmem:[#allocation2 + $0x44] sm:$0x1]  ;;  %v9636_v4 = vsel %vm8361_vm14, %v5547_v3, %v5548_v40  ;;  %v3237_v26 = vrot.slane %v3235_v16, 4 }
 0x19e   : > { %7074 = vmatprep.mubr.bf16.mxu1 %v7723_v36  ;;  %7344 = vmatpush3.bf16.msra.mxu1 %v7801_v21  ;;  %v5464_v56 = vrot.slane %v7804_v13, 5  ;;  %v5540_v36 = vrot.slane %v5538_v0, 4  ;;  %v9628_v21 = vsel %vm8361_vm14, %v6526_v11, %v5545_v50  ;;  %v7727_v0 = vld [vmem:[#allocation2 + $0x9c] sm:$0xff]   ;;  %v7807_v13 = vld [vmem:[#allocation2 + $0x88] sm:$0xf] }
 0x19f   : > { %7337 = vmatprep.subr.bf16.mxu1 %v7803_v23  ;;  %v6558_v48 = vcombine.low %v9628_v21, %v9636_v4  ;;  %v3238_v17 = vor.u32 %v3237_v26, %v3233_v43  ;;  %v3283_v11 = vshrl.u32 %v7807_v13, 16 }
 0x1a0   : > { %v9624_v54 = vsel %vm8361_vm14, %v5540_v36, %v5541_v63  ;;  %v5465_v14 = vsel %vm8361_vm14, %v5463_v18, %v5464_v56  ;;  %v3011_v63 = vld [vmem:[#allocation2 + $0x84] sm:$0xf]  ;;  %v3279_v56 = vshll.u32 %v7807_v13, 16  ;;  %v9995_v18 = vcombine.low %v9349_v37, %v9370_v5  ;;  %v7808_v5 = vld [vmem:[#allocation2 + $0x8c] sm:$0x1] }
 0x1a1   : > { %v6557_v52 = vcombine.low %v9618_v30, %v9624_v54  ;;  %v6546_v59 = vcombine.low %v5462_v20, %v5465_v14  ;;  %v3273_v7 = vshll.u32 %v3011_v63, 16  ;;  %v3229_v36 = vrot.slane %v3228_v25, 4 }
 0x1a2   : > { %7345 = vmatpush3.bf16.msra.mxu1 %v7803_v23  ;;  %7299 = vmatmul.mubr.bf16.vlgmr.msra.gmra.mrb[0].mxu0 %v6544_v35  ;;  %v7726_v23 = vld [vmem:[#allocation2 + $0x90] sm:$0xff]   ;;  %v3239_v50 = vrot.slane %v3238_v17, 4  ;;  %v9645_v3 = vrot.slane %v3279_v56, 5  ;;  %v3285_v20 = vrot.slane %v3283_v11, 4  ;;  %v3289_v26 = vshll.u32 %v7808_v5, 16 }
 0x1a3   : > { %7302 = vmatprep.mubr.bf16.mxu0 %v6545_v19  ;;  %v3270_v19 = vshrl.u32 %v3011_v63, 16  ;;  %v3275_v16 = vrot.slane %v3273_v7, 5  ;;  %v3234_v12 = vsel %vm7977_vm9, %v3229_v36, %v3233_v43  ;;  %v3318_v63 = vshrl.u32 %v3017_v29, 16  ;;  %v7810_v17 = vld [vmem:[#allocation2 + $0xa0] sm:$0xf] }
 0x1a4   : > { %v3321_v25 = vshll.u32 %v3017_v29, 16  ;;  %v3286_v7 = vor.u32 %v3285_v20, %v9645_v3  ;;  %v9997_v11 = vcombine.low %v9360_v60, %v9387_v22  ;;  %v3291_v36 = vrot.slane %v3289_v26, 5  ;;  %v7811_v20 = vld [vmem:[#allocation2 + $0x98] sm:$0x1]  ;;  %v7812_v22 = vld [vmem:[#allocation2 + $0xa4] sm:$0x1] }
 0x1a5   : > { %7075 = vmatmul.mubr.bf16.gmra.mrb[16].mxu1 %v7724_v55  ;;  %v7806_v55 = vld [vmem:[#allocation2 + $0x74] sm:$0x1]  ;;  %v3272_v33 = vrot.slane %v3270_v19, 4  ;;  %v9996_v19 = vcombine.low %v9353_v2, %v9383_v44  ;;  %v3337_v5 = vshll.u32 %v7812_v22, 16 }
 0x1a6   : > { %7078 = vmatprep.mubr.bf16.mxu1 %v7725_v10  ;;  %v3241_v35 = vshll.u32 %v7806_v55, 16  ;;  %v3014_v10 = vld [vmem:[#allocation2 + $0x90] sm:$0xf]  ;;  %v3327_v55 = vshll.u32 %v7810_v17, 16  ;;  %v3323_v29 = vrot.slane %v3321_v25, 5 }
 0x1a7   : > { %v3294_v40 = vshrl.u32 %v3014_v10, 16  ;;  %v3297_v14 = vshll.u32 %v3014_v10, 16  ;;  %v3276_v43 = vor.u32 %v3275_v16, %v3272_v33  ;;  %v7730_v10 = vld [vmem:[#allocation2 + $0xc0] sm:$0xff]   ;;  %v3287_v16 = vrot.slane %v3286_v7, 4  ;;  %v3023_v26 = vld [vmem:[#allocation2 + $0xb4] sm:$0xf] }
 0x1a8   : > { %v3243_v27 = vrot.slane %v3241_v35, 5  ;;  %v3331_v35 = vshrl.u32 %v7810_v17, 16  ;;  %v9660_v2 = vrot.slane %v3327_v55, 5  ;;  %v9998_v17 = vcombine.low %v9397_v39, %v9412_v6 }
 0x1a9   : > { %v3296_v13 = vrot.slane %v3294_v40, 4  ;;  %v3299_v56 = vrot.slane %v3297_v14, 5  ;;  %v3277_v33 = vrot.slane %v3276_v43, 4  ;;  %v3313_v14 = vshll.u32 %v7811_v20, 16  ;;  %v7815_v20 = vld [vmem:[#allocation2 + $0xb0] sm:$0x1] }
 0x1aa   : > { %7303 = vmatmul.mubr.bf16.gmra.mrb[4].mxu0 %v6546_v59  ;;  %v3244_v37 = vsel %vm7977_vm9, %v3239_v50, %v3243_v27  ;;  %v3333_v44 = vrot.slane %v3331_v35, 4  ;;  %v3292_v35 = vsel %vm7977_vm9, %v3287_v16, %v3291_v36  ;;  %v3366_v7 = vshrl.u32 %v3023_v26, 16 }
 0x1ab   : > { %7306 = vmatprep.mubr.bf16.mxu0 %v9995_v18  ;;  %v6359_v18 = vcombine.low %v3234_v12, %v3244_v37  ;;  %v3300_v40 = vor.u32 %v3299_v56, %v3296_v13  ;;  %v3282_v55 = vsel %vm7977_vm9, %v3277_v33, %v9645_v3  ;;  %v3315_v43 = vrot.slane %v3313_v14, 5  ;;  %v7814_v56 = vld [vmem:[#allocation2 + $0xb8] sm:$0xf] }
 0x1ac   : > { %v3369_v13 = vshll.u32 %v3023_v26, 16  ;;  %v3379_v39 = vshrl.u32 %v7814_v56, 16  ;;  %v6361_v36 = vcombine.low %v3282_v55, %v3292_v35  ;;  %v3361_v14 = vshll.u32 %v7815_v20, 16  ;;  %v7816_v26 = vld [vmem:[#allocation2 + $0xc4] sm:$0xf] }
 0x1ad   : > { %7079 = vmatmul.mubr.bf16.gmra.mrb[20].mxu1 %v7726_v23  ;;  %v7809_v23 = vld [vmem:[#allocation2 + $0x94] sm:$0xf] }
 0x1ae   : > { %7082 = vmatprep.mubr.bf16.mxu1 %v7727_v0  ;;  %v3303_v59 = vshll.u32 %v7809_v23, 16  ;;  %v3307_v0 = vshrl.u32 %v7809_v23, 16  ;;  %v3371_v33 = vrot.slane %v3369_v13, 5  ;;  %v3363_v32 = vrot.slane %v3361_v14, 5 }
 0x1b0   : > { %v9658_v50 = vrot.slane %v3303_v59, 5  ;;  %v3309_v27 = vrot.slane %v3307_v0, 4  ;;  %v3334_v59 = vor.u32 %v3333_v44, %v9660_v2  ;;  %v7813_v0 = vld [vmem:[#allocation2 + $0xac] sm:$0xf] }
 0x1b1   : > { %v3355_v25 = vshrl.u32 %v7813_v0, 16 }
 0x1b2   : > { %7307 = vmatmul.mubr.bf16.gmra.mrb[8].mxu0 %v9996_v19  ;;  %v3310_v60 = vor.u32 %v3309_v27, %v9658_v50  ;;  %v3301_v19 = vrot.slane %v3300_v40, 4  ;;  %v3335_v3 = vrot.slane %v3334_v59, 4  ;;  %v3381_v40 = vrot.slane %v3379_v39, 4  ;;  %v7818_v39 = vld [vmem:[#allocation2 + $0xc8] sm:$0x1] }
 0x1b3   : > { %7310 = vmatprep.mubr.bf16.mxu0 %v9997_v11  ;;  %v3375_v11 = vshll.u32 %v7814_v56, 16  ;;  %v3357_v44 = vrot.slane %v3355_v25, 4  ;;  %v3403_v59 = vshrl.u32 %v7816_v26, 16 }
 0x1b4   : > { %v3311_v6 = vrot.slane %v3310_v60, 4  ;;  %v3306_v24 = vsel %vm7977_vm9, %v3301_v19, %v9658_v50  ;;  %v3390_v50 = vshrl.u32 %v3026_v45, 16 }
 0x1b5   : > { %7083 = vmatmul.mubr.bf16.gmra.mrb[24].mxu1 %v7728_v41  ;;  %v3320_v41 = vrot.slane %v3318_v63, 4  ;;  %v3351_v63 = vshll.u32 %v7813_v0, 16  ;;  %v3377_v16 = vrot.slane %v3375_v11, 5  ;;  %v7817_v0 = vld [vmem:[#allocation2 + $0xbc] sm:$0x1] }
 0x1b6   : > { %7086 = vmatprep.mubr.bf16.mxu1 %v7729_v53  ;;  %v3020_v53 = vld [vmem:[#allocation2 + $0xa8] sm:$0xf]  ;;  %v3392_v61 = vrot.slane %v3390_v50, 4 }
 0x1b7   : > { %v3342_v12 = vshrl.u32 %v3020_v53, 16  ;;  %v3345_v37 = vshll.u32 %v3020_v53, 16  ;;  %v3324_v23 = vor.u32 %v3323_v29, %v3320_v41  ;;  %v3353_v29 = vrot.slane %v3351_v63, 5 }
 0x1b8   : > { %v3368_v53 = vrot.slane %v3366_v7, 4  ;;  %v3385_v63 = vshll.u32 %v7817_v0, 16 }
 0x1b9   : > { %v3347_v27 = vrot.slane %v3345_v37, 5  ;;  %v3325_v41 = vrot.slane %v3324_v23, 4  ;;  %v3393_v37 = vshll.u32 %v3026_v45, 16  ;;  %v3399_v23 = vshll.u32 %v7816_v26, 16 }
 0x1ba   : > { %7311 = vmatmul.mubr.bf16.gmra.mrb[12].mxu0 %v9998_v17  ;;  %v3387_v56 = vrot.slane %v3385_v63, 5 }
 0x1bb   : > { %7314 = vmatprep.mubr.bf16.mxu0 %v6551_v42  ;;  %v3316_v42 = vsel %vm7977_vm9, %v3311_v6, %v3315_v43  ;;  %v3330_v60 = vsel %vm7977_vm9, %v3325_v41, %v9660_v2  ;;  %v3382_v2 = vor.u32 %v3381_v40, %v3377_v16  ;;  %v3401_v19 = vrot.slane %v3399_v23, 5 }
 0x1bc   : > { %v6362_v25 = vcombine.low %v3306_v24, %v3316_v42  ;;  %v3405_v43 = vrot.slane %v3403_v59, 4  ;;  %v3409_v6 = vshll.u32 %v7818_v39, 16 }
 0x1bd   : > { %7087 = vmatmul.mubr.bf16.gmra.mrb[28].mxu1 %v7730_v10  ;;  %v3339_v10 = vrot.slane %v3337_v5, 5  ;;  %v3383_v13 = vrot.slane %v3382_v2, 4 }
 0x1be   : > { %7122 = vmatprep.mubr.bf16.mxu1 %v6359_v18  ;;  %v3344_v18 = vrot.slane %v3342_v12, 4  ;;  %v3358_v12 = vor.u32 %v3357_v44, %v3353_v29  ;;  %v3406_v11 = vor.u32 %v3405_v43, %v3401_v19  ;;  %v3411_v41 = vrot.slane %v3409_v6, 5 }
 0x1bf   : > { %v3340_v22 = vsel %vm7977_vm9, %v3335_v3, %v3339_v10 }
 0x1c0   : > { %v3348_v5 = vor.u32 %v3347_v27, %v3344_v18  ;;  %v6363_v17 = vcombine.low %v3330_v60, %v3340_v22  ;;  %v3359_v35 = vrot.slane %v3358_v12, 4  ;;  %v3388_v18 = vsel %vm7977_vm9, %v3383_v13, %v3387_v56 }
 0x1c1   : > { %v3407_v27 = vrot.slane %v3406_v11, 4 }
 0x1c2   : > { %7315 = vmatmul.mubr.bf16.gmra.mrb[16].mxu0 %v6552_v49  ;;  %v3349_v55 = vrot.slane %v3348_v5, 4  ;;  %v3395_v49 = vrot.slane %v3393_v37, 5  ;;  %v3364_v47 = vsel %vm7977_vm9, %v3359_v35, %v3363_v32 }
 0x1c3   : > { %7318 = vmatprep.mubr.bf16.mxu0 %v6553_v28  ;;  %v3412_v58 = vsel %vm7977_vm9, %v3407_v27, %v3411_v41 }
 0x1c4   : > { %v3354_v15 = vsel %vm7977_vm9, %v3349_v55, %v3353_v29  ;;  %v3396_v28 = vor.u32 %v3395_v49, %v3392_v61 }
 0x1c5   : > { %7123 = vmatmul.mubr.bf16.vlgmr.msra.gmra.mrb[16].mxu1 %v9472_v62  ;;  %v3372_v62 = vor.u32 %v3371_v33, %v3368_v53  ;;  %v6364_v31 = vcombine.low %v3354_v15, %v3364_v47 }
 0x1c6   : > { %7126 = vmatprep.mubr.bf16.mxu1 %v6361_v36 }
 0x1c7   : > { %v3373_v7 = vrot.slane %v3372_v62, 4 }
 0x1c9   : > { %v3378_v10 = vsel %vm7977_vm9, %v3373_v7, %v3377_v16 }
 0x1ca   : > { %7319 = vmatmul.mubr.bf16.gmra.mrb[20].mxu0 %v6554_v57  ;;  %v6365_v34 = vcombine.low %v3378_v10, %v3388_v18  ;;  %v3397_v57 = vrot.slane %v3396_v28, 4 }
 0x1cb   : > { %7322 = vmatprep.mubr.bf16.mxu0 %v6555_v46 }
 0x1cc   : > { %v3402_v38 = vsel %vm7977_vm9, %v3397_v57, %v3401_v19 }
 0x1cd   : > { %7127 = vmatmul.mubr.bf16.gmra.mrb[20].mxu1 %v6362_v25  ;;  %v6366_v46 = vcombine.low %v3402_v38, %v3412_v58 }
 0x1ce   : > { %7130 = vmatprep.mubr.bf16.mxu1 %v6363_v17 }
 0x1d2   : > { %7323 = vmatmul.mubr.bf16.gmra.mrb[24].mxu0 %v6556_v51 }
 0x1d3   : > { %7326 = vmatprep.mubr.bf16.mxu0 %v6557_v52 }
 0x1d5   : > { %7131 = vmatmul.mubr.bf16.gmra.mrb[24].mxu1 %v6364_v31 }
 0x1d6   : > { %7134 = vmatprep.mubr.bf16.mxu1 %v6365_v34 }
 0x1da   : > { %7327 = vmatmul.mubr.bf16.gmra.mrb[28].mxu0 %v6558_v48 }
 0x1dd   : > { %7135 = vmatmul.mubr.bf16.gmra.mrb[28].mxu1 %v6366_v46 }
 0x258   : > { %v7060_v3 = vpop.f32.mrb[0].mxu1 }
 0x259   : > { %v2822_v8 = vpop.f32.mrb[1].mxu1 }
 0x25a   : > { %v7061_v9 = vpop.f32.mrb[2].mxu1 }
 0x25b   : > { %v2825_v51 = vpop.f32.mrb[3].mxu1 }
 0x260   : > { %v7064_v29 = vpop.f32.mrb[4].mxu1 }
 0x261   : > { %v2838_v44 = vpop.f32.mrb[5].mxu1 }
 0x262   : > { %v7065_v36 = vpop.f32.mrb[6].mxu1 }
 0x263   : > { %v2841_v1 = vpop.f32.mrb[7].mxu1 }
 0x268   : > { %v7068_v53 = vpop.f32.mrb[8].mxu1 }
 0x269   : > { %v2854_v33 = vpop.f32.mrb[9].mxu1 }
 0x26a   : > { %v7069_v16 = vpop.f32.mrb[10].mxu1 }
 0x26b   : > { %v2857_v30 = vpop.f32.mrb[11].mxu1 }
 0x270   : > { %v7072_v54 = vpop.f32.mrb[12].mxu1 }
 0x271   : > { %v2870_v52 = vpop.f32.mrb[13].mxu1 }
 0x272   : > { %v7073_v40 = vpop.f32.mrb[14].mxu1 }
 0x273   : > { %v2873_v45 = vpop.f32.mrb[15].mxu1 }
 0x275   : > { %v7300_v21 = vpop.f32.mrb[0].mxu0 }
 0x276   : > { %v9725_v4 = vadd.f32 %v7300_v21, %v7060_v3  ;;  %v5713_v48 = vpop.f32.mrb[1].mxu0 }
 0x277   : > { %v9727_v24 = vadd.f32 %v5713_v48, %v2822_v8  ;;  %v7301_v42 = vpop.f32.mrb[2].mxu0 }
 0x278   : > { %6015 = vst [vmem:[%s9723_s21 + $0x10] sm:$0xff] %v9725_v4  ;;  %v9731_v20 = vadd.f32 %v7301_v42, %v7061_v9  ;;  %v5716_v14 = vpop.f32.mrb[3].mxu0 }
 0x279   : > { %6013 = vst [vmem:[%s9723_s21] sm:$0xff] %v9727_v24  ;;  %v9735_v60 = vadd.f32 %v5716_v14, %v2825_v51 }
 0x27a   : > { %6016 = vst [vmem:[%s9723_s21 + $0x18] sm:$0xff] %v9731_v20 }
 0x27b   : > { %v5872_v22 = vadd.f32 %v9735_v60, %v9727_v24  ;;  %6014 = vst [vmem:[%s9723_s21 + $0x8] sm:$0xff] %v9735_v60 }
 0x27d   : > { %v5873_v5 = vadd.f32 %v9725_v4, %v5872_v22  ;;  %v7304_v12 = vpop.f32.mrb[4].mxu0 }
 0x27e   : > { %v9744_v50 = vadd.f32 %v7304_v12, %v7064_v29  ;;  %v5729_v37 = vpop.f32.mrb[5].mxu0 }
 0x27f   : > { %v9746_v26 = vadd.f32 %v5729_v37, %v2838_v44  ;;  %v5874_v23 = vadd.f32 %v9731_v20, %v5873_v5  ;;  %v7305_v59 = vpop.f32.mrb[6].mxu0 }
 0x280   : > { %6019 = vst [vmem:[%s9723_s21 + $0x30] sm:$0xff] %v9744_v50  ;;  %v9751_v62 = vadd.f32 %v7305_v59, %v7065_v36  ;;  %v5732_v2 = vpop.f32.mrb[7].mxu0 }
 0x281   : > { %v5875_v0 = vadd.f32 %v9746_v26, %v5874_v23  ;;  %6017 = vst [vmem:[%s9723_s21 + $0x20] sm:$0xff] %v9746_v26  ;;  %v9756_v63 = vadd.f32 %v5732_v2, %v2841_v1 }
 0x282   : > { %6020 = vst [vmem:[%s9723_s21 + $0x38] sm:$0xff] %v9751_v62 }
 0x283   : > { %v5876_v25 = vadd.f32 %v9756_v63, %v5875_v0  ;;  %6018 = vst [vmem:[%s9723_s21 + $0x28] sm:$0xff] %v9756_v63 }
 0x285   : > { %v5877_v17 = vadd.f32 %v9744_v50, %v5876_v25  ;;  %v7308_v55 = vpop.f32.mrb[8].mxu0 }
 0x286   : > { %v9764_v35 = vadd.f32 %v7308_v55, %v7068_v53  ;;  %v5745_v32 = vpop.f32.mrb[9].mxu0 }
 0x287   : > { %v9766_v61 = vadd.f32 %v5745_v32, %v2854_v33  ;;  %v5878_v49 = vadd.f32 %v9751_v62, %v5877_v17  ;;  %v7309_v19 = vpop.f32.mrb[10].mxu0 }
 0x288   : > { %6023 = vst [vmem:[%s9723_s21 + $0x50] sm:$0xff] %v9764_v35  ;;  %v9771_v43 = vadd.f32 %v7309_v19, %v7069_v16  ;;  %v5748_v7 = vpop.f32.mrb[11].mxu0 }
 0x289   : > { %v5879_v13 = vadd.f32 %v9766_v61, %v5878_v49  ;;  %6021 = vst [vmem:[%s9723_s21 + $0x40] sm:$0xff] %v9766_v61  ;;  %v9776_v56 = vadd.f32 %v5748_v7, %v2857_v30 }
 0x28a   : > { %6024 = vst [vmem:[%s9723_s21 + $0x58] sm:$0xff] %v9771_v43 }
 0x28b   : > { %v5880_v15 = vadd.f32 %v9776_v56, %v5879_v13  ;;  %6022 = vst [vmem:[%s9723_s21 + $0x48] sm:$0xff] %v9776_v56 }
 0x28d   : > { %v5881_v47 = vadd.f32 %v9764_v35, %v5880_v15  ;;  %v7312_v28 = vpop.f32.mrb[12].mxu0 }
 0x28e   : > { %v9784_v11 = vadd.f32 %v7312_v28, %v7072_v54  ;;  %v5761_v39 = vpop.f32.mrb[13].mxu0 }
 0x28f   : > { %v9786_v6 = vadd.f32 %v5761_v39, %v2870_v52  ;;  %v5882_v10 = vadd.f32 %v9771_v43, %v5881_v47  ;;  %v7313_v18 = vpop.f32.mrb[14].mxu0 }
 0x290   : > { %6027 = vst [vmem:[%s9723_s21 + $0x70] sm:$0xff] %v9784_v11  ;;  %v9791_v31 = vadd.f32 %v7313_v18, %v7073_v40  ;;  %v5764_v34 = vpop.f32.mrb[15].mxu0 }
 0x291   : > { %v5883_v57 = vadd.f32 %v9786_v6, %v5882_v10  ;;  %6025 = vst [vmem:[%s9723_s21 + $0x60] sm:$0xff] %v9786_v6  ;;  %v9796_v27 = vadd.f32 %v5764_v34, %v2873_v45 }
 0x292   : > { %6028 = vst [vmem:[%s9723_s21 + $0x78] sm:$0xff] %v9791_v31 }
 0x293   : > { %v5884_v41 = vadd.f32 %v9796_v27, %v5883_v57  ;;  %6026 = vst [vmem:[%s9723_s21 + $0x68] sm:$0xff] %v9796_v27 }
 0x295   : > { %v5885_v58 = vadd.f32 %v9784_v11, %v5884_v41  ;;  %v7316_v3 = vpop.f32.mrb[16].mxu0 }
 0x296   : > { %v5777_v51 = vpop.f32.mrb[17].mxu0 }
 0x297   : > { %v5886_v44 = vadd.f32 %v9791_v31, %v5885_v58  ;;  %v7317_v1 = vpop.f32.mrb[18].mxu0 }
 0x298   : > { %v7124_v38 = vpop.f32.mrb[16].mxu1  ;;  %v5780_v33 = vpop.f32.mrb[19].mxu0 }
 0x299   : > { %v3640_v46 = vpop.f32.mrb[17].mxu1  ;;  %v9804_v8 = vadd.f32 %v7316_v3, %v7124_v38 }
 0x29a   : > { %v7125_v9 = vpop.f32.mrb[18].mxu1  ;;  %v9806_v29 = vadd.f32 %v5777_v51, %v3640_v46 }
 0x29b   : > { %v3643_v36 = vpop.f32.mrb[19].mxu1  ;;  %6031 = vst [vmem:[%s9723_s21 + $0x90] sm:$0xff] %v9804_v8  ;;  %v9811_v53 = vadd.f32 %v7317_v1, %v7125_v9 }
 0x29c   : > { %v5887_v16 = vadd.f32 %v9806_v29, %v5886_v44  ;;  %6029 = vst [vmem:[%s9723_s21 + $0x80] sm:$0xff] %v9806_v29  ;;  %v9816_v30 = vadd.f32 %v5780_v33, %v3643_v36 }
 0x29d   : > { %6032 = vst [vmem:[%s9723_s21 + $0x98] sm:$0xff] %v9811_v53  ;;  %v7320_v21 = vpop.f32.mrb[20].mxu0 }
 0x29e   : > { %v5888_v54 = vadd.f32 %v9816_v30, %v5887_v16  ;;  %6030 = vst [vmem:[%s9723_s21 + $0x88] sm:$0xff] %v9816_v30  ;;  %v5793_v14 = vpop.f32.mrb[21].mxu0 }
 0x29f   : > { %v7321_v37 = vpop.f32.mrb[22].mxu0 }
 0x2a0   : > { %v7128_v52 = vpop.f32.mrb[20].mxu1  ;;  %v5889_v40 = vadd.f32 %v9804_v8, %v5888_v54  ;;  %v5796_v59 = vpop.f32.mrb[23].mxu0 }
 0x2a1   : > { %v3656_v45 = vpop.f32.mrb[21].mxu1  ;;  %v9824_v48 = vadd.f32 %v7320_v21, %v7128_v52 }
 0x2a2   : > { %v7129_v42 = vpop.f32.mrb[22].mxu1  ;;  %v9826_v22 = vadd.f32 %v5793_v14, %v3656_v45  ;;  %v5890_v5 = vadd.f32 %v9811_v53, %v5889_v40 }
 0x2a3   : > { %v3659_v12 = vpop.f32.mrb[23].mxu1  ;;  %6035 = vst [vmem:[%s9723_s21 + $0xb0] sm:$0xff] %v9824_v48  ;;  %v9831_v23 = vadd.f32 %v7321_v37, %v7129_v42 }
 0x2a4   : > { %v5891_v2 = vadd.f32 %v9826_v22, %v5890_v5  ;;  %6033 = vst [vmem:[%s9723_s21 + $0xa0] sm:$0xff] %v9826_v22  ;;  %v9836_v0 = vadd.f32 %v5796_v59, %v3659_v12 }
 0x2a5   : > { %6036 = vst [vmem:[%s9723_s21 + $0xb8] sm:$0xff] %v9831_v23  ;;  %v7324_v49 = vpop.f32.mrb[24].mxu0 }
 0x2a6   : > { %v5892_v25 = vadd.f32 %v9836_v0, %v5891_v2  ;;  %6034 = vst [vmem:[%s9723_s21 + $0xa8] sm:$0xff] %v9836_v0  ;;  %v5809_v13 = vpop.f32.mrb[25].mxu0 }
 0x2a7   : > { %v7325_v39 = vpop.f32.mrb[26].mxu0 }
 0x2a8   : > { %v7132_v17 = vpop.f32.mrb[24].mxu1  ;;  %v5893_v55 = vadd.f32 %v9824_v48, %v5892_v25  ;;  %v5812_v18 = vpop.f32.mrb[27].mxu0 }
 0x2a9   : > { %v3672_v32 = vpop.f32.mrb[25].mxu1  ;;  %v9844_v19 = vadd.f32 %v7324_v49, %v7132_v17 }
 0x2aa   : > { %v7133_v7 = vpop.f32.mrb[26].mxu1  ;;  %v7371_v15 = vadd.f32 %v5809_v13, %v3672_v32  ;;  %v5894_v47 = vadd.f32 %v9831_v23, %v5893_v55 }
 0x2ab   : > { %v3675_v28 = vpop.f32.mrb[27].mxu1  ;;  %6039 = vst [vmem:[%s9723_s21 + $0xd0] sm:$0xff] %v9844_v19  ;;  %v7372_v10 = vadd.f32 %v7325_v39, %v7133_v7 }
 0x2ac   : > { %v5895_v34 = vadd.f32 %v7371_v15, %v5894_v47  ;;  %6037 = vst [vmem:[%s9723_s21 + $0xc0] sm:$0xff] %v7371_v15  ;;  %v7373_v57 = vadd.f32 %v5812_v18, %v3675_v28 }
 0x2ad   : > { %6040 = vst [vmem:[%s9723_s21 + $0xd8] sm:$0xff] %v7372_v10  ;;  %v7328_v3 = vpop.f32.mrb[28].mxu0 }
 0x2ae   : > { %v5896_v41 = vadd.f32 %v7373_v57, %v5895_v34  ;;  %6038 = vst [vmem:[%s9723_s21 + $0xc8] sm:$0xff] %v7373_v57  ;;  %v5825_v44 = vpop.f32.mrb[29].mxu0 }
 0x2af   : > { %v7329_v16 = vpop.f32.mrb[30].mxu0 }
 0x2b0   : > { %v7136_v38 = vpop.f32.mrb[28].mxu1  ;;  %v5897_v58 = vadd.f32 %v9844_v19, %v5896_v41  ;;  %v5828_v52 = vpop.f32.mrb[31].mxu0 }
 0x2b1   : > { %v3688_v46 = vpop.f32.mrb[29].mxu1  ;;  %v7374_v9 = vadd.f32 %v7328_v3, %v7136_v38 }
 0x2b2   : > { %v7137_v51 = vpop.f32.mrb[30].mxu1  ;;  %v7375_v36 = vadd.f32 %v5825_v44, %v3688_v46  ;;  %v5898_v1 = vadd.f32 %v7372_v10, %v5897_v58 }
 0x2b3   : > { %v3691_v33 = vpop.f32.mrb[31].mxu1  ;;  %6043 = vst [vmem:[%s9723_s21 + $0xf0] sm:$0xff] %v7374_v9  ;;  %v7376_v54 = vadd.f32 %v7329_v16, %v7137_v51 }
 0x2b4   : > { %v5899_v40 = vadd.f32 %v7375_v36, %v5898_v1  ;;  %6041 = vst [vmem:[%s9723_s21 + $0xe0] sm:$0xff] %v7375_v36  ;;  %v7377_v45 = vadd.f32 %v5828_v52, %v3691_v33 }
 0x2b5   : > { %6044 = vst [vmem:[%s9723_s21 + $0xf8] sm:$0xff] %v7376_v54 }
 0x2b6   : > { %v5900_v21 = vadd.f32 %v7377_v45, %v5899_v40  ;;  %6042 = vst [vmem:[%s9723_s21 + $0xe8] sm:$0xff] %v7377_v45 }
 0x2b8   : > { %v5901_v42 = vadd.f32 %v7374_v9, %v5900_v21 }
 0x2ba   : > { %v5902_v14 = vadd.f32 %v7376_v54, %v5901_v42 }
 0x2bc   : > { %v5903_v5 = vrot.slane %v5902_v14, 4 }
 0x2be   : > { %v5904_v12 = vadd.f32 %v5903_v5, %v5902_v14 }
 0x2c0   : > { %v5905_v37 = vrot.slane %v5904_v12, 2 }
 0x2c2   : > { %v5906_v59 = vadd.f32 %v5905_v37, %v5904_v12 }
 0x2c4   : > { %v5907_v2 = vrot.slane %v5906_v59, 1 }
 0x2c6   : > { %v5908_v25 = vadd.f32 %v5907_v2, %v5906_v59 }
 0x2c8   : > { %v5909_v17 = vmul.f32 0.00390625, %v5908_v25  ;;  %5942 = vst [vmem:[%s9861_s26] sm:$0x1] %v5908_v25 }
 0x2ca   : > { %v5918_v55 = vsub.f32 %v9766_v61, %v5909_v17  ;;  %v5919_v32 = vsub.f32 %v9776_v56, %v5909_v17  ;;  %v5921_v49 = vsub.f32 %v9771_v43, %v5909_v17  ;;  %v5922_v7 = vsub.f32 %v9786_v6, %v5909_v17 }
 0x2cb   : > { %v5923_v13 = vsub.f32 %v9796_v27, %v5909_v17  ;;  %v5924_v47 = vsub.f32 %v9784_v11, %v5909_v17  ;;  %v5925_v28 = vsub.f32 %v9791_v31, %v5909_v17  ;;  %v5926_v39 = vsub.f32 %v9806_v29, %v5909_v17 }
 0x2cc   : > { %v5927_v18 = vsub.f32 %v9816_v30, %v5909_v17  ;;  %v5928_v34 = vsub.f32 %v9804_v8, %v5909_v17  ;;  %v5929_v61 = vsub.f32 %v9811_v53, %v5909_v17  ;;  %v5930_v56 = vsub.f32 %v9826_v22, %v5909_v17 }
 0x2cd   : > { %v5931_v43 = vsub.f32 %v9836_v0, %v5909_v17  ;;  %v5932_v6 = vsub.f32 %v9824_v48, %v5909_v17  ;;  %v5933_v27 = vsub.f32 %v9831_v23, %v5909_v17  ;;  %v9879_v41 = vsub.f32 %v7371_v15, %v5909_v17 }
 0x2ce   : > { %v9881_v11 = vsub.f32 %v7373_v57, %v5909_v17  ;;  %v9884_v31 = vsub.f32 %v9844_v19, %v5909_v17  ;;  %v9886_v29 = vsub.f32 %v7372_v10, %v5909_v17  ;;  %v9888_v8 = vsub.f32 %v7375_v36, %v5909_v17 }
 0x2cf   : > { %v9890_v53 = vsub.f32 %v7377_v45, %v5909_v17  ;;  %v9892_v30 = vsub.f32 %v7374_v9, %v5909_v17  ;;  %v9894_v22 = vsub.f32 %v7376_v54, %v5909_v17  ;;  %v5910_v48 = vsub.f32 %v9727_v24, %v5909_v17 }
 0x2d0   : > { %v5911_v23 = vsub.f32 %v9735_v60, %v5909_v17  ;;  %v5912_v0 = vsub.f32 %v9725_v4, %v5909_v17  ;;  %v5913_v19 = vsub.f32 %v9731_v20, %v5909_v17  ;;  %v5914_v10 = vsub.f32 %v9746_v26, %v5909_v17 }
 0x2d1   : > { %v5943_v15 = vmul.f32 %v5910_v48, %v5910_v48  ;;  %v5915_v46 = vsub.f32 %v9756_v63, %v5909_v17  ;;  %v5916_v51 = vsub.f32 %v9744_v50, %v5909_v17  ;;  %v5917_v60 = vsub.f32 %v9751_v62, %v5909_v17 }
 0x2d2   : > { %v5944_v57 = vmul.f32 %v5911_v23, %v5911_v23  ;;  %v5945_v38 = vmul.f32 %v5912_v0, %v5912_v0  ;;  %v5946_v3 = vmul.f32 %v5913_v19, %v5913_v19  ;;  %v5947_v44 = vmul.f32 %v5914_v10, %v5914_v10 }
 0x2d3   : > { %v5948_v36 = vmul.f32 %v5915_v46, %v5915_v46  ;;  %v5949_v1 = vmul.f32 %v5916_v51, %v5916_v51  ;;  %v5950_v16 = vmul.f32 %v5917_v60, %v5917_v60  ;;  %v5920_v26 = vsub.f32 %v9764_v35, %v5909_v17 }
 0x2d4   : > { %v5975_v58 = vadd.f32 %v5944_v57, %v5943_v15  ;;  %v5951_v54 = vmul.f32 %v5918_v55, %v5918_v55  ;;  %v5952_v40 = vmul.f32 %v5919_v32, %v5919_v32  ;;  %v5954_v42 = vmul.f32 %v5921_v49, %v5921_v49 }
 0x2d5   : > { %v5953_v45 = vmul.f32 %v5920_v26, %v5920_v26  ;;  %v5955_v14 = vmul.f32 %v5922_v7, %v5922_v7  ;;  %v5956_v12 = vmul.f32 %v5923_v13, %v5923_v13  ;;  %v5957_v37 = vmul.f32 %v5924_v47, %v5924_v47 }
 0x2d6   : > { %v5976_v9 = vadd.f32 %v5975_v58, %v5945_v38  ;;  %v5958_v2 = vmul.f32 %v5925_v28, %v5925_v28  ;;  %v5959_v48 = vmul.f32 %v5926_v39, %v5926_v39  ;;  %v5960_v0 = vmul.f32 %v5927_v18, %v5927_v18 }
 0x2d7   : > { %v5961_v17 = vmul.f32 %v5928_v34, %v5928_v34  ;;  %v5962_v32 = vmul.f32 %v5929_v61, %v5929_v61  ;;  %v5963_v57 = vmul.f32 %v5930_v56, %v5930_v56  ;;  %v5964_v49 = vmul.f32 %v5931_v43, %v5931_v43 }
 0x2d8   : > { %v5977_v24 = vadd.f32 %v5976_v9, %v5946_v3  ;;  %v5965_v7 = vmul.f32 %v5932_v6, %v5932_v6  ;;  %v5966_v13 = vmul.f32 %v5933_v27, %v5933_v27  ;;  %v5967_v47 = vmul.f32 %v9879_v41, %v9879_v41 }
 0x2d9   : > { %v5968_v39 = vmul.f32 %v9881_v11, %v9881_v11  ;;  %v5969_v34 = vmul.f32 %v9884_v31, %v9884_v31  ;;  %v5970_v56 = vmul.f32 %v9886_v29, %v9886_v29  ;;  %v5971_v6 = vmul.f32 %v9888_v8, %v9888_v8 }
 0x2da   : > { %v5978_v4 = vadd.f32 %v5977_v24, %v5947_v44  ;;  %v5972_v41 = vmul.f32 %v9890_v53, %v9890_v53  ;;  %v5973_v11 = vmul.f32 %v9892_v30, %v9892_v30  ;;  %v5974_v31 = vmul.f32 %v9894_v22, %v9894_v22 }
 0x2dc   : > { %v5979_v33 = vadd.f32 %v5978_v4, %v5948_v36 }
 0x2de   : > { %v5980_v20 = vadd.f32 %v5979_v33, %v5949_v1 }
 0x2e0   : > { %v5981_v52 = vadd.f32 %v5980_v20, %v5950_v16 }
 0x2e2   : > { %v5982_v63 = vadd.f32 %v5981_v52, %v5951_v54 }
 0x2e4   : > { %v5983_v21 = vadd.f32 %v5982_v63, %v5952_v40 }
 0x2e6   : > { %v5984_v50 = vadd.f32 %v5983_v21, %v5953_v45 }
 0x2e8   : > { %v5985_v5 = vadd.f32 %v5984_v50, %v5954_v42 }
 0x2ea   : > { %v5986_v62 = vadd.f32 %v5985_v5, %v5955_v14 }
 0x2ec   : > { %v5987_v59 = vadd.f32 %v5986_v62, %v5956_v12 }
 0x2ee   : > { %v5988_v25 = vadd.f32 %v5987_v59, %v5957_v37 }
 0x2f0   : > { %v5989_v23 = vadd.f32 %v5988_v25, %v5958_v2 }
 0x2f2   : > { %v5990_v35 = vadd.f32 %v5989_v23, %v5959_v48 }
 0x2f4   : > { %v5991_v55 = vadd.f32 %v5990_v35, %v5960_v0 }
 0x2f6   : > { %v5992_v15 = vadd.f32 %v5991_v55, %v5961_v17 }
 0x2f8   : > { %v5993_v19 = vadd.f32 %v5992_v15, %v5962_v32 }
 0x2fa   : > { %v5994_v10 = vadd.f32 %v5993_v19, %v5963_v57 }
 0x2fc   : > { %v5995_v38 = vadd.f32 %v5994_v10, %v5964_v49 }
 0x2fe   : > { %v5996_v58 = vadd.f32 %v5995_v38, %v5965_v7 }
 0x300   : > { %v5997_v28 = vadd.f32 %v5996_v58, %v5966_v13 }
 0x302   : > { %v5998_v18 = vadd.f32 %v5997_v28, %v5967_v47 }
 0x304   : > { %v5999_v61 = vadd.f32 %v5998_v18, %v5968_v39 }
 0x306   : > { %v6000_v43 = vadd.f32 %v5999_v61, %v5969_v34 }
 0x308   : > { %v6001_v27 = vadd.f32 %v6000_v43, %v5970_v56 }
 0x30a   : > { %v6002_v46 = vadd.f32 %v6001_v27, %v5971_v6 }
 0x30c   : > { %v6003_v3 = vadd.f32 %v6002_v46, %v5972_v41 }
 0x30e   : > { %v6004_v9 = vadd.f32 %v6003_v3, %v5973_v11 }
 0x310   : > { %v6005_v51 = vadd.f32 %v6004_v9, %v5974_v31 }
 0x312   : > { %v6006_v29 = vrot.slane %v6005_v51, 4 }
 0x314   : > { %v6007_v44 = vadd.f32 %v6006_v29, %v6005_v51 }
 0x316   : > { %v6008_v24 = vrot.slane %v6007_v44, 2 }
 0x318   : > { %v6009_v60 = vadd.f32 %v6008_v24, %v6007_v44 }
 0x31a   : > { %v6010_v36 = vrot.slane %v6009_v60, 1 }
 0x31c   : > { %v6011_v8 = vadd.f32 %v6010_v36, %v6009_v60 }
 0x31e   : > { %6012 = vst [vmem:[%s9861_s26 + $0x1] sm:$0x1] %v6011_v8 }
 0x31f PF: > { %s16_s18 = sadd.s32 1, %s7825_s18  }
 0x320   : > { %p13_p4 = scmp.ge.s32.totalorder %s16_s18, 4  }
 0x322   :  { %15 = sbr.rel (!%p13_p4) target bundleno = 1 (0x1), region = 89 }

</bundles_post_ra>
